<compile_context>
chip_gen: v7x
topology: tpu7x:2x2x1
jax: 0.10.0
libtpu: 0.0.40
codegen_flags: <defaults>
</compile_context>

<pallas_src>
import jax
import jax.numpy as jnp
from jax.experimental import pallas as pl
from jax.experimental.pallas import tpu as pltpu


def _round_up(x, m):
    return ((x + m - 1) // m) * m


def _pad_gates(a, H, H_pad):
    """Pad the trailing gate dim (..., 3H) -> (..., 3*H_pad); each gate zero-padded."""
    if H_pad == H:
        return a
    pad = [(0, 0)] * (a.ndim - 1) + [(0, H_pad - H)]
    parts = [jnp.pad(a[..., g * H:(g + 1) * H], pad) for g in range(3)]
    return jnp.concatenate(parts, axis=-1)


# ----------------------- GRU recurrence kernel (hot path) -----------------------
def _make_gru_kernel(num_dirs, t_chunk, num_chunks, seq_len, seq_pad, unroll):
    """Build the fused (fwd+bwd) GRU recurrence kernel for one layer.

    Kernel refs (in order):
      gi_refs[d]:  (t_chunk, B_pad, 3*H_pad) bf16   precomputed x@Wih^T + fused biases;
                   d=0 chunks arrive forward in time, d=1 chunks arrive reversed (index_map)
      whh_ref:     (num_dirs, H_pad, 3*H_pad) bf16  recurrent weights (transposed), gates r|z|n
      bhhn_ref:    (num_dirs, 1, H_pad)       f32   n-gate recurrent bias
      out_refs[d]: (t_chunk, B_pad, H_pad)    bf16  hidden states, natural time order
      h_ref:       (num_dirs, B_pad, H_pad)   f32   VMEM scratch carrying h across chunks
    """
    pad_time = seq_pad != seq_len

    def kernel(*refs):
        gi_refs = refs[:num_dirs]
        whh_ref = refs[num_dirs]
        bhhn_ref = refs[num_dirs + 1]
        out_refs = refs[num_dirs + 2:2 * num_dirs + 2]
        h_ref = refs[-1]

        t_blk = pl.program_id(0)

        @pl.when(t_blk == 0)
        def _():
            h_ref[...] = jnp.zeros_like(h_ref)

        B_pad, H_pad = h_ref.shape[1], h_ref.shape[2]
        # Hoisted out of the step loop (JAX does not CSE broadcast_in_dim).
        bhhn = [jnp.broadcast_to(bhhn_ref[d], (B_pad, H_pad)) for d in range(num_dirs)]
        bwd_base = (num_chunks - 1 - t_blk) * t_chunk   # abs time at start of bwd chunk

        def gate_math(gi, gh, h, bn):
            r = jax.nn.sigmoid(gi[:, :H_pad] + gh[:, :H_pad])
            z = jax.nn.sigmoid(gi[:, H_pad:2 * H_pad] + gh[:, H_pad:2 * H_pad])
            n = jnp.tanh(gi[:, 2 * H_pad:] + r * (gh[:, 2 * H_pad:] + bn))
            return (1.0 - z) * n + z * h

        def step(i, hs):
            new_hs = []
            for d in range(num_dirs):   # both chains in one body -> latency hiding
                h = hs[d]
                j = i if d == 0 else t_chunk - 1 - i    # bwd chain walks chunk backwards
                gi = gi_refs[d][j].astype(jnp.float32)
                gh = jnp.dot(h.astype(jnp.bfloat16), whh_ref[d],
                             preferred_element_type=jnp.float32)
                h_new = gate_math(gi, gh, h, bhhn[d])
                if d == 1 and pad_time:
                    # Backward chain meets the L->L_pad zero padding FIRST; hold h at its
                    # initial value until the first real timestep.
                    h_new = jnp.where(bwd_base + j < seq_len, h_new, h)
                out_refs[d][j] = h_new.astype(out_refs[d].dtype)
                new_hs.append(h_new)
            return tuple(new_hs)

        hs = tuple(h_ref[d] for d in range(num_dirs))
        full = (t_chunk // unroll) * unroll
        if full > 0:                                    # partial unroll (keeps vreg pressure sane)
            hs = jax.lax.fori_loop(0, full, step, hs, unroll=unroll)
        if full < t_chunk:                              # explicit remainder loop
            hs = jax.lax.fori_loop(full, t_chunk, step, hs, unroll=True)
        for d in range(num_dirs):
            h_ref[d] = hs[d]

    return kernel


def gru_layer(gi_list, whhT, bhhn, *, seq_len, t_chunk, unroll=8):
    """Run one (bi)directional GRU layer's recurrence.

    gi_list: per-direction (L_pad, B_pad, 3*H_pad) bf16, natural time order.
    whhT:    (num_dirs, H_pad, 3*H_pad) bf16.   bhhn: (num_dirs, 1, H_pad) f32.
    Returns per-direction (L_pad, B_pad, H_pad) bf16 hidden sequences in natural
    time order (backward reversal is handled by the kernel's index_maps).
    """
    num_dirs = len(gi_list)
    L_pad, B_pad, G = gi_list[0].shape
    H_pad = G // 3
    num_chunks = L_pad // t_chunk

    def chunk_map(d):
        if d == 0:
            return lambda t: (t, 0, 0)
        return lambda t: (num_chunks - 1 - t, 0, 0)     # bwd: chunks visited in reverse

    in_specs = (
        [pl.BlockSpec((t_chunk, B_pad, 3 * H_pad), chunk_map(d)) for d in range(num_dirs)]
        + [pl.BlockSpec((num_dirs, H_pad, 3 * H_pad), lambda t: (0, 0, 0)),
           pl.BlockSpec((num_dirs, 1, H_pad), lambda t: (0, 0, 0))])
    out_specs = [pl.BlockSpec((t_chunk, B_pad, H_pad), chunk_map(d)) for d in range(num_dirs)]
    out_shape = [jax.ShapeDtypeStruct((L_pad, B_pad, H_pad), jnp.bfloat16)
                 for _ in range(num_dirs)]

    # Explicit VMEM budget (v7x: 64 MiB physical / 32 MiB scoped default).
    block_bytes = (2 * num_dirs * t_chunk * B_pad * (3 * H_pad + H_pad) * 2   # gi+out, dbl-buffered
                   + 2 * num_dirs * H_pad * 3 * H_pad * 2                     # whh
                   + 2 * num_dirs * H_pad * 4                                 # bhhn
                   + num_dirs * B_pad * H_pad * 4)                            # h scratch
    vmem_limit = int(min(max(2 * block_bytes + (8 << 20), 32 << 20), 56 << 20))

    kernel = _make_gru_kernel(num_dirs, t_chunk, num_chunks, seq_len, L_pad, unroll)
    outs = pl.pallas_call(
        kernel,
        out_shape=out_shape,
        grid_spec=pltpu.PrefetchScalarGridSpec(
            num_scalar_prefetch=0,
            grid=(num_chunks,),
            in_specs=in_specs,
            out_specs=out_specs,
            scratch_shapes=[pltpu.VMEM((num_dirs, B_pad, H_pad), jnp.float32)],
        ),
        compiler_params=pltpu.CompilerParams(
            dimension_semantics=("arbitrary",),          # time axis carries h
            vmem_limit_bytes=vmem_limit,
        ),
    )(*gi_list, whhT, bhhn)
    if not isinstance(outs, (list, tuple)):
        outs = [outs]
    return list(outs)


def _choose_t_chunk(L, B_pad, H_pad, num_dirs, budget_bytes=12 << 20):
    """Largest time chunk whose double-buffered gi+out blocks fit the VMEM budget."""
    per_t = 2 * num_dirs * B_pad * (3 * H_pad + H_pad) * 2   # bf16, double-buffered
    return int(max(1, min(L, budget_bytes // per_t)))


# ------------------------------ Parameter setup ---------------------------------
def build_params(key, vocab_size, embedding_dim, hidden_dim, output_dim,
                 n_layers, bidirectional, pad_idx):
    """PyTorch-layout parameters (what the nn.Module would hold)."""
    num_dirs = 2 if bidirectional else 1
    keys = iter(jax.random.split(key, 4 + n_layers * num_dirs * 4))

    def rnd(shape, scale=0.1):
        return (scale * jax.random.normal(next(keys), shape)).astype(jnp.float32)

    emb = rnd((vocab_size, embedding_dim))
    emb = emb.at[pad_idx].set(0.0)                 # padding_idx row is zero

    gru = []
    for layer in range(n_layers):
        e_in = embedding_dim if layer == 0 else hidden_dim * num_dirs
        dirs = []
        for _ in range(num_dirs):
            dirs.append(dict(
                w_ih=rnd((3 * hidden_dim, e_in)),
                w_hh=rnd((3 * hidden_dim, hidden_dim)),
                b_ih=rnd((3 * hidden_dim,)),
                b_hh=rnd((3 * hidden_dim,)),
            ))
        gru.append(dirs)

    fc_w = rnd((output_dim, hidden_dim * num_dirs))
    fc_b = rnd((output_dim,))
    return dict(embedding=emb, gru=gru, fc_w=fc_w, fc_b=fc_b,
                hidden_dim=hidden_dim, n_layers=n_layers,
                bidirectional=bidirectional)


def prepare_fast_params(params):
    """One-time preprocessing: transpose / pad / split / cast weights so the forward
    never re-lays-out the big activation tensors (all padding lives in the weights)."""
    H = params["hidden_dim"]
    H_pad = _round_up(H, 128)        # 128-lane aligned gate slices & lane-dense stores
    nd = 2 if params["bidirectional"] else 1

    layers = []
    for li, layer_params in enumerate(params["gru"]):
        w_in, gi_bias = [], []
        for p in layer_params:
            wihT = _pad_gates(jnp.transpose(p["w_ih"]), H, H_pad)      # (E_in, 3*H_pad)
            if li == 0:
                streams = [wihT.astype(jnp.bfloat16)]                  # one stream: embedding
            else:
                streams = []                                           # one stream per input dir
                for s in range(nd):
                    blk = wihT[s * H:(s + 1) * H]                      # rows for that dir's h
                    blk = jnp.pad(blk, ((0, H_pad - H), (0, 0)))       # padded h lanes are zero
                    streams.append(blk.astype(jnp.bfloat16))           # (H_pad, 3*H_pad)
            w_in.append(streams)
            # Fused bias for precomputed gi: b_ih + [b_hh_r, b_hh_z, 0]
            # (b_hh_n stays inside r*(...) and is passed to the kernel separately).
            gi_bias.append(_pad_gates(
                p["b_ih"] + jnp.concatenate([p["b_hh"][:2 * H],
                                             jnp.zeros((H,), jnp.float32)]), H, H_pad))
        whhT = jnp.stack([
            jnp.pad(_pad_gates(jnp.transpose(p["w_hh"]), H, H_pad), ((0, H_pad - H), (0, 0)))
            for p in layer_params]).astype(jnp.bfloat16)               # (nd, H_pad, 3*H_pad)
        bhhn = jnp.stack([
            jnp.pad(p["b_hh"][2 * H:], (0, H_pad - H)).reshape(1, H_pad)
            for p in layer_params])                                    # (nd, 1, H_pad) f32
        layers.append(dict(w_in=w_in, gi_bias=jnp.stack(gi_bias), whhT=whhT, bhhn=bhhn))

    return dict(layers=layers, H=H, H_pad=H_pad, nd=nd,
                embedding=params["embedding"],
                fc_wT=jnp.transpose(params["fc_w"]), fc_b=params["fc_b"])


# --------------------------------- Forward --------------------------------------
def text_rnn_classifier_forward(fast, text, t_chunk=None, unroll=8):
    """text: (B, L) int32 token ids -> (B, output_dim) logits (eval mode)."""
    H, H_pad, nd = fast["H"], fast["H_pad"], fast["nd"]
    B, L = text.shape
    B_pad = _round_up(B, 16)                       # bf16 (16,128) packing tile: dense stores
    if t_chunk is None:
        t_chunk = _choose_t_chunk(L, B_pad, H_pad, nd)
    L_pad = _round_up(L, t_chunk)

    emb = fast["embedding"][text]                  # (B, L, E) gather: XLA glue
    # TODO(synk): nn.Dropout is identity in eval mode; training-mode RNG dropout not implemented.
    x = jnp.transpose(emb, (1, 0, 2))              # (L, B, E) time-major
    x = jnp.pad(x, ((0, L_pad - L), (0, B_pad - B), (0, 0))).astype(jnp.bfloat16)
    xs = [x]                                       # per-direction input streams for layer 0

    for layer in fast["layers"]:
        # ---- hoisted input projection (XLA, MXU-friendly); gi stored in bf16 ----
        gi_list = []
        for d in range(nd):
            acc = None
            for j, xj in enumerate(xs):
                t = jnp.dot(xj, layer["w_in"][d][j], preferred_element_type=jnp.float32)
                acc = t if acc is None else acc + t
            gi_list.append((acc + layer["gi_bias"][d]).astype(jnp.bfloat16))
        # ---- serial recurrence in Pallas (both directions fused in one call) ----
        xs = gru_layer(gi_list, layer["whhT"], layer["bhhn"],
                       seq_len=L, t_chunk=t_chunk, unroll=unroll)

    # Final hidden states: forward at t=L-1, backward at t=0 (kernel writes natural order).
    finals = [xs[0][L - 1, :B, :H]]
    if nd == 2:
        finals.append(xs[1][0, :B, :H])
    hidden = (jnp.concatenate(finals, axis=-1) if nd == 2 else finals[0]).astype(jnp.float32)
    # Final linear stays in XLA: output_dim is tiny (Pallas would be launch-overhead bound).
    return hidden @ fast["fc_wT"] + fast["fc_b"]


# ---------------------------- Pure-JAX reference ---------------------------------
def reference_forward(params, text):
    """lax.scan reference with the same numerics discipline (bf16 gi & matmul inputs,
    f32 accumulation & gate math, bf16 inter-layer activations)."""
    H = params["hidden_dim"]
    nd = 2 if params["bidirectional"] else 1
    emb = params["embedding"][text]
    x = jnp.transpose(emb, (1, 0, 2)).astype(jnp.bfloat16)

    finals = None
    for layer_params in params["gru"]:
        seqs, finals = [], []
        for d, p in enumerate(layer_params):
            wihT = jnp.transpose(p["w_ih"]).astype(jnp.bfloat16)
            whhT = jnp.transpose(p["w_hh"]).astype(jnp.bfloat16)
            gi = jnp.dot(x, wihT, preferred_element_type=jnp.float32)
            gi = gi + (p["b_ih"] + jnp.concatenate(
                [p["b_hh"][:2 * H], jnp.zeros((H,), jnp.float32)]))
            gi = gi.astype(jnp.bfloat16).astype(jnp.float32)   # kernel stores gi in bf16
            bhhn = p["b_hh"][2 * H:]
            xs_scan = gi[::-1] if d == 1 else gi

            def step(h, gi_t, whhT=whhT, bhhn=bhhn):
                gh = jnp.dot(h.astype(jnp.bfloat16), whhT,
                             preferred_element_type=jnp.float32)
                r = jax.nn.sigmoid(gi_t[:, :H] + gh[:, :H])
                z = jax.nn.sigmoid(gi_t[:, H:2 * H] + gh[:, H:2 * H])
                n = jnp.tanh(gi_t[:, 2 * H:] + r * (gh[:, 2 * H:] + bhhn))
                h_new = (1.0 - z) * n + z * h
                return h_new, h_new.astype(jnp.bfloat16)

            _, ys = jax.lax.scan(step, jnp.zeros((x.shape[1], H), jnp.float32), xs_scan)
            finals.append(ys[-1])
            seqs.append(ys[::-1] if d == 1 else ys)
        x = jnp.concatenate(seqs, axis=-1) if nd == 2 else seqs[0]

    hidden = (jnp.concatenate(finals, axis=-1)
              if nd == 2 else finals[0]).astype(jnp.float32)
    return hidden @ params["fc_w"].T + params["fc_b"]


# ----------------------------------- Main ----------------------------------------
if __name__ == "__main__":
    VOCAB, EMB, HID, OUT = 50, 16, 32, 4
    N_LAYERS, BIDIR, DROPOUT, PAD_IDX = 2, True, 0.5, 0   # dropout inactive (eval mode)
    B, L = 2, 9

    key = jax.random.PRNGKey(0)
    k_param, k_text = jax.random.split(key)
    params = build_params(k_param, VOCAB, EMB, HID, OUT, N_LAYERS, BIDIR, PAD_IDX)
    fast = prepare_fast_params(params)

    text = jax.random.randint(k_text, (B, L), 0, VOCAB, dtype=jnp.int32)
    text = text.at[:, -2:].set(PAD_IDX)   # some trailing padding tokens

    ref = reference_forward(params, text)

    # Default config: whole sequence in a single grid step (no time padding).
    logits = jax.block_until_ready(
        jax.jit(lambda t: text_rnn_classifier_forward(fast, t))(text))
    assert logits.shape == (B, OUT), logits.shape
    assert jnp.allclose(logits, ref, atol=1e-2, rtol=1e-2), (logits, ref)

    # Chunked config: exercises multi-chunk pipelining, in-kernel time reversal and
    # the backward-chain padding mask (L=9 -> L_pad=12 with t_chunk=4).
    logits_c = jax.block_until_ready(
        jax.jit(lambda t: text_rnn_classifier_forward(fast, t, t_chunk=4))(text))
    assert jnp.allclose(logits_c, ref, atol=1e-2, rtol=1e-2), (logits_c, ref)

    print("KERNEL_OK")
</pallas_src>

<mosaic_0001>
module attributes {stable_mosaic.version = 11 : i64} {
  func.func @kernel(%arg0: i32, %arg1: memref<9x16x384xbf16, #tpu.memory_space<vmem>>, %arg2: memref<9x16x384xbf16, #tpu.memory_space<vmem>>, %arg3: memref<2x128x384xbf16, #tpu.memory_space<vmem>>, %arg4: memref<2x1x128xf32, #tpu.memory_space<vmem>>, %arg5: memref<9x16x128xbf16, #tpu.memory_space<vmem>>, %arg6: memref<9x16x128xbf16, #tpu.memory_space<vmem>>, %arg7: memref<2x16x128xf32, #tpu.memory_space<vmem>>) attributes {dimension_semantics = [#tpu.dimension_semantics<arbitrary>], iteration_bounds = array<i64: 1>, scalar_prefetch = 0 : i64, scratch_operands = 1 : i64, tpu.core_type = #tpu.core_type<tc>, window_params = [{transform_indices = @transform_0, window_bounds = array<i64: 9, 16, 384>}, {transform_indices = @transform_1, window_bounds = array<i64: 9, 16, 384>}, {pipeline_mode = #tpu.pipeline_mode<synchronous>, transform_indices = @transform_2, window_bounds = array<i64: 2, 128, 384>}, {pipeline_mode = #tpu.pipeline_mode<synchronous>, transform_indices = @transform_3, window_bounds = array<i64: 2, 1, 128>}, {transform_indices = @transform_4, window_bounds = array<i64: 9, 16, 128>}, {transform_indices = @transform_5, window_bounds = array<i64: 9, 16, 128>}]} {
    %c0_i32 = arith.constant 0 : i32
    %0 = arith.cmpi eq, %arg0, %c0_i32 : i32
    %1 = arith.extui %0 : i1 to i32
    %c0_i32_0 = arith.constant 0 : i32
    %2 = arith.cmpi ne, %1, %c0_i32_0 : i32
    scf.if %2 {
      %cst_226 = arith.constant 0.000000e+00 : f32
      %750 = vector.broadcast %cst_226 : f32 to vector<2x16x128xf32>
      %c0_227 = arith.constant 0 : index
      %c0_228 = arith.constant 0 : index
      %c0_229 = arith.constant 0 : index
      %751 = vector.load %arg7[%c0_227, %c0_228, %c0_229] : memref<2x16x128xf32, #tpu.memory_space<vmem>>, vector<2x16x128xf32>
      tpu.vector_store %arg7[%c0_227, %c0_228, %c0_229], %750 {strides = array<i32>} : memref<2x16x128xf32, #tpu.memory_space<vmem>>, vector<2x16x128xf32>,
    } else {
    }
    %c0 = arith.constant 0 : index
    %c0_1 = arith.constant 0 : index
    %c0_2 = arith.constant 0 : index
    %3 = vector.load %arg4[%c0, %c0_1, %c0_2] : memref<2x1x128xf32, #tpu.memory_space<vmem>>, vector<1x1x128xf32>
    %4 = vector.shape_cast %3 : vector<1x1x128xf32> to vector<1x128xf32>
    %5 = vector.shape_cast %4 : vector<1x128xf32> to vector<1x128xf32>
    %6 = vector.broadcast %5 : vector<1x128xf32> to vector<16x128xf32>
    %c1 = arith.constant 1 : index
    %c0_3 = arith.constant 0 : index
    %c0_4 = arith.constant 0 : index
    %7 = vector.load %arg4[%c1, %c0_3, %c0_4] : memref<2x1x128xf32, #tpu.memory_space<vmem>>, vector<1x1x128xf32>
    %8 = vector.shape_cast %7 : vector<1x1x128xf32> to vector<1x128xf32>
    %9 = vector.shape_cast %8 : vector<1x128xf32> to vector<1x128xf32>
    %10 = vector.broadcast %9 : vector<1x128xf32> to vector<16x128xf32>
    %c0_5 = arith.constant 0 : index
    %c0_6 = arith.constant 0 : index
    %c0_7 = arith.constant 0 : index
    %11 = vector.load %arg7[%c0_5, %c0_6, %c0_7] : memref<2x16x128xf32, #tpu.memory_space<vmem>>, vector<1x16x128xf32>
    %12 = vector.shape_cast %11 : vector<1x16x128xf32> to vector<16x128xf32>
    %c1_8 = arith.constant 1 : index
    %c0_9 = arith.constant 0 : index
    %c0_10 = arith.constant 0 : index
    %13 = vector.load %arg7[%c1_8, %c0_9, %c0_10] : memref<2x16x128xf32, #tpu.memory_space<vmem>>, vector<1x16x128xf32>
    %14 = vector.shape_cast %13 : vector<1x16x128xf32> to vector<16x128xf32>
    %c0_i32_11 = arith.constant 0 : i32
    %15 = arith.index_cast %c0_i32_11 : i32 to index
    %c0_12 = arith.constant 0 : index
    %c0_13 = arith.constant 0 : index
    %16 = vector.load %arg1[%15, %c0_12, %c0_13] : memref<9x16x384xbf16, #tpu.memory_space<vmem>>, vector<1x16x384xbf16>
    %17 = vector.shape_cast %16 : vector<1x16x384xbf16> to vector<16x384xbf16>
    %18 = arith.extf %17 : vector<16x384xbf16> to vector<16x384xf32>
    %19 = arith.truncf %12 : vector<16x128xf32> to vector<16x128xbf16>
    %c0_14 = arith.constant 0 : index
    %c0_15 = arith.constant 0 : index
    %c0_16 = arith.constant 0 : index
    %20 = vector.load %arg3[%c0_14, %c0_15, %c0_16] : memref<2x128x384xbf16, #tpu.memory_space<vmem>>, vector<1x128x384xbf16>
    %21 = vector.shape_cast %20 : vector<1x128x384xbf16> to vector<128x384xbf16>
    %cst = arith.constant dense<0.000000e+00> : vector<16x384xf32>
    %22 = tpu.matmul %19, %21, %cst {dimension_numbers = #tpu.dot_dimension_numbers<[1], [0], [0], [1], [0, 0, 1, 1], [], []>} : vector<16x128xbf16>, vector<128x384xbf16>, vector<16x384xf32> -> vector<16x384xf32>
    %23 = vector.extract_strided_slice %18 {offsets = [0, 0], sizes = [16, 128], strides = [1, 1]} : vector<16x384xf32> to vector<16x128xf32>
    %24 = vector.extract_strided_slice %22 {offsets = [0, 0], sizes = [16, 128], strides = [1, 1]} : vector<16x384xf32> to vector<16x128xf32>
    %25 = arith.addf %23, %24 : vector<16x128xf32>
    %26 = arith.negf %25 : vector<16x128xf32>
    %27 = math.exp %26 : vector<16x128xf32>
    %cst_17 = arith.constant 1.000000e+00 : f32
    %28 = vector.broadcast %cst_17 : f32 to vector<16x128xf32>
    %29 = arith.addf %28, %27 : vector<16x128xf32>
    %30 = arith.divf %28, %29 : vector<16x128xf32>
    %31 = vector.extract_strided_slice %18 {offsets = [0, 128], sizes = [16, 128], strides = [1, 1]} : vector<16x384xf32> to vector<16x128xf32>
    %32 = vector.extract_strided_slice %22 {offsets = [0, 128], sizes = [16, 128], strides = [1, 1]} : vector<16x384xf32> to vector<16x128xf32>
    %33 = arith.addf %31, %32 : vector<16x128xf32>
    %34 = arith.negf %33 : vector<16x128xf32>
    %35 = math.exp %34 : vector<16x128xf32>
    %cst_18 = arith.constant 1.000000e+00 : f32
    %36 = vector.broadcast %cst_18 : f32 to vector<16x128xf32>
    %37 = arith.addf %36, %35 : vector<16x128xf32>
    %38 = arith.divf %36, %37 : vector<16x128xf32>
    %39 = vector.extract_strided_slice %18 {offsets = [0, 256], sizes = [16, 128], strides = [1, 1]} : vector<16x384xf32> to vector<16x128xf32>
    %40 = vector.extract_strided_slice %22 {offsets = [0, 256], sizes = [16, 128], strides = [1, 1]} : vector<16x384xf32> to vector<16x128xf32>
    %41 = arith.addf %40, %6 : vector<16x128xf32>
    %42 = arith.mulf %30, %41 : vector<16x128xf32>
    %43 = arith.addf %39, %42 : vector<16x128xf32>
    %44 = math.tanh %43 : vector<16x128xf32>
    %cst_19 = arith.constant 1.000000e+00 : f32
    %45 = vector.broadcast %cst_19 : f32 to vector<16x128xf32>
    %46 = arith.subf %45, %38 : vector<16x128xf32>
    %47 = arith.mulf %46, %44 : vector<16x128xf32>
    %48 = arith.mulf %38, %12 : vector<16x128xf32>
    %49 = arith.addf %47, %48 : vector<16x128xf32>
    %50 = arith.truncf %49 : vector<16x128xf32> to vector<16x128xbf16>
    %51 = arith.index_cast %c0_i32_11 : i32 to index
    %c0_20 = arith.constant 0 : index
    %c0_21 = arith.constant 0 : index
    %52 = vector.load %arg5[%51, %c0_20, %c0_21] : memref<9x16x128xbf16, #tpu.memory_space<vmem>>, vector<1x16x128xbf16>
    %53 = vector.shape_cast %52 : vector<1x16x128xbf16> to vector<16x128xbf16>
    %54 = vector.shape_cast %50 : vector<16x128xbf16> to vector<1x16x128xbf16>
    tpu.vector_store %arg5[%51, %c0_20, %c0_21], %54 {strides = array<i32>} : memref<9x16x128xbf16, #tpu.memory_space<vmem>>, vector<1x16x128xbf16>,
    %c8_i32 = arith.constant 8 : i32
    %55 = arith.subi %c8_i32, %c0_i32_11 : i32
    %56 = arith.index_cast %55 : i32 to index
    %c0_22 = arith.constant 0 : index
    %c0_23 = arith.constant 0 : index
    %57 = vector.load %arg2[%56, %c0_22, %c0_23] : memref<9x16x384xbf16, #tpu.memory_space<vmem>>, vector<1x16x384xbf16>
    %58 = vector.shape_cast %57 : vector<1x16x384xbf16> to vector<16x384xbf16>
    %59 = arith.extf %58 : vector<16x384xbf16> to vector<16x384xf32>
    %60 = arith.truncf %14 : vector<16x128xf32> to vector<16x128xbf16>
    %c1_24 = arith.constant 1 : index
    %c0_25 = arith.constant 0 : index
    %c0_26 = arith.constant 0 : index
    %61 = vector.load %arg3[%c1_24, %c0_25, %c0_26] : memref<2x128x384xbf16, #tpu.memory_space<vmem>>, vector<1x128x384xbf16>
    %62 = vector.shape_cast %61 : vector<1x128x384xbf16> to vector<128x384xbf16>
    %cst_27 = arith.constant dense<0.000000e+00> : vector<16x384xf32>
    %63 = tpu.matmul %60, %62, %cst_27 {dimension_numbers = #tpu.dot_dimension_numbers<[1], [0], [0], [1], [0, 0, 1, 1], [], []>} : vector<16x128xbf16>, vector<128x384xbf16>, vector<16x384xf32> -> vector<16x384xf32>
    %64 = vector.extract_strided_slice %59 {offsets = [0, 0], sizes = [16, 128], strides = [1, 1]} : vector<16x384xf32> to vector<16x128xf32>
    %65 = vector.extract_strided_slice %63 {offsets = [0, 0], sizes = [16, 128], strides = [1, 1]} : vector<16x384xf32> to vector<16x128xf32>
    %66 = arith.addf %64, %65 : vector<16x128xf32>
    %67 = arith.negf %66 : vector<16x128xf32>
    %68 = math.exp %67 : vector<16x128xf32>
    %cst_28 = arith.constant 1.000000e+00 : f32
    %69 = vector.broadcast %cst_28 : f32 to vector<16x128xf32>
    %70 = arith.addf %69, %68 : vector<16x128xf32>
    %71 = arith.divf %69, %70 : vector<16x128xf32>
    %72 = vector.extract_strided_slice %59 {offsets = [0, 128], sizes = [16, 128], strides = [1, 1]} : vector<16x384xf32> to vector<16x128xf32>
    %73 = vector.extract_strided_slice %63 {offsets = [0, 128], sizes = [16, 128], strides = [1, 1]} : vector<16x384xf32> to vector<16x128xf32>
    %74 = arith.addf %72, %73 : vector<16x128xf32>
    %75 = arith.negf %74 : vector<16x128xf32>
    %76 = math.exp %75 : vector<16x128xf32>
    %cst_29 = arith.constant 1.000000e+00 : f32
    %77 = vector.broadcast %cst_29 : f32 to vector<16x128xf32>
    %78 = arith.addf %77, %76 : vector<16x128xf32>
    %79 = arith.divf %77, %78 : vector<16x128xf32>
    %80 = vector.extract_strided_slice %59 {offsets = [0, 256], sizes = [16, 128], strides = [1, 1]} : vector<16x384xf32> to vector<16x128xf32>
    %81 = vector.extract_strided_slice %63 {offsets = [0, 256], sizes = [16, 128], strides = [1, 1]} : vector<16x384xf32> to vector<16x128xf32>
    %82 = arith.addf %81, %10 : vector<16x128xf32>
    %83 = arith.mulf %71, %82 : vector<16x128xf32>
    %84 = arith.addf %80, %83 : vector<16x128xf32>
    %85 = math.tanh %84 : vector<16x128xf32>
    %cst_30 = arith.constant 1.000000e+00 : f32
    %86 = vector.broadcast %cst_30 : f32 to vector<16x128xf32>
    %87 = arith.subf %86, %79 : vector<16x128xf32>
    %88 = arith.mulf %87, %85 : vector<16x128xf32>
    %89 = arith.mulf %79, %14 : vector<16x128xf32>
    %90 = arith.addf %88, %89 : vector<16x128xf32>
    %91 = arith.truncf %90 : vector<16x128xf32> to vector<16x128xbf16>
    %92 = arith.index_cast %55 : i32 to index
    %c0_31 = arith.constant 0 : index
    %c0_32 = arith.constant 0 : index
    %93 = vector.load %arg6[%92, %c0_31, %c0_32] : memref<9x16x128xbf16, #tpu.memory_space<vmem>>, vector<1x16x128xbf16>
    %94 = vector.shape_cast %93 : vector<1x16x128xbf16> to vector<16x128xbf16>
    %95 = vector.shape_cast %91 : vector<16x128xbf16> to vector<1x16x128xbf16>
    tpu.vector_store %arg6[%92, %c0_31, %c0_32], %95 {strides = array<i32>} : memref<9x16x128xbf16, #tpu.memory_space<vmem>>, vector<1x16x128xbf16>,
    %c1_i32 = arith.constant 1 : i32
    %96 = arith.index_cast %c1_i32 : i32 to index
    %c0_33 = arith.constant 0 : index
    %c0_34 = arith.constant 0 : index
    %97 = vector.load %arg1[%96, %c0_33, %c0_34] : memref<9x16x384xbf16, #tpu.memory_space<vmem>>, vector<1x16x384xbf16>
    %98 = vector.shape_cast %97 : vector<1x16x384xbf16> to vector<16x384xbf16>
    %99 = arith.extf %98 : vector<16x384xbf16> to vector<16x384xf32>
    %100 = arith.truncf %49 : vector<16x128xf32> to vector<16x128xbf16>
    %c0_35 = arith.constant 0 : index
    %c0_36 = arith.constant 0 : index
    %c0_37 = arith.constant 0 : index
    %101 = vector.load %arg3[%c0_35, %c0_36, %c0_37] : memref<2x128x384xbf16, #tpu.memory_space<vmem>>, vector<1x128x384xbf16>
    %102 = vector.shape_cast %101 : vector<1x128x384xbf16> to vector<128x384xbf16>
    %cst_38 = arith.constant dense<0.000000e+00> : vector<16x384xf32>
    %103 = tpu.matmul %100, %102, %cst_38 {dimension_numbers = #tpu.dot_dimension_numbers<[1], [0], [0], [1], [0, 0, 1, 1], [], []>} : vector<16x128xbf16>, vector<128x384xbf16>, vector<16x384xf32> -> vector<16x384xf32>
    %104 = vector.extract_strided_slice %99 {offsets = [0, 0], sizes = [16, 128], strides = [1, 1]} : vector<16x384xf32> to vector<16x128xf32>
    %105 = vector.extract_strided_slice %103 {offsets = [0, 0], sizes = [16, 128], strides = [1, 1]} : vector<16x384xf32> to vector<16x128xf32>
    %106 = arith.addf %104, %105 : vector<16x128xf32>
    %107 = arith.negf %106 : vector<16x128xf32>
    %108 = math.exp %107 : vector<16x128xf32>
    %cst_39 = arith.constant 1.000000e+00 : f32
    %109 = vector.broadcast %cst_39 : f32 to vector<16x128xf32>
    %110 = arith.addf %109, %108 : vector<16x128xf32>
    %111 = arith.divf %109, %110 : vector<16x128xf32>
    %112 = vector.extract_strided_slice %99 {offsets = [0, 128], sizes = [16, 128], strides = [1, 1]} : vector<16x384xf32> to vector<16x128xf32>
    %113 = vector.extract_strided_slice %103 {offsets = [0, 128], sizes = [16, 128], strides = [1, 1]} : vector<16x384xf32> to vector<16x128xf32>
    %114 = arith.addf %112, %113 : vector<16x128xf32>
    %115 = arith.negf %114 : vector<16x128xf32>
    %116 = math.exp %115 : vector<16x128xf32>
    %cst_40 = arith.constant 1.000000e+00 : f32
    %117 = vector.broadcast %cst_40 : f32 to vector<16x128xf32>
    %118 = arith.addf %117, %116 : vector<16x128xf32>
    %119 = arith.divf %117, %118 : vector<16x128xf32>
    %120 = vector.extract_strided_slice %99 {offsets = [0, 256], sizes = [16, 128], strides = [1, 1]} : vector<16x384xf32> to vector<16x128xf32>
    %121 = vector.extract_strided_slice %103 {offsets = [0, 256], sizes = [16, 128], strides = [1, 1]} : vector<16x384xf32> to vector<16x128xf32>
    %122 = arith.addf %121, %6 : vector<16x128xf32>
    %123 = arith.mulf %111, %122 : vector<16x128xf32>
    %124 = arith.addf %120, %123 : vector<16x128xf32>
    %125 = math.tanh %124 : vector<16x128xf32>
    %cst_41 = arith.constant 1.000000e+00 : f32
    %126 = vector.broadcast %cst_41 : f32 to vector<16x128xf32>
    %127 = arith.subf %126, %119 : vector<16x128xf32>
    %128 = arith.mulf %127, %125 : vector<16x128xf32>
    %129 = arith.mulf %119, %49 : vector<16x128xf32>
    %130 = arith.addf %128, %129 : vector<16x128xf32>
    %131 = arith.truncf %130 : vector<16x128xf32> to vector<16x128xbf16>
    %132 = arith.index_cast %c1_i32 : i32 to index
    %c0_42 = arith.constant 0 : index
    %c0_43 = arith.constant 0 : index
    %133 = vector.load %arg5[%132, %c0_42, %c0_43] : memref<9x16x128xbf16, #tpu.memory_space<vmem>>, vector<1x16x128xbf16>
    %134 = vector.shape_cast %133 : vector<1x16x128xbf16> to vector<16x128xbf16>
    %135 = vector.shape_cast %131 : vector<16x128xbf16> to vector<1x16x128xbf16>
    tpu.vector_store %arg5[%132, %c0_42, %c0_43], %135 {strides = array<i32>} : memref<9x16x128xbf16, #tpu.memory_space<vmem>>, vector<1x16x128xbf16>,
    %c8_i32_44 = arith.constant 8 : i32
    %136 = arith.subi %c8_i32_44, %c1_i32 : i32
    %137 = arith.index_cast %136 : i32 to index
    %c0_45 = arith.constant 0 : index
    %c0_46 = arith.constant 0 : index
    %138 = vector.load %arg2[%137, %c0_45, %c0_46] : memref<9x16x384xbf16, #tpu.memory_space<vmem>>, vector<1x16x384xbf16>
    %139 = vector.shape_cast %138 : vector<1x16x384xbf16> to vector<16x384xbf16>
    %140 = arith.extf %139 : vector<16x384xbf16> to vector<16x384xf32>
    %141 = arith.truncf %90 : vector<16x128xf32> to vector<16x128xbf16>
    %c1_47 = arith.constant 1 : index
    %c0_48 = arith.constant 0 : index
    %c0_49 = arith.constant 0 : index
    %142 = vector.load %arg3[%c1_47, %c0_48, %c0_49] : memref<2x128x384xbf16, #tpu.memory_space<vmem>>, vector<1x128x384xbf16>
    %143 = vector.shape_cast %142 : vector<1x128x384xbf16> to vector<128x384xbf16>
    %cst_50 = arith.constant dense<0.000000e+00> : vector<16x384xf32>
    %144 = tpu.matmul %141, %143, %cst_50 {dimension_numbers = #tpu.dot_dimension_numbers<[1], [0], [0], [1], [0, 0, 1, 1], [], []>} : vector<16x128xbf16>, vector<128x384xbf16>, vector<16x384xf32> -> vector<16x384xf32>
    %145 = vector.extract_strided_slice %140 {offsets = [0, 0], sizes = [16, 128], strides = [1, 1]} : vector<16x384xf32> to vector<16x128xf32>
    %146 = vector.extract_strided_slice %144 {offsets = [0, 0], sizes = [16, 128], strides = [1, 1]} : vector<16x384xf32> to vector<16x128xf32>
    %147 = arith.addf %145, %146 : vector<16x128xf32>
    %148 = arith.negf %147 : vector<16x128xf32>
    %149 = math.exp %148 : vector<16x128xf32>
    %cst_51 = arith.constant 1.000000e+00 : f32
    %150 = vector.broadcast %cst_51 : f32 to vector<16x128xf32>
    %151 = arith.addf %150, %149 : vector<16x128xf32>
    %152 = arith.divf %150, %151 : vector<16x128xf32>
    %153 = vector.extract_strided_slice %140 {offsets = [0, 128], sizes = [16, 128], strides = [1, 1]} : vector<16x384xf32> to vector<16x128xf32>
    %154 = vector.extract_strided_slice %144 {offsets = [0, 128], sizes = [16, 128], strides = [1, 1]} : vector<16x384xf32> to vector<16x128xf32>
    %155 = arith.addf %153, %154 : vector<16x128xf32>
    %156 = arith.negf %155 : vector<16x128xf32>
    %157 = math.exp %156 : vector<16x128xf32>
    %cst_52 = arith.constant 1.000000e+00 : f32
    %158 = vector.broadcast %cst_52 : f32 to vector<16x128xf32>
    %159 = arith.addf %158, %157 : vector<16x128xf32>
    %160 = arith.divf %158, %159 : vector<16x128xf32>
    %161 = vector.extract_strided_slice %140 {offsets = [0, 256], sizes = [16, 128], strides = [1, 1]} : vector<16x384xf32> to vector<16x128xf32>
    %162 = vector.extract_strided_slice %144 {offsets = [0, 256], sizes = [16, 128], strides = [1, 1]} : vector<16x384xf32> to vector<16x128xf32>
    %163 = arith.addf %162, %10 : vector<16x128xf32>
    %164 = arith.mulf %152, %163 : vector<16x128xf32>
    %165 = arith.addf %161, %164 : vector<16x128xf32>
    %166 = math.tanh %165 : vector<16x128xf32>
    %cst_53 = arith.constant 1.000000e+00 : f32
    %167 = vector.broadcast %cst_53 : f32 to vector<16x128xf32>
    %168 = arith.subf %167, %160 : vector<16x128xf32>
    %169 = arith.mulf %168, %166 : vector<16x128xf32>
    %170 = arith.mulf %160, %90 : vector<16x128xf32>
    %171 = arith.addf %169, %170 : vector<16x128xf32>
    %172 = arith.truncf %171 : vector<16x128xf32> to vector<16x128xbf16>
    %173 = arith.index_cast %136 : i32 to index
    %c0_54 = arith.constant 0 : index
    %c0_55 = arith.constant 0 : index
    %174 = vector.load %arg6[%173, %c0_54, %c0_55] : memref<9x16x128xbf16, #tpu.memory_space<vmem>>, vector<1x16x128xbf16>
    %175 = vector.shape_cast %174 : vector<1x16x128xbf16> to vector<16x128xbf16>
    %176 = vector.shape_cast %172 : vector<16x128xbf16> to vector<1x16x128xbf16>
    tpu.vector_store %arg6[%173, %c0_54, %c0_55], %176 {strides = array<i32>} : memref<9x16x128xbf16, #tpu.memory_space<vmem>>, vector<1x16x128xbf16>,
    %c2_i32 = arith.constant 2 : i32
    %177 = arith.index_cast %c2_i32 : i32 to index
    %c0_56 = arith.constant 0 : index
    %c0_57 = arith.constant 0 : index
    %178 = vector.load %arg1[%177, %c0_56, %c0_57] : memref<9x16x384xbf16, #tpu.memory_space<vmem>>, vector<1x16x384xbf16>
    %179 = vector.shape_cast %178 : vector<1x16x384xbf16> to vector<16x384xbf16>
    %180 = arith.extf %179 : vector<16x384xbf16> to vector<16x384xf32>
    %181 = arith.truncf %130 : vector<16x128xf32> to vector<16x128xbf16>
    %c0_58 = arith.constant 0 : index
    %c0_59 = arith.constant 0 : index
    %c0_60 = arith.constant 0 : index
    %182 = vector.load %arg3[%c0_58, %c0_59, %c0_60] : memref<2x128x384xbf16, #tpu.memory_space<vmem>>, vector<1x128x384xbf16>
    %183 = vector.shape_cast %182 : vector<1x128x384xbf16> to vector<128x384xbf16>
    %cst_61 = arith.constant dense<0.000000e+00> : vector<16x384xf32>
    %184 = tpu.matmul %181, %183, %cst_61 {dimension_numbers = #tpu.dot_dimension_numbers<[1], [0], [0], [1], [0, 0, 1, 1], [], []>} : vector<16x128xbf16>, vector<128x384xbf16>, vector<16x384xf32> -> vector<16x384xf32>
    %185 = vector.extract_strided_slice %180 {offsets = [0, 0], sizes = [16, 128], strides = [1, 1]} : vector<16x384xf32> to vector<16x128xf32>
    %186 = vector.extract_strided_slice %184 {offsets = [0, 0], sizes = [16, 128], strides = [1, 1]} : vector<16x384xf32> to vector<16x128xf32>
    %187 = arith.addf %185, %186 : vector<16x128xf32>
    %188 = arith.negf %187 : vector<16x128xf32>
    %189 = math.exp %188 : vector<16x128xf32>
    %cst_62 = arith.constant 1.000000e+00 : f32
    %190 = vector.broadcast %cst_62 : f32 to vector<16x128xf32>
    %191 = arith.addf %190, %189 : vector<16x128xf32>
    %192 = arith.divf %190, %191 : vector<16x128xf32>
    %193 = vector.extract_strided_slice %180 {offsets = [0, 128], sizes = [16, 128], strides = [1, 1]} : vector<16x384xf32> to vector<16x128xf32>
    %194 = vector.extract_strided_slice %184 {offsets = [0, 128], sizes = [16, 128], strides = [1, 1]} : vector<16x384xf32> to vector<16x128xf32>
    %195 = arith.addf %193, %194 : vector<16x128xf32>
    %196 = arith.negf %195 : vector<16x128xf32>
    %197 = math.exp %196 : vector<16x128xf32>
    %cst_63 = arith.constant 1.000000e+00 : f32
    %198 = vector.broadcast %cst_63 : f32 to vector<16x128xf32>
    %199 = arith.addf %198, %197 : vector<16x128xf32>
    %200 = arith.divf %198, %199 : vector<16x128xf32>
    %201 = vector.extract_strided_slice %180 {offsets = [0, 256], sizes = [16, 128], strides = [1, 1]} : vector<16x384xf32> to vector<16x128xf32>
    %202 = vector.extract_strided_slice %184 {offsets = [0, 256], sizes = [16, 128], strides = [1, 1]} : vector<16x384xf32> to vector<16x128xf32>
    %203 = arith.addf %202, %6 : vector<16x128xf32>
    %204 = arith.mulf %192, %203 : vector<16x128xf32>
    %205 = arith.addf %201, %204 : vector<16x128xf32>
    %206 = math.tanh %205 : vector<16x128xf32>
    %cst_64 = arith.constant 1.000000e+00 : f32
    %207 = vector.broadcast %cst_64 : f32 to vector<16x128xf32>
    %208 = arith.subf %207, %200 : vector<16x128xf32>
    %209 = arith.mulf %208, %206 : vector<16x128xf32>
    %210 = arith.mulf %200, %130 : vector<16x128xf32>
    %211 = arith.addf %209, %210 : vector<16x128xf32>
    %212 = arith.truncf %211 : vector<16x128xf32> to vector<16x128xbf16>
    %213 = arith.index_cast %c2_i32 : i32 to index
    %c0_65 = arith.constant 0 : index
    %c0_66 = arith.constant 0 : index
    %214 = vector.load %arg5[%213, %c0_65, %c0_66] : memref<9x16x128xbf16, #tpu.memory_space<vmem>>, vector<1x16x128xbf16>
    %215 = vector.shape_cast %214 : vector<1x16x128xbf16> to vector<16x128xbf16>
    %216 = vector.shape_cast %212 : vector<16x128xbf16> to vector<1x16x128xbf16>
    tpu.vector_store %arg5[%213, %c0_65, %c0_66], %216 {strides = array<i32>} : memref<9x16x128xbf16, #tpu.memory_space<vmem>>, vector<1x16x128xbf16>,
    %c8_i32_67 = arith.constant 8 : i32
    %217 = arith.subi %c8_i32_67, %c2_i32 : i32
    %218 = arith.index_cast %217 : i32 to index
    %c0_68 = arith.constant 0 : index
    %c0_69 = arith.constant 0 : index
    %219 = vector.load %arg2[%218, %c0_68, %c0_69] : memref<9x16x384xbf16, #tpu.memory_space<vmem>>, vector<1x16x384xbf16>
    %220 = vector.shape_cast %219 : vector<1x16x384xbf16> to vector<16x384xbf16>
    %221 = arith.extf %220 : vector<16x384xbf16> to vector<16x384xf32>
    %222 = arith.truncf %171 : vector<16x128xf32> to vector<16x128xbf16>
    %c1_70 = arith.constant 1 : index
    %c0_71 = arith.constant 0 : index
    %c0_72 = arith.constant 0 : index
    %223 = vector.load %arg3[%c1_70, %c0_71, %c0_72] : memref<2x128x384xbf16, #tpu.memory_space<vmem>>, vector<1x128x384xbf16>
    %224 = vector.shape_cast %223 : vector<1x128x384xbf16> to vector<128x384xbf16>
    %cst_73 = arith.constant dense<0.000000e+00> : vector<16x384xf32>
    %225 = tpu.matmul %222, %224, %cst_73 {dimension_numbers = #tpu.dot_dimension_numbers<[1], [0], [0], [1], [0, 0, 1, 1], [], []>} : vector<16x128xbf16>, vector<128x384xbf16>, vector<16x384xf32> -> vector<16x384xf32>
    %226 = vector.extract_strided_slice %221 {offsets = [0, 0], sizes = [16, 128], strides = [1, 1]} : vector<16x384xf32> to vector<16x128xf32>
    %227 = vector.extract_strided_slice %225 {offsets = [0, 0], sizes = [16, 128], strides = [1, 1]} : vector<16x384xf32> to vector<16x128xf32>
    %228 = arith.addf %226, %227 : vector<16x128xf32>
    %229 = arith.negf %228 : vector<16x128xf32>
    %230 = math.exp %229 : vector<16x128xf32>
    %cst_74 = arith.constant 1.000000e+00 : f32
    %231 = vector.broadcast %cst_74 : f32 to vector<16x128xf32>
    %232 = arith.addf %231, %230 : vector<16x128xf32>
    %233 = arith.divf %231, %232 : vector<16x128xf32>
    %234 = vector.extract_strided_slice %221 {offsets = [0, 128], sizes = [16, 128], strides = [1, 1]} : vector<16x384xf32> to vector<16x128xf32>
    %235 = vector.extract_strided_slice %225 {offsets = [0, 128], sizes = [16, 128], strides = [1, 1]} : vector<16x384xf32> to vector<16x128xf32>
    %236 = arith.addf %234, %235 : vector<16x128xf32>
    %237 = arith.negf %236 : vector<16x128xf32>
    %238 = math.exp %237 : vector<16x128xf32>
    %cst_75 = arith.constant 1.000000e+00 : f32
    %239 = vector.broadcast %cst_75 : f32 to vector<16x128xf32>
    %240 = arith.addf %239, %238 : vector<16x128xf32>
    %241 = arith.divf %239, %240 : vector<16x128xf32>
    %242 = vector.extract_strided_slice %221 {offsets = [0, 256], sizes = [16, 128], strides = [1, 1]} : vector<16x384xf32> to vector<16x128xf32>
    %243 = vector.extract_strided_slice %225 {offsets = [0, 256], sizes = [16, 128], strides = [1, 1]} : vector<16x384xf32> to vector<16x128xf32>
    %244 = arith.addf %243, %10 : vector<16x128xf32>
    %245 = arith.mulf %233, %244 : vector<16x128xf32>
    %246 = arith.addf %242, %245 : vector<16x128xf32>
    %247 = math.tanh %246 : vector<16x128xf32>
    %cst_76 = arith.constant 1.000000e+00 : f32
    %248 = vector.broadcast %cst_76 : f32 to vector<16x128xf32>
    %249 = arith.subf %248, %241 : vector<16x128xf32>
    %250 = arith.mulf %249, %247 : vector<16x128xf32>
    %251 = arith.mulf %241, %171 : vector<16x128xf32>
    %252 = arith.addf %250, %251 : vector<16x128xf32>
    %253 = arith.truncf %252 : vector<16x128xf32> to vector<16x128xbf16>
    %254 = arith.index_cast %217 : i32 to index
    %c0_77 = arith.constant 0 : index
    %c0_78 = arith.constant 0 : index
    %255 = vector.load %arg6[%254, %c0_77, %c0_78] : memref<9x16x128xbf16, #tpu.memory_space<vmem>>, vector<1x16x128xbf16>
    %256 = vector.shape_cast %255 : vector<1x16x128xbf16> to vector<16x128xbf16>
    %257 = vector.shape_cast %253 : vector<16x128xbf16> to vector<1x16x128xbf16>
    tpu.vector_store %arg6[%254, %c0_77, %c0_78], %257 {strides = array<i32>} : memref<9x16x128xbf16, #tpu.memory_space<vmem>>, vector<1x16x128xbf16>,
    %c3_i32 = arith.constant 3 : i32
    %258 = arith.index_cast %c3_i32 : i32 to index
    %c0_79 = arith.constant 0 : index
    %c0_80 = arith.constant 0 : index
    %259 = vector.load %arg1[%258, %c0_79, %c0_80] : memref<9x16x384xbf16, #tpu.memory_space<vmem>>, vector<1x16x384xbf16>
    %260 = vector.shape_cast %259 : vector<1x16x384xbf16> to vector<16x384xbf16>
    %261 = arith.extf %260 : vector<16x384xbf16> to vector<16x384xf32>
    %262 = arith.truncf %211 : vector<16x128xf32> to vector<16x128xbf16>
    %c0_81 = arith.constant 0 : index
    %c0_82 = arith.constant 0 : index
    %c0_83 = arith.constant 0 : index
    %263 = vector.load %arg3[%c0_81, %c0_82, %c0_83] : memref<2x128x384xbf16, #tpu.memory_space<vmem>>, vector<1x128x384xbf16>
    %264 = vector.shape_cast %263 : vector<1x128x384xbf16> to vector<128x384xbf16>
    %cst_84 = arith.constant dense<0.000000e+00> : vector<16x384xf32>
    %265 = tpu.matmul %262, %264, %cst_84 {dimension_numbers = #tpu.dot_dimension_numbers<[1], [0], [0], [1], [0, 0, 1, 1], [], []>} : vector<16x128xbf16>, vector<128x384xbf16>, vector<16x384xf32> -> vector<16x384xf32>
    %266 = vector.extract_strided_slice %261 {offsets = [0, 0], sizes = [16, 128], strides = [1, 1]} : vector<16x384xf32> to vector<16x128xf32>
    %267 = vector.extract_strided_slice %265 {offsets = [0, 0], sizes = [16, 128], strides = [1, 1]} : vector<16x384xf32> to vector<16x128xf32>
    %268 = arith.addf %266, %267 : vector<16x128xf32>
    %269 = arith.negf %268 : vector<16x128xf32>
    %270 = math.exp %269 : vector<16x128xf32>
    %cst_85 = arith.constant 1.000000e+00 : f32
    %271 = vector.broadcast %cst_85 : f32 to vector<16x128xf32>
    %272 = arith.addf %271, %270 : vector<16x128xf32>
    %273 = arith.divf %271, %272 : vector<16x128xf32>
    %274 = vector.extract_strided_slice %261 {offsets = [0, 128], sizes = [16, 128], strides = [1, 1]} : vector<16x384xf32> to vector<16x128xf32>
    %275 = vector.extract_strided_slice %265 {offsets = [0, 128], sizes = [16, 128], strides = [1, 1]} : vector<16x384xf32> to vector<16x128xf32>
    %276 = arith.addf %274, %275 : vector<16x128xf32>
    %277 = arith.negf %276 : vector<16x128xf32>
    %278 = math.exp %277 : vector<16x128xf32>
    %cst_86 = arith.constant 1.000000e+00 : f32
    %279 = vector.broadcast %cst_86 : f32 to vector<16x128xf32>
    %280 = arith.addf %279, %278 : vector<16x128xf32>
    %281 = arith.divf %279, %280 : vector<16x128xf32>
    %282 = vector.extract_strided_slice %261 {offsets = [0, 256], sizes = [16, 128], strides = [1, 1]} : vector<16x384xf32> to vector<16x128xf32>
    %283 = vector.extract_strided_slice %265 {offsets = [0, 256], sizes = [16, 128], strides = [1, 1]} : vector<16x384xf32> to vector<16x128xf32>
    %284 = arith.addf %283, %6 : vector<16x128xf32>
    %285 = arith.mulf %273, %284 : vector<16x128xf32>
    %286 = arith.addf %282, %285 : vector<16x128xf32>
    %287 = math.tanh %286 : vector<16x128xf32>
    %cst_87 = arith.constant 1.000000e+00 : f32
    %288 = vector.broadcast %cst_87 : f32 to vector<16x128xf32>
    %289 = arith.subf %288, %281 : vector<16x128xf32>
    %290 = arith.mulf %289, %287 : vector<16x128xf32>
    %291 = arith.mulf %281, %211 : vector<16x128xf32>
    %292 = arith.addf %290, %291 : vector<16x128xf32>
    %293 = arith.truncf %292 : vector<16x128xf32> to vector<16x128xbf16>
    %294 = arith.index_cast %c3_i32 : i32 to index
    %c0_88 = arith.constant 0 : index
    %c0_89 = arith.constant 0 : index
    %295 = vector.load %arg5[%294, %c0_88, %c0_89] : memref<9x16x128xbf16, #tpu.memory_space<vmem>>, vector<1x16x128xbf16>
    %296 = vector.shape_cast %295 : vector<1x16x128xbf16> to vector<16x128xbf16>
    %297 = vector.shape_cast %293 : vector<16x128xbf16> to vector<1x16x128xbf16>
    tpu.vector_store %arg5[%294, %c0_88, %c0_89], %297 {strides = array<i32>} : memref<9x16x128xbf16, #tpu.memory_space<vmem>>, vector<1x16x128xbf16>,
    %c8_i32_90 = arith.constant 8 : i32
    %298 = arith.subi %c8_i32_90, %c3_i32 : i32
    %299 = arith.index_cast %298 : i32 to index
    %c0_91 = arith.constant 0 : index
    %c0_92 = arith.constant 0 : index
    %300 = vector.load %arg2[%299, %c0_91, %c0_92] : memref<9x16x384xbf16, #tpu.memory_space<vmem>>, vector<1x16x384xbf16>
    %301 = vector.shape_cast %300 : vector<1x16x384xbf16> to vector<16x384xbf16>
    %302 = arith.extf %301 : vector<16x384xbf16> to vector<16x384xf32>
    %303 = arith.truncf %252 : vector<16x128xf32> to vector<16x128xbf16>
    %c1_93 = arith.constant 1 : index
    %c0_94 = arith.constant 0 : index
    %c0_95 = arith.constant 0 : index
    %304 = vector.load %arg3[%c1_93, %c0_94, %c0_95] : memref<2x128x384xbf16, #tpu.memory_space<vmem>>, vector<1x128x384xbf16>
    %305 = vector.shape_cast %304 : vector<1x128x384xbf16> to vector<128x384xbf16>
    %cst_96 = arith.constant dense<0.000000e+00> : vector<16x384xf32>
    %306 = tpu.matmul %303, %305, %cst_96 {dimension_numbers = #tpu.dot_dimension_numbers<[1], [0], [0], [1], [0, 0, 1, 1], [], []>} : vector<16x128xbf16>, vector<128x384xbf16>, vector<16x384xf32> -> vector<16x384xf32>
    %307 = vector.extract_strided_slice %302 {offsets = [0, 0], sizes = [16, 128], strides = [1, 1]} : vector<16x384xf32> to vector<16x128xf32>
    %308 = vector.extract_strided_slice %306 {offsets = [0, 0], sizes = [16, 128], strides = [1, 1]} : vector<16x384xf32> to vector<16x128xf32>
    %309 = arith.addf %307, %308 : vector<16x128xf32>
    %310 = arith.negf %309 : vector<16x128xf32>
    %311 = math.exp %310 : vector<16x128xf32>
    %cst_97 = arith.constant 1.000000e+00 : f32
    %312 = vector.broadcast %cst_97 : f32 to vector<16x128xf32>
    %313 = arith.addf %312, %311 : vector<16x128xf32>
    %314 = arith.divf %312, %313 : vector<16x128xf32>
    %315 = vector.extract_strided_slice %302 {offsets = [0, 128], sizes = [16, 128], strides = [1, 1]} : vector<16x384xf32> to vector<16x128xf32>
    %316 = vector.extract_strided_slice %306 {offsets = [0, 128], sizes = [16, 128], strides = [1, 1]} : vector<16x384xf32> to vector<16x128xf32>
    %317 = arith.addf %315, %316 : vector<16x128xf32>
    %318 = arith.negf %317 : vector<16x128xf32>
    %319 = math.exp %318 : vector<16x128xf32>
    %cst_98 = arith.constant 1.000000e+00 : f32
    %320 = vector.broadcast %cst_98 : f32 to vector<16x128xf32>
    %321 = arith.addf %320, %319 : vector<16x128xf32>
    %322 = arith.divf %320, %321 : vector<16x128xf32>
    %323 = vector.extract_strided_slice %302 {offsets = [0, 256], sizes = [16, 128], strides = [1, 1]} : vector<16x384xf32> to vector<16x128xf32>
    %324 = vector.extract_strided_slice %306 {offsets = [0, 256], sizes = [16, 128], strides = [1, 1]} : vector<16x384xf32> to vector<16x128xf32>
    %325 = arith.addf %324, %10 : vector<16x128xf32>
    %326 = arith.mulf %314, %325 : vector<16x128xf32>
    %327 = arith.addf %323, %326 : vector<16x128xf32>
    %328 = math.tanh %327 : vector<16x128xf32>
    %cst_99 = arith.constant 1.000000e+00 : f32
    %329 = vector.broadcast %cst_99 : f32 to vector<16x128xf32>
    %330 = arith.subf %329, %322 : vector<16x128xf32>
    %331 = arith.mulf %330, %328 : vector<16x128xf32>
    %332 = arith.mulf %322, %252 : vector<16x128xf32>
    %333 = arith.addf %331, %332 : vector<16x128xf32>
    %334 = arith.truncf %333 : vector<16x128xf32> to vector<16x128xbf16>
    %335 = arith.index_cast %298 : i32 to index
    %c0_100 = arith.constant 0 : index
    %c0_101 = arith.constant 0 : index
    %336 = vector.load %arg6[%335, %c0_100, %c0_101] : memref<9x16x128xbf16, #tpu.memory_space<vmem>>, vector<1x16x128xbf16>
    %337 = vector.shape_cast %336 : vector<1x16x128xbf16> to vector<16x128xbf16>
    %338 = vector.shape_cast %334 : vector<16x128xbf16> to vector<1x16x128xbf16>
    tpu.vector_store %arg6[%335, %c0_100, %c0_101], %338 {strides = array<i32>} : memref<9x16x128xbf16, #tpu.memory_space<vmem>>, vector<1x16x128xbf16>,
    %c4_i32 = arith.constant 4 : i32
    %339 = arith.index_cast %c4_i32 : i32 to index
    %c0_102 = arith.constant 0 : index
    %c0_103 = arith.constant 0 : index
    %340 = vector.load %arg1[%339, %c0_102, %c0_103] : memref<9x16x384xbf16, #tpu.memory_space<vmem>>, vector<1x16x384xbf16>
    %341 = vector.shape_cast %340 : vector<1x16x384xbf16> to vector<16x384xbf16>
    %342 = arith.extf %341 : vector<16x384xbf16> to vector<16x384xf32>
    %343 = arith.truncf %292 : vector<16x128xf32> to vector<16x128xbf16>
    %c0_104 = arith.constant 0 : index
    %c0_105 = arith.constant 0 : index
    %c0_106 = arith.constant 0 : index
    %344 = vector.load %arg3[%c0_104, %c0_105, %c0_106] : memref<2x128x384xbf16, #tpu.memory_space<vmem>>, vector<1x128x384xbf16>
    %345 = vector.shape_cast %344 : vector<1x128x384xbf16> to vector<128x384xbf16>
    %cst_107 = arith.constant dense<0.000000e+00> : vector<16x384xf32>
    %346 = tpu.matmul %343, %345, %cst_107 {dimension_numbers = #tpu.dot_dimension_numbers<[1], [0], [0], [1], [0, 0, 1, 1], [], []>} : vector<16x128xbf16>, vector<128x384xbf16>, vector<16x384xf32> -> vector<16x384xf32>
    %347 = vector.extract_strided_slice %342 {offsets = [0, 0], sizes = [16, 128], strides = [1, 1]} : vector<16x384xf32> to vector<16x128xf32>
    %348 = vector.extract_strided_slice %346 {offsets = [0, 0], sizes = [16, 128], strides = [1, 1]} : vector<16x384xf32> to vector<16x128xf32>
    %349 = arith.addf %347, %348 : vector<16x128xf32>
    %350 = arith.negf %349 : vector<16x128xf32>
    %351 = math.exp %350 : vector<16x128xf32>
    %cst_108 = arith.constant 1.000000e+00 : f32
    %352 = vector.broadcast %cst_108 : f32 to vector<16x128xf32>
    %353 = arith.addf %352, %351 : vector<16x128xf32>
    %354 = arith.divf %352, %353 : vector<16x128xf32>
    %355 = vector.extract_strided_slice %342 {offsets = [0, 128], sizes = [16, 128], strides = [1, 1]} : vector<16x384xf32> to vector<16x128xf32>
    %356 = vector.extract_strided_slice %346 {offsets = [0, 128], sizes = [16, 128], strides = [1, 1]} : vector<16x384xf32> to vector<16x128xf32>
    %357 = arith.addf %355, %356 : vector<16x128xf32>
    %358 = arith.negf %357 : vector<16x128xf32>
    %359 = math.exp %358 : vector<16x128xf32>
    %cst_109 = arith.constant 1.000000e+00 : f32
    %360 = vector.broadcast %cst_109 : f32 to vector<16x128xf32>
    %361 = arith.addf %360, %359 : vector<16x128xf32>
    %362 = arith.divf %360, %361 : vector<16x128xf32>
    %363 = vector.extract_strided_slice %342 {offsets = [0, 256], sizes = [16, 128], strides = [1, 1]} : vector<16x384xf32> to vector<16x128xf32>
    %364 = vector.extract_strided_slice %346 {offsets = [0, 256], sizes = [16, 128], strides = [1, 1]} : vector<16x384xf32> to vector<16x128xf32>
    %365 = arith.addf %364, %6 : vector<16x128xf32>
    %366 = arith.mulf %354, %365 : vector<16x128xf32>
    %367 = arith.addf %363, %366 : vector<16x128xf32>
    %368 = math.tanh %367 : vector<16x128xf32>
    %cst_110 = arith.constant 1.000000e+00 : f32
    %369 = vector.broadcast %cst_110 : f32 to vector<16x128xf32>
    %370 = arith.subf %369, %362 : vector<16x128xf32>
    %371 = arith.mulf %370, %368 : vector<16x128xf32>
    %372 = arith.mulf %362, %292 : vector<16x128xf32>
    %373 = arith.addf %371, %372 : vector<16x128xf32>
    %374 = arith.truncf %373 : vector<16x128xf32> to vector<16x128xbf16>
    %375 = arith.index_cast %c4_i32 : i32 to index
    %c0_111 = arith.constant 0 : index
    %c0_112 = arith.constant 0 : index
    %376 = vector.load %arg5[%375, %c0_111, %c0_112] : memref<9x16x128xbf16, #tpu.memory_space<vmem>>, vector<1x16x128xbf16>
    %377 = vector.shape_cast %376 : vector<1x16x128xbf16> to vector<16x128xbf16>
    %378 = vector.shape_cast %374 : vector<16x128xbf16> to vector<1x16x128xbf16>
    tpu.vector_store %arg5[%375, %c0_111, %c0_112], %378 {strides = array<i32>} : memref<9x16x128xbf16, #tpu.memory_space<vmem>>, vector<1x16x128xbf16>,
    %c8_i32_113 = arith.constant 8 : i32
    %379 = arith.subi %c8_i32_113, %c4_i32 : i32
    %380 = arith.index_cast %379 : i32 to index
    %c0_114 = arith.constant 0 : index
    %c0_115 = arith.constant 0 : index
    %381 = vector.load %arg2[%380, %c0_114, %c0_115] : memref<9x16x384xbf16, #tpu.memory_space<vmem>>, vector<1x16x384xbf16>
    %382 = vector.shape_cast %381 : vector<1x16x384xbf16> to vector<16x384xbf16>
    %383 = arith.extf %382 : vector<16x384xbf16> to vector<16x384xf32>
    %384 = arith.truncf %333 : vector<16x128xf32> to vector<16x128xbf16>
    %c1_116 = arith.constant 1 : index
    %c0_117 = arith.constant 0 : index
    %c0_118 = arith.constant 0 : index
    %385 = vector.load %arg3[%c1_116, %c0_117, %c0_118] : memref<2x128x384xbf16, #tpu.memory_space<vmem>>, vector<1x128x384xbf16>
    %386 = vector.shape_cast %385 : vector<1x128x384xbf16> to vector<128x384xbf16>
    %cst_119 = arith.constant dense<0.000000e+00> : vector<16x384xf32>
    %387 = tpu.matmul %384, %386, %cst_119 {dimension_numbers = #tpu.dot_dimension_numbers<[1], [0], [0], [1], [0, 0, 1, 1], [], []>} : vector<16x128xbf16>, vector<128x384xbf16>, vector<16x384xf32> -> vector<16x384xf32>
    %388 = vector.extract_strided_slice %383 {offsets = [0, 0], sizes = [16, 128], strides = [1, 1]} : vector<16x384xf32> to vector<16x128xf32>
    %389 = vector.extract_strided_slice %387 {offsets = [0, 0], sizes = [16, 128], strides = [1, 1]} : vector<16x384xf32> to vector<16x128xf32>
    %390 = arith.addf %388, %389 : vector<16x128xf32>
    %391 = arith.negf %390 : vector<16x128xf32>
    %392 = math.exp %391 : vector<16x128xf32>
    %cst_120 = arith.constant 1.000000e+00 : f32
    %393 = vector.broadcast %cst_120 : f32 to vector<16x128xf32>
    %394 = arith.addf %393, %392 : vector<16x128xf32>
    %395 = arith.divf %393, %394 : vector<16x128xf32>
    %396 = vector.extract_strided_slice %383 {offsets = [0, 128], sizes = [16, 128], strides = [1, 1]} : vector<16x384xf32> to vector<16x128xf32>
    %397 = vector.extract_strided_slice %387 {offsets = [0, 128], sizes = [16, 128], strides = [1, 1]} : vector<16x384xf32> to vector<16x128xf32>
    %398 = arith.addf %396, %397 : vector<16x128xf32>
    %399 = arith.negf %398 : vector<16x128xf32>
    %400 = math.exp %399 : vector<16x128xf32>
    %cst_121 = arith.constant 1.000000e+00 : f32
    %401 = vector.broadcast %cst_121 : f32 to vector<16x128xf32>
    %402 = arith.addf %401, %400 : vector<16x128xf32>
    %403 = arith.divf %401, %402 : vector<16x128xf32>
    %404 = vector.extract_strided_slice %383 {offsets = [0, 256], sizes = [16, 128], strides = [1, 1]} : vector<16x384xf32> to vector<16x128xf32>
    %405 = vector.extract_strided_slice %387 {offsets = [0, 256], sizes = [16, 128], strides = [1, 1]} : vector<16x384xf32> to vector<16x128xf32>
    %406 = arith.addf %405, %10 : vector<16x128xf32>
    %407 = arith.mulf %395, %406 : vector<16x128xf32>
    %408 = arith.addf %404, %407 : vector<16x128xf32>
    %409 = math.tanh %408 : vector<16x128xf32>
    %cst_122 = arith.constant 1.000000e+00 : f32
    %410 = vector.broadcast %cst_122 : f32 to vector<16x128xf32>
    %411 = arith.subf %410, %403 : vector<16x128xf32>
    %412 = arith.mulf %411, %409 : vector<16x128xf32>
    %413 = arith.mulf %403, %333 : vector<16x128xf32>
    %414 = arith.addf %412, %413 : vector<16x128xf32>
    %415 = arith.truncf %414 : vector<16x128xf32> to vector<16x128xbf16>
    %416 = arith.index_cast %379 : i32 to index
    %c0_123 = arith.constant 0 : index
    %c0_124 = arith.constant 0 : index
    %417 = vector.load %arg6[%416, %c0_123, %c0_124] : memref<9x16x128xbf16, #tpu.memory_space<vmem>>, vector<1x16x128xbf16>
    %418 = vector.shape_cast %417 : vector<1x16x128xbf16> to vector<16x128xbf16>
    %419 = vector.shape_cast %415 : vector<16x128xbf16> to vector<1x16x128xbf16>
    tpu.vector_store %arg6[%416, %c0_123, %c0_124], %419 {strides = array<i32>} : memref<9x16x128xbf16, #tpu.memory_space<vmem>>, vector<1x16x128xbf16>,
    %c5_i32 = arith.constant 5 : i32
    %420 = arith.index_cast %c5_i32 : i32 to index
    %c0_125 = arith.constant 0 : index
    %c0_126 = arith.constant 0 : index
    %421 = vector.load %arg1[%420, %c0_125, %c0_126] : memref<9x16x384xbf16, #tpu.memory_space<vmem>>, vector<1x16x384xbf16>
    %422 = vector.shape_cast %421 : vector<1x16x384xbf16> to vector<16x384xbf16>
    %423 = arith.extf %422 : vector<16x384xbf16> to vector<16x384xf32>
    %424 = arith.truncf %373 : vector<16x128xf32> to vector<16x128xbf16>
    %c0_127 = arith.constant 0 : index
    %c0_128 = arith.constant 0 : index
    %c0_129 = arith.constant 0 : index
    %425 = vector.load %arg3[%c0_127, %c0_128, %c0_129] : memref<2x128x384xbf16, #tpu.memory_space<vmem>>, vector<1x128x384xbf16>
    %426 = vector.shape_cast %425 : vector<1x128x384xbf16> to vector<128x384xbf16>
    %cst_130 = arith.constant dense<0.000000e+00> : vector<16x384xf32>
    %427 = tpu.matmul %424, %426, %cst_130 {dimension_numbers = #tpu.dot_dimension_numbers<[1], [0], [0], [1], [0, 0, 1, 1], [], []>} : vector<16x128xbf16>, vector<128x384xbf16>, vector<16x384xf32> -> vector<16x384xf32>
    %428 = vector.extract_strided_slice %423 {offsets = [0, 0], sizes = [16, 128], strides = [1, 1]} : vector<16x384xf32> to vector<16x128xf32>
    %429 = vector.extract_strided_slice %427 {offsets = [0, 0], sizes = [16, 128], strides = [1, 1]} : vector<16x384xf32> to vector<16x128xf32>
    %430 = arith.addf %428, %429 : vector<16x128xf32>
    %431 = arith.negf %430 : vector<16x128xf32>
    %432 = math.exp %431 : vector<16x128xf32>
    %cst_131 = arith.constant 1.000000e+00 : f32
    %433 = vector.broadcast %cst_131 : f32 to vector<16x128xf32>
    %434 = arith.addf %433, %432 : vector<16x128xf32>
    %435 = arith.divf %433, %434 : vector<16x128xf32>
    %436 = vector.extract_strided_slice %423 {offsets = [0, 128], sizes = [16, 128], strides = [1, 1]} : vector<16x384xf32> to vector<16x128xf32>
    %437 = vector.extract_strided_slice %427 {offsets = [0, 128], sizes = [16, 128], strides = [1, 1]} : vector<16x384xf32> to vector<16x128xf32>
    %438 = arith.addf %436, %437 : vector<16x128xf32>
    %439 = arith.negf %438 : vector<16x128xf32>
    %440 = math.exp %439 : vector<16x128xf32>
    %cst_132 = arith.constant 1.000000e+00 : f32
    %441 = vector.broadcast %cst_132 : f32 to vector<16x128xf32>
    %442 = arith.addf %441, %440 : vector<16x128xf32>
    %443 = arith.divf %441, %442 : vector<16x128xf32>
    %444 = vector.extract_strided_slice %423 {offsets = [0, 256], sizes = [16, 128], strides = [1, 1]} : vector<16x384xf32> to vector<16x128xf32>
    %445 = vector.extract_strided_slice %427 {offsets = [0, 256], sizes = [16, 128], strides = [1, 1]} : vector<16x384xf32> to vector<16x128xf32>
    %446 = arith.addf %445, %6 : vector<16x128xf32>
    %447 = arith.mulf %435, %446 : vector<16x128xf32>
    %448 = arith.addf %444, %447 : vector<16x128xf32>
    %449 = math.tanh %448 : vector<16x128xf32>
    %cst_133 = arith.constant 1.000000e+00 : f32
    %450 = vector.broadcast %cst_133 : f32 to vector<16x128xf32>
    %451 = arith.subf %450, %443 : vector<16x128xf32>
    %452 = arith.mulf %451, %449 : vector<16x128xf32>
    %453 = arith.mulf %443, %373 : vector<16x128xf32>
    %454 = arith.addf %452, %453 : vector<16x128xf32>
    %455 = arith.truncf %454 : vector<16x128xf32> to vector<16x128xbf16>
    %456 = arith.index_cast %c5_i32 : i32 to index
    %c0_134 = arith.constant 0 : index
    %c0_135 = arith.constant 0 : index
    %457 = vector.load %arg5[%456, %c0_134, %c0_135] : memref<9x16x128xbf16, #tpu.memory_space<vmem>>, vector<1x16x128xbf16>
    %458 = vector.shape_cast %457 : vector<1x16x128xbf16> to vector<16x128xbf16>
    %459 = vector.shape_cast %455 : vector<16x128xbf16> to vector<1x16x128xbf16>
    tpu.vector_store %arg5[%456, %c0_134, %c0_135], %459 {strides = array<i32>} : memref<9x16x128xbf16, #tpu.memory_space<vmem>>, vector<1x16x128xbf16>,
    %c8_i32_136 = arith.constant 8 : i32
    %460 = arith.subi %c8_i32_136, %c5_i32 : i32
    %461 = arith.index_cast %460 : i32 to index
    %c0_137 = arith.constant 0 : index
    %c0_138 = arith.constant 0 : index
    %462 = vector.load %arg2[%461, %c0_137, %c0_138] : memref<9x16x384xbf16, #tpu.memory_space<vmem>>, vector<1x16x384xbf16>
    %463 = vector.shape_cast %462 : vector<1x16x384xbf16> to vector<16x384xbf16>
    %464 = arith.extf %463 : vector<16x384xbf16> to vector<16x384xf32>
    %465 = arith.truncf %414 : vector<16x128xf32> to vector<16x128xbf16>
    %c1_139 = arith.constant 1 : index
    %c0_140 = arith.constant 0 : index
    %c0_141 = arith.constant 0 : index
    %466 = vector.load %arg3[%c1_139, %c0_140, %c0_141] : memref<2x128x384xbf16, #tpu.memory_space<vmem>>, vector<1x128x384xbf16>
    %467 = vector.shape_cast %466 : vector<1x128x384xbf16> to vector<128x384xbf16>
    %cst_142 = arith.constant dense<0.000000e+00> : vector<16x384xf32>
    %468 = tpu.matmul %465, %467, %cst_142 {dimension_numbers = #tpu.dot_dimension_numbers<[1], [0], [0], [1], [0, 0, 1, 1], [], []>} : vector<16x128xbf16>, vector<128x384xbf16>, vector<16x384xf32> -> vector<16x384xf32>
    %469 = vector.extract_strided_slice %464 {offsets = [0, 0], sizes = [16, 128], strides = [1, 1]} : vector<16x384xf32> to vector<16x128xf32>
    %470 = vector.extract_strided_slice %468 {offsets = [0, 0], sizes = [16, 128], strides = [1, 1]} : vector<16x384xf32> to vector<16x128xf32>
    %471 = arith.addf %469, %470 : vector<16x128xf32>
    %472 = arith.negf %471 : vector<16x128xf32>
    %473 = math.exp %472 : vector<16x128xf32>
    %cst_143 = arith.constant 1.000000e+00 : f32
    %474 = vector.broadcast %cst_143 : f32 to vector<16x128xf32>
    %475 = arith.addf %474, %473 : vector<16x128xf32>
    %476 = arith.divf %474, %475 : vector<16x128xf32>
    %477 = vector.extract_strided_slice %464 {offsets = [0, 128], sizes = [16, 128], strides = [1, 1]} : vector<16x384xf32> to vector<16x128xf32>
    %478 = vector.extract_strided_slice %468 {offsets = [0, 128], sizes = [16, 128], strides = [1, 1]} : vector<16x384xf32> to vector<16x128xf32>
    %479 = arith.addf %477, %478 : vector<16x128xf32>
    %480 = arith.negf %479 : vector<16x128xf32>
    %481 = math.exp %480 : vector<16x128xf32>
    %cst_144 = arith.constant 1.000000e+00 : f32
    %482 = vector.broadcast %cst_144 : f32 to vector<16x128xf32>
    %483 = arith.addf %482, %481 : vector<16x128xf32>
    %484 = arith.divf %482, %483 : vector<16x128xf32>
    %485 = vector.extract_strided_slice %464 {offsets = [0, 256], sizes = [16, 128], strides = [1, 1]} : vector<16x384xf32> to vector<16x128xf32>
    %486 = vector.extract_strided_slice %468 {offsets = [0, 256], sizes = [16, 128], strides = [1, 1]} : vector<16x384xf32> to vector<16x128xf32>
    %487 = arith.addf %486, %10 : vector<16x128xf32>
    %488 = arith.mulf %476, %487 : vector<16x128xf32>
    %489 = arith.addf %485, %488 : vector<16x128xf32>
    %490 = math.tanh %489 : vector<16x128xf32>
    %cst_145 = arith.constant 1.000000e+00 : f32
    %491 = vector.broadcast %cst_145 : f32 to vector<16x128xf32>
    %492 = arith.subf %491, %484 : vector<16x128xf32>
    %493 = arith.mulf %492, %490 : vector<16x128xf32>
    %494 = arith.mulf %484, %414 : vector<16x128xf32>
    %495 = arith.addf %493, %494 : vector<16x128xf32>
    %496 = arith.truncf %495 : vector<16x128xf32> to vector<16x128xbf16>
    %497 = arith.index_cast %460 : i32 to index
    %c0_146 = arith.constant 0 : index
    %c0_147 = arith.constant 0 : index
    %498 = vector.load %arg6[%497, %c0_146, %c0_147] : memref<9x16x128xbf16, #tpu.memory_space<vmem>>, vector<1x16x128xbf16>
    %499 = vector.shape_cast %498 : vector<1x16x128xbf16> to vector<16x128xbf16>
    %500 = vector.shape_cast %496 : vector<16x128xbf16> to vector<1x16x128xbf16>
    tpu.vector_store %arg6[%497, %c0_146, %c0_147], %500 {strides = array<i32>} : memref<9x16x128xbf16, #tpu.memory_space<vmem>>, vector<1x16x128xbf16>,
    %c6_i32 = arith.constant 6 : i32
    %501 = arith.index_cast %c6_i32 : i32 to index
    %c0_148 = arith.constant 0 : index
    %c0_149 = arith.constant 0 : index
    %502 = vector.load %arg1[%501, %c0_148, %c0_149] : memref<9x16x384xbf16, #tpu.memory_space<vmem>>, vector<1x16x384xbf16>
    %503 = vector.shape_cast %502 : vector<1x16x384xbf16> to vector<16x384xbf16>
    %504 = arith.extf %503 : vector<16x384xbf16> to vector<16x384xf32>
    %505 = arith.truncf %454 : vector<16x128xf32> to vector<16x128xbf16>
    %c0_150 = arith.constant 0 : index
    %c0_151 = arith.constant 0 : index
    %c0_152 = arith.constant 0 : index
    %506 = vector.load %arg3[%c0_150, %c0_151, %c0_152] : memref<2x128x384xbf16, #tpu.memory_space<vmem>>, vector<1x128x384xbf16>
    %507 = vector.shape_cast %506 : vector<1x128x384xbf16> to vector<128x384xbf16>
    %cst_153 = arith.constant dense<0.000000e+00> : vector<16x384xf32>
    %508 = tpu.matmul %505, %507, %cst_153 {dimension_numbers = #tpu.dot_dimension_numbers<[1], [0], [0], [1], [0, 0, 1, 1], [], []>} : vector<16x128xbf16>, vector<128x384xbf16>, vector<16x384xf32> -> vector<16x384xf32>
    %509 = vector.extract_strided_slice %504 {offsets = [0, 0], sizes = [16, 128], strides = [1, 1]} : vector<16x384xf32> to vector<16x128xf32>
    %510 = vector.extract_strided_slice %508 {offsets = [0, 0], sizes = [16, 128], strides = [1, 1]} : vector<16x384xf32> to vector<16x128xf32>
    %511 = arith.addf %509, %510 : vector<16x128xf32>
    %512 = arith.negf %511 : vector<16x128xf32>
    %513 = math.exp %512 : vector<16x128xf32>
    %cst_154 = arith.constant 1.000000e+00 : f32
    %514 = vector.broadcast %cst_154 : f32 to vector<16x128xf32>
    %515 = arith.addf %514, %513 : vector<16x128xf32>
    %516 = arith.divf %514, %515 : vector<16x128xf32>
    %517 = vector.extract_strided_slice %504 {offsets = [0, 128], sizes = [16, 128], strides = [1, 1]} : vector<16x384xf32> to vector<16x128xf32>
    %518 = vector.extract_strided_slice %508 {offsets = [0, 128], sizes = [16, 128], strides = [1, 1]} : vector<16x384xf32> to vector<16x128xf32>
    %519 = arith.addf %517, %518 : vector<16x128xf32>
    %520 = arith.negf %519 : vector<16x128xf32>
    %521 = math.exp %520 : vector<16x128xf32>
    %cst_155 = arith.constant 1.000000e+00 : f32
    %522 = vector.broadcast %cst_155 : f32 to vector<16x128xf32>
    %523 = arith.addf %522, %521 : vector<16x128xf32>
    %524 = arith.divf %522, %523 : vector<16x128xf32>
    %525 = vector.extract_strided_slice %504 {offsets = [0, 256], sizes = [16, 128], strides = [1, 1]} : vector<16x384xf32> to vector<16x128xf32>
    %526 = vector.extract_strided_slice %508 {offsets = [0, 256], sizes = [16, 128], strides = [1, 1]} : vector<16x384xf32> to vector<16x128xf32>
    %527 = arith.addf %526, %6 : vector<16x128xf32>
    %528 = arith.mulf %516, %527 : vector<16x128xf32>
    %529 = arith.addf %525, %528 : vector<16x128xf32>
    %530 = math.tanh %529 : vector<16x128xf32>
    %cst_156 = arith.constant 1.000000e+00 : f32
    %531 = vector.broadcast %cst_156 : f32 to vector<16x128xf32>
    %532 = arith.subf %531, %524 : vector<16x128xf32>
    %533 = arith.mulf %532, %530 : vector<16x128xf32>
    %534 = arith.mulf %524, %454 : vector<16x128xf32>
    %535 = arith.addf %533, %534 : vector<16x128xf32>
    %536 = arith.truncf %535 : vector<16x128xf32> to vector<16x128xbf16>
    %537 = arith.index_cast %c6_i32 : i32 to index
    %c0_157 = arith.constant 0 : index
    %c0_158 = arith.constant 0 : index
    %538 = vector.load %arg5[%537, %c0_157, %c0_158] : memref<9x16x128xbf16, #tpu.memory_space<vmem>>, vector<1x16x128xbf16>
    %539 = vector.shape_cast %538 : vector<1x16x128xbf16> to vector<16x128xbf16>
    %540 = vector.shape_cast %536 : vector<16x128xbf16> to vector<1x16x128xbf16>
    tpu.vector_store %arg5[%537, %c0_157, %c0_158], %540 {strides = array<i32>} : memref<9x16x128xbf16, #tpu.memory_space<vmem>>, vector<1x16x128xbf16>,
    %c8_i32_159 = arith.constant 8 : i32
    %541 = arith.subi %c8_i32_159, %c6_i32 : i32
    %542 = arith.index_cast %541 : i32 to index
    %c0_160 = arith.constant 0 : index
    %c0_161 = arith.constant 0 : index
    %543 = vector.load %arg2[%542, %c0_160, %c0_161] : memref<9x16x384xbf16, #tpu.memory_space<vmem>>, vector<1x16x384xbf16>
    %544 = vector.shape_cast %543 : vector<1x16x384xbf16> to vector<16x384xbf16>
    %545 = arith.extf %544 : vector<16x384xbf16> to vector<16x384xf32>
    %546 = arith.truncf %495 : vector<16x128xf32> to vector<16x128xbf16>
    %c1_162 = arith.constant 1 : index
    %c0_163 = arith.constant 0 : index
    %c0_164 = arith.constant 0 : index
    %547 = vector.load %arg3[%c1_162, %c0_163, %c0_164] : memref<2x128x384xbf16, #tpu.memory_space<vmem>>, vector<1x128x384xbf16>
    %548 = vector.shape_cast %547 : vector<1x128x384xbf16> to vector<128x384xbf16>
    %cst_165 = arith.constant dense<0.000000e+00> : vector<16x384xf32>
    %549 = tpu.matmul %546, %548, %cst_165 {dimension_numbers = #tpu.dot_dimension_numbers<[1], [0], [0], [1], [0, 0, 1, 1], [], []>} : vector<16x128xbf16>, vector<128x384xbf16>, vector<16x384xf32> -> vector<16x384xf32>
    %550 = vector.extract_strided_slice %545 {offsets = [0, 0], sizes = [16, 128], strides = [1, 1]} : vector<16x384xf32> to vector<16x128xf32>
    %551 = vector.extract_strided_slice %549 {offsets = [0, 0], sizes = [16, 128], strides = [1, 1]} : vector<16x384xf32> to vector<16x128xf32>
    %552 = arith.addf %550, %551 : vector<16x128xf32>
    %553 = arith.negf %552 : vector<16x128xf32>
    %554 = math.exp %553 : vector<16x128xf32>
    %cst_166 = arith.constant 1.000000e+00 : f32
    %555 = vector.broadcast %cst_166 : f32 to vector<16x128xf32>
    %556 = arith.addf %555, %554 : vector<16x128xf32>
    %557 = arith.divf %555, %556 : vector<16x128xf32>
    %558 = vector.extract_strided_slice %545 {offsets = [0, 128], sizes = [16, 128], strides = [1, 1]} : vector<16x384xf32> to vector<16x128xf32>
    %559 = vector.extract_strided_slice %549 {offsets = [0, 128], sizes = [16, 128], strides = [1, 1]} : vector<16x384xf32> to vector<16x128xf32>
    %560 = arith.addf %558, %559 : vector<16x128xf32>
    %561 = arith.negf %560 : vector<16x128xf32>
    %562 = math.exp %561 : vector<16x128xf32>
    %cst_167 = arith.constant 1.000000e+00 : f32
    %563 = vector.broadcast %cst_167 : f32 to vector<16x128xf32>
    %564 = arith.addf %563, %562 : vector<16x128xf32>
    %565 = arith.divf %563, %564 : vector<16x128xf32>
    %566 = vector.extract_strided_slice %545 {offsets = [0, 256], sizes = [16, 128], strides = [1, 1]} : vector<16x384xf32> to vector<16x128xf32>
    %567 = vector.extract_strided_slice %549 {offsets = [0, 256], sizes = [16, 128], strides = [1, 1]} : vector<16x384xf32> to vector<16x128xf32>
    %568 = arith.addf %567, %10 : vector<16x128xf32>
    %569 = arith.mulf %557, %568 : vector<16x128xf32>
    %570 = arith.addf %566, %569 : vector<16x128xf32>
    %571 = math.tanh %570 : vector<16x128xf32>
    %cst_168 = arith.constant 1.000000e+00 : f32
    %572 = vector.broadcast %cst_168 : f32 to vector<16x128xf32>
    %573 = arith.subf %572, %565 : vector<16x128xf32>
    %574 = arith.mulf %573, %571 : vector<16x128xf32>
    %575 = arith.mulf %565, %495 : vector<16x128xf32>
    %576 = arith.addf %574, %575 : vector<16x128xf32>
    %577 = arith.truncf %576 : vector<16x128xf32> to vector<16x128xbf16>
    %578 = arith.index_cast %541 : i32 to index
    %c0_169 = arith.constant 0 : index
    %c0_170 = arith.constant 0 : index
    %579 = vector.load %arg6[%578, %c0_169, %c0_170] : memref<9x16x128xbf16, #tpu.memory_space<vmem>>, vector<1x16x128xbf16>
    %580 = vector.shape_cast %579 : vector<1x16x128xbf16> to vector<16x128xbf16>
    %581 = vector.shape_cast %577 : vector<16x128xbf16> to vector<1x16x128xbf16>
    tpu.vector_store %arg6[%578, %c0_169, %c0_170], %581 {strides = array<i32>} : memref<9x16x128xbf16, #tpu.memory_space<vmem>>, vector<1x16x128xbf16>,
    %c7_i32 = arith.constant 7 : i32
    %582 = arith.index_cast %c7_i32 : i32 to index
    %c0_171 = arith.constant 0 : index
    %c0_172 = arith.constant 0 : index
    %583 = vector.load %arg1[%582, %c0_171, %c0_172] : memref<9x16x384xbf16, #tpu.memory_space<vmem>>, vector<1x16x384xbf16>
    %584 = vector.shape_cast %583 : vector<1x16x384xbf16> to vector<16x384xbf16>
    %585 = arith.extf %584 : vector<16x384xbf16> to vector<16x384xf32>
    %586 = arith.truncf %535 : vector<16x128xf32> to vector<16x128xbf16>
    %c0_173 = arith.constant 0 : index
    %c0_174 = arith.constant 0 : index
    %c0_175 = arith.constant 0 : index
    %587 = vector.load %arg3[%c0_173, %c0_174, %c0_175] : memref<2x128x384xbf16, #tpu.memory_space<vmem>>, vector<1x128x384xbf16>
    %588 = vector.shape_cast %587 : vector<1x128x384xbf16> to vector<128x384xbf16>
    %cst_176 = arith.constant dense<0.000000e+00> : vector<16x384xf32>
    %589 = tpu.matmul %586, %588, %cst_176 {dimension_numbers = #tpu.dot_dimension_numbers<[1], [0], [0], [1], [0, 0, 1, 1], [], []>} : vector<16x128xbf16>, vector<128x384xbf16>, vector<16x384xf32> -> vector<16x384xf32>
    %590 = vector.extract_strided_slice %585 {offsets = [0, 0], sizes = [16, 128], strides = [1, 1]} : vector<16x384xf32> to vector<16x128xf32>
    %591 = vector.extract_strided_slice %589 {offsets = [0, 0], sizes = [16, 128], strides = [1, 1]} : vector<16x384xf32> to vector<16x128xf32>
    %592 = arith.addf %590, %591 : vector<16x128xf32>
    %593 = arith.negf %592 : vector<16x128xf32>
    %594 = math.exp %593 : vector<16x128xf32>
    %cst_177 = arith.constant 1.000000e+00 : f32
    %595 = vector.broadcast %cst_177 : f32 to vector<16x128xf32>
    %596 = arith.addf %595, %594 : vector<16x128xf32>
    %597 = arith.divf %595, %596 : vector<16x128xf32>
    %598 = vector.extract_strided_slice %585 {offsets = [0, 128], sizes = [16, 128], strides = [1, 1]} : vector<16x384xf32> to vector<16x128xf32>
    %599 = vector.extract_strided_slice %589 {offsets = [0, 128], sizes = [16, 128], strides = [1, 1]} : vector<16x384xf32> to vector<16x128xf32>
    %600 = arith.addf %598, %599 : vector<16x128xf32>
    %601 = arith.negf %600 : vector<16x128xf32>
    %602 = math.exp %601 : vector<16x128xf32>
    %cst_178 = arith.constant 1.000000e+00 : f32
    %603 = vector.broadcast %cst_178 : f32 to vector<16x128xf32>
    %604 = arith.addf %603, %602 : vector<16x128xf32>
    %605 = arith.divf %603, %604 : vector<16x128xf32>
    %606 = vector.extract_strided_slice %585 {offsets = [0, 256], sizes = [16, 128], strides = [1, 1]} : vector<16x384xf32> to vector<16x128xf32>
    %607 = vector.extract_strided_slice %589 {offsets = [0, 256], sizes = [16, 128], strides = [1, 1]} : vector<16x384xf32> to vector<16x128xf32>
    %608 = arith.addf %607, %6 : vector<16x128xf32>
    %609 = arith.mulf %597, %608 : vector<16x128xf32>
    %610 = arith.addf %606, %609 : vector<16x128xf32>
    %611 = math.tanh %610 : vector<16x128xf32>
    %cst_179 = arith.constant 1.000000e+00 : f32
    %612 = vector.broadcast %cst_179 : f32 to vector<16x128xf32>
    %613 = arith.subf %612, %605 : vector<16x128xf32>
    %614 = arith.mulf %613, %611 : vector<16x128xf32>
    %615 = arith.mulf %605, %535 : vector<16x128xf32>
    %616 = arith.addf %614, %615 : vector<16x128xf32>
    %617 = arith.truncf %616 : vector<16x128xf32> to vector<16x128xbf16>
    %618 = arith.index_cast %c7_i32 : i32 to index
    %c0_180 = arith.constant 0 : index
    %c0_181 = arith.constant 0 : index
    %619 = vector.load %arg5[%618, %c0_180, %c0_181] : memref<9x16x128xbf16, #tpu.memory_space<vmem>>, vector<1x16x128xbf16>
    %620 = vector.shape_cast %619 : vector<1x16x128xbf16> to vector<16x128xbf16>
    %621 = vector.shape_cast %617 : vector<16x128xbf16> to vector<1x16x128xbf16>
    tpu.vector_store %arg5[%618, %c0_180, %c0_181], %621 {strides = array<i32>} : memref<9x16x128xbf16, #tpu.memory_space<vmem>>, vector<1x16x128xbf16>,
    %c8_i32_182 = arith.constant 8 : i32
    %622 = arith.subi %c8_i32_182, %c7_i32 : i32
    %623 = arith.index_cast %622 : i32 to index
    %c0_183 = arith.constant 0 : index
    %c0_184 = arith.constant 0 : index
    %624 = vector.load %arg2[%623, %c0_183, %c0_184] : memref<9x16x384xbf16, #tpu.memory_space<vmem>>, vector<1x16x384xbf16>
    %625 = vector.shape_cast %624 : vector<1x16x384xbf16> to vector<16x384xbf16>
    %626 = arith.extf %625 : vector<16x384xbf16> to vector<16x384xf32>
    %627 = arith.truncf %576 : vector<16x128xf32> to vector<16x128xbf16>
    %c1_185 = arith.constant 1 : index
    %c0_186 = arith.constant 0 : index
    %c0_187 = arith.constant 0 : index
    %628 = vector.load %arg3[%c1_185, %c0_186, %c0_187] : memref<2x128x384xbf16, #tpu.memory_space<vmem>>, vector<1x128x384xbf16>
    %629 = vector.shape_cast %628 : vector<1x128x384xbf16> to vector<128x384xbf16>
    %cst_188 = arith.constant dense<0.000000e+00> : vector<16x384xf32>
    %630 = tpu.matmul %627, %629, %cst_188 {dimension_numbers = #tpu.dot_dimension_numbers<[1], [0], [0], [1], [0, 0, 1, 1], [], []>} : vector<16x128xbf16>, vector<128x384xbf16>, vector<16x384xf32> -> vector<16x384xf32>
    %631 = vector.extract_strided_slice %626 {offsets = [0, 0], sizes = [16, 128], strides = [1, 1]} : vector<16x384xf32> to vector<16x128xf32>
    %632 = vector.extract_strided_slice %630 {offsets = [0, 0], sizes = [16, 128], strides = [1, 1]} : vector<16x384xf32> to vector<16x128xf32>
    %633 = arith.addf %631, %632 : vector<16x128xf32>
    %634 = arith.negf %633 : vector<16x128xf32>
    %635 = math.exp %634 : vector<16x128xf32>
    %cst_189 = arith.constant 1.000000e+00 : f32
    %636 = vector.broadcast %cst_189 : f32 to vector<16x128xf32>
    %637 = arith.addf %636, %635 : vector<16x128xf32>
    %638 = arith.divf %636, %637 : vector<16x128xf32>
    %639 = vector.extract_strided_slice %626 {offsets = [0, 128], sizes = [16, 128], strides = [1, 1]} : vector<16x384xf32> to vector<16x128xf32>
    %640 = vector.extract_strided_slice %630 {offsets = [0, 128], sizes = [16, 128], strides = [1, 1]} : vector<16x384xf32> to vector<16x128xf32>
    %641 = arith.addf %639, %640 : vector<16x128xf32>
    %642 = arith.negf %641 : vector<16x128xf32>
    %643 = math.exp %642 : vector<16x128xf32>
    %cst_190 = arith.constant 1.000000e+00 : f32
    %644 = vector.broadcast %cst_190 : f32 to vector<16x128xf32>
    %645 = arith.addf %644, %643 : vector<16x128xf32>
    %646 = arith.divf %644, %645 : vector<16x128xf32>
    %647 = vector.extract_strided_slice %626 {offsets = [0, 256], sizes = [16, 128], strides = [1, 1]} : vector<16x384xf32> to vector<16x128xf32>
    %648 = vector.extract_strided_slice %630 {offsets = [0, 256], sizes = [16, 128], strides = [1, 1]} : vector<16x384xf32> to vector<16x128xf32>
    %649 = arith.addf %648, %10 : vector<16x128xf32>
    %650 = arith.mulf %638, %649 : vector<16x128xf32>
    %651 = arith.addf %647, %650 : vector<16x128xf32>
    %652 = math.tanh %651 : vector<16x128xf32>
    %cst_191 = arith.constant 1.000000e+00 : f32
    %653 = vector.broadcast %cst_191 : f32 to vector<16x128xf32>
    %654 = arith.subf %653, %646 : vector<16x128xf32>
    %655 = arith.mulf %654, %652 : vector<16x128xf32>
    %656 = arith.mulf %646, %576 : vector<16x128xf32>
    %657 = arith.addf %655, %656 : vector<16x128xf32>
    %658 = arith.truncf %657 : vector<16x128xf32> to vector<16x128xbf16>
    %659 = arith.index_cast %622 : i32 to index
    %c0_192 = arith.constant 0 : index
    %c0_193 = arith.constant 0 : index
    %660 = vector.load %arg6[%659, %c0_192, %c0_193] : memref<9x16x128xbf16, #tpu.memory_space<vmem>>, vector<1x16x128xbf16>
    %661 = vector.shape_cast %660 : vector<1x16x128xbf16> to vector<16x128xbf16>
    %662 = vector.shape_cast %658 : vector<16x128xbf16> to vector<1x16x128xbf16>
    tpu.vector_store %arg6[%659, %c0_192, %c0_193], %662 {strides = array<i32>} : memref<9x16x128xbf16, #tpu.memory_space<vmem>>, vector<1x16x128xbf16>,
    %c8_i32_194 = arith.constant 8 : i32
    %c8_i32_195 = arith.constant 8 : i32
    %663 = arith.index_cast %c8_i32_195 : i32 to index
    %c0_196 = arith.constant 0 : index
    %c0_197 = arith.constant 0 : index
    %664 = vector.load %arg1[%663, %c0_196, %c0_197] : memref<9x16x384xbf16, #tpu.memory_space<vmem>>, vector<1x16x384xbf16>
    %665 = vector.shape_cast %664 : vector<1x16x384xbf16> to vector<16x384xbf16>
    %666 = arith.extf %665 : vector<16x384xbf16> to vector<16x384xf32>
    %667 = arith.truncf %616 : vector<16x128xf32> to vector<16x128xbf16>
    %c0_198 = arith.constant 0 : index
    %c0_199 = arith.constant 0 : index
    %c0_200 = arith.constant 0 : index
    %668 = vector.load %arg3[%c0_198, %c0_199, %c0_200] : memref<2x128x384xbf16, #tpu.memory_space<vmem>>, vector<1x128x384xbf16>
    %669 = vector.shape_cast %668 : vector<1x128x384xbf16> to vector<128x384xbf16>
    %cst_201 = arith.constant dense<0.000000e+00> : vector<16x384xf32>
    %670 = tpu.matmul %667, %669, %cst_201 {dimension_numbers = #tpu.dot_dimension_numbers<[1], [0], [0], [1], [0, 0, 1, 1], [], []>} : vector<16x128xbf16>, vector<128x384xbf16>, vector<16x384xf32> -> vector<16x384xf32>
    %671 = vector.extract_strided_slice %666 {offsets = [0, 0], sizes = [16, 128], strides = [1, 1]} : vector<16x384xf32> to vector<16x128xf32>
    %672 = vector.extract_strided_slice %670 {offsets = [0, 0], sizes = [16, 128], strides = [1, 1]} : vector<16x384xf32> to vector<16x128xf32>
    %673 = arith.addf %671, %672 : vector<16x128xf32>
    %674 = arith.negf %673 : vector<16x128xf32>
    %675 = math.exp %674 : vector<16x128xf32>
    %cst_202 = arith.constant 1.000000e+00 : f32
    %676 = vector.broadcast %cst_202 : f32 to vector<16x128xf32>
    %677 = arith.addf %676, %675 : vector<16x128xf32>
    %678 = arith.divf %676, %677 : vector<16x128xf32>
    %679 = vector.extract_strided_slice %666 {offsets = [0, 128], sizes = [16, 128], strides = [1, 1]} : vector<16x384xf32> to vector<16x128xf32>
    %680 = vector.extract_strided_slice %670 {offsets = [0, 128], sizes = [16, 128], strides = [1, 1]} : vector<16x384xf32> to vector<16x128xf32>
    %681 = arith.addf %679, %680 : vector<16x128xf32>
    %682 = arith.negf %681 : vector<16x128xf32>
    %683 = math.exp %682 : vector<16x128xf32>
    %cst_203 = arith.constant 1.000000e+00 : f32
    %684 = vector.broadcast %cst_203 : f32 to vector<16x128xf32>
    %685 = arith.addf %684, %683 : vector<16x128xf32>
    %686 = arith.divf %684, %685 : vector<16x128xf32>
    %687 = vector.extract_strided_slice %666 {offsets = [0, 256], sizes = [16, 128], strides = [1, 1]} : vector<16x384xf32> to vector<16x128xf32>
    %688 = vector.extract_strided_slice %670 {offsets = [0, 256], sizes = [16, 128], strides = [1, 1]} : vector<16x384xf32> to vector<16x128xf32>
    %689 = arith.addf %688, %6 : vector<16x128xf32>
    %690 = arith.mulf %678, %689 : vector<16x128xf32>
    %691 = arith.addf %687, %690 : vector<16x128xf32>
    %692 = math.tanh %691 : vector<16x128xf32>
    %cst_204 = arith.constant 1.000000e+00 : f32
    %693 = vector.broadcast %cst_204 : f32 to vector<16x128xf32>
    %694 = arith.subf %693, %686 : vector<16x128xf32>
    %695 = arith.mulf %694, %692 : vector<16x128xf32>
    %696 = arith.mulf %686, %616 : vector<16x128xf32>
    %697 = arith.addf %695, %696 : vector<16x128xf32>
    %698 = arith.truncf %697 : vector<16x128xf32> to vector<16x128xbf16>
    %699 = arith.index_cast %c8_i32_195 : i32 to index
    %c0_205 = arith.constant 0 : index
    %c0_206 = arith.constant 0 : index
    %700 = vector.load %arg5[%699, %c0_205, %c0_206] : memref<9x16x128xbf16, #tpu.memory_space<vmem>>, vector<1x16x128xbf16>
    %701 = vector.shape_cast %700 : vector<1x16x128xbf16> to vector<16x128xbf16>
    %702 = vector.shape_cast %698 : vector<16x128xbf16> to vector<1x16x128xbf16>
    tpu.vector_store %arg5[%699, %c0_205, %c0_206], %702 {strides = array<i32>} : memref<9x16x128xbf16, #tpu.memory_space<vmem>>, vector<1x16x128xbf16>,
    %c8_i32_207 = arith.constant 8 : i32
    %703 = arith.subi %c8_i32_207, %c8_i32_195 : i32
    %704 = arith.index_cast %703 : i32 to index
    %c0_208 = arith.constant 0 : index
    %c0_209 = arith.constant 0 : index
    %705 = vector.load %arg2[%704, %c0_208, %c0_209] : memref<9x16x384xbf16, #tpu.memory_space<vmem>>, vector<1x16x384xbf16>
    %706 = vector.shape_cast %705 : vector<1x16x384xbf16> to vector<16x384xbf16>
    %707 = arith.extf %706 : vector<16x384xbf16> to vector<16x384xf32>
    %708 = arith.truncf %657 : vector<16x128xf32> to vector<16x128xbf16>
    %c1_210 = arith.constant 1 : index
    %c0_211 = arith.constant 0 : index
    %c0_212 = arith.constant 0 : index
    %709 = vector.load %arg3[%c1_210, %c0_211, %c0_212] : memref<2x128x384xbf16, #tpu.memory_space<vmem>>, vector<1x128x384xbf16>
    %710 = vector.shape_cast %709 : vector<1x128x384xbf16> to vector<128x384xbf16>
    %cst_213 = arith.constant dense<0.000000e+00> : vector<16x384xf32>
    %711 = tpu.matmul %708, %710, %cst_213 {dimension_numbers = #tpu.dot_dimension_numbers<[1], [0], [0], [1], [0, 0, 1, 1], [], []>} : vector<16x128xbf16>, vector<128x384xbf16>, vector<16x384xf32> -> vector<16x384xf32>
    %712 = vector.extract_strided_slice %707 {offsets = [0, 0], sizes = [16, 128], strides = [1, 1]} : vector<16x384xf32> to vector<16x128xf32>
    %713 = vector.extract_strided_slice %711 {offsets = [0, 0], sizes = [16, 128], strides = [1, 1]} : vector<16x384xf32> to vector<16x128xf32>
    %714 = arith.addf %712, %713 : vector<16x128xf32>
    %715 = arith.negf %714 : vector<16x128xf32>
    %716 = math.exp %715 : vector<16x128xf32>
    %cst_214 = arith.constant 1.000000e+00 : f32
    %717 = vector.broadcast %cst_214 : f32 to vector<16x128xf32>
    %718 = arith.addf %717, %716 : vector<16x128xf32>
    %719 = arith.divf %717, %718 : vector<16x128xf32>
    %720 = vector.extract_strided_slice %707 {offsets = [0, 128], sizes = [16, 128], strides = [1, 1]} : vector<16x384xf32> to vector<16x128xf32>
    %721 = vector.extract_strided_slice %711 {offsets = [0, 128], sizes = [16, 128], strides = [1, 1]} : vector<16x384xf32> to vector<16x128xf32>
    %722 = arith.addf %720, %721 : vector<16x128xf32>
    %723 = arith.negf %722 : vector<16x128xf32>
    %724 = math.exp %723 : vector<16x128xf32>
    %cst_215 = arith.constant 1.000000e+00 : f32
    %725 = vector.broadcast %cst_215 : f32 to vector<16x128xf32>
    %726 = arith.addf %725, %724 : vector<16x128xf32>
    %727 = arith.divf %725, %726 : vector<16x128xf32>
    %728 = vector.extract_strided_slice %707 {offsets = [0, 256], sizes = [16, 128], strides = [1, 1]} : vector<16x384xf32> to vector<16x128xf32>
    %729 = vector.extract_strided_slice %711 {offsets = [0, 256], sizes = [16, 128], strides = [1, 1]} : vector<16x384xf32> to vector<16x128xf32>
    %730 = arith.addf %729, %10 : vector<16x128xf32>
    %731 = arith.mulf %719, %730 : vector<16x128xf32>
    %732 = arith.addf %728, %731 : vector<16x128xf32>
    %733 = math.tanh %732 : vector<16x128xf32>
    %cst_216 = arith.constant 1.000000e+00 : f32
    %734 = vector.broadcast %cst_216 : f32 to vector<16x128xf32>
    %735 = arith.subf %734, %727 : vector<16x128xf32>
    %736 = arith.mulf %735, %733 : vector<16x128xf32>
    %737 = arith.mulf %727, %657 : vector<16x128xf32>
    %738 = arith.addf %736, %737 : vector<16x128xf32>
    %739 = arith.truncf %738 : vector<16x128xf32> to vector<16x128xbf16>
    %740 = arith.index_cast %703 : i32 to index
    %c0_217 = arith.constant 0 : index
    %c0_218 = arith.constant 0 : index
    %741 = vector.load %arg6[%740, %c0_217, %c0_218] : memref<9x16x128xbf16, #tpu.memory_space<vmem>>, vector<1x16x128xbf16>
    %742 = vector.shape_cast %741 : vector<1x16x128xbf16> to vector<16x128xbf16>
    %743 = vector.shape_cast %739 : vector<16x128xbf16> to vector<1x16x128xbf16>
    tpu.vector_store %arg6[%740, %c0_217, %c0_218], %743 {strides = array<i32>} : memref<9x16x128xbf16, #tpu.memory_space<vmem>>, vector<1x16x128xbf16>,
    %c1_i32_219 = arith.constant 1 : i32
    %c0_220 = arith.constant 0 : index
    %c0_221 = arith.constant 0 : index
    %c0_222 = arith.constant 0 : index
    %744 = vector.load %arg7[%c0_220, %c0_221, %c0_222] : memref<2x16x128xf32, #tpu.memory_space<vmem>>, vector<1x16x128xf32>
    %745 = vector.shape_cast %744 : vector<1x16x128xf32> to vector<16x128xf32>
    %746 = vector.shape_cast %697 : vector<16x128xf32> to vector<1x16x128xf32>
    tpu.vector_store %arg7[%c0_220, %c0_221, %c0_222], %746 {strides = array<i32>} : memref<2x16x128xf32, #tpu.memory_space<vmem>>, vector<1x16x128xf32>,
    %c1_223 = arith.constant 1 : index
    %c0_224 = arith.constant 0 : index
    %c0_225 = arith.constant 0 : index
    %747 = vector.load %arg7[%c1_223, %c0_224, %c0_225] : memref<2x16x128xf32, #tpu.memory_space<vmem>>, vector<1x16x128xf32>
    %748 = vector.shape_cast %747 : vector<1x16x128xf32> to vector<16x128xf32>
    %749 = vector.shape_cast %738 : vector<16x128xf32> to vector<1x16x128xf32>
    tpu.vector_store %arg7[%c1_223, %c0_224, %c0_225], %749 {strides = array<i32>} : memref<2x16x128xf32, #tpu.memory_space<vmem>>, vector<1x16x128xf32>,
    return
  }
  func.func @transform_0(%arg0: i32) -> (i32, i32, i32) {
    %c0_i32 = arith.constant 0 : i32
    %c0_i32_0 = arith.constant 0 : i32
    %c0_i32_1 = arith.constant 0 : i32
    return %arg0, %c0_i32, %c0_i32_0 : i32, i32, i32
  }
  func.func @transform_1(%arg0: i32) -> (i32, i32, i32) {
    %c0_i32 = arith.constant 0 : i32
    %0 = arith.subi %c0_i32, %arg0 : i32
    %c0_i32_0 = arith.constant 0 : i32
    %c0_i32_1 = arith.constant 0 : i32
    %c0_i32_2 = arith.constant 0 : i32
    return %0, %c0_i32_0, %c0_i32_1 : i32, i32, i32
  }
  func.func @transform_2(%arg0: i32) -> (i32, i32, i32) {
    %c0_i32 = arith.constant 0 : i32
    %c0_i32_0 = arith.constant 0 : i32
    %c0_i32_1 = arith.constant 0 : i32
    %c0_i32_2 = arith.constant 0 : i32
    return %c0_i32, %c0_i32_0, %c0_i32_1 : i32, i32, i32
  }
  func.func @transform_3(%arg0: i32) -> (i32, i32, i32) {
    %c0_i32 = arith.constant 0 : i32
    %c0_i32_0 = arith.constant 0 : i32
    %c0_i32_1 = arith.constant 0 : i32
    %c0_i32_2 = arith.constant 0 : i32
    return %c0_i32, %c0_i32_0, %c0_i32_1 : i32, i32, i32
  }
  func.func @transform_4(%arg0: i32) -> (i32, i32, i32) {
    %c0_i32 = arith.constant 0 : i32
    %c0_i32_0 = arith.constant 0 : i32
    %c0_i32_1 = arith.constant 0 : i32
    return %arg0, %c0_i32, %c0_i32_0 : i32, i32, i32
  }
  func.func @transform_5(%arg0: i32) -> (i32, i32, i32) {
    %c0_i32 = arith.constant 0 : i32
    %0 = arith.subi %c0_i32, %arg0 : i32
    %c0_i32_0 = arith.constant 0 : i32
    %c0_i32_1 = arith.constant 0 : i32
    %c0_i32_2 = arith.constant 0 : i32
    return %0, %c0_i32_0, %c0_i32_1 : i32, i32, i32
  }
}

module attributes {stable_mosaic.version = 11 : i64} {
  func.func @kernel(%arg0: i32, %arg1: memref<9x16x384xbf16, #tpu.memory_space<vmem>>, %arg2: memref<9x16x384xbf16, #tpu.memory_space<vmem>>, %arg3: memref<2x128x384xbf16, #tpu.memory_space<vmem>>, %arg4: memref<2x1x128xf32, #tpu.memory_space<vmem>>, %arg5: memref<9x16x128xbf16, #tpu.memory_space<vmem>>, %arg6: memref<9x16x128xbf16, #tpu.memory_space<vmem>>, %arg7: memref<2x16x128xf32, #tpu.memory_space<vmem>>) attributes {dimension_semantics = [#tpu.dimension_semantics<arbitrary>], iteration_bounds = array<i64: 1>, scalar_prefetch = 0 : i64, scratch_operands = 1 : i64, tpu.core_type = #tpu.core_type<tc>, window_params = [{transform_indices = @transform_0, window_bounds = array<i64: 9, 16, 384>}, {transform_indices = @transform_1, window_bounds = array<i64: 9, 16, 384>}, {pipeline_mode = #tpu.pipeline_mode<synchronous>, transform_indices = @transform_2, window_bounds = array<i64: 2, 128, 384>}, {pipeline_mode = #tpu.pipeline_mode<synchronous>, transform_indices = @transform_3, window_bounds = array<i64: 2, 1, 128>}, {transform_indices = @transform_4, window_bounds = array<i64: 9, 16, 128>}, {transform_indices = @transform_5, window_bounds = array<i64: 9, 16, 128>}]} {
    %c0_i32 = arith.constant 0 : i32
    %0 = arith.cmpi eq, %arg0, %c0_i32 : i32
    %1 = arith.extui %0 : i1 to i32
    %c0_i32_0 = arith.constant 0 : i32
    %2 = arith.cmpi ne, %1, %c0_i32_0 : i32
    scf.if %2 {
      %cst_226 = arith.constant 0.000000e+00 : f32
      %750 = vector.broadcast %cst_226 : f32 to vector<2x16x128xf32>
      %c0_227 = arith.constant 0 : index
      %c0_228 = arith.constant 0 : index
      %c0_229 = arith.constant 0 : index
      %751 = vector.load %arg7[%c0_227, %c0_228, %c0_229] : memref<2x16x128xf32, #tpu.memory_space<vmem>>, vector<2x16x128xf32>
      tpu.vector_store %arg7[%c0_227, %c0_228, %c0_229], %750 {strides = array<i32>} : memref<2x16x128xf32, #tpu.memory_space<vmem>>, vector<2x16x128xf32>,
    } else {
    }
    %c0 = arith.constant 0 : index
    %c0_1 = arith.constant 0 : index
    %c0_2 = arith.constant 0 : index
    %3 = vector.load %arg4[%c0, %c0_1, %c0_2] : memref<2x1x128xf32, #tpu.memory_space<vmem>>, vector<1x1x128xf32>
    %4 = vector.shape_cast %3 : vector<1x1x128xf32> to vector<1x128xf32>
    %5 = vector.shape_cast %4 : vector<1x128xf32> to vector<1x128xf32>
    %6 = vector.broadcast %5 : vector<1x128xf32> to vector<16x128xf32>
    %c1 = arith.constant 1 : index
    %c0_3 = arith.constant 0 : index
    %c0_4 = arith.constant 0 : index
    %7 = vector.load %arg4[%c1, %c0_3, %c0_4] : memref<2x1x128xf32, #tpu.memory_space<vmem>>, vector<1x1x128xf32>
    %8 = vector.shape_cast %7 : vector<1x1x128xf32> to vector<1x128xf32>
    %9 = vector.shape_cast %8 : vector<1x128xf32> to vector<1x128xf32>
    %10 = vector.broadcast %9 : vector<1x128xf32> to vector<16x128xf32>
    %c0_5 = arith.constant 0 : index
    %c0_6 = arith.constant 0 : index
    %c0_7 = arith.constant 0 : index
    %11 = vector.load %arg7[%c0_5, %c0_6, %c0_7] : memref<2x16x128xf32, #tpu.memory_space<vmem>>, vector<1x16x128xf32>
    %12 = vector.shape_cast %11 : vector<1x16x128xf32> to vector<16x128xf32>
    %c1_8 = arith.constant 1 : index
    %c0_9 = arith.constant 0 : index
    %c0_10 = arith.constant 0 : index
    %13 = vector.load %arg7[%c1_8, %c0_9, %c0_10] : memref<2x16x128xf32, #tpu.memory_space<vmem>>, vector<1x16x128xf32>
    %14 = vector.shape_cast %13 : vector<1x16x128xf32> to vector<16x128xf32>
    %c0_i32_11 = arith.constant 0 : i32
    %15 = arith.index_cast %c0_i32_11 : i32 to index
    %c0_12 = arith.constant 0 : index
    %c0_13 = arith.constant 0 : index
    %16 = vector.load %arg1[%15, %c0_12, %c0_13] : memref<9x16x384xbf16, #tpu.memory_space<vmem>>, vector<1x16x384xbf16>
    %17 = vector.shape_cast %16 : vector<1x16x384xbf16> to vector<16x384xbf16>
    %18 = arith.extf %17 : vector<16x384xbf16> to vector<16x384xf32>
    %19 = arith.truncf %12 : vector<16x128xf32> to vector<16x128xbf16>
    %c0_14 = arith.constant 0 : index
    %c0_15 = arith.constant 0 : index
    %c0_16 = arith.constant 0 : index
    %20 = vector.load %arg3[%c0_14, %c0_15, %c0_16] : memref<2x128x384xbf16, #tpu.memory_space<vmem>>, vector<1x128x384xbf16>
    %21 = vector.shape_cast %20 : vector<1x128x384xbf16> to vector<128x384xbf16>
    %cst = arith.constant dense<0.000000e+00> : vector<16x384xf32>
    %22 = tpu.matmul %19, %21, %cst {dimension_numbers = #tpu.dot_dimension_numbers<[1], [0], [0], [1], [0, 0, 1, 1], [], []>} : vector<16x128xbf16>, vector<128x384xbf16>, vector<16x384xf32> -> vector<16x384xf32>
    %23 = vector.extract_strided_slice %18 {offsets = [0, 0], sizes = [16, 128], strides = [1, 1]} : vector<16x384xf32> to vector<16x128xf32>
    %24 = vector.extract_strided_slice %22 {offsets = [0, 0], sizes = [16, 128], strides = [1, 1]} : vector<16x384xf32> to vector<16x128xf32>
    %25 = arith.addf %23, %24 : vector<16x128xf32>
    %26 = arith.negf %25 : vector<16x128xf32>
    %27 = math.exp %26 : vector<16x128xf32>
    %cst_17 = arith.constant 1.000000e+00 : f32
    %28 = vector.broadcast %cst_17 : f32 to vector<16x128xf32>
    %29 = arith.addf %28, %27 : vector<16x128xf32>
    %30 = arith.divf %28, %29 : vector<16x128xf32>
    %31 = vector.extract_strided_slice %18 {offsets = [0, 128], sizes = [16, 128], strides = [1, 1]} : vector<16x384xf32> to vector<16x128xf32>
    %32 = vector.extract_strided_slice %22 {offsets = [0, 128], sizes = [16, 128], strides = [1, 1]} : vector<16x384xf32> to vector<16x128xf32>
    %33 = arith.addf %31, %32 : vector<16x128xf32>
    %34 = arith.negf %33 : vector<16x128xf32>
    %35 = math.exp %34 : vector<16x128xf32>
    %cst_18 = arith.constant 1.000000e+00 : f32
    %36 = vector.broadcast %cst_18 : f32 to vector<16x128xf32>
    %37 = arith.addf %36, %35 : vector<16x128xf32>
    %38 = arith.divf %36, %37 : vector<16x128xf32>
    %39 = vector.extract_strided_slice %18 {offsets = [0, 256], sizes = [16, 128], strides = [1, 1]} : vector<16x384xf32> to vector<16x128xf32>
    %40 = vector.extract_strided_slice %22 {offsets = [0, 256], sizes = [16, 128], strides = [1, 1]} : vector<16x384xf32> to vector<16x128xf32>
    %41 = arith.addf %40, %6 : vector<16x128xf32>
    %42 = arith.mulf %30, %41 : vector<16x128xf32>
    %43 = arith.addf %39, %42 : vector<16x128xf32>
    %44 = math.tanh %43 : vector<16x128xf32>
    %cst_19 = arith.constant 1.000000e+00 : f32
    %45 = vector.broadcast %cst_19 : f32 to vector<16x128xf32>
    %46 = arith.subf %45, %38 : vector<16x128xf32>
    %47 = arith.mulf %46, %44 : vector<16x128xf32>
    %48 = arith.mulf %38, %12 : vector<16x128xf32>
    %49 = arith.addf %47, %48 : vector<16x128xf32>
    %50 = arith.truncf %49 : vector<16x128xf32> to vector<16x128xbf16>
    %51 = arith.index_cast %c0_i32_11 : i32 to index
    %c0_20 = arith.constant 0 : index
    %c0_21 = arith.constant 0 : index
    %52 = vector.load %arg5[%51, %c0_20, %c0_21] : memref<9x16x128xbf16, #tpu.memory_space<vmem>>, vector<1x16x128xbf16>
    %53 = vector.shape_cast %52 : vector<1x16x128xbf16> to vector<16x128xbf16>
    %54 = vector.shape_cast %50 : vector<16x128xbf16> to vector<1x16x128xbf16>
    tpu.vector_store %arg5[%51, %c0_20, %c0_21], %54 {strides = array<i32>} : memref<9x16x128xbf16, #tpu.memory_space<vmem>>, vector<1x16x128xbf16>,
    %c8_i32 = arith.constant 8 : i32
    %55 = arith.subi %c8_i32, %c0_i32_11 : i32
    %56 = arith.index_cast %55 : i32 to index
    %c0_22 = arith.constant 0 : index
    %c0_23 = arith.constant 0 : index
    %57 = vector.load %arg2[%56, %c0_22, %c0_23] : memref<9x16x384xbf16, #tpu.memory_space<vmem>>, vector<1x16x384xbf16>
    %58 = vector.shape_cast %57 : vector<1x16x384xbf16> to vector<16x384xbf16>
    %59 = arith.extf %58 : vector<16x384xbf16> to vector<16x384xf32>
    %60 = arith.truncf %14 : vector<16x128xf32> to vector<16x128xbf16>
    %c1_24 = arith.constant 1 : index
    %c0_25 = arith.constant 0 : index
    %c0_26 = arith.constant 0 : index
    %61 = vector.load %arg3[%c1_24, %c0_25, %c0_26] : memref<2x128x384xbf16, #tpu.memory_space<vmem>>, vector<1x128x384xbf16>
    %62 = vector.shape_cast %61 : vector<1x128x384xbf16> to vector<128x384xbf16>
    %cst_27 = arith.constant dense<0.000000e+00> : vector<16x384xf32>
    %63 = tpu.matmul %60, %62, %cst_27 {dimension_numbers = #tpu.dot_dimension_numbers<[1], [0], [0], [1], [0, 0, 1, 1], [], []>} : vector<16x128xbf16>, vector<128x384xbf16>, vector<16x384xf32> -> vector<16x384xf32>
    %64 = vector.extract_strided_slice %59 {offsets = [0, 0], sizes = [16, 128], strides = [1, 1]} : vector<16x384xf32> to vector<16x128xf32>
    %65 = vector.extract_strided_slice %63 {offsets = [0, 0], sizes = [16, 128], strides = [1, 1]} : vector<16x384xf32> to vector<16x128xf32>
    %66 = arith.addf %64, %65 : vector<16x128xf32>
    %67 = arith.negf %66 : vector<16x128xf32>
    %68 = math.exp %67 : vector<16x128xf32>
    %cst_28 = arith.constant 1.000000e+00 : f32
    %69 = vector.broadcast %cst_28 : f32 to vector<16x128xf32>
    %70 = arith.addf %69, %68 : vector<16x128xf32>
    %71 = arith.divf %69, %70 : vector<16x128xf32>
    %72 = vector.extract_strided_slice %59 {offsets = [0, 128], sizes = [16, 128], strides = [1, 1]} : vector<16x384xf32> to vector<16x128xf32>
    %73 = vector.extract_strided_slice %63 {offsets = [0, 128], sizes = [16, 128], strides = [1, 1]} : vector<16x384xf32> to vector<16x128xf32>
    %74 = arith.addf %72, %73 : vector<16x128xf32>
    %75 = arith.negf %74 : vector<16x128xf32>
    %76 = math.exp %75 : vector<16x128xf32>
    %cst_29 = arith.constant 1.000000e+00 : f32
    %77 = vector.broadcast %cst_29 : f32 to vector<16x128xf32>
    %78 = arith.addf %77, %76 : vector<16x128xf32>
    %79 = arith.divf %77, %78 : vector<16x128xf32>
    %80 = vector.extract_strided_slice %59 {offsets = [0, 256], sizes = [16, 128], strides = [1, 1]} : vector<16x384xf32> to vector<16x128xf32>
    %81 = vector.extract_strided_slice %63 {offsets = [0, 256], sizes = [16, 128], strides = [1, 1]} : vector<16x384xf32> to vector<16x128xf32>
    %82 = arith.addf %81, %10 : vector<16x128xf32>
    %83 = arith.mulf %71, %82 : vector<16x128xf32>
    %84 = arith.addf %80, %83 : vector<16x128xf32>
    %85 = math.tanh %84 : vector<16x128xf32>
    %cst_30 = arith.constant 1.000000e+00 : f32
    %86 = vector.broadcast %cst_30 : f32 to vector<16x128xf32>
    %87 = arith.subf %86, %79 : vector<16x128xf32>
    %88 = arith.mulf %87, %85 : vector<16x128xf32>
    %89 = arith.mulf %79, %14 : vector<16x128xf32>
    %90 = arith.addf %88, %89 : vector<16x128xf32>
    %91 = arith.truncf %90 : vector<16x128xf32> to vector<16x128xbf16>
    %92 = arith.index_cast %55 : i32 to index
    %c0_31 = arith.constant 0 : index
    %c0_32 = arith.constant 0 : index
    %93 = vector.load %arg6[%92, %c0_31, %c0_32] : memref<9x16x128xbf16, #tpu.memory_space<vmem>>, vector<1x16x128xbf16>
    %94 = vector.shape_cast %93 : vector<1x16x128xbf16> to vector<16x128xbf16>
    %95 = vector.shape_cast %91 : vector<16x128xbf16> to vector<1x16x128xbf16>
    tpu.vector_store %arg6[%92, %c0_31, %c0_32], %95 {strides = array<i32>} : memref<9x16x128xbf16, #tpu.memory_space<vmem>>, vector<1x16x128xbf16>,
    %c1_i32 = arith.constant 1 : i32
    %96 = arith.index_cast %c1_i32 : i32 to index
    %c0_33 = arith.constant 0 : index
    %c0_34 = arith.constant 0 : index
    %97 = vector.load %arg1[%96, %c0_33, %c0_34] : memref<9x16x384xbf16, #tpu.memory_space<vmem>>, vector<1x16x384xbf16>
    %98 = vector.shape_cast %97 : vector<1x16x384xbf16> to vector<16x384xbf16>
    %99 = arith.extf %98 : vector<16x384xbf16> to vector<16x384xf32>
    %100 = arith.truncf %49 : vector<16x128xf32> to vector<16x128xbf16>
    %c0_35 = arith.constant 0 : index
    %c0_36 = arith.constant 0 : index
    %c0_37 = arith.constant 0 : index
    %101 = vector.load %arg3[%c0_35, %c0_36, %c0_37] : memref<2x128x384xbf16, #tpu.memory_space<vmem>>, vector<1x128x384xbf16>
    %102 = vector.shape_cast %101 : vector<1x128x384xbf16> to vector<128x384xbf16>
    %cst_38 = arith.constant dense<0.000000e+00> : vector<16x384xf32>
    %103 = tpu.matmul %100, %102, %cst_38 {dimension_numbers = #tpu.dot_dimension_numbers<[1], [0], [0], [1], [0, 0, 1, 1], [], []>} : vector<16x128xbf16>, vector<128x384xbf16>, vector<16x384xf32> -> vector<16x384xf32>
    %104 = vector.extract_strided_slice %99 {offsets = [0, 0], sizes = [16, 128], strides = [1, 1]} : vector<16x384xf32> to vector<16x128xf32>
    %105 = vector.extract_strided_slice %103 {offsets = [0, 0], sizes = [16, 128], strides = [1, 1]} : vector<16x384xf32> to vector<16x128xf32>
    %106 = arith.addf %104, %105 : vector<16x128xf32>
    %107 = arith.negf %106 : vector<16x128xf32>
    %108 = math.exp %107 : vector<16x128xf32>
    %cst_39 = arith.constant 1.000000e+00 : f32
    %109 = vector.broadcast %cst_39 : f32 to vector<16x128xf32>
    %110 = arith.addf %109, %108 : vector<16x128xf32>
    %111 = arith.divf %109, %110 : vector<16x128xf32>
    %112 = vector.extract_strided_slice %99 {offsets = [0, 128], sizes = [16, 128], strides = [1, 1]} : vector<16x384xf32> to vector<16x128xf32>
    %113 = vector.extract_strided_slice %103 {offsets = [0, 128], sizes = [16, 128], strides = [1, 1]} : vector<16x384xf32> to vector<16x128xf32>
    %114 = arith.addf %112, %113 : vector<16x128xf32>
    %115 = arith.negf %114 : vector<16x128xf32>
    %116 = math.exp %115 : vector<16x128xf32>
    %cst_40 = arith.constant 1.000000e+00 : f32
    %117 = vector.broadcast %cst_40 : f32 to vector<16x128xf32>
    %118 = arith.addf %117, %116 : vector<16x128xf32>
    %119 = arith.divf %117, %118 : vector<16x128xf32>
    %120 = vector.extract_strided_slice %99 {offsets = [0, 256], sizes = [16, 128], strides = [1, 1]} : vector<16x384xf32> to vector<16x128xf32>
    %121 = vector.extract_strided_slice %103 {offsets = [0, 256], sizes = [16, 128], strides = [1, 1]} : vector<16x384xf32> to vector<16x128xf32>
    %122 = arith.addf %121, %6 : vector<16x128xf32>
    %123 = arith.mulf %111, %122 : vector<16x128xf32>
    %124 = arith.addf %120, %123 : vector<16x128xf32>
    %125 = math.tanh %124 : vector<16x128xf32>
    %cst_41 = arith.constant 1.000000e+00 : f32
    %126 = vector.broadcast %cst_41 : f32 to vector<16x128xf32>
    %127 = arith.subf %126, %119 : vector<16x128xf32>
    %128 = arith.mulf %127, %125 : vector<16x128xf32>
    %129 = arith.mulf %119, %49 : vector<16x128xf32>
    %130 = arith.addf %128, %129 : vector<16x128xf32>
    %131 = arith.truncf %130 : vector<16x128xf32> to vector<16x128xbf16>
    %132 = arith.index_cast %c1_i32 : i32 to index
    %c0_42 = arith.constant 0 : index
    %c0_43 = arith.constant 0 : index
    %133 = vector.load %arg5[%132, %c0_42, %c0_43] : memref<9x16x128xbf16, #tpu.memory_space<vmem>>, vector<1x16x128xbf16>
    %134 = vector.shape_cast %133 : vector<1x16x128xbf16> to vector<16x128xbf16>
    %135 = vector.shape_cast %131 : vector<16x128xbf16> to vector<1x16x128xbf16>
    tpu.vector_store %arg5[%132, %c0_42, %c0_43], %135 {strides = array<i32>} : memref<9x16x128xbf16, #tpu.memory_space<vmem>>, vector<1x16x128xbf16>,
    %c8_i32_44 = arith.constant 8 : i32
    %136 = arith.subi %c8_i32_44, %c1_i32 : i32
    %137 = arith.index_cast %136 : i32 to index
    %c0_45 = arith.constant 0 : index
    %c0_46 = arith.constant 0 : index
    %138 = vector.load %arg2[%137, %c0_45, %c0_46] : memref<9x16x384xbf16, #tpu.memory_space<vmem>>, vector<1x16x384xbf16>
    %139 = vector.shape_cast %138 : vector<1x16x384xbf16> to vector<16x384xbf16>
    %140 = arith.extf %139 : vector<16x384xbf16> to vector<16x384xf32>
    %141 = arith.truncf %90 : vector<16x128xf32> to vector<16x128xbf16>
    %c1_47 = arith.constant 1 : index
    %c0_48 = arith.constant 0 : index
    %c0_49 = arith.constant 0 : index
    %142 = vector.load %arg3[%c1_47, %c0_48, %c0_49] : memref<2x128x384xbf16, #tpu.memory_space<vmem>>, vector<1x128x384xbf16>
    %143 = vector.shape_cast %142 : vector<1x128x384xbf16> to vector<128x384xbf16>
    %cst_50 = arith.constant dense<0.000000e+00> : vector<16x384xf32>
    %144 = tpu.matmul %141, %143, %cst_50 {dimension_numbers = #tpu.dot_dimension_numbers<[1], [0], [0], [1], [0, 0, 1, 1], [], []>} : vector<16x128xbf16>, vector<128x384xbf16>, vector<16x384xf32> -> vector<16x384xf32>
    %145 = vector.extract_strided_slice %140 {offsets = [0, 0], sizes = [16, 128], strides = [1, 1]} : vector<16x384xf32> to vector<16x128xf32>
    %146 = vector.extract_strided_slice %144 {offsets = [0, 0], sizes = [16, 128], strides = [1, 1]} : vector<16x384xf32> to vector<16x128xf32>
    %147 = arith.addf %145, %146 : vector<16x128xf32>
    %148 = arith.negf %147 : vector<16x128xf32>
    %149 = math.exp %148 : vector<16x128xf32>
    %cst_51 = arith.constant 1.000000e+00 : f32
    %150 = vector.broadcast %cst_51 : f32 to vector<16x128xf32>
    %151 = arith.addf %150, %149 : vector<16x128xf32>
    %152 = arith.divf %150, %151 : vector<16x128xf32>
    %153 = vector.extract_strided_slice %140 {offsets = [0, 128], sizes = [16, 128], strides = [1, 1]} : vector<16x384xf32> to vector<16x128xf32>
    %154 = vector.extract_strided_slice %144 {offsets = [0, 128], sizes = [16, 128], strides = [1, 1]} : vector<16x384xf32> to vector<16x128xf32>
    %155 = arith.addf %153, %154 : vector<16x128xf32>
    %156 = arith.negf %155 : vector<16x128xf32>
    %157 = math.exp %156 : vector<16x128xf32>
    %cst_52 = arith.constant 1.000000e+00 : f32
    %158 = vector.broadcast %cst_52 : f32 to vector<16x128xf32>
    %159 = arith.addf %158, %157 : vector<16x128xf32>
    %160 = arith.divf %158, %159 : vector<16x128xf32>
    %161 = vector.extract_strided_slice %140 {offsets = [0, 256], sizes = [16, 128], strides = [1, 1]} : vector<16x384xf32> to vector<16x128xf32>
    %162 = vector.extract_strided_slice %144 {offsets = [0, 256], sizes = [16, 128], strides = [1, 1]} : vector<16x384xf32> to vector<16x128xf32>
    %163 = arith.addf %162, %10 : vector<16x128xf32>
    %164 = arith.mulf %152, %163 : vector<16x128xf32>
    %165 = arith.addf %161, %164 : vector<16x128xf32>
    %166 = math.tanh %165 : vector<16x128xf32>
    %cst_53 = arith.constant 1.000000e+00 : f32
    %167 = vector.broadcast %cst_53 : f32 to vector<16x128xf32>
    %168 = arith.subf %167, %160 : vector<16x128xf32>
    %169 = arith.mulf %168, %166 : vector<16x128xf32>
    %170 = arith.mulf %160, %90 : vector<16x128xf32>
    %171 = arith.addf %169, %170 : vector<16x128xf32>
    %172 = arith.truncf %171 : vector<16x128xf32> to vector<16x128xbf16>
    %173 = arith.index_cast %136 : i32 to index
    %c0_54 = arith.constant 0 : index
    %c0_55 = arith.constant 0 : index
    %174 = vector.load %arg6[%173, %c0_54, %c0_55] : memref<9x16x128xbf16, #tpu.memory_space<vmem>>, vector<1x16x128xbf16>
    %175 = vector.shape_cast %174 : vector<1x16x128xbf16> to vector<16x128xbf16>
    %176 = vector.shape_cast %172 : vector<16x128xbf16> to vector<1x16x128xbf16>
    tpu.vector_store %arg6[%173, %c0_54, %c0_55], %176 {strides = array<i32>} : memref<9x16x128xbf16, #tpu.memory_space<vmem>>, vector<1x16x128xbf16>,
    %c2_i32 = arith.constant 2 : i32
    %177 = arith.index_cast %c2_i32 : i32 to index
    %c0_56 = arith.constant 0 : index
    %c0_57 = arith.constant 0 : index
    %178 = vector.load %arg1[%177, %c0_56, %c0_57] : memref<9x16x384xbf16, #tpu.memory_space<vmem>>, vector<1x16x384xbf16>
    %179 = vector.shape_cast %178 : vector<1x16x384xbf16> to vector<16x384xbf16>
    %180 = arith.extf %179 : vector<16x384xbf16> to vector<16x384xf32>
    %181 = arith.truncf %130 : vector<16x128xf32> to vector<16x128xbf16>
    %c0_58 = arith.constant 0 : index
    %c0_59 = arith.constant 0 : index
    %c0_60 = arith.constant 0 : index
    %182 = vector.load %arg3[%c0_58, %c0_59, %c0_60] : memref<2x128x384xbf16, #tpu.memory_space<vmem>>, vector<1x128x384xbf16>
    %183 = vector.shape_cast %182 : vector<1x128x384xbf16> to vector<128x384xbf16>
    %cst_61 = arith.constant dense<0.000000e+00> : vector<16x384xf32>
    %184 = tpu.matmul %181, %183, %cst_61 {dimension_numbers = #tpu.dot_dimension_numbers<[1], [0], [0], [1], [0, 0, 1, 1], [], []>} : vector<16x128xbf16>, vector<128x384xbf16>, vector<16x384xf32> -> vector<16x384xf32>
    %185 = vector.extract_strided_slice %180 {offsets = [0, 0], sizes = [16, 128], strides = [1, 1]} : vector<16x384xf32> to vector<16x128xf32>
    %186 = vector.extract_strided_slice %184 {offsets = [0, 0], sizes = [16, 128], strides = [1, 1]} : vector<16x384xf32> to vector<16x128xf32>
    %187 = arith.addf %185, %186 : vector<16x128xf32>
    %188 = arith.negf %187 : vector<16x128xf32>
    %189 = math.exp %188 : vector<16x128xf32>
    %cst_62 = arith.constant 1.000000e+00 : f32
    %190 = vector.broadcast %cst_62 : f32 to vector<16x128xf32>
    %191 = arith.addf %190, %189 : vector<16x128xf32>
    %192 = arith.divf %190, %191 : vector<16x128xf32>
    %193 = vector.extract_strided_slice %180 {offsets = [0, 128], sizes = [16, 128], strides = [1, 1]} : vector<16x384xf32> to vector<16x128xf32>
    %194 = vector.extract_strided_slice %184 {offsets = [0, 128], sizes = [16, 128], strides = [1, 1]} : vector<16x384xf32> to vector<16x128xf32>
    %195 = arith.addf %193, %194 : vector<16x128xf32>
    %196 = arith.negf %195 : vector<16x128xf32>
    %197 = math.exp %196 : vector<16x128xf32>
    %cst_63 = arith.constant 1.000000e+00 : f32
    %198 = vector.broadcast %cst_63 : f32 to vector<16x128xf32>
    %199 = arith.addf %198, %197 : vector<16x128xf32>
    %200 = arith.divf %198, %199 : vector<16x128xf32>
    %201 = vector.extract_strided_slice %180 {offsets = [0, 256], sizes = [16, 128], strides = [1, 1]} : vector<16x384xf32> to vector<16x128xf32>
    %202 = vector.extract_strided_slice %184 {offsets = [0, 256], sizes = [16, 128], strides = [1, 1]} : vector<16x384xf32> to vector<16x128xf32>
    %203 = arith.addf %202, %6 : vector<16x128xf32>
    %204 = arith.mulf %192, %203 : vector<16x128xf32>
    %205 = arith.addf %201, %204 : vector<16x128xf32>
    %206 = math.tanh %205 : vector<16x128xf32>
    %cst_64 = arith.constant 1.000000e+00 : f32
    %207 = vector.broadcast %cst_64 : f32 to vector<16x128xf32>
    %208 = arith.subf %207, %200 : vector<16x128xf32>
    %209 = arith.mulf %208, %206 : vector<16x128xf32>
    %210 = arith.mulf %200, %130 : vector<16x128xf32>
    %211 = arith.addf %209, %210 : vector<16x128xf32>
    %212 = arith.truncf %211 : vector<16x128xf32> to vector<16x128xbf16>
    %213 = arith.index_cast %c2_i32 : i32 to index
    %c0_65 = arith.constant 0 : index
    %c0_66 = arith.constant 0 : index
    %214 = vector.load %arg5[%213, %c0_65, %c0_66] : memref<9x16x128xbf16, #tpu.memory_space<vmem>>, vector<1x16x128xbf16>
    %215 = vector.shape_cast %214 : vector<1x16x128xbf16> to vector<16x128xbf16>
    %216 = vector.shape_cast %212 : vector<16x128xbf16> to vector<1x16x128xbf16>
    tpu.vector_store %arg5[%213, %c0_65, %c0_66], %216 {strides = array<i32>} : memref<9x16x128xbf16, #tpu.memory_space<vmem>>, vector<1x16x128xbf16>,
    %c8_i32_67 = arith.constant 8 : i32
    %217 = arith.subi %c8_i32_67, %c2_i32 : i32
    %218 = arith.index_cast %217 : i32 to index
    %c0_68 = arith.constant 0 : index
    %c0_69 = arith.constant 0 : index
    %219 = vector.load %arg2[%218, %c0_68, %c0_69] : memref<9x16x384xbf16, #tpu.memory_space<vmem>>, vector<1x16x384xbf16>
    %220 = vector.shape_cast %219 : vector<1x16x384xbf16> to vector<16x384xbf16>
    %221 = arith.extf %220 : vector<16x384xbf16> to vector<16x384xf32>
    %222 = arith.truncf %171 : vector<16x128xf32> to vector<16x128xbf16>
    %c1_70 = arith.constant 1 : index
    %c0_71 = arith.constant 0 : index
    %c0_72 = arith.constant 0 : index
    %223 = vector.load %arg3[%c1_70, %c0_71, %c0_72] : memref<2x128x384xbf16, #tpu.memory_space<vmem>>, vector<1x128x384xbf16>
    %224 = vector.shape_cast %223 : vector<1x128x384xbf16> to vector<128x384xbf16>
    %cst_73 = arith.constant dense<0.000000e+00> : vector<16x384xf32>
    %225 = tpu.matmul %222, %224, %cst_73 {dimension_numbers = #tpu.dot_dimension_numbers<[1], [0], [0], [1], [0, 0, 1, 1], [], []>} : vector<16x128xbf16>, vector<128x384xbf16>, vector<16x384xf32> -> vector<16x384xf32>
    %226 = vector.extract_strided_slice %221 {offsets = [0, 0], sizes = [16, 128], strides = [1, 1]} : vector<16x384xf32> to vector<16x128xf32>
    %227 = vector.extract_strided_slice %225 {offsets = [0, 0], sizes = [16, 128], strides = [1, 1]} : vector<16x384xf32> to vector<16x128xf32>
    %228 = arith.addf %226, %227 : vector<16x128xf32>
    %229 = arith.negf %228 : vector<16x128xf32>
    %230 = math.exp %229 : vector<16x128xf32>
    %cst_74 = arith.constant 1.000000e+00 : f32
    %231 = vector.broadcast %cst_74 : f32 to vector<16x128xf32>
    %232 = arith.addf %231, %230 : vector<16x128xf32>
    %233 = arith.divf %231, %232 : vector<16x128xf32>
    %234 = vector.extract_strided_slice %221 {offsets = [0, 128], sizes = [16, 128], strides = [1, 1]} : vector<16x384xf32> to vector<16x128xf32>
    %235 = vector.extract_strided_slice %225 {offsets = [0, 128], sizes = [16, 128], strides = [1, 1]} : vector<16x384xf32> to vector<16x128xf32>
    %236 = arith.addf %234, %235 : vector<16x128xf32>
    %237 = arith.negf %236 : vector<16x128xf32>
    %238 = math.exp %237 : vector<16x128xf32>
    %cst_75 = arith.constant 1.000000e+00 : f32
    %239 = vector.broadcast %cst_75 : f32 to vector<16x128xf32>
    %240 = arith.addf %239, %238 : vector<16x128xf32>
    %241 = arith.divf %239, %240 : vector<16x128xf32>
    %242 = vector.extract_strided_slice %221 {offsets = [0, 256], sizes = [16, 128], strides = [1, 1]} : vector<16x384xf32> to vector<16x128xf32>
    %243 = vector.extract_strided_slice %225 {offsets = [0, 256], sizes = [16, 128], strides = [1, 1]} : vector<16x384xf32> to vector<16x128xf32>
    %244 = arith.addf %243, %10 : vector<16x128xf32>
    %245 = arith.mulf %233, %244 : vector<16x128xf32>
    %246 = arith.addf %242, %245 : vector<16x128xf32>
    %247 = math.tanh %246 : vector<16x128xf32>
    %cst_76 = arith.constant 1.000000e+00 : f32
    %248 = vector.broadcast %cst_76 : f32 to vector<16x128xf32>
    %249 = arith.subf %248, %241 : vector<16x128xf32>
    %250 = arith.mulf %249, %247 : vector<16x128xf32>
    %251 = arith.mulf %241, %171 : vector<16x128xf32>
    %252 = arith.addf %250, %251 : vector<16x128xf32>
    %253 = arith.truncf %252 : vector<16x128xf32> to vector<16x128xbf16>
    %254 = arith.index_cast %217 : i32 to index
    %c0_77 = arith.constant 0 : index
    %c0_78 = arith.constant 0 : index
    %255 = vector.load %arg6[%254, %c0_77, %c0_78] : memref<9x16x128xbf16, #tpu.memory_space<vmem>>, vector<1x16x128xbf16>
    %256 = vector.shape_cast %255 : vector<1x16x128xbf16> to vector<16x128xbf16>
    %257 = vector.shape_cast %253 : vector<16x128xbf16> to vector<1x16x128xbf16>
    tpu.vector_store %arg6[%254, %c0_77, %c0_78], %257 {strides = array<i32>} : memref<9x16x128xbf16, #tpu.memory_space<vmem>>, vector<1x16x128xbf16>,
    %c3_i32 = arith.constant 3 : i32
    %258 = arith.index_cast %c3_i32 : i32 to index
    %c0_79 = arith.constant 0 : index
    %c0_80 = arith.constant 0 : index
    %259 = vector.load %arg1[%258, %c0_79, %c0_80] : memref<9x16x384xbf16, #tpu.memory_space<vmem>>, vector<1x16x384xbf16>
    %260 = vector.shape_cast %259 : vector<1x16x384xbf16> to vector<16x384xbf16>
    %261 = arith.extf %260 : vector<16x384xbf16> to vector<16x384xf32>
    %262 = arith.truncf %211 : vector<16x128xf32> to vector<16x128xbf16>
    %c0_81 = arith.constant 0 : index
    %c0_82 = arith.constant 0 : index
    %c0_83 = arith.constant 0 : index
    %263 = vector.load %arg3[%c0_81, %c0_82, %c0_83] : memref<2x128x384xbf16, #tpu.memory_space<vmem>>, vector<1x128x384xbf16>
    %264 = vector.shape_cast %263 : vector<1x128x384xbf16> to vector<128x384xbf16>
    %cst_84 = arith.constant dense<0.000000e+00> : vector<16x384xf32>
    %265 = tpu.matmul %262, %264, %cst_84 {dimension_numbers = #tpu.dot_dimension_numbers<[1], [0], [0], [1], [0, 0, 1, 1], [], []>} : vector<16x128xbf16>, vector<128x384xbf16>, vector<16x384xf32> -> vector<16x384xf32>
    %266 = vector.extract_strided_slice %261 {offsets = [0, 0], sizes = [16, 128], strides = [1, 1]} : vector<16x384xf32> to vector<16x128xf32>
    %267 = vector.extract_strided_slice %265 {offsets = [0, 0], sizes = [16, 128], strides = [1, 1]} : vector<16x384xf32> to vector<16x128xf32>
    %268 = arith.addf %266, %267 : vector<16x128xf32>
    %269 = arith.negf %268 : vector<16x128xf32>
    %270 = math.exp %269 : vector<16x128xf32>
    %cst_85 = arith.constant 1.000000e+00 : f32
    %271 = vector.broadcast %cst_85 : f32 to vector<16x128xf32>
    %272 = arith.addf %271, %270 : vector<16x128xf32>
    %273 = arith.divf %271, %272 : vector<16x128xf32>
    %274 = vector.extract_strided_slice %261 {offsets = [0, 128], sizes = [16, 128], strides = [1, 1]} : vector<16x384xf32> to vector<16x128xf32>
    %275 = vector.extract_strided_slice %265 {offsets = [0, 128], sizes = [16, 128], strides = [1, 1]} : vector<16x384xf32> to vector<16x128xf32>
    %276 = arith.addf %274, %275 : vector<16x128xf32>
    %277 = arith.negf %276 : vector<16x128xf32>
    %278 = math.exp %277 : vector<16x128xf32>
    %cst_86 = arith.constant 1.000000e+00 : f32
    %279 = vector.broadcast %cst_86 : f32 to vector<16x128xf32>
    %280 = arith.addf %279, %278 : vector<16x128xf32>
    %281 = arith.divf %279, %280 : vector<16x128xf32>
    %282 = vector.extract_strided_slice %261 {offsets = [0, 256], sizes = [16, 128], strides = [1, 1]} : vector<16x384xf32> to vector<16x128xf32>
    %283 = vector.extract_strided_slice %265 {offsets = [0, 256], sizes = [16, 128], strides = [1, 1]} : vector<16x384xf32> to vector<16x128xf32>
    %284 = arith.addf %283, %6 : vector<16x128xf32>
    %285 = arith.mulf %273, %284 : vector<16x128xf32>
    %286 = arith.addf %282, %285 : vector<16x128xf32>
    %287 = math.tanh %286 : vector<16x128xf32>
    %cst_87 = arith.constant 1.000000e+00 : f32
    %288 = vector.broadcast %cst_87 : f32 to vector<16x128xf32>
    %289 = arith.subf %288, %281 : vector<16x128xf32>
    %290 = arith.mulf %289, %287 : vector<16x128xf32>
    %291 = arith.mulf %281, %211 : vector<16x128xf32>
    %292 = arith.addf %290, %291 : vector<16x128xf32>
    %293 = arith.truncf %292 : vector<16x128xf32> to vector<16x128xbf16>
    %294 = arith.index_cast %c3_i32 : i32 to index
    %c0_88 = arith.constant 0 : index
    %c0_89 = arith.constant 0 : index
    %295 = vector.load %arg5[%294, %c0_88, %c0_89] : memref<9x16x128xbf16, #tpu.memory_space<vmem>>, vector<1x16x128xbf16>
    %296 = vector.shape_cast %295 : vector<1x16x128xbf16> to vector<16x128xbf16>
    %297 = vector.shape_cast %293 : vector<16x128xbf16> to vector<1x16x128xbf16>
    tpu.vector_store %arg5[%294, %c0_88, %c0_89], %297 {strides = array<i32>} : memref<9x16x128xbf16, #tpu.memory_space<vmem>>, vector<1x16x128xbf16>,
    %c8_i32_90 = arith.constant 8 : i32
    %298 = arith.subi %c8_i32_90, %c3_i32 : i32
    %299 = arith.index_cast %298 : i32 to index
    %c0_91 = arith.constant 0 : index
    %c0_92 = arith.constant 0 : index
    %300 = vector.load %arg2[%299, %c0_91, %c0_92] : memref<9x16x384xbf16, #tpu.memory_space<vmem>>, vector<1x16x384xbf16>
    %301 = vector.shape_cast %300 : vector<1x16x384xbf16> to vector<16x384xbf16>
    %302 = arith.extf %301 : vector<16x384xbf16> to vector<16x384xf32>
    %303 = arith.truncf %252 : vector<16x128xf32> to vector<16x128xbf16>
    %c1_93 = arith.constant 1 : index
    %c0_94 = arith.constant 0 : index
    %c0_95 = arith.constant 0 : index
    %304 = vector.load %arg3[%c1_93, %c0_94, %c0_95] : memref<2x128x384xbf16, #tpu.memory_space<vmem>>, vector<1x128x384xbf16>
    %305 = vector.shape_cast %304 : vector<1x128x384xbf16> to vector<128x384xbf16>
    %cst_96 = arith.constant dense<0.000000e+00> : vector<16x384xf32>
    %306 = tpu.matmul %303, %305, %cst_96 {dimension_numbers = #tpu.dot_dimension_numbers<[1], [0], [0], [1], [0, 0, 1, 1], [], []>} : vector<16x128xbf16>, vector<128x384xbf16>, vector<16x384xf32> -> vector<16x384xf32>
    %307 = vector.extract_strided_slice %302 {offsets = [0, 0], sizes = [16, 128], strides = [1, 1]} : vector<16x384xf32> to vector<16x128xf32>
    %308 = vector.extract_strided_slice %306 {offsets = [0, 0], sizes = [16, 128], strides = [1, 1]} : vector<16x384xf32> to vector<16x128xf32>
    %309 = arith.addf %307, %308 : vector<16x128xf32>
    %310 = arith.negf %309 : vector<16x128xf32>
    %311 = math.exp %310 : vector<16x128xf32>
    %cst_97 = arith.constant 1.000000e+00 : f32
    %312 = vector.broadcast %cst_97 : f32 to vector<16x128xf32>
    %313 = arith.addf %312, %311 : vector<16x128xf32>
    %314 = arith.divf %312, %313 : vector<16x128xf32>
    %315 = vector.extract_strided_slice %302 {offsets = [0, 128], sizes = [16, 128], strides = [1, 1]} : vector<16x384xf32> to vector<16x128xf32>
    %316 = vector.extract_strided_slice %306 {offsets = [0, 128], sizes = [16, 128], strides = [1, 1]} : vector<16x384xf32> to vector<16x128xf32>
    %317 = arith.addf %315, %316 : vector<16x128xf32>
    %318 = arith.negf %317 : vector<16x128xf32>
    %319 = math.exp %318 : vector<16x128xf32>
    %cst_98 = arith.constant 1.000000e+00 : f32
    %320 = vector.broadcast %cst_98 : f32 to vector<16x128xf32>
    %321 = arith.addf %320, %319 : vector<16x128xf32>
    %322 = arith.divf %320, %321 : vector<16x128xf32>
    %323 = vector.extract_strided_slice %302 {offsets = [0, 256], sizes = [16, 128], strides = [1, 1]} : vector<16x384xf32> to vector<16x128xf32>
    %324 = vector.extract_strided_slice %306 {offsets = [0, 256], sizes = [16, 128], strides = [1, 1]} : vector<16x384xf32> to vector<16x128xf32>
    %325 = arith.addf %324, %10 : vector<16x128xf32>
    %326 = arith.mulf %314, %325 : vector<16x128xf32>
    %327 = arith.addf %323, %326 : vector<16x128xf32>
    %328 = math.tanh %327 : vector<16x128xf32>
    %cst_99 = arith.constant 1.000000e+00 : f32
    %329 = vector.broadcast %cst_99 : f32 to vector<16x128xf32>
    %330 = arith.subf %329, %322 : vector<16x128xf32>
    %331 = arith.mulf %330, %328 : vector<16x128xf32>
    %332 = arith.mulf %322, %252 : vector<16x128xf32>
    %333 = arith.addf %331, %332 : vector<16x128xf32>
    %334 = arith.truncf %333 : vector<16x128xf32> to vector<16x128xbf16>
    %335 = arith.index_cast %298 : i32 to index
    %c0_100 = arith.constant 0 : index
    %c0_101 = arith.constant 0 : index
    %336 = vector.load %arg6[%335, %c0_100, %c0_101] : memref<9x16x128xbf16, #tpu.memory_space<vmem>>, vector<1x16x128xbf16>
    %337 = vector.shape_cast %336 : vector<1x16x128xbf16> to vector<16x128xbf16>
    %338 = vector.shape_cast %334 : vector<16x128xbf16> to vector<1x16x128xbf16>
    tpu.vector_store %arg6[%335, %c0_100, %c0_101], %338 {strides = array<i32>} : memref<9x16x128xbf16, #tpu.memory_space<vmem>>, vector<1x16x128xbf16>,
    %c4_i32 = arith.constant 4 : i32
    %339 = arith.index_cast %c4_i32 : i32 to index
    %c0_102 = arith.constant 0 : index
    %c0_103 = arith.constant 0 : index
    %340 = vector.load %arg1[%339, %c0_102, %c0_103] : memref<9x16x384xbf16, #tpu.memory_space<vmem>>, vector<1x16x384xbf16>
    %341 = vector.shape_cast %340 : vector<1x16x384xbf16> to vector<16x384xbf16>
    %342 = arith.extf %341 : vector<16x384xbf16> to vector<16x384xf32>
    %343 = arith.truncf %292 : vector<16x128xf32> to vector<16x128xbf16>
    %c0_104 = arith.constant 0 : index
    %c0_105 = arith.constant 0 : index
    %c0_106 = arith.constant 0 : index
    %344 = vector.load %arg3[%c0_104, %c0_105, %c0_106] : memref<2x128x384xbf16, #tpu.memory_space<vmem>>, vector<1x128x384xbf16>
    %345 = vector.shape_cast %344 : vector<1x128x384xbf16> to vector<128x384xbf16>
    %cst_107 = arith.constant dense<0.000000e+00> : vector<16x384xf32>
    %346 = tpu.matmul %343, %345, %cst_107 {dimension_numbers = #tpu.dot_dimension_numbers<[1], [0], [0], [1], [0, 0, 1, 1], [], []>} : vector<16x128xbf16>, vector<128x384xbf16>, vector<16x384xf32> -> vector<16x384xf32>
    %347 = vector.extract_strided_slice %342 {offsets = [0, 0], sizes = [16, 128], strides = [1, 1]} : vector<16x384xf32> to vector<16x128xf32>
    %348 = vector.extract_strided_slice %346 {offsets = [0, 0], sizes = [16, 128], strides = [1, 1]} : vector<16x384xf32> to vector<16x128xf32>
    %349 = arith.addf %347, %348 : vector<16x128xf32>
    %350 = arith.negf %349 : vector<16x128xf32>
    %351 = math.exp %350 : vector<16x128xf32>
    %cst_108 = arith.constant 1.000000e+00 : f32
    %352 = vector.broadcast %cst_108 : f32 to vector<16x128xf32>
    %353 = arith.addf %352, %351 : vector<16x128xf32>
    %354 = arith.divf %352, %353 : vector<16x128xf32>
    %355 = vector.extract_strided_slice %342 {offsets = [0, 128], sizes = [16, 128], strides = [1, 1]} : vector<16x384xf32> to vector<16x128xf32>
    %356 = vector.extract_strided_slice %346 {offsets = [0, 128], sizes = [16, 128], strides = [1, 1]} : vector<16x384xf32> to vector<16x128xf32>
    %357 = arith.addf %355, %356 : vector<16x128xf32>
    %358 = arith.negf %357 : vector<16x128xf32>
    %359 = math.exp %358 : vector<16x128xf32>
    %cst_109 = arith.constant 1.000000e+00 : f32
    %360 = vector.broadcast %cst_109 : f32 to vector<16x128xf32>
    %361 = arith.addf %360, %359 : vector<16x128xf32>
    %362 = arith.divf %360, %361 : vector<16x128xf32>
    %363 = vector.extract_strided_slice %342 {offsets = [0, 256], sizes = [16, 128], strides = [1, 1]} : vector<16x384xf32> to vector<16x128xf32>
    %364 = vector.extract_strided_slice %346 {offsets = [0, 256], sizes = [16, 128], strides = [1, 1]} : vector<16x384xf32> to vector<16x128xf32>
    %365 = arith.addf %364, %6 : vector<16x128xf32>
    %366 = arith.mulf %354, %365 : vector<16x128xf32>
    %367 = arith.addf %363, %366 : vector<16x128xf32>
    %368 = math.tanh %367 : vector<16x128xf32>
    %cst_110 = arith.constant 1.000000e+00 : f32
    %369 = vector.broadcast %cst_110 : f32 to vector<16x128xf32>
    %370 = arith.subf %369, %362 : vector<16x128xf32>
    %371 = arith.mulf %370, %368 : vector<16x128xf32>
    %372 = arith.mulf %362, %292 : vector<16x128xf32>
    %373 = arith.addf %371, %372 : vector<16x128xf32>
    %374 = arith.truncf %373 : vector<16x128xf32> to vector<16x128xbf16>
    %375 = arith.index_cast %c4_i32 : i32 to index
    %c0_111 = arith.constant 0 : index
    %c0_112 = arith.constant 0 : index
    %376 = vector.load %arg5[%375, %c0_111, %c0_112] : memref<9x16x128xbf16, #tpu.memory_space<vmem>>, vector<1x16x128xbf16>
    %377 = vector.shape_cast %376 : vector<1x16x128xbf16> to vector<16x128xbf16>
    %378 = vector.shape_cast %374 : vector<16x128xbf16> to vector<1x16x128xbf16>
    tpu.vector_store %arg5[%375, %c0_111, %c0_112], %378 {strides = array<i32>} : memref<9x16x128xbf16, #tpu.memory_space<vmem>>, vector<1x16x128xbf16>,
    %c8_i32_113 = arith.constant 8 : i32
    %379 = arith.subi %c8_i32_113, %c4_i32 : i32
    %380 = arith.index_cast %379 : i32 to index
    %c0_114 = arith.constant 0 : index
    %c0_115 = arith.constant 0 : index
    %381 = vector.load %arg2[%380, %c0_114, %c0_115] : memref<9x16x384xbf16, #tpu.memory_space<vmem>>, vector<1x16x384xbf16>
    %382 = vector.shape_cast %381 : vector<1x16x384xbf16> to vector<16x384xbf16>
    %383 = arith.extf %382 : vector<16x384xbf16> to vector<16x384xf32>
    %384 = arith.truncf %333 : vector<16x128xf32> to vector<16x128xbf16>
    %c1_116 = arith.constant 1 : index
    %c0_117 = arith.constant 0 : index
    %c0_118 = arith.constant 0 : index
    %385 = vector.load %arg3[%c1_116, %c0_117, %c0_118] : memref<2x128x384xbf16, #tpu.memory_space<vmem>>, vector<1x128x384xbf16>
    %386 = vector.shape_cast %385 : vector<1x128x384xbf16> to vector<128x384xbf16>
    %cst_119 = arith.constant dense<0.000000e+00> : vector<16x384xf32>
    %387 = tpu.matmul %384, %386, %cst_119 {dimension_numbers = #tpu.dot_dimension_numbers<[1], [0], [0], [1], [0, 0, 1, 1], [], []>} : vector<16x128xbf16>, vector<128x384xbf16>, vector<16x384xf32> -> vector<16x384xf32>
    %388 = vector.extract_strided_slice %383 {offsets = [0, 0], sizes = [16, 128], strides = [1, 1]} : vector<16x384xf32> to vector<16x128xf32>
    %389 = vector.extract_strided_slice %387 {offsets = [0, 0], sizes = [16, 128], strides = [1, 1]} : vector<16x384xf32> to vector<16x128xf32>
    %390 = arith.addf %388, %389 : vector<16x128xf32>
    %391 = arith.negf %390 : vector<16x128xf32>
    %392 = math.exp %391 : vector<16x128xf32>
    %cst_120 = arith.constant 1.000000e+00 : f32
    %393 = vector.broadcast %cst_120 : f32 to vector<16x128xf32>
    %394 = arith.addf %393, %392 : vector<16x128xf32>
    %395 = arith.divf %393, %394 : vector<16x128xf32>
    %396 = vector.extract_strided_slice %383 {offsets = [0, 128], sizes = [16, 128], strides = [1, 1]} : vector<16x384xf32> to vector<16x128xf32>
    %397 = vector.extract_strided_slice %387 {offsets = [0, 128], sizes = [16, 128], strides = [1, 1]} : vector<16x384xf32> to vector<16x128xf32>
    %398 = arith.addf %396, %397 : vector<16x128xf32>
    %399 = arith.negf %398 : vector<16x128xf32>
    %400 = math.exp %399 : vector<16x128xf32>
    %cst_121 = arith.constant 1.000000e+00 : f32
    %401 = vector.broadcast %cst_121 : f32 to vector<16x128xf32>
    %402 = arith.addf %401, %400 : vector<16x128xf32>
    %403 = arith.divf %401, %402 : vector<16x128xf32>
    %404 = vector.extract_strided_slice %383 {offsets = [0, 256], sizes = [16, 128], strides = [1, 1]} : vector<16x384xf32> to vector<16x128xf32>
    %405 = vector.extract_strided_slice %387 {offsets = [0, 256], sizes = [16, 128], strides = [1, 1]} : vector<16x384xf32> to vector<16x128xf32>
    %406 = arith.addf %405, %10 : vector<16x128xf32>
    %407 = arith.mulf %395, %406 : vector<16x128xf32>
    %408 = arith.addf %404, %407 : vector<16x128xf32>
    %409 = math.tanh %408 : vector<16x128xf32>
    %cst_122 = arith.constant 1.000000e+00 : f32
    %410 = vector.broadcast %cst_122 : f32 to vector<16x128xf32>
    %411 = arith.subf %410, %403 : vector<16x128xf32>
    %412 = arith.mulf %411, %409 : vector<16x128xf32>
    %413 = arith.mulf %403, %333 : vector<16x128xf32>
    %414 = arith.addf %412, %413 : vector<16x128xf32>
    %415 = arith.truncf %414 : vector<16x128xf32> to vector<16x128xbf16>
    %416 = arith.index_cast %379 : i32 to index
    %c0_123 = arith.constant 0 : index
    %c0_124 = arith.constant 0 : index
    %417 = vector.load %arg6[%416, %c0_123, %c0_124] : memref<9x16x128xbf16, #tpu.memory_space<vmem>>, vector<1x16x128xbf16>
    %418 = vector.shape_cast %417 : vector<1x16x128xbf16> to vector<16x128xbf16>
    %419 = vector.shape_cast %415 : vector<16x128xbf16> to vector<1x16x128xbf16>
    tpu.vector_store %arg6[%416, %c0_123, %c0_124], %419 {strides = array<i32>} : memref<9x16x128xbf16, #tpu.memory_space<vmem>>, vector<1x16x128xbf16>,
    %c5_i32 = arith.constant 5 : i32
    %420 = arith.index_cast %c5_i32 : i32 to index
    %c0_125 = arith.constant 0 : index
    %c0_126 = arith.constant 0 : index
    %421 = vector.load %arg1[%420, %c0_125, %c0_126] : memref<9x16x384xbf16, #tpu.memory_space<vmem>>, vector<1x16x384xbf16>
    %422 = vector.shape_cast %421 : vector<1x16x384xbf16> to vector<16x384xbf16>
    %423 = arith.extf %422 : vector<16x384xbf16> to vector<16x384xf32>
    %424 = arith.truncf %373 : vector<16x128xf32> to vector<16x128xbf16>
    %c0_127 = arith.constant 0 : index
    %c0_128 = arith.constant 0 : index
    %c0_129 = arith.constant 0 : index
    %425 = vector.load %arg3[%c0_127, %c0_128, %c0_129] : memref<2x128x384xbf16, #tpu.memory_space<vmem>>, vector<1x128x384xbf16>
    %426 = vector.shape_cast %425 : vector<1x128x384xbf16> to vector<128x384xbf16>
    %cst_130 = arith.constant dense<0.000000e+00> : vector<16x384xf32>
    %427 = tpu.matmul %424, %426, %cst_130 {dimension_numbers = #tpu.dot_dimension_numbers<[1], [0], [0], [1], [0, 0, 1, 1], [], []>} : vector<16x128xbf16>, vector<128x384xbf16>, vector<16x384xf32> -> vector<16x384xf32>
    %428 = vector.extract_strided_slice %423 {offsets = [0, 0], sizes = [16, 128], strides = [1, 1]} : vector<16x384xf32> to vector<16x128xf32>
    %429 = vector.extract_strided_slice %427 {offsets = [0, 0], sizes = [16, 128], strides = [1, 1]} : vector<16x384xf32> to vector<16x128xf32>
    %430 = arith.addf %428, %429 : vector<16x128xf32>
    %431 = arith.negf %430 : vector<16x128xf32>
    %432 = math.exp %431 : vector<16x128xf32>
    %cst_131 = arith.constant 1.000000e+00 : f32
    %433 = vector.broadcast %cst_131 : f32 to vector<16x128xf32>
    %434 = arith.addf %433, %432 : vector<16x128xf32>
    %435 = arith.divf %433, %434 : vector<16x128xf32>
    %436 = vector.extract_strided_slice %423 {offsets = [0, 128], sizes = [16, 128], strides = [1, 1]} : vector<16x384xf32> to vector<16x128xf32>
    %437 = vector.extract_strided_slice %427 {offsets = [0, 128], sizes = [16, 128], strides = [1, 1]} : vector<16x384xf32> to vector<16x128xf32>
    %438 = arith.addf %436, %437 : vector<16x128xf32>
    %439 = arith.negf %438 : vector<16x128xf32>
    %440 = math.exp %439 : vector<16x128xf32>
    %cst_132 = arith.constant 1.000000e+00 : f32
    %441 = vector.broadcast %cst_132 : f32 to vector<16x128xf32>
    %442 = arith.addf %441, %440 : vector<16x128xf32>
    %443 = arith.divf %441, %442 : vector<16x128xf32>
    %444 = vector.extract_strided_slice %423 {offsets = [0, 256], sizes = [16, 128], strides = [1, 1]} : vector<16x384xf32> to vector<16x128xf32>
    %445 = vector.extract_strided_slice %427 {offsets = [0, 256], sizes = [16, 128], strides = [1, 1]} : vector<16x384xf32> to vector<16x128xf32>
    %446 = arith.addf %445, %6 : vector<16x128xf32>
    %447 = arith.mulf %435, %446 : vector<16x128xf32>
    %448 = arith.addf %444, %447 : vector<16x128xf32>
    %449 = math.tanh %448 : vector<16x128xf32>
    %cst_133 = arith.constant 1.000000e+00 : f32
    %450 = vector.broadcast %cst_133 : f32 to vector<16x128xf32>
    %451 = arith.subf %450, %443 : vector<16x128xf32>
    %452 = arith.mulf %451, %449 : vector<16x128xf32>
    %453 = arith.mulf %443, %373 : vector<16x128xf32>
    %454 = arith.addf %452, %453 : vector<16x128xf32>
    %455 = arith.truncf %454 : vector<16x128xf32> to vector<16x128xbf16>
    %456 = arith.index_cast %c5_i32 : i32 to index
    %c0_134 = arith.constant 0 : index
    %c0_135 = arith.constant 0 : index
    %457 = vector.load %arg5[%456, %c0_134, %c0_135] : memref<9x16x128xbf16, #tpu.memory_space<vmem>>, vector<1x16x128xbf16>
    %458 = vector.shape_cast %457 : vector<1x16x128xbf16> to vector<16x128xbf16>
    %459 = vector.shape_cast %455 : vector<16x128xbf16> to vector<1x16x128xbf16>
    tpu.vector_store %arg5[%456, %c0_134, %c0_135], %459 {strides = array<i32>} : memref<9x16x128xbf16, #tpu.memory_space<vmem>>, vector<1x16x128xbf16>,
    %c8_i32_136 = arith.constant 8 : i32
    %460 = arith.subi %c8_i32_136, %c5_i32 : i32
    %461 = arith.index_cast %460 : i32 to index
    %c0_137 = arith.constant 0 : index
    %c0_138 = arith.constant 0 : index
    %462 = vector.load %arg2[%461, %c0_137, %c0_138] : memref<9x16x384xbf16, #tpu.memory_space<vmem>>, vector<1x16x384xbf16>
    %463 = vector.shape_cast %462 : vector<1x16x384xbf16> to vector<16x384xbf16>
    %464 = arith.extf %463 : vector<16x384xbf16> to vector<16x384xf32>
    %465 = arith.truncf %414 : vector<16x128xf32> to vector<16x128xbf16>
    %c1_139 = arith.constant 1 : index
    %c0_140 = arith.constant 0 : index
    %c0_141 = arith.constant 0 : index
    %466 = vector.load %arg3[%c1_139, %c0_140, %c0_141] : memref<2x128x384xbf16, #tpu.memory_space<vmem>>, vector<1x128x384xbf16>
    %467 = vector.shape_cast %466 : vector<1x128x384xbf16> to vector<128x384xbf16>
    %cst_142 = arith.constant dense<0.000000e+00> : vector<16x384xf32>
    %468 = tpu.matmul %465, %467, %cst_142 {dimension_numbers = #tpu.dot_dimension_numbers<[1], [0], [0], [1], [0, 0, 1, 1], [], []>} : vector<16x128xbf16>, vector<128x384xbf16>, vector<16x384xf32> -> vector<16x384xf32>
    %469 = vector.extract_strided_slice %464 {offsets = [0, 0], sizes = [16, 128], strides = [1, 1]} : vector<16x384xf32> to vector<16x128xf32>
    %470 = vector.extract_strided_slice %468 {offsets = [0, 0], sizes = [16, 128], strides = [1, 1]} : vector<16x384xf32> to vector<16x128xf32>
    %471 = arith.addf %469, %470 : vector<16x128xf32>
    %472 = arith.negf %471 : vector<16x128xf32>
    %473 = math.exp %472 : vector<16x128xf32>
    %cst_143 = arith.constant 1.000000e+00 : f32
    %474 = vector.broadcast %cst_143 : f32 to vector<16x128xf32>
    %475 = arith.addf %474, %473 : vector<16x128xf32>
    %476 = arith.divf %474, %475 : vector<16x128xf32>
    %477 = vector.extract_strided_slice %464 {offsets = [0, 128], sizes = [16, 128], strides = [1, 1]} : vector<16x384xf32> to vector<16x128xf32>
    %478 = vector.extract_strided_slice %468 {offsets = [0, 128], sizes = [16, 128], strides = [1, 1]} : vector<16x384xf32> to vector<16x128xf32>
    %479 = arith.addf %477, %478 : vector<16x128xf32>
    %480 = arith.negf %479 : vector<16x128xf32>
    %481 = math.exp %480 : vector<16x128xf32>
    %cst_144 = arith.constant 1.000000e+00 : f32
    %482 = vector.broadcast %cst_144 : f32 to vector<16x128xf32>
    %483 = arith.addf %482, %481 : vector<16x128xf32>
    %484 = arith.divf %482, %483 : vector<16x128xf32>
    %485 = vector.extract_strided_slice %464 {offsets = [0, 256], sizes = [16, 128], strides = [1, 1]} : vector<16x384xf32> to vector<16x128xf32>
    %486 = vector.extract_strided_slice %468 {offsets = [0, 256], sizes = [16, 128], strides = [1, 1]} : vector<16x384xf32> to vector<16x128xf32>
    %487 = arith.addf %486, %10 : vector<16x128xf32>
    %488 = arith.mulf %476, %487 : vector<16x128xf32>
    %489 = arith.addf %485, %488 : vector<16x128xf32>
    %490 = math.tanh %489 : vector<16x128xf32>
    %cst_145 = arith.constant 1.000000e+00 : f32
    %491 = vector.broadcast %cst_145 : f32 to vector<16x128xf32>
    %492 = arith.subf %491, %484 : vector<16x128xf32>
    %493 = arith.mulf %492, %490 : vector<16x128xf32>
    %494 = arith.mulf %484, %414 : vector<16x128xf32>
    %495 = arith.addf %493, %494 : vector<16x128xf32>
    %496 = arith.truncf %495 : vector<16x128xf32> to vector<16x128xbf16>
    %497 = arith.index_cast %460 : i32 to index
    %c0_146 = arith.constant 0 : index
    %c0_147 = arith.constant 0 : index
    %498 = vector.load %arg6[%497, %c0_146, %c0_147] : memref<9x16x128xbf16, #tpu.memory_space<vmem>>, vector<1x16x128xbf16>
    %499 = vector.shape_cast %498 : vector<1x16x128xbf16> to vector<16x128xbf16>
    %500 = vector.shape_cast %496 : vector<16x128xbf16> to vector<1x16x128xbf16>
    tpu.vector_store %arg6[%497, %c0_146, %c0_147], %500 {strides = array<i32>} : memref<9x16x128xbf16, #tpu.memory_space<vmem>>, vector<1x16x128xbf16>,
    %c6_i32 = arith.constant 6 : i32
    %501 = arith.index_cast %c6_i32 : i32 to index
    %c0_148 = arith.constant 0 : index
    %c0_149 = arith.constant 0 : index
    %502 = vector.load %arg1[%501, %c0_148, %c0_149] : memref<9x16x384xbf16, #tpu.memory_space<vmem>>, vector<1x16x384xbf16>
    %503 = vector.shape_cast %502 : vector<1x16x384xbf16> to vector<16x384xbf16>
    %504 = arith.extf %503 : vector<16x384xbf16> to vector<16x384xf32>
    %505 = arith.truncf %454 : vector<16x128xf32> to vector<16x128xbf16>
    %c0_150 = arith.constant 0 : index
    %c0_151 = arith.constant 0 : index
    %c0_152 = arith.constant 0 : index
    %506 = vector.load %arg3[%c0_150, %c0_151, %c0_152] : memref<2x128x384xbf16, #tpu.memory_space<vmem>>, vector<1x128x384xbf16>
    %507 = vector.shape_cast %506 : vector<1x128x384xbf16> to vector<128x384xbf16>
    %cst_153 = arith.constant dense<0.000000e+00> : vector<16x384xf32>
    %508 = tpu.matmul %505, %507, %cst_153 {dimension_numbers = #tpu.dot_dimension_numbers<[1], [0], [0], [1], [0, 0, 1, 1], [], []>} : vector<16x128xbf16>, vector<128x384xbf16>, vector<16x384xf32> -> vector<16x384xf32>
    %509 = vector.extract_strided_slice %504 {offsets = [0, 0], sizes = [16, 128], strides = [1, 1]} : vector<16x384xf32> to vector<16x128xf32>
    %510 = vector.extract_strided_slice %508 {offsets = [0, 0], sizes = [16, 128], strides = [1, 1]} : vector<16x384xf32> to vector<16x128xf32>
    %511 = arith.addf %509, %510 : vector<16x128xf32>
    %512 = arith.negf %511 : vector<16x128xf32>
    %513 = math.exp %512 : vector<16x128xf32>
    %cst_154 = arith.constant 1.000000e+00 : f32
    %514 = vector.broadcast %cst_154 : f32 to vector<16x128xf32>
    %515 = arith.addf %514, %513 : vector<16x128xf32>
    %516 = arith.divf %514, %515 : vector<16x128xf32>
    %517 = vector.extract_strided_slice %504 {offsets = [0, 128], sizes = [16, 128], strides = [1, 1]} : vector<16x384xf32> to vector<16x128xf32>
    %518 = vector.extract_strided_slice %508 {offsets = [0, 128], sizes = [16, 128], strides = [1, 1]} : vector<16x384xf32> to vector<16x128xf32>
    %519 = arith.addf %517, %518 : vector<16x128xf32>
    %520 = arith.negf %519 : vector<16x128xf32>
    %521 = math.exp %520 : vector<16x128xf32>
    %cst_155 = arith.constant 1.000000e+00 : f32
    %522 = vector.broadcast %cst_155 : f32 to vector<16x128xf32>
    %523 = arith.addf %522, %521 : vector<16x128xf32>
    %524 = arith.divf %522, %523 : vector<16x128xf32>
    %525 = vector.extract_strided_slice %504 {offsets = [0, 256], sizes = [16, 128], strides = [1, 1]} : vector<16x384xf32> to vector<16x128xf32>
    %526 = vector.extract_strided_slice %508 {offsets = [0, 256], sizes = [16, 128], strides = [1, 1]} : vector<16x384xf32> to vector<16x128xf32>
    %527 = arith.addf %526, %6 : vector<16x128xf32>
    %528 = arith.mulf %516, %527 : vector<16x128xf32>
    %529 = arith.addf %525, %528 : vector<16x128xf32>
    %530 = math.tanh %529 : vector<16x128xf32>
    %cst_156 = arith.constant 1.000000e+00 : f32
    %531 = vector.broadcast %cst_156 : f32 to vector<16x128xf32>
    %532 = arith.subf %531, %524 : vector<16x128xf32>
    %533 = arith.mulf %532, %530 : vector<16x128xf32>
    %534 = arith.mulf %524, %454 : vector<16x128xf32>
    %535 = arith.addf %533, %534 : vector<16x128xf32>
    %536 = arith.truncf %535 : vector<16x128xf32> to vector<16x128xbf16>
    %537 = arith.index_cast %c6_i32 : i32 to index
    %c0_157 = arith.constant 0 : index
    %c0_158 = arith.constant 0 : index
    %538 = vector.load %arg5[%537, %c0_157, %c0_158] : memref<9x16x128xbf16, #tpu.memory_space<vmem>>, vector<1x16x128xbf16>
    %539 = vector.shape_cast %538 : vector<1x16x128xbf16> to vector<16x128xbf16>
    %540 = vector.shape_cast %536 : vector<16x128xbf16> to vector<1x16x128xbf16>
    tpu.vector_store %arg5[%537, %c0_157, %c0_158], %540 {strides = array<i32>} : memref<9x16x128xbf16, #tpu.memory_space<vmem>>, vector<1x16x128xbf16>,
    %c8_i32_159 = arith.constant 8 : i32
    %541 = arith.subi %c8_i32_159, %c6_i32 : i32
    %542 = arith.index_cast %541 : i32 to index
    %c0_160 = arith.constant 0 : index
    %c0_161 = arith.constant 0 : index
    %543 = vector.load %arg2[%542, %c0_160, %c0_161] : memref<9x16x384xbf16, #tpu.memory_space<vmem>>, vector<1x16x384xbf16>
    %544 = vector.shape_cast %543 : vector<1x16x384xbf16> to vector<16x384xbf16>
    %545 = arith.extf %544 : vector<16x384xbf16> to vector<16x384xf32>
    %546 = arith.truncf %495 : vector<16x128xf32> to vector<16x128xbf16>
    %c1_162 = arith.constant 1 : index
    %c0_163 = arith.constant 0 : index
    %c0_164 = arith.constant 0 : index
    %547 = vector.load %arg3[%c1_162, %c0_163, %c0_164] : memref<2x128x384xbf16, #tpu.memory_space<vmem>>, vector<1x128x384xbf16>
    %548 = vector.shape_cast %547 : vector<1x128x384xbf16> to vector<128x384xbf16>
    %cst_165 = arith.constant dense<0.000000e+00> : vector<16x384xf32>
    %549 = tpu.matmul %546, %548, %cst_165 {dimension_numbers = #tpu.dot_dimension_numbers<[1], [0], [0], [1], [0, 0, 1, 1], [], []>} : vector<16x128xbf16>, vector<128x384xbf16>, vector<16x384xf32> -> vector<16x384xf32>
    %550 = vector.extract_strided_slice %545 {offsets = [0, 0], sizes = [16, 128], strides = [1, 1]} : vector<16x384xf32> to vector<16x128xf32>
    %551 = vector.extract_strided_slice %549 {offsets = [0, 0], sizes = [16, 128], strides = [1, 1]} : vector<16x384xf32> to vector<16x128xf32>
    %552 = arith.addf %550, %551 : vector<16x128xf32>
    %553 = arith.negf %552 : vector<16x128xf32>
    %554 = math.exp %553 : vector<16x128xf32>
    %cst_166 = arith.constant 1.000000e+00 : f32
    %555 = vector.broadcast %cst_166 : f32 to vector<16x128xf32>
    %556 = arith.addf %555, %554 : vector<16x128xf32>
    %557 = arith.divf %555, %556 : vector<16x128xf32>
    %558 = vector.extract_strided_slice %545 {offsets = [0, 128], sizes = [16, 128], strides = [1, 1]} : vector<16x384xf32> to vector<16x128xf32>
    %559 = vector.extract_strided_slice %549 {offsets = [0, 128], sizes = [16, 128], strides = [1, 1]} : vector<16x384xf32> to vector<16x128xf32>
    %560 = arith.addf %558, %559 : vector<16x128xf32>
    %561 = arith.negf %560 : vector<16x128xf32>
    %562 = math.exp %561 : vector<16x128xf32>
    %cst_167 = arith.constant 1.000000e+00 : f32
    %563 = vector.broadcast %cst_167 : f32 to vector<16x128xf32>
    %564 = arith.addf %563, %562 : vector<16x128xf32>
    %565 = arith.divf %563, %564 : vector<16x128xf32>
    %566 = vector.extract_strided_slice %545 {offsets = [0, 256], sizes = [16, 128], strides = [1, 1]} : vector<16x384xf32> to vector<16x128xf32>
    %567 = vector.extract_strided_slice %549 {offsets = [0, 256], sizes = [16, 128], strides = [1, 1]} : vector<16x384xf32> to vector<16x128xf32>
    %568 = arith.addf %567, %10 : vector<16x128xf32>
    %569 = arith.mulf %557, %568 : vector<16x128xf32>
    %570 = arith.addf %566, %569 : vector<16x128xf32>
    %571 = math.tanh %570 : vector<16x128xf32>
    %cst_168 = arith.constant 1.000000e+00 : f32
    %572 = vector.broadcast %cst_168 : f32 to vector<16x128xf32>
    %573 = arith.subf %572, %565 : vector<16x128xf32>
    %574 = arith.mulf %573, %571 : vector<16x128xf32>
    %575 = arith.mulf %565, %495 : vector<16x128xf32>
    %576 = arith.addf %574, %575 : vector<16x128xf32>
    %577 = arith.truncf %576 : vector<16x128xf32> to vector<16x128xbf16>
    %578 = arith.index_cast %541 : i32 to index
    %c0_169 = arith.constant 0 : index
    %c0_170 = arith.constant 0 : index
    %579 = vector.load %arg6[%578, %c0_169, %c0_170] : memref<9x16x128xbf16, #tpu.memory_space<vmem>>, vector<1x16x128xbf16>
    %580 = vector.shape_cast %579 : vector<1x16x128xbf16> to vector<16x128xbf16>
    %581 = vector.shape_cast %577 : vector<16x128xbf16> to vector<1x16x128xbf16>
    tpu.vector_store %arg6[%578, %c0_169, %c0_170], %581 {strides = array<i32>} : memref<9x16x128xbf16, #tpu.memory_space<vmem>>, vector<1x16x128xbf16>,
    %c7_i32 = arith.constant 7 : i32
    %582 = arith.index_cast %c7_i32 : i32 to index
    %c0_171 = arith.constant 0 : index
    %c0_172 = arith.constant 0 : index
    %583 = vector.load %arg1[%582, %c0_171, %c0_172] : memref<9x16x384xbf16, #tpu.memory_space<vmem>>, vector<1x16x384xbf16>
    %584 = vector.shape_cast %583 : vector<1x16x384xbf16> to vector<16x384xbf16>
    %585 = arith.extf %584 : vector<16x384xbf16> to vector<16x384xf32>
    %586 = arith.truncf %535 : vector<16x128xf32> to vector<16x128xbf16>
    %c0_173 = arith.constant 0 : index
    %c0_174 = arith.constant 0 : index
    %c0_175 = arith.constant 0 : index
    %587 = vector.load %arg3[%c0_173, %c0_174, %c0_175] : memref<2x128x384xbf16, #tpu.memory_space<vmem>>, vector<1x128x384xbf16>
    %588 = vector.shape_cast %587 : vector<1x128x384xbf16> to vector<128x384xbf16>
    %cst_176 = arith.constant dense<0.000000e+00> : vector<16x384xf32>
    %589 = tpu.matmul %586, %588, %cst_176 {dimension_numbers = #tpu.dot_dimension_numbers<[1], [0], [0], [1], [0, 0, 1, 1], [], []>} : vector<16x128xbf16>, vector<128x384xbf16>, vector<16x384xf32> -> vector<16x384xf32>
    %590 = vector.extract_strided_slice %585 {offsets = [0, 0], sizes = [16, 128], strides = [1, 1]} : vector<16x384xf32> to vector<16x128xf32>
    %591 = vector.extract_strided_slice %589 {offsets = [0, 0], sizes = [16, 128], strides = [1, 1]} : vector<16x384xf32> to vector<16x128xf32>
    %592 = arith.addf %590, %591 : vector<16x128xf32>
    %593 = arith.negf %592 : vector<16x128xf32>
    %594 = math.exp %593 : vector<16x128xf32>
    %cst_177 = arith.constant 1.000000e+00 : f32
    %595 = vector.broadcast %cst_177 : f32 to vector<16x128xf32>
    %596 = arith.addf %595, %594 : vector<16x128xf32>
    %597 = arith.divf %595, %596 : vector<16x128xf32>
    %598 = vector.extract_strided_slice %585 {offsets = [0, 128], sizes = [16, 128], strides = [1, 1]} : vector<16x384xf32> to vector<16x128xf32>
    %599 = vector.extract_strided_slice %589 {offsets = [0, 128], sizes = [16, 128], strides = [1, 1]} : vector<16x384xf32> to vector<16x128xf32>
    %600 = arith.addf %598, %599 : vector<16x128xf32>
    %601 = arith.negf %600 : vector<16x128xf32>
    %602 = math.exp %601 : vector<16x128xf32>
    %cst_178 = arith.constant 1.000000e+00 : f32
    %603 = vector.broadcast %cst_178 : f32 to vector<16x128xf32>
    %604 = arith.addf %603, %602 : vector<16x128xf32>
    %605 = arith.divf %603, %604 : vector<16x128xf32>
    %606 = vector.extract_strided_slice %585 {offsets = [0, 256], sizes = [16, 128], strides = [1, 1]} : vector<16x384xf32> to vector<16x128xf32>
    %607 = vector.extract_strided_slice %589 {offsets = [0, 256], sizes = [16, 128], strides = [1, 1]} : vector<16x384xf32> to vector<16x128xf32>
    %608 = arith.addf %607, %6 : vector<16x128xf32>
    %609 = arith.mulf %597, %608 : vector<16x128xf32>
    %610 = arith.addf %606, %609 : vector<16x128xf32>
    %611 = math.tanh %610 : vector<16x128xf32>
    %cst_179 = arith.constant 1.000000e+00 : f32
    %612 = vector.broadcast %cst_179 : f32 to vector<16x128xf32>
    %613 = arith.subf %612, %605 : vector<16x128xf32>
    %614 = arith.mulf %613, %611 : vector<16x128xf32>
    %615 = arith.mulf %605, %535 : vector<16x128xf32>
    %616 = arith.addf %614, %615 : vector<16x128xf32>
    %617 = arith.truncf %616 : vector<16x128xf32> to vector<16x128xbf16>
    %618 = arith.index_cast %c7_i32 : i32 to index
    %c0_180 = arith.constant 0 : index
    %c0_181 = arith.constant 0 : index
    %619 = vector.load %arg5[%618, %c0_180, %c0_181] : memref<9x16x128xbf16, #tpu.memory_space<vmem>>, vector<1x16x128xbf16>
    %620 = vector.shape_cast %619 : vector<1x16x128xbf16> to vector<16x128xbf16>
    %621 = vector.shape_cast %617 : vector<16x128xbf16> to vector<1x16x128xbf16>
    tpu.vector_store %arg5[%618, %c0_180, %c0_181], %621 {strides = array<i32>} : memref<9x16x128xbf16, #tpu.memory_space<vmem>>, vector<1x16x128xbf16>,
    %c8_i32_182 = arith.constant 8 : i32
    %622 = arith.subi %c8_i32_182, %c7_i32 : i32
    %623 = arith.index_cast %622 : i32 to index
    %c0_183 = arith.constant 0 : index
    %c0_184 = arith.constant 0 : index
    %624 = vector.load %arg2[%623, %c0_183, %c0_184] : memref<9x16x384xbf16, #tpu.memory_space<vmem>>, vector<1x16x384xbf16>
    %625 = vector.shape_cast %624 : vector<1x16x384xbf16> to vector<16x384xbf16>
    %626 = arith.extf %625 : vector<16x384xbf16> to vector<16x384xf32>
    %627 = arith.truncf %576 : vector<16x128xf32> to vector<16x128xbf16>
    %c1_185 = arith.constant 1 : index
    %c0_186 = arith.constant 0 : index
    %c0_187 = arith.constant 0 : index
    %628 = vector.load %arg3[%c1_185, %c0_186, %c0_187] : memref<2x128x384xbf16, #tpu.memory_space<vmem>>, vector<1x128x384xbf16>
    %629 = vector.shape_cast %628 : vector<1x128x384xbf16> to vector<128x384xbf16>
    %cst_188 = arith.constant dense<0.000000e+00> : vector<16x384xf32>
    %630 = tpu.matmul %627, %629, %cst_188 {dimension_numbers = #tpu.dot_dimension_numbers<[1], [0], [0], [1], [0, 0, 1, 1], [], []>} : vector<16x128xbf16>, vector<128x384xbf16>, vector<16x384xf32> -> vector<16x384xf32>
    %631 = vector.extract_strided_slice %626 {offsets = [0, 0], sizes = [16, 128], strides = [1, 1]} : vector<16x384xf32> to vector<16x128xf32>
    %632 = vector.extract_strided_slice %630 {offsets = [0, 0], sizes = [16, 128], strides = [1, 1]} : vector<16x384xf32> to vector<16x128xf32>
    %633 = arith.addf %631, %632 : vector<16x128xf32>
    %634 = arith.negf %633 : vector<16x128xf32>
    %635 = math.exp %634 : vector<16x128xf32>
    %cst_189 = arith.constant 1.000000e+00 : f32
    %636 = vector.broadcast %cst_189 : f32 to vector<16x128xf32>
    %637 = arith.addf %636, %635 : vector<16x128xf32>
    %638 = arith.divf %636, %637 : vector<16x128xf32>
    %639 = vector.extract_strided_slice %626 {offsets = [0, 128], sizes = [16, 128], strides = [1, 1]} : vector<16x384xf32> to vector<16x128xf32>
    %640 = vector.extract_strided_slice %630 {offsets = [0, 128], sizes = [16, 128], strides = [1, 1]} : vector<16x384xf32> to vector<16x128xf32>
    %641 = arith.addf %639, %640 : vector<16x128xf32>
    %642 = arith.negf %641 : vector<16x128xf32>
    %643 = math.exp %642 : vector<16x128xf32>
    %cst_190 = arith.constant 1.000000e+00 : f32
    %644 = vector.broadcast %cst_190 : f32 to vector<16x128xf32>
    %645 = arith.addf %644, %643 : vector<16x128xf32>
    %646 = arith.divf %644, %645 : vector<16x128xf32>
    %647 = vector.extract_strided_slice %626 {offsets = [0, 256], sizes = [16, 128], strides = [1, 1]} : vector<16x384xf32> to vector<16x128xf32>
    %648 = vector.extract_strided_slice %630 {offsets = [0, 256], sizes = [16, 128], strides = [1, 1]} : vector<16x384xf32> to vector<16x128xf32>
    %649 = arith.addf %648, %10 : vector<16x128xf32>
    %650 = arith.mulf %638, %649 : vector<16x128xf32>
    %651 = arith.addf %647, %650 : vector<16x128xf32>
    %652 = math.tanh %651 : vector<16x128xf32>
    %cst_191 = arith.constant 1.000000e+00 : f32
    %653 = vector.broadcast %cst_191 : f32 to vector<16x128xf32>
    %654 = arith.subf %653, %646 : vector<16x128xf32>
    %655 = arith.mulf %654, %652 : vector<16x128xf32>
    %656 = arith.mulf %646, %576 : vector<16x128xf32>
    %657 = arith.addf %655, %656 : vector<16x128xf32>
    %658 = arith.truncf %657 : vector<16x128xf32> to vector<16x128xbf16>
    %659 = arith.index_cast %622 : i32 to index
    %c0_192 = arith.constant 0 : index
    %c0_193 = arith.constant 0 : index
    %660 = vector.load %arg6[%659, %c0_192, %c0_193] : memref<9x16x128xbf16, #tpu.memory_space<vmem>>, vector<1x16x128xbf16>
    %661 = vector.shape_cast %660 : vector<1x16x128xbf16> to vector<16x128xbf16>
    %662 = vector.shape_cast %658 : vector<16x128xbf16> to vector<1x16x128xbf16>
    tpu.vector_store %arg6[%659, %c0_192, %c0_193], %662 {strides = array<i32>} : memref<9x16x128xbf16, #tpu.memory_space<vmem>>, vector<1x16x128xbf16>,
    %c8_i32_194 = arith.constant 8 : i32
    %c8_i32_195 = arith.constant 8 : i32
    %663 = arith.index_cast %c8_i32_195 : i32 to index
    %c0_196 = arith.constant 0 : index
    %c0_197 = arith.constant 0 : index
    %664 = vector.load %arg1[%663, %c0_196, %c0_197] : memref<9x16x384xbf16, #tpu.memory_space<vmem>>, vector<1x16x384xbf16>
    %665 = vector.shape_cast %664 : vector<1x16x384xbf16> to vector<16x384xbf16>
    %666 = arith.extf %665 : vector<16x384xbf16> to vector<16x384xf32>
    %667 = arith.truncf %616 : vector<16x128xf32> to vector<16x128xbf16>
    %c0_198 = arith.constant 0 : index
    %c0_199 = arith.constant 0 : index
    %c0_200 = arith.constant 0 : index
    %668 = vector.load %arg3[%c0_198, %c0_199, %c0_200] : memref<2x128x384xbf16, #tpu.memory_space<vmem>>, vector<1x128x384xbf16>
    %669 = vector.shape_cast %668 : vector<1x128x384xbf16> to vector<128x384xbf16>
    %cst_201 = arith.constant dense<0.000000e+00> : vector<16x384xf32>
    %670 = tpu.matmul %667, %669, %cst_201 {dimension_numbers = #tpu.dot_dimension_numbers<[1], [0], [0], [1], [0, 0, 1, 1], [], []>} : vector<16x128xbf16>, vector<128x384xbf16>, vector<16x384xf32> -> vector<16x384xf32>
    %671 = vector.extract_strided_slice %666 {offsets = [0, 0], sizes = [16, 128], strides = [1, 1]} : vector<16x384xf32> to vector<16x128xf32>
    %672 = vector.extract_strided_slice %670 {offsets = [0, 0], sizes = [16, 128], strides = [1, 1]} : vector<16x384xf32> to vector<16x128xf32>
    %673 = arith.addf %671, %672 : vector<16x128xf32>
    %674 = arith.negf %673 : vector<16x128xf32>
    %675 = math.exp %674 : vector<16x128xf32>
    %cst_202 = arith.constant 1.000000e+00 : f32
    %676 = vector.broadcast %cst_202 : f32 to vector<16x128xf32>
    %677 = arith.addf %676, %675 : vector<16x128xf32>
    %678 = arith.divf %676, %677 : vector<16x128xf32>
    %679 = vector.extract_strided_slice %666 {offsets = [0, 128], sizes = [16, 128], strides = [1, 1]} : vector<16x384xf32> to vector<16x128xf32>
    %680 = vector.extract_strided_slice %670 {offsets = [0, 128], sizes = [16, 128], strides = [1, 1]} : vector<16x384xf32> to vector<16x128xf32>
    %681 = arith.addf %679, %680 : vector<16x128xf32>
    %682 = arith.negf %681 : vector<16x128xf32>
    %683 = math.exp %682 : vector<16x128xf32>
    %cst_203 = arith.constant 1.000000e+00 : f32
    %684 = vector.broadcast %cst_203 : f32 to vector<16x128xf32>
    %685 = arith.addf %684, %683 : vector<16x128xf32>
    %686 = arith.divf %684, %685 : vector<16x128xf32>
    %687 = vector.extract_strided_slice %666 {offsets = [0, 256], sizes = [16, 128], strides = [1, 1]} : vector<16x384xf32> to vector<16x128xf32>
    %688 = vector.extract_strided_slice %670 {offsets = [0, 256], sizes = [16, 128], strides = [1, 1]} : vector<16x384xf32> to vector<16x128xf32>
    %689 = arith.addf %688, %6 : vector<16x128xf32>
    %690 = arith.mulf %678, %689 : vector<16x128xf32>
    %691 = arith.addf %687, %690 : vector<16x128xf32>
    %692 = math.tanh %691 : vector<16x128xf32>
    %cst_204 = arith.constant 1.000000e+00 : f32
    %693 = vector.broadcast %cst_204 : f32 to vector<16x128xf32>
    %694 = arith.subf %693, %686 : vector<16x128xf32>
    %695 = arith.mulf %694, %692 : vector<16x128xf32>
    %696 = arith.mulf %686, %616 : vector<16x128xf32>
    %697 = arith.addf %695, %696 : vector<16x128xf32>
    %698 = arith.truncf %697 : vector<16x128xf32> to vector<16x128xbf16>
    %699 = arith.index_cast %c8_i32_195 : i32 to index
    %c0_205 = arith.constant 0 : index
    %c0_206 = arith.constant 0 : index
    %700 = vector.load %arg5[%699, %c0_205, %c0_206] : memref<9x16x128xbf16, #tpu.memory_space<vmem>>, vector<1x16x128xbf16>
    %701 = vector.shape_cast %700 : vector<1x16x128xbf16> to vector<16x128xbf16>
    %702 = vector.shape_cast %698 : vector<16x128xbf16> to vector<1x16x128xbf16>
    tpu.vector_store %arg5[%699, %c0_205, %c0_206], %702 {strides = array<i32>} : memref<9x16x128xbf16, #tpu.memory_space<vmem>>, vector<1x16x128xbf16>,
    %c8_i32_207 = arith.constant 8 : i32
    %703 = arith.subi %c8_i32_207, %c8_i32_195 : i32
    %704 = arith.index_cast %703 : i32 to index
    %c0_208 = arith.constant 0 : index
    %c0_209 = arith.constant 0 : index
    %705 = vector.load %arg2[%704, %c0_208, %c0_209] : memref<9x16x384xbf16, #tpu.memory_space<vmem>>, vector<1x16x384xbf16>
    %706 = vector.shape_cast %705 : vector<1x16x384xbf16> to vector<16x384xbf16>
    %707 = arith.extf %706 : vector<16x384xbf16> to vector<16x384xf32>
    %708 = arith.truncf %657 : vector<16x128xf32> to vector<16x128xbf16>
    %c1_210 = arith.constant 1 : index
    %c0_211 = arith.constant 0 : index
    %c0_212 = arith.constant 0 : index
    %709 = vector.load %arg3[%c1_210, %c0_211, %c0_212] : memref<2x128x384xbf16, #tpu.memory_space<vmem>>, vector<1x128x384xbf16>
    %710 = vector.shape_cast %709 : vector<1x128x384xbf16> to vector<128x384xbf16>
    %cst_213 = arith.constant dense<0.000000e+00> : vector<16x384xf32>
    %711 = tpu.matmul %708, %710, %cst_213 {dimension_numbers = #tpu.dot_dimension_numbers<[1], [0], [0], [1], [0, 0, 1, 1], [], []>} : vector<16x128xbf16>, vector<128x384xbf16>, vector<16x384xf32> -> vector<16x384xf32>
    %712 = vector.extract_strided_slice %707 {offsets = [0, 0], sizes = [16, 128], strides = [1, 1]} : vector<16x384xf32> to vector<16x128xf32>
    %713 = vector.extract_strided_slice %711 {offsets = [0, 0], sizes = [16, 128], strides = [1, 1]} : vector<16x384xf32> to vector<16x128xf32>
    %714 = arith.addf %712, %713 : vector<16x128xf32>
    %715 = arith.negf %714 : vector<16x128xf32>
    %716 = math.exp %715 : vector<16x128xf32>
    %cst_214 = arith.constant 1.000000e+00 : f32
    %717 = vector.broadcast %cst_214 : f32 to vector<16x128xf32>
    %718 = arith.addf %717, %716 : vector<16x128xf32>
    %719 = arith.divf %717, %718 : vector<16x128xf32>
    %720 = vector.extract_strided_slice %707 {offsets = [0, 128], sizes = [16, 128], strides = [1, 1]} : vector<16x384xf32> to vector<16x128xf32>
    %721 = vector.extract_strided_slice %711 {offsets = [0, 128], sizes = [16, 128], strides = [1, 1]} : vector<16x384xf32> to vector<16x128xf32>
    %722 = arith.addf %720, %721 : vector<16x128xf32>
    %723 = arith.negf %722 : vector<16x128xf32>
    %724 = math.exp %723 : vector<16x128xf32>
    %cst_215 = arith.constant 1.000000e+00 : f32
    %725 = vector.broadcast %cst_215 : f32 to vector<16x128xf32>
    %726 = arith.addf %725, %724 : vector<16x128xf32>
    %727 = arith.divf %725, %726 : vector<16x128xf32>
    %728 = vector.extract_strided_slice %707 {offsets = [0, 256], sizes = [16, 128], strides = [1, 1]} : vector<16x384xf32> to vector<16x128xf32>
    %729 = vector.extract_strided_slice %711 {offsets = [0, 256], sizes = [16, 128], strides = [1, 1]} : vector<16x384xf32> to vector<16x128xf32>
    %730 = arith.addf %729, %10 : vector<16x128xf32>
    %731 = arith.mulf %719, %730 : vector<16x128xf32>
    %732 = arith.addf %728, %731 : vector<16x128xf32>
    %733 = math.tanh %732 : vector<16x128xf32>
    %cst_216 = arith.constant 1.000000e+00 : f32
    %734 = vector.broadcast %cst_216 : f32 to vector<16x128xf32>
    %735 = arith.subf %734, %727 : vector<16x128xf32>
    %736 = arith.mulf %735, %733 : vector<16x128xf32>
    %737 = arith.mulf %727, %657 : vector<16x128xf32>
    %738 = arith.addf %736, %737 : vector<16x128xf32>
    %739 = arith.truncf %738 : vector<16x128xf32> to vector<16x128xbf16>
    %740 = arith.index_cast %703 : i32 to index
    %c0_217 = arith.constant 0 : index
    %c0_218 = arith.constant 0 : index
    %741 = vector.load %arg6[%740, %c0_217, %c0_218] : memref<9x16x128xbf16, #tpu.memory_space<vmem>>, vector<1x16x128xbf16>
    %742 = vector.shape_cast %741 : vector<1x16x128xbf16> to vector<16x128xbf16>
    %743 = vector.shape_cast %739 : vector<16x128xbf16> to vector<1x16x128xbf16>
    tpu.vector_store %arg6[%740, %c0_217, %c0_218], %743 {strides = array<i32>} : memref<9x16x128xbf16, #tpu.memory_space<vmem>>, vector<1x16x128xbf16>,
    %c1_i32_219 = arith.constant 1 : i32
    %c0_220 = arith.constant 0 : index
    %c0_221 = arith.constant 0 : index
    %c0_222 = arith.constant 0 : index
    %744 = vector.load %arg7[%c0_220, %c0_221, %c0_222] : memref<2x16x128xf32, #tpu.memory_space<vmem>>, vector<1x16x128xf32>
    %745 = vector.shape_cast %744 : vector<1x16x128xf32> to vector<16x128xf32>
    %746 = vector.shape_cast %697 : vector<16x128xf32> to vector<1x16x128xf32>
    tpu.vector_store %arg7[%c0_220, %c0_221, %c0_222], %746 {strides = array<i32>} : memref<2x16x128xf32, #tpu.memory_space<vmem>>, vector<1x16x128xf32>,
    %c1_223 = arith.constant 1 : index
    %c0_224 = arith.constant 0 : index
    %c0_225 = arith.constant 0 : index
    %747 = vector.load %arg7[%c1_223, %c0_224, %c0_225] : memref<2x16x128xf32, #tpu.memory_space<vmem>>, vector<1x16x128xf32>
    %748 = vector.shape_cast %747 : vector<1x16x128xf32> to vector<16x128xf32>
    %749 = vector.shape_cast %738 : vector<16x128xf32> to vector<1x16x128xf32>
    tpu.vector_store %arg7[%c1_223, %c0_224, %c0_225], %749 {strides = array<i32>} : memref<2x16x128xf32, #tpu.memory_space<vmem>>, vector<1x16x128xf32>,
    return
  }
  func.func @transform_0(%arg0: i32) -> (i32, i32, i32) {
    %c0_i32 = arith.constant 0 : i32
    %c0_i32_0 = arith.constant 0 : i32
    %c0_i32_1 = arith.constant 0 : i32
    return %arg0, %c0_i32, %c0_i32_0 : i32, i32, i32
  }
  func.func @transform_1(%arg0: i32) -> (i32, i32, i32) {
    %c0_i32 = arith.constant 0 : i32
    %0 = arith.subi %c0_i32, %arg0 : i32
    %c0_i32_0 = arith.constant 0 : i32
    %c0_i32_1 = arith.constant 0 : i32
    %c0_i32_2 = arith.constant 0 : i32
    return %0, %c0_i32_0, %c0_i32_1 : i32, i32, i32
  }
  func.func @transform_2(%arg0: i32) -> (i32, i32, i32) {
    %c0_i32 = arith.constant 0 : i32
    %c0_i32_0 = arith.constant 0 : i32
    %c0_i32_1 = arith.constant 0 : i32
    %c0_i32_2 = arith.constant 0 : i32
    return %c0_i32, %c0_i32_0, %c0_i32_1 : i32, i32, i32
  }
  func.func @transform_3(%arg0: i32) -> (i32, i32, i32) {
    %c0_i32 = arith.constant 0 : i32
    %c0_i32_0 = arith.constant 0 : i32
    %c0_i32_1 = arith.constant 0 : i32
    %c0_i32_2 = arith.constant 0 : i32
    return %c0_i32, %c0_i32_0, %c0_i32_1 : i32, i32, i32
  }
  func.func @transform_4(%arg0: i32) -> (i32, i32, i32) {
    %c0_i32 = arith.constant 0 : i32
    %c0_i32_0 = arith.constant 0 : i32
    %c0_i32_1 = arith.constant 0 : i32
    return %arg0, %c0_i32, %c0_i32_0 : i32, i32, i32
  }
  func.func @transform_5(%arg0: i32) -> (i32, i32, i32) {
    %c0_i32 = arith.constant 0 : i32
    %0 = arith.subi %c0_i32, %arg0 : i32
    %c0_i32_0 = arith.constant 0 : i32
    %c0_i32_1 = arith.constant 0 : i32
    %c0_i32_2 = arith.constant 0 : i32
    return %0, %c0_i32_0, %c0_i32_1 : i32, i32, i32
  }
}

</mosaic_0001>

<bundles_post_ra>
// kernel: _lambda_.2
= control target key start
LH: loop header
LB: loop body
LE: loop exit
PB: predicated region body
PF: predicated region fallthrough
CT: control target
= control target key end

     0   :  { %v7726_v1 = vmov 0.0   ;;  %v7727_v2 = vmov 0   ;;  %vm7728_vm0 = vmmov 0   ;;  %v7729_v28 = vmov 0.0|0.0   ;;  %s9817_s2 = inlined_call_operand.vmem [shape: bf16[2,128,384], index: 2, kind: input, shape index: {}]   ;;  %s9818_s0 = inlined_call_operand.vmem [shape: bf16[9,16,384], index: 0, kind: input, shape index: {}]   ;;  %s9819_s3 = inlined_call_operand.vmem [shape: f32[2,1,128], index: 3, kind: input, shape index: {}]   ;;  %s9820_s1 = inlined_call_operand.vmem [shape: bf16[9,16,384], index: 1, kind: input, shape index: {}]   ;;  %s9821_s4 = inlined_call_operand.vmem [shape: bf16[9,16,128], index: 4, kind: output, shape index: {0}]   ;;  %s9822_s5 = inlined_call_operand.vmem [shape: bf16[9,16,128], index: 5, kind: output, shape index: {1}]  }
   0x1   :  { %v7763_v0 = vld [vmem:[%s9817_s2 + $0x4] ss:$12 sps:$4 sm:$0xff]   ;;  %6599 = vmatprep.subr.bf16.mxu1 %v7726_v1  ;;  %290 = vmatprep.mubr.bf16.mxu0 %v7727_v2  ;;  %v7770_v3 = vld [vmem:[%s9817_s2] ss:$12 sps:$4 sm:$0xff]   ;;  %v7778_v4 = vld [vmem:[%s9817_s2 + $0x1c] ss:$12 sps:$4 sm:$0xff]  }
   0x2   :  { %6615 = vmatprep.mubr.msk.bf16.mxu1 %vm7728_vm0, %v7726_v1  ;;  %258 = vmatprep.subr.bf16.mxu0 %v7763_v0  ;;  %v7784_v5 = vld [vmem:[%s9817_s2 + $0x18] ss:$12 sps:$4 sm:$0xff]   ;;  %v7790_v6 = vld [vmem:[%s9817_s2 + $0x34] ss:$12 sps:$4 sm:$0xff]   ;;  %v7796_v7 = vld [vmem:[%s9817_s2 + $0x30] ss:$12 sps:$4 sm:$0xff]  }
   0x3   :  { %259 = vmatpush1.bf16.msra.mxu0 %v7770_v3  ;;  %v7802_v8 = vld [vmem:[%s9817_s2 + $0x4c] ss:$12 sps:$4 sm:$0xff]   ;;  %v6983_v9 = vld [vmem:[%s9817_s2 + $0x8] ss:$12 sps:$4 sm:$0xff]   ;;  %v7817_v11 = vld [vmem:[%s9817_s2 + $0x64] ss:$12 sps:$4 sm:$0xff]  }
   0x4   :  { %260 = vmatprep.subr.bf16.mxu0 %v7778_v4  ;;  %v7811_v10 = vld [vmem:[%s9817_s2 + $0x48] ss:$12 sps:$4 sm:$0xff]   ;;  %6600 = vmatpush3.bf16.msra.mxu1 %v6983_v9  ;;  %v6987_v12 = vld [vmem:[%s9817_s2 + $0x20] ss:$12 sps:$4 sm:$0xff]   ;;  %v6989_v14 = vld [vmem:[%s9817_s2 + $0x38] ss:$12 sps:$4 sm:$0xff]  }
   0x5   :  { %6601 = vmatprep.subr.bf16.mxu1 %v7726_v1  ;;  %v7826_v13 = vld [vmem:[%s9817_s2 + $0x60] ss:$12 sps:$4 sm:$0xff]   ;;  %v7836_v15 = vld [vmem:[%s9817_s2 + $0x7c] ss:$12 sps:$4 sm:$0xff]   ;;  %v7843_v16 = vld [vmem:[%s9817_s2 + $0x78] ss:$12 sps:$4 sm:$0xff]  }
   0x6   :  { %v6993_v17 = vld [vmem:[%s9817_s2 + $0x50] ss:$12 sps:$4 sm:$0xff]   ;;  %v7852_v18 = vld [vmem:[%s9817_s2 + $0x94] ss:$12 sps:$4 sm:$0xff]   ;;  %v7868_v21 = vld [vmem:[%s9817_s2 + $0xac] ss:$12 sps:$4 sm:$0xff]  }
   0x7   :  { %261 = vmatpush1.bf16.msra.mxu0 %v7784_v5  ;;  %v7858_v19 = vld [vmem:[%s9817_s2 + $0x90] ss:$12 sps:$4 sm:$0xff]   ;;  %v6997_v20 = vld [vmem:[%s9817_s2 + $0x68] ss:$12 sps:$4 sm:$0xff]   ;;  %v7001_v23 = vld [vmem:[%s9817_s2 + $0x80] ss:$12 sps:$4 sm:$0xff]  }
   0x8   :  { %262 = vmatprep.subr.bf16.mxu0 %v7790_v6  ;;  %6602 = vmatpush3.bf16.msra.mxu1 %v6987_v12  ;;  %v7875_v22 = vld [vmem:[%s9817_s2 + $0xa8] ss:$12 sps:$4 sm:$0xff]   ;;  %v7884_v24 = vld [vmem:[%s9817_s2 + $0xc4] ss:$12 sps:$4 sm:$0xff]   ;;  %v6990_v25 = vld [vmem:[%s9817_s2 + $0xc0] ss:$12 sps:$4 sm:$0xff]  }
   0x9   :  { %6603 = vmatprep.subr.bf16.mxu1 %v7726_v1  ;;  %v7005_v26 = vld [vmem:[%s9817_s2 + $0x98] ss:$12 sps:$4 sm:$0xff]   ;;  %v6996_v27 = vld [vmem:[%s9817_s2 + $0xdc] ss:$12 sps:$4 sm:$0xff]   ;;  %v7000_v31 = vld [vmem:[%s9817_s2 + $0xf4] ss:$12 sps:$4 sm:$0xff]  }
   0xa   :  { %v6994_v29 = vld [vmem:[%s9817_s2 + $0xd8] ss:$12 sps:$4 sm:$0xff]   ;;  %v7009_v30 = vld [vmem:[%s9817_s2 + $0xb0] ss:$12 sps:$4 sm:$0xff]   ;;  %v7016_v33 = vld [vmem:[%s9817_s2 + $0xc8] ss:$12 sps:$4 sm:$0xff]  }
   0xb   :  { %263 = vmatpush1.bf16.msra.mxu0 %v7796_v7  ;;  %v6998_v32 = vld [vmem:[%s9817_s2 + $0xf0] ss:$12 sps:$4 sm:$0xff]   ;;  %v7004_v34 = vld [vmem:[%s9817_s2 + $0x10c] ss:$12 sps:$4 sm:$0xff]   ;;  %v7002_v35 = vld [vmem:[%s9817_s2 + $0x108] ss:$12 sps:$4 sm:$0xff]  }
   0xc   :  { %264 = vmatprep.subr.bf16.mxu0 %v7802_v8  ;;  %6604 = vmatpush3.bf16.msra.mxu1 %v6989_v14  ;;  %v7020_v36 = vld [vmem:[%s9817_s2 + $0xe0] ss:$12 sps:$4 sm:$0xff]   ;;  %v7008_v37 = vld [vmem:[%s9817_s2 + $0x124] ss:$12 sps:$4 sm:$0xff]   ;;  %v7012_v40 = vld [vmem:[%s9817_s2 + $0x13c] ss:$12 sps:$4 sm:$0xff]  }
   0xd   :  { %6605 = vmatprep.subr.bf16.mxu1 %v7726_v1  ;;  %v7006_v38 = vld [vmem:[%s9817_s2 + $0x120] ss:$12 sps:$4 sm:$0xff]   ;;  %v7021_v39 = vld [vmem:[%s9817_s2 + $0xf8] ss:$12 sps:$4 sm:$0xff]   ;;  %v7022_v42 = vld [vmem:[%s9817_s2 + $0x110] ss:$12 sps:$4 sm:$0xff]  }
   0xe   :  { %v7010_v41 = vld [vmem:[%s9817_s2 + $0x138] ss:$12 sps:$4 sm:$0xff]   ;;  %v7015_v43 = vld [vmem:[%s9817_s2 + $0x154] ss:$12 sps:$4 sm:$0xff]   ;;  %v7013_v44 = vld [vmem:[%s9817_s2 + $0x150] ss:$12 sps:$4 sm:$0xff]  }
   0xf   :  { %265 = vmatpush1.bf16.msra.mxu0 %v7811_v10  ;;  %v7023_v45 = vld [vmem:[%s9817_s2 + $0x128] ss:$12 sps:$4 sm:$0xff]   ;;  %v7019_v46 = vld [vmem:[%s9817_s2 + $0x16c] ss:$12 sps:$4 sm:$0xff]   ;;  %v7026_v50 = vld [vmem:[%s9817_s2 + $0x170] ss:$12 sps:$4 sm:$0xff]  }
  0x10   :  { %266 = vmatprep.subr.bf16.mxu0 %v7817_v11  ;;  %6606 = vmatpush3.bf16.msra.mxu1 %v6993_v17  ;;  %v7017_v47 = vld [vmem:[%s9817_s2 + $0x168] ss:$12 sps:$4 sm:$0xff]   ;;  %v7024_v48 = vld [vmem:[%s9817_s2 + $0x140] ss:$12 sps:$4 sm:$0xff]   ;;  %v7025_v49 = vld [vmem:[%s9817_s2 + $0x158] ss:$12 sps:$4 sm:$0xff]  }
  0x11   :  { %6607 = vmatprep.subr.bf16.mxu1 %v7726_v1  ;;  %v7027_v51 = vld [vmem:[%s9817_s2 + $0x8] ss:$12 sps:$4 sm:$0xff]   ;;  %v7028_v52 = vld [vmem:[%s9817_s2 + $0x20] ss:$12 sps:$4 sm:$0xff]   ;;  %v7029_v53 = vld [vmem:[%s9817_s2 + $0x38] ss:$12 sps:$4 sm:$0xff]  }
  0x12   :  { %v7030_v54 = vld [vmem:[%s9817_s2 + $0x50] ss:$12 sps:$4 sm:$0xff]   ;;  %v7031_v55 = vld [vmem:[%s9817_s2 + $0x68] ss:$12 sps:$4 sm:$0xff]   ;;  %v7032_v56 = vld [vmem:[%s9817_s2 + $0x80] ss:$12 sps:$4 sm:$0xff]  }
  0x13   :  { %267 = vmatpush1.bf16.msra.mxu0 %v7826_v13  ;;  %v7033_v57 = vld [vmem:[%s9817_s2 + $0x98] ss:$12 sps:$4 sm:$0xff]   ;;  %v7034_v58 = vld [vmem:[%s9817_s2 + $0xb0] ss:$12 sps:$4 sm:$0xff]  }
  0x14   :  { %268 = vmatprep.subr.bf16.mxu0 %v7836_v15  ;;  %6608 = vmatpush3.bf16.msra.mxu1 %v6997_v20  ;;  %v87_v59 = vld [vmem:[%s9818_s0] sm:$0xff]  ;;  %v89_v60 = vld [vmem:[%s9818_s0 + $0xc] sm:$0xff] }
  0x15   :  { %6609 = vmatprep.subr.bf16.mxu1 %v7726_v1  ;;  %v91_v61 = vunpack.c.l.bf16 %v87_v59  ;;  %v94_v62 = vunpack.c.l.bf16 %v89_v60 }
  0x17   :  { %269 = vmatpush1.bf16.msra.mxu0 %v7843_v16 }
  0x18   :  { %270 = vmatprep.subr.bf16.mxu0 %v7852_v18  ;;  %6610 = vmatpush3.bf16.msra.mxu1 %v7001_v23 }
  0x19   :  { %6611 = vmatprep.subr.bf16.mxu1 %v7726_v1 }
  0x1b   :  { %271 = vmatpush1.bf16.msra.mxu0 %v7858_v19 }
  0x1c   :  { %272 = vmatprep.subr.bf16.mxu0 %v7868_v21  ;;  %6612 = vmatpush3.bf16.msra.mxu1 %v7005_v26  ;;  %v88_v26 = vld [vmem:[%s9818_s0 + $0x8] ss:$12 sps:$4 sm:$0xff]  }
  0x1d   :  { %6613 = vmatprep.subr.bf16.mxu1 %v7726_v1 }
  0x1f   :  { %273 = vmatpush1.bf16.msra.mxu0 %v7875_v22 }
  0x20   :  { %561 = vmatprep.subr.bf16.mxu0 %v7884_v24  ;;  %6614 = vmatpush3.bf16.msra.mxu1 %v7009_v30 }
  0x21   :  { %6619 = vmatprep.subr.bf16.mxu1 %v7726_v1 }
  0x22   :  { %291 = vmatmul.mubr.bf16.vlgmr.msra.gmra.mrb[0].mxu0 %v7729_v28 }
  0x23   :  { %562 = vmatpush1.bf16.msra.mxu0 %v6990_v25  ;;  %593 = vmatprep.mubr.bf16.mxu0 %v7727_v2 }
  0x24   :  { %563 = vmatprep.subr.bf16.mxu0 %v6996_v27  ;;  %6616 = vmatmul.mubr.bf16.vlgmr.msra.gmra.mrb[0].mxu1 %v7729_v28 }
  0x25   :  { %6620 = vmatpush3.bf16.msra.mxu1 %v7016_v33  ;;  %6635 = vmatprep.mubr.msk.bf16.mxu1 %vm7728_vm0, %v7726_v1 }
  0x26   :  { %6621 = vmatprep.subr.bf16.mxu1 %v7726_v1 }
  0x27   :  { %564 = vmatpush1.bf16.msra.mxu0 %v6994_v29  ;;  %v5593_v29 = vld [vmem:[%s9820_s1 + $0xc0] sm:$0xff] }
  0x28   :  { %565 = vmatprep.subr.bf16.mxu0 %v7000_v31  ;;  %v93_v31 = vunpack.c.l.bf16 %v88_v26 }
  0x29   :  { %6622 = vmatpush3.bf16.msra.mxu1 %v7020_v36  ;;  %v96_v36 = vunpack.c.h.bf16 %v88_v26 }
  0x2a   :  { %6623 = vmatprep.subr.bf16.mxu1 %v7726_v1 }
  0x2b   :  { %566 = vmatpush1.bf16.msra.mxu0 %v6998_v32 }
  0x2c   :  { %567 = vmatprep.subr.bf16.mxu0 %v7004_v34  ;;  %v5595_v34 = vld [vmem:[%s9820_s1 + $0xcc] sm:$0xff] }
  0x2d   :  { %6624 = vmatpush3.bf16.msra.mxu1 %v7021_v39 }
  0x2e   :  { %6625 = vmatprep.subr.bf16.mxu1 %v7726_v1 }
  0x2f   :  { %568 = vmatpush1.bf16.msra.mxu0 %v7002_v35 }
  0x30   :  { %569 = vmatprep.subr.bf16.mxu0 %v7008_v37  ;;  %v393_v37 = vunpack.c.l.bf16 %v5593_v29 }
  0x31   :  { %6626 = vmatpush3.bf16.msra.mxu1 %v7022_v42 }
  0x32   :  { %6627 = vmatprep.subr.bf16.mxu1 %v7726_v1 }
  0x33   :  { %570 = vmatpush1.bf16.msra.mxu0 %v7006_v38 }
  0x34   :  { %571 = vmatprep.subr.bf16.mxu0 %v7012_v40 }
  0x35   :  { %6628 = vmatpush3.bf16.msra.mxu1 %v7023_v45 }
  0x36   :  { %6629 = vmatprep.subr.bf16.mxu1 %v7726_v1 }
  0x37   :  { %572 = vmatpush1.bf16.msra.mxu0 %v7010_v41  ;;  %v396_v41 = vunpack.c.l.bf16 %v5595_v34 }
  0x38   :  { %573 = vmatprep.subr.bf16.mxu0 %v7015_v43  ;;  %v394_v43 = vunpack.c.h.bf16 %v5593_v29  ;;  %v7710_v29 = vld [vmem:[%s9817_s2 + $0xf4] ss:$12 sps:$4 sm:$0xff]  }
  0x39   :  { %6630 = vmatpush3.bf16.msra.mxu1 %v7024_v48  ;;  %v397_v48 = vunpack.c.h.bf16 %v5595_v34 }
  0x3a   :  { %6631 = vmatprep.subr.bf16.mxu1 %v7726_v1 }
  0x3b   :  { %574 = vmatpush1.bf16.msra.mxu0 %v7013_v44 }
  0x3c   :  { %575 = vmatprep.subr.bf16.mxu0 %v7019_v46 }
  0x3d   :  { %6632 = vmatpush3.bf16.msra.mxu1 %v7025_v49 }
  0x3e   :  { %6633 = vmatprep.subr.bf16.mxu1 %v7726_v1 }
  0x3f   :  { %576 = vmatpush1.bf16.msra.mxu0 %v7017_v47 }
  0x40   :  { %863 = vmatprep.subr.bf16.mxu0 %v7763_v0  ;;  %v92_v0 = vunpack.c.h.bf16 %v87_v59 }
  0x41   :  { %6634 = vmatpush3.bf16.msra.mxu1 %v7026_v50 }
  0x42   :  { %594 = vmatmul.mubr.bf16.vlgmr.msra.gmra.mrb[4].mxu0 %v7729_v28  ;;  %6639 = vmatprep.subr.bf16.mxu1 %v7726_v1 }
  0x43   :  { %864 = vmatpush1.bf16.msra.mxu0 %v7770_v3  ;;  %895 = vmatprep.mubr.bf16.mxu0 %v7727_v2 }
  0x44   :  { %865 = vmatprep.subr.bf16.mxu0 %v7778_v4  ;;  %6636 = vmatmul.mubr.bf16.vlgmr.msra.gmra.mrb[4].mxu1 %v7729_v28 }
  0x45   :  { %6655 = vmatprep.mubr.msk.bf16.mxu1 %vm7728_vm0, %v7726_v1  ;;  %6640 = vmatpush3.bf16.msra.mxu1 %v7027_v51 }
  0x46   :  { %6641 = vmatprep.subr.bf16.mxu1 %v7726_v1 }
  0x47   :  { %866 = vmatpush1.bf16.msra.mxu0 %v7784_v5 }
  0x48   :  { %867 = vmatprep.subr.bf16.mxu0 %v7790_v6  ;;  %v95_v6 = vunpack.c.h.bf16 %v89_v60 }
  0x49   :  { %6642 = vmatpush3.bf16.msra.mxu1 %v7028_v52 }
  0x4a   :  { %6643 = vmatprep.subr.bf16.mxu1 %v7726_v1 }
  0x4b   :  { %868 = vmatpush1.bf16.msra.mxu0 %v7796_v7 }
  0x4c   :  { %869 = vmatprep.subr.bf16.mxu0 %v7802_v8 }
  0x4d   :  { %6644 = vmatpush3.bf16.msra.mxu1 %v7029_v53 }
  0x4e   :  { %6645 = vmatprep.subr.bf16.mxu1 %v7726_v1 }
  0x4f   :  { %870 = vmatpush1.bf16.msra.mxu0 %v7811_v10 }
  0x50   :  { %871 = vmatprep.subr.bf16.mxu0 %v7817_v11 }
  0x51   :  { %6646 = vmatpush3.bf16.msra.mxu1 %v7030_v54 }
  0x52   :  { %6647 = vmatprep.subr.bf16.mxu1 %v7726_v1 }
  0x53   :  { %872 = vmatpush1.bf16.msra.mxu0 %v7826_v13 }
  0x54   :  { %873 = vmatprep.subr.bf16.mxu0 %v7836_v15 }
  0x55   :  { %6648 = vmatpush3.bf16.msra.mxu1 %v7031_v55 }
  0x56   :  { %6649 = vmatprep.subr.bf16.mxu1 %v7726_v1 }
  0x57   :  { %874 = vmatpush1.bf16.msra.mxu0 %v7843_v16 }
  0x58   :  { %875 = vmatprep.subr.bf16.mxu0 %v7852_v18 }
  0x59   :  { %6650 = vmatpush3.bf16.msra.mxu1 %v7032_v56 }
  0x5a   :  { %6651 = vmatprep.subr.bf16.mxu1 %v7726_v1 }
  0x5b   :  { %876 = vmatpush1.bf16.msra.mxu0 %v7858_v19 }
  0x5c   :  { %877 = vmatprep.subr.bf16.mxu0 %v7868_v21 }
  0x5d   :  { %6652 = vmatpush3.bf16.msra.mxu1 %v7033_v57 }
  0x5e   :  { %6653 = vmatprep.subr.bf16.mxu1 %v7726_v1 }
  0x5f   :  { %878 = vmatpush1.bf16.msra.mxu0 %v7875_v22 }
  0x60   :  { %1165 = vmatprep.subr.bf16.mxu0 %v7884_v24  ;;  %v8043_v24 = vld [vmem:[%s9819_s3] ss:$0 sm:$0xff] }
  0x61   :  { %6654 = vmatpush3.bf16.msra.mxu1 %v7034_v58 }
  0x62   :  { %6659 = vmatprep.subr.bf16.mxu1 %v7726_v1 }
  0xf5   :  { %v292_v63 = vpop.f32.mrb[0].mxu0 }
  0xf6   :  { %v342_v3 = vadd.f32 %v292_v63, %v91_v61  ;;  %v294_v4 = vpop.f32.mrb[1].mxu0 }
  0xf7   :  { %v296_v5 = vpop.f32.mrb[2].mxu0  ;;  %v356_v10 = vadd.f32 %v294_v4, %v92_v0  ;;  %v335_v14 = vpop.f32.mrb[0].mxu1 }
  0xf8   :  { %v5589_v7 = vmul.f32 -1.442695, %v342_v3  ;;  %v343_v8 = vadd.f32 %v296_v5, %v94_v62  ;;  %v298_v9 = vpop.f32.mrb[3].mxu0  ;;  %v6617_v15 = vpop.f32.mrb[1].mxu1  ;;  %v370_v28 = vadd.f32 %v8043_v24, %v335_v14  ;;  %v7035_v14 = vld [vmem:[%s9817_s2 + $0xc8] ss:$12 sps:$4 sm:$0xff]  }
  0xf9   :  { %v357_v12 = vadd.f32 %v298_v9, %v95_v6  ;;  %v5591_v13 = vmul.f32 -1.442695, %v356_v10  ;;  %v338_v17 = vpop.f32.mrb[2].mxu1 }
  0xfa   :  { %7347 = vpow2.f32 %v5589_v7  ;;  %v5590_v11 = vmul.f32 -1.442695, %v343_v8  ;;  %v6618_v18 = vpop.f32.mrb[3].mxu1  ;;  %v371_v32 = vadd.f32 %v8043_v24, %v338_v17  ;;  %v7707_v17 = vld [vmem:[%s9817_s2 + $0xc0] ss:$12 sps:$4 sm:$0xff]  }
  0xfb   :  { %v5592_v16 = vmul.f32 -1.442695, %v357_v12  ;;  %v7036_v18 = vld [vmem:[%s9817_s2 + $0xe0] ss:$12 sps:$4 sm:$0xff]  }
  0xfc   :  { %7349 = vpow2.f32 %v5590_v11 }
  0xfd   :  { %7351 = vpow2.f32 %v5591_v13 }
  0xfe   :  { %7353 = vpow2.f32 %v5592_v16 }
 0x104   :  { %v7348_v19 = vpop.eup %7347 }
 0x105   :  { %v350_v20 = vadd.f32 1.0, %v7348_v19 }
 0x106   :  { %v7350_v21 = vpop.eup %7349 }
 0x107   :  { %7355 = vrcp.f32 %v350_v20  ;;  %v351_v22 = vadd.f32 1.0, %v7350_v21  ;;  %v7352_v23 = vpop.eup %7351  ;;  %v8077_v20 = vld [vmem:[%s9819_s3 + $0x1] ss:$0 sm:$0xff]  ;;  %v7708_v21 = vld [vmem:[%s9817_s2 + $0xdc] ss:$12 sps:$4 sm:$0xff]  }
 0x108   :  { %v7354_v25 = vpop.eup %7353  ;;  %v364_v27 = vadd.f32 1.0, %v7352_v23  ;;  %v5594_v23 = vld [vmem:[%s9820_s1 + $0xc8] ss:$12 sps:$4 sm:$0xff]  }
 0x109   :  { %7357 = vrcp.f32 %v351_v22  ;;  %v365_v30 = vadd.f32 1.0, %v7354_v25  ;;  %v398_v34 = vunpack.c.h.bf16 %v5594_v23 }
 0x10a   :  { %7359 = vrcp.f32 %v364_v27  ;;  %v7709_v27 = vld [vmem:[%s9817_s2 + $0xd8] ss:$12 sps:$4 sm:$0xff]  }
 0x10b   :  { %7361 = vrcp.f32 %v365_v30 }
 0x111   :  { %v7356_v33 = vpop.eup %7355 }
 0x112   :  { %v372_v35 = vmul.f32 %v7356_v33, %v370_v28  ;;  %v7037_v28 = vld [vmem:[%s9817_s2 + $0xf8] ss:$12 sps:$4 sm:$0xff]  }
 0x113   :  { %v7358_v38 = vpop.eup %7357 }
 0x114   :  { %v374_v39 = vadd.f32 %v372_v35, %v93_v31  ;;  %v373_v40 = vmul.f32 %v7358_v38, %v371_v32  ;;  %v7360_v55 = vpop.eup %7359  ;;  %v395_v31 = vunpack.c.l.bf16 %v5594_v23  ;;  %v8239_v23 = vld [vmem:[%s9817_s2 + $0x60] ss:$12 sps:$4 sm:$0xff]  }
 0x115   :  { %v595_v42 = vpop.f32.mrb[4].mxu0  ;;  %v7362_v58 = vpop.eup %7361  ;;  %v378_v61 = vsub.f32 1.0, %v7360_v55  ;;  %v382_v5 = vmul.f32 0.0, %v7360_v55 }
 0x116   :  { %7363 = vtanh.f32 %v374_v39  ;;  %v375_v44 = vadd.f32 %v373_v40, %v96_v36  ;;  %v645_v45 = vadd.f32 %v595_v42, %v393_v37  ;;  %v597_v46 = vpop.f32.mrb[5].mxu0  ;;  %v379_v3 = vsub.f32 1.0, %v7362_v58  ;;  %v7711_v36 = vld [vmem:[%s9817_s2 + $0xf0] ss:$12 sps:$4 sm:$0xff]   ;;  %v7712_v39 = vld [vmem:[%s9817_s2 + $0x10c] ss:$12 sps:$4 sm:$0xff]  }
 0x117   :  { %v599_v47 = vpop.f32.mrb[6].mxu0  ;;  %v659_v52 = vadd.f32 %v597_v46, %v394_v43  ;;  %v638_v57 = vpop.f32.mrb[4].mxu1  ;;  %v383_v8 = vmul.f32 0.0, %v7362_v58  ;;  %v7038_v37 = vld [vmem:[%s9817_s2 + $0x110] ss:$12 sps:$4 sm:$0xff]  }
 0x118   :  { %7365 = vtanh.f32 %v375_v44  ;;  %v5653_v49 = vmul.f32 -1.442695, %v645_v45  ;;  %v646_v50 = vadd.f32 %v599_v47, %v396_v41  ;;  %v601_v51 = vpop.f32.mrb[7].mxu0  ;;  %v6637_v59 = vpop.f32.mrb[5].mxu1  ;;  %v673_v26 = vadd.f32 %v8077_v20, %v638_v57  ;;  %v7713_v43 = vld [vmem:[%s9817_s2 + $0x108] ss:$12 sps:$4 sm:$0xff]  }
 0x119   :  { %v660_v54 = vadd.f32 %v601_v51, %v397_v48  ;;  %v5655_v56 = vmul.f32 -1.442695, %v659_v52  ;;  %v641_v62 = vpop.f32.mrb[6].mxu1  ;;  %v7039_v44 = vld [vmem:[%s9817_s2 + $0x128] ss:$12 sps:$4 sm:$0xff]  }
 0x11a   :  { %7367 = vpow2.f32 %v5653_v49  ;;  %v5654_v53 = vmul.f32 -1.442695, %v646_v50  ;;  %v6638_v0 = vpop.f32.mrb[7].mxu1  ;;  %v674_v35 = vadd.f32 %v8077_v20, %v641_v62  ;;  %v7714_v45 = vld [vmem:[%s9817_s2 + $0x124] ss:$12 sps:$4 sm:$0xff]  }
 0x11b   :  { %v5656_v60 = vmul.f32 -1.442695, %v660_v54  ;;  %v7715_v46 = vld [vmem:[%s9817_s2 + $0x120] ss:$12 sps:$4 sm:$0xff]   ;;  %v7716_v48 = vld [vmem:[%s9817_s2 + $0x13c] ss:$12 sps:$4 sm:$0xff]  }
 0x11c   :  { %7369 = vpow2.f32 %v5654_v53  ;;  %v7040_v47 = vld [vmem:[%s9817_s2 + $0x140] ss:$12 sps:$4 sm:$0xff]   ;;  %v7717_v51 = vld [vmem:[%s9817_s2 + $0x138] ss:$12 sps:$4 sm:$0xff]  }
 0x11d   :  { %7371 = vpow2.f32 %v5655_v56  ;;  %v7041_v52 = vld [vmem:[%s9817_s2 + $0x158] ss:$12 sps:$4 sm:$0xff]   ;;  %v7718_v53 = vld [vmem:[%s9817_s2 + $0x154] ss:$12 sps:$4 sm:$0xff]  }
 0x11e   :  { %7373 = vpow2.f32 %v5656_v60  ;;  %v7719_v60 = vld [vmem:[%s9817_s2 + $0x150] ss:$12 sps:$4 sm:$0xff]   ;;  %v7720_v62 = vld [vmem:[%s9817_s2 + $0x16c] ss:$12 sps:$4 sm:$0xff]  }
 0x120   :  { %v7364_v63 = vpop.eup %7363 }
 0x121   :  { %v380_v4 = vmul.f32 %v7364_v63, %v378_v61  ;;  %v7042_v61 = vld [vmem:[%s9817_s2 + $0x170] ss:$12 sps:$4 sm:$0xff]  }
 0x122   :  { %v7366_v6 = vpop.eup %7365 }
 0x123   :  { %v381_v7 = vmul.f32 %v7366_v6, %v379_v3  ;;  %v8056_v9 = vadd.f32 %v382_v5, %v380_v4  ;;  %v7721_v5 = vld [vmem:[%s9817_s2 + $0x168] ss:$12 sps:$4 sm:$0xff]  }
 0x124   :  { %v7368_v10 = vpop.eup %7367 }
 0x125   :  { %v653_v11 = vadd.f32 1.0, %v7368_v10  ;;  %v8058_v12 = vadd.f32 %v383_v8, %v381_v7  ;;  %v8170_v7 = vld [vmem:[%s9817_s2 + $0x4] ss:$12 sps:$4 sm:$0xff]   ;;  %v8175_v8 = vld [vmem:[%s9817_s2] ss:$12 sps:$4 sm:$0xff]  }
 0x126   :  { %v7370_v13 = vpop.eup %7369  ;;  %v7046_v10 = vld [vmem:[%s9817_s2 + $0x8] ss:$12 sps:$4 sm:$0xff]  }
 0x127   :  { %7375 = vrcp.f32 %v653_v11  ;;  %v654_v15 = vadd.f32 1.0, %v7370_v13  ;;  %v386_v16 = vpack.c.bf16 %v8058_v12, %v8056_v9  ;;  %v7372_v19 = vpop.eup %7371  ;;  %v8185_v11 = vld [vmem:[%s9817_s2 + $0x1c] ss:$12 sps:$4 sm:$0xff]   ;;  %v8191_v13 = vld [vmem:[%s9817_s2 + $0x18] ss:$12 sps:$4 sm:$0xff]  }
 0x128   :  { %v7374_v22 = vpop.eup %7373  ;;  %v667_v25 = vadd.f32 1.0, %v7372_v19  ;;  %v8223_v19 = vld [vmem:[%s9817_s2 + $0x48] ss:$12 sps:$4 sm:$0xff]  }
 0x129   :  { %7377 = vrcp.f32 %v654_v15  ;;  %387 = vst [vmem:[%s9821_s4] sm:$0xff] %v386_v16  ;;  %896 = vmatmul.mubr.bf16.vlgmr.msra.gmra.mrb[8].mxu0 %v386_v16  ;;  %6656 = vmatmul.mubr.bf16.vlgmr.msra.gmra.mrb[8].mxu1 %v386_v16  ;;  %v668_v30 = vadd.f32 1.0, %v7374_v22  ;;  %v8201_v15 = vld [vmem:[%s9817_s2 + $0x34] ss:$12 sps:$4 sm:$0xff]   ;;  %v8207_v16 = vld [vmem:[%s9817_s2 + $0x30] ss:$12 sps:$4 sm:$0xff]  }
 0x12a   :  { %1166 = vmatpush1.bf16.msra.mxu0 %v7707_v17  ;;  %6660 = vmatpush3.bf16.msra.mxu1 %v7035_v14  ;;  %7379 = vrcp.f32 %v667_v25  ;;  %v7050_v14 = vld [vmem:[%s9817_s2 + $0x20] ss:$12 sps:$4 sm:$0xff]   ;;  %v7054_v17 = vld [vmem:[%s9817_s2 + $0x38] ss:$12 sps:$4 sm:$0xff]   ;;  %v7062_v25 = vld [vmem:[%s9817_s2 + $0x68] ss:$12 sps:$4 sm:$0xff]  }
 0x12b   :  { %1167 = vmatprep.subr.bf16.mxu0 %v7708_v21  ;;  %6661 = vmatprep.subr.bf16.mxu1 %v7726_v1  ;;  %7381 = vrcp.f32 %v668_v30  ;;  %v7058_v21 = vld [vmem:[%s9817_s2 + $0x50] ss:$12 sps:$4 sm:$0xff]  }
 0x12c   :  { %1197 = vmatprep.mubr.bf16.mxu0 %v7727_v2  ;;  %6675 = vmatprep.mubr.msk.bf16.mxu1 %vm7728_vm0, %v7726_v1  ;;  %v8233_v22 = vld [vmem:[%s9817_s2 + $0x64] ss:$12 sps:$4 sm:$0xff]  }
 0x12d   :  { %v8271_v30 = vld [vmem:[%s9817_s2 + $0x90] ss:$12 sps:$4 sm:$0xff]  }
 0x12e   :  { %1168 = vmatpush1.bf16.msra.mxu0 %v7709_v27  ;;  %6662 = vmatpush3.bf16.msra.mxu1 %v7036_v18  ;;  %v8217_v18 = vld [vmem:[%s9817_s2 + $0x4c] ss:$12 sps:$4 sm:$0xff]  }
 0x12f   :  { %1169 = vmatprep.subr.bf16.mxu0 %v7710_v29  ;;  %6663 = vmatprep.subr.bf16.mxu1 %v7726_v1  ;;  %v8255_v27 = vld [vmem:[%s9817_s2 + $0x78] ss:$12 sps:$4 sm:$0xff]   ;;  %v8265_v29 = vld [vmem:[%s9817_s2 + $0x94] ss:$12 sps:$4 sm:$0xff]  }
 0x131   :  { %v7376_v32 = vpop.eup %7375 }
 0x132   :  { %v675_v33 = vmul.f32 %v7376_v32, %v673_v26  ;;  %1170 = vmatpush1.bf16.msra.mxu0 %v7711_v36  ;;  %6664 = vmatpush3.bf16.msra.mxu1 %v7037_v28  ;;  %v8249_v26 = vld [vmem:[%s9817_s2 + $0x7c] ss:$12 sps:$4 sm:$0xff]   ;;  %v7066_v28 = vld [vmem:[%s9817_s2 + $0x80] ss:$12 sps:$4 sm:$0xff]  }
 0x133   :  { %v7378_v38 = vpop.eup %7377  ;;  %1171 = vmatprep.subr.bf16.mxu0 %v7712_v39  ;;  %6665 = vmatprep.subr.bf16.mxu1 %v7726_v1  ;;  %v8281_v32 = vld [vmem:[%s9817_s2 + $0xac] ss:$12 sps:$4 sm:$0xff]  }
 0x134   :  { %v677_v40 = vadd.f32 %v675_v33, %v395_v31  ;;  %v676_v41 = vmul.f32 %v7378_v38, %v674_v35  ;;  %v7380_v49 = vpop.eup %7379  ;;  %v7070_v31 = vld [vmem:[%s9817_s2 + $0x98] ss:$12 sps:$4 sm:$0xff]   ;;  %v8287_v33 = vld [vmem:[%s9817_s2 + $0xa8] ss:$12 sps:$4 sm:$0xff]  }
 0x135   :  { %v7382_v50 = vpop.eup %7381  ;;  %v681_v54 = vsub.f32 1.0, %v7380_v49  ;;  %v685_v58 = vmul.f32 0.0, %v7380_v49  ;;  %v8297_v35 = vld [vmem:[%s9817_s2 + $0xc4] ss:$12 sps:$4 sm:$0xff]   ;;  %v5658_v36 = vld [vmem:[%s9818_s0 + $0x18] sm:$0xff] }
 0x136   :  { %7383 = vtanh.f32 %v677_v40  ;;  %v678_v42 = vadd.f32 %v676_v41, %v398_v34  ;;  %1172 = vmatpush1.bf16.msra.mxu0 %v7713_v43  ;;  %6666 = vmatpush3.bf16.msra.mxu1 %v7038_v37  ;;  %v682_v56 = vsub.f32 1.0, %v7382_v50  ;;  %v686_v0 = vmul.f32 0.0, %v7382_v50  ;;  %v7074_v34 = vld [vmem:[%s9817_s2 + $0xb0] ss:$12 sps:$4 sm:$0xff]   ;;  %v5660_v37 = vld [vmem:[%s9818_s0 + $0x24] sm:$0xff] }
 0x137   :  { %1173 = vmatprep.subr.bf16.mxu0 %v7714_v45  ;;  %6667 = vmatprep.subr.bf16.mxu1 %v7726_v1  ;;  %v697_v38 = vunpack.c.l.bf16 %v5658_v36  ;;  %v700_v39 = vunpack.c.l.bf16 %v5660_v37 }
 0x138   :  { %7385 = vtanh.f32 %v678_v42  ;;  %v698_v42 = vunpack.c.h.bf16 %v5658_v36 }
 0x13a   :  { %1174 = vmatpush1.bf16.msra.mxu0 %v7715_v46  ;;  %6668 = vmatpush3.bf16.msra.mxu1 %v7039_v44 }
 0x13b   :  { %1175 = vmatprep.subr.bf16.mxu0 %v7716_v48  ;;  %6669 = vmatprep.subr.bf16.mxu1 %v7726_v1  ;;  %v701_v48 = vunpack.c.h.bf16 %v5660_v37 }
 0x13e   :  { %1176 = vmatpush1.bf16.msra.mxu0 %v7717_v51  ;;  %6670 = vmatpush3.bf16.msra.mxu1 %v7040_v47 }
 0x13f   :  { %1177 = vmatprep.subr.bf16.mxu0 %v7718_v53  ;;  %6671 = vmatprep.subr.bf16.mxu1 %v7726_v1 }
 0x140   :  { %v7384_v55 = vpop.eup %7383 }
 0x141   :  { %v683_v57 = vmul.f32 %v7384_v55, %v681_v54 }
 0x142   :  { %v7386_v59 = vpop.eup %7385  ;;  %1178 = vmatpush1.bf16.msra.mxu0 %v7719_v60  ;;  %6672 = vmatpush3.bf16.msra.mxu1 %v7041_v52 }
 0x143   :  { %1179 = vmatprep.subr.bf16.mxu0 %v7720_v62  ;;  %6673 = vmatprep.subr.bf16.mxu1 %v7726_v1  ;;  %v684_v63 = vmul.f32 %v7386_v59, %v682_v56  ;;  %v8151_v3 = vadd.f32 %v685_v58, %v683_v57 }
 0x145   :  { %v8153_v4 = vadd.f32 %v686_v0, %v684_v63  ;;  %v5659_v0 = vld [vmem:[%s9818_s0 + $0x20] ss:$12 sps:$4 sm:$0xff]  }
 0x146   :  { %1180 = vmatpush1.bf16.msra.mxu0 %v7721_v5  ;;  %6674 = vmatpush3.bf16.msra.mxu1 %v7042_v61 }
 0x147   :  { %v689_v6 = vpack.c.bf16 %v8153_v4, %v8151_v3  ;;  %6679 = vmatprep.subr.bf16.mxu1 %v7726_v1  ;;  %1467 = vmatprep.subr.bf16.mxu0 %v8170_v7 }
 0x149   :  { %5657 = vst [vmem:[%s9822_s5 + $0x40] sm:$0xff] %v689_v6  ;;  %1198 = vmatmul.mubr.bf16.vlgmr.msra.gmra.mrb[12].mxu0 %v689_v6  ;;  %6676 = vmatmul.mubr.bf16.vlgmr.msra.gmra.mrb[12].mxu1 %v689_v6  ;;  %v5691_v6 = vld [vmem:[%s9820_s1 + $0xa8] sm:$0xff] }
 0x14a   :  { %1499 = vmatprep.mubr.bf16.mxu0 %v7727_v2  ;;  %6695 = vmatprep.mubr.msk.bf16.mxu1 %vm7728_vm0, %v7726_v1  ;;  %v999_v36 = vunpack.c.l.bf16 %v5691_v6 }
 0x14b   :  { %1468 = vmatpush1.bf16.msra.mxu0 %v8175_v8  ;;  %6680 = vmatpush3.bf16.msra.mxu1 %v7046_v10  ;;  %v699_v10 = vunpack.c.l.bf16 %v5659_v0 }
 0x14c   :  { %6681 = vmatprep.subr.bf16.mxu1 %v7726_v1  ;;  %1469 = vmatprep.subr.bf16.mxu0 %v8185_v11 }
 0x14f   :  { %1470 = vmatpush1.bf16.msra.mxu0 %v8191_v13  ;;  %6682 = vmatpush3.bf16.msra.mxu1 %v7050_v14 }
 0x150   :  { %6683 = vmatprep.subr.bf16.mxu1 %v7726_v1  ;;  %1471 = vmatprep.subr.bf16.mxu0 %v8201_v15 }
 0x153   :  { %1472 = vmatpush1.bf16.msra.mxu0 %v8207_v16  ;;  %6684 = vmatpush3.bf16.msra.mxu1 %v7054_v17 }
 0x154   :  { %6685 = vmatprep.subr.bf16.mxu1 %v7726_v1  ;;  %1473 = vmatprep.subr.bf16.mxu0 %v8217_v18 }
 0x157   :  { %1474 = vmatpush1.bf16.msra.mxu0 %v8223_v19  ;;  %6686 = vmatpush3.bf16.msra.mxu1 %v7058_v21 }
 0x158   :  { %6687 = vmatprep.subr.bf16.mxu1 %v7726_v1  ;;  %1475 = vmatprep.subr.bf16.mxu0 %v8233_v22 }
 0x15b   :  { %1476 = vmatpush1.bf16.msra.mxu0 %v8239_v23  ;;  %6688 = vmatpush3.bf16.msra.mxu1 %v7062_v25  ;;  %v702_v25 = vunpack.c.h.bf16 %v5659_v0 }
 0x15c   :  { %6689 = vmatprep.subr.bf16.mxu1 %v7726_v1  ;;  %1477 = vmatprep.subr.bf16.mxu0 %v8249_v26 }
 0x15f   :  { %1478 = vmatpush1.bf16.msra.mxu0 %v8255_v27  ;;  %6690 = vmatpush3.bf16.msra.mxu1 %v7066_v28  ;;  %v5693_v28 = vld [vmem:[%s9820_s1 + $0xb4] sm:$0xff] }
 0x160   :  { %6691 = vmatprep.subr.bf16.mxu1 %v7726_v1  ;;  %1479 = vmatprep.subr.bf16.mxu0 %v8265_v29 }
 0x163   :  { %1480 = vmatpush1.bf16.msra.mxu0 %v8271_v30  ;;  %6692 = vmatpush3.bf16.msra.mxu1 %v7070_v31 }
 0x164   :  { %6693 = vmatprep.subr.bf16.mxu1 %v7726_v1  ;;  %1481 = vmatprep.subr.bf16.mxu0 %v8281_v32 }
 0x167   :  { %1482 = vmatpush1.bf16.msra.mxu0 %v8287_v33  ;;  %6694 = vmatpush3.bf16.msra.mxu1 %v7074_v34 }
 0x168   :  { %6699 = vmatprep.subr.bf16.mxu1 %v7726_v1  ;;  %1769 = vmatprep.subr.bf16.mxu0 %v8297_v35 }
 0x1fc   :  { %v897_v40 = vpop.f32.mrb[8].mxu0  ;;  %v940_v41 = vpop.f32.mrb[8].mxu1 }
 0x1fd   :  { %v947_v43 = vadd.f32 %v897_v40, %v697_v38  ;;  %v899_v44 = vpop.f32.mrb[9].mxu0  ;;  %v6657_v45 = vpop.f32.mrb[9].mxu1  ;;  %v975_v14 = vadd.f32 %v8043_v24, %v940_v41  ;;  %v1002_v40 = vunpack.c.l.bf16 %v5693_v28  ;;  %v1000_v41 = vunpack.c.h.bf16 %v5691_v6 }
 0x1fe   :  { %v901_v46 = vpop.f32.mrb[10].mxu0  ;;  %v943_v47 = vpop.f32.mrb[10].mxu1  ;;  %v961_v53 = vadd.f32 %v899_v44, %v698_v42 }
 0x1ff   :  { %v5686_v49 = vmul.f32 -1.442695, %v947_v43  ;;  %v948_v50 = vadd.f32 %v901_v46, %v700_v39  ;;  %v903_v51 = vpop.f32.mrb[11].mxu0  ;;  %v6658_v52 = vpop.f32.mrb[11].mxu1  ;;  %v976_v34 = vadd.f32 %v8043_v24, %v943_v47 }
 0x200   :  { %v962_v55 = vadd.f32 %v903_v51, %v701_v48  ;;  %v5688_v56 = vmul.f32 -1.442695, %v961_v53  ;;  %v1003_v51 = vunpack.c.h.bf16 %v5693_v28 }
 0x201   :  { %7387 = vpow2.f32 %v5686_v49  ;;  %v5687_v54 = vmul.f32 -1.442695, %v948_v50 }
 0x202   :  { %v5689_v57 = vmul.f32 -1.442695, %v962_v55 }
 0x203   :  { %7389 = vpow2.f32 %v5687_v54 }
 0x204   :  { %7391 = vpow2.f32 %v5688_v56 }
 0x205   :  { %7393 = vpow2.f32 %v5689_v57 }
 0x20b   :  { %v7388_v58 = vpop.eup %7387 }
 0x20c   :  { %v955_v59 = vadd.f32 1.0, %v7388_v58 }
 0x20d   :  { %v7390_v60 = vpop.eup %7389 }
 0x20e   :  { %7395 = vrcp.f32 %v955_v59  ;;  %v956_v61 = vadd.f32 1.0, %v7390_v60  ;;  %v7392_v62 = vpop.eup %7391 }
 0x20f   :  { %v7394_v63 = vpop.eup %7393  ;;  %v969_v5 = vadd.f32 1.0, %v7392_v62 }
 0x210   :  { %7397 = vrcp.f32 %v956_v61  ;;  %v970_v17 = vadd.f32 1.0, %v7394_v63 }
 0x211   :  { %7399 = vrcp.f32 %v969_v5 }
 0x212   :  { %7401 = vrcp.f32 %v970_v17 }
 0x218   :  { %v7396_v21 = vpop.eup %7395 }
 0x219   :  { %v977_v31 = vmul.f32 %v7396_v21, %v975_v14 }
 0x21a   :  { %v7398_v37 = vpop.eup %7397 }
 0x21b   :  { %v979_v38 = vadd.f32 %v977_v31, %v699_v10  ;;  %v978_v39 = vmul.f32 %v7398_v37, %v976_v34  ;;  %v7400_v58 = vpop.eup %7399 }
 0x21c   :  { %v1199_v42 = vpop.f32.mrb[12].mxu0  ;;  %v8318_v43 = vpop.f32.mrb[12].mxu1  ;;  %v983_v62 = vsub.f32 1.0, %v7400_v58  ;;  %v987_v6 = vmul.f32 %v7400_v58, %v8056_v9  ;;  %v7078_v9 = vld [vmem:[%s9817_s2 + $0xc8] ss:$12 sps:$4 sm:$0xff]  }
 0x21d   :  { %7403 = vtanh.f32 %v979_v38  ;;  %v980_v44 = vadd.f32 %v978_v39, %v702_v25  ;;  %v1249_v45 = vadd.f32 %v1199_v42, %v999_v36  ;;  %v1201_v46 = vpop.f32.mrb[13].mxu0  ;;  %v6677_v48 = vpop.f32.mrb[13].mxu1  ;;  %v8331_v36 = vld [vmem:[%s9817_s2 + $0xc0] ss:$12 sps:$4 sm:$0xff]   ;;  %v8341_v38 = vld [vmem:[%s9817_s2 + $0xdc] ss:$12 sps:$4 sm:$0xff]  }
 0x21e   :  { %v1203_v49 = vpop.f32.mrb[14].mxu0  ;;  %v8320_v50 = vpop.f32.mrb[14].mxu1  ;;  %v1263_v55 = vadd.f32 %v1201_v46, %v1000_v41  ;;  %v8350_v39 = vld [vmem:[%s9817_s2 + $0xd8] ss:$12 sps:$4 sm:$0xff]   ;;  %v8360_v41 = vld [vmem:[%s9817_s2 + $0xf4] ss:$12 sps:$4 sm:$0xff]  }
 0x21f   :  { %7405 = vtanh.f32 %v980_v44  ;;  %v5751_v47 = vmul.f32 -1.442695, %v1249_v45  ;;  %v1250_v52 = vadd.f32 %v1203_v49, %v1002_v40  ;;  %v1205_v53 = vpop.f32.mrb[15].mxu0  ;;  %v6678_v54 = vpop.f32.mrb[15].mxu1  ;;  %v7082_v40 = vld [vmem:[%s9817_s2 + $0xe0] ss:$12 sps:$4 sm:$0xff]  }
 0x220   :  { %v1264_v57 = vadd.f32 %v1205_v53, %v1003_v51  ;;  %v5753_v59 = vmul.f32 -1.442695, %v1263_v55  ;;  %v7402_v60 = vpop.eup %7401  ;;  %v5692_v45 = vld [vmem:[%s9820_s1 + $0xb0] ss:$12 sps:$4 sm:$0xff]   ;;  %v7086_v49 = vld [vmem:[%s9817_s2 + $0xf8] ss:$12 sps:$4 sm:$0xff]  }
 0x221   :  { %7407 = vpow2.f32 %v5751_v47  ;;  %v5752_v56 = vmul.f32 -1.442695, %v1250_v52  ;;  %v984_v0 = vsub.f32 1.0, %v7402_v60  ;;  %v988_v17 = vmul.f32 %v7402_v60, %v8058_v12  ;;  %v8372_v48 = vld [vmem:[%s9817_s2 + $0xf0] ss:$12 sps:$4 sm:$0xff]  }
 0x222   :  { %v5754_v61 = vmul.f32 -1.442695, %v1264_v57  ;;  %v8382_v51 = vld [vmem:[%s9817_s2 + $0x10c] ss:$12 sps:$4 sm:$0xff]   ;;  %v1001_v47 = vunpack.c.l.bf16 %v5692_v45  ;;  %v1277_v52 = vadd.f32 %v8077_v20, %v8318_v43  ;;  %v1278_v57 = vadd.f32 %v8077_v20, %v8320_v50  ;;  %v8392_v58 = vld [vmem:[%s9817_s2 + $0x108] ss:$12 sps:$4 sm:$0xff]  }
 0x223   :  { %7409 = vpow2.f32 %v5752_v56  ;;  %v1004_v56 = vunpack.c.h.bf16 %v5692_v45  ;;  %v7090_v43 = vld [vmem:[%s9817_s2 + $0x110] ss:$12 sps:$4 sm:$0xff]  }
 0x224   :  { %7411 = vpow2.f32 %v5753_v59  ;;  %v8402_v50 = vld [vmem:[%s9817_s2 + $0x124] ss:$12 sps:$4 sm:$0xff]  }
 0x225   :  { %7413 = vpow2.f32 %v5754_v61 }
 0x227   :  { %v7404_v63 = vpop.eup %7403 }
 0x228   :  { %v985_v5 = vmul.f32 %v7404_v63, %v983_v62  ;;  %v8408_v63 = vld [vmem:[%s9817_s2 + $0x120] ss:$12 sps:$4 sm:$0xff]  }
 0x229   :  { %v7406_v10 = vpop.eup %7405 }
 0x22a   :  { %v986_v14 = vmul.f32 %v7406_v10, %v984_v0  ;;  %v8324_v21 = vadd.f32 %v987_v6, %v985_v5  ;;  %v7094_v0 = vld [vmem:[%s9817_s2 + $0x128] ss:$12 sps:$4 sm:$0xff]   ;;  %v8424_v6 = vld [vmem:[%s9817_s2 + $0x138] ss:$12 sps:$4 sm:$0xff]   ;;  %v7098_v10 = vld [vmem:[%s9817_s2 + $0x140] ss:$12 sps:$4 sm:$0xff]  }
 0x22b   :  { %v7408_v25 = vpop.eup %7407  ;;  %v8418_v5 = vld [vmem:[%s9817_s2 + $0x13c] ss:$12 sps:$4 sm:$0xff]  }
 0x22c   :  { %v1257_v28 = vadd.f32 1.0, %v7408_v25  ;;  %v8326_v31 = vadd.f32 %v988_v17, %v986_v14  ;;  %v8434_v14 = vld [vmem:[%s9817_s2 + $0x154] ss:$12 sps:$4 sm:$0xff]  }
 0x22d   :  { %v7410_v34 = vpop.eup %7409 }
 0x22e   :  { %7415 = vrcp.f32 %v1257_v28  ;;  %v1258_v37 = vadd.f32 1.0, %v7410_v34  ;;  %v991_v12 = vpack.c.bf16 %v8326_v31, %v8324_v21  ;;  %v7412_v42 = vpop.eup %7411  ;;  %v8440_v28 = vld [vmem:[%s9817_s2 + $0x150] ss:$12 sps:$4 sm:$0xff]   ;;  %v7102_v34 = vld [vmem:[%s9817_s2 + $0x158] ss:$12 sps:$4 sm:$0xff]  }
 0x22f   :  { %v7414_v44 = vpop.eup %7413  ;;  %v1271_v46 = vadd.f32 1.0, %v7412_v42 }
 0x230   :  { %7417 = vrcp.f32 %v1258_v37  ;;  %5690 = vst [vmem:[%s9821_s4 + $0x8] sm:$0xff] %v991_v12  ;;  %1500 = vmatmul.mubr.bf16.vlgmr.msra.gmra.mrb[16].mxu0 %v991_v12  ;;  %6696 = vmatmul.mubr.bf16.vlgmr.msra.gmra.mrb[16].mxu1 %v991_v12  ;;  %v1272_v53 = vadd.f32 1.0, %v7414_v44 }
 0x231   :  { %1770 = vmatpush1.bf16.msra.mxu0 %v8331_v36  ;;  %6700 = vmatpush3.bf16.msra.mxu1 %v7078_v9  ;;  %7419 = vrcp.f32 %v1271_v46  ;;  %v8450_v9 = vld [vmem:[%s9817_s2 + $0x16c] ss:$12 sps:$4 sm:$0xff]   ;;  %v8457_v46 = vld [vmem:[%s9817_s2 + $0x168] ss:$12 sps:$4 sm:$0xff]  }
 0x232   :  { %1771 = vmatprep.subr.bf16.mxu0 %v8341_v38  ;;  %6701 = vmatprep.subr.bf16.mxu1 %v7726_v1  ;;  %7421 = vrcp.f32 %v1272_v53 }
 0x233   :  { %1801 = vmatprep.mubr.bf16.mxu0 %v7727_v2  ;;  %6715 = vmatprep.mubr.msk.bf16.mxu1 %vm7728_vm0, %v7726_v1 }
 0x235   :  { %1772 = vmatpush1.bf16.msra.mxu0 %v8350_v39  ;;  %6702 = vmatpush3.bf16.msra.mxu1 %v7082_v40 }
 0x236   :  { %1773 = vmatprep.subr.bf16.mxu0 %v8360_v41  ;;  %6703 = vmatprep.subr.bf16.mxu1 %v7726_v1 }
 0x238   :  { %v7416_v54 = vpop.eup %7415 }
 0x239   :  { %v1279_v55 = vmul.f32 %v7416_v54, %v1277_v52  ;;  %1774 = vmatpush1.bf16.msra.mxu0 %v8372_v48  ;;  %6704 = vmatpush3.bf16.msra.mxu1 %v7086_v49  ;;  %v7106_v49 = vld [vmem:[%s9817_s2 + $0x170] ss:$12 sps:$4 sm:$0xff]  }
 0x23a   :  { %v7418_v59 = vpop.eup %7417  ;;  %1775 = vmatprep.subr.bf16.mxu0 %v8382_v51  ;;  %6705 = vmatprep.subr.bf16.mxu1 %v7726_v1 }
 0x23b   :  { %v1281_v60 = vadd.f32 %v1279_v55, %v1001_v47  ;;  %v1280_v61 = vmul.f32 %v7418_v59, %v1278_v57  ;;  %v7420_v17 = vpop.eup %7419 }
 0x23c   :  { %v7422_v25 = vpop.eup %7421  ;;  %v1285_v37 = vsub.f32 1.0, %v7420_v17  ;;  %v1289_v44 = vmul.f32 %v7420_v17, %v8151_v3 }
 0x23d   :  { %7423 = vtanh.f32 %v1281_v60  ;;  %v1282_v62 = vadd.f32 %v1280_v61, %v1004_v56  ;;  %1776 = vmatpush1.bf16.msra.mxu0 %v8392_v58  ;;  %6706 = vmatpush3.bf16.msra.mxu1 %v7090_v43  ;;  %v1286_v40 = vsub.f32 1.0, %v7422_v25  ;;  %v1290_v3 = vmul.f32 %v7422_v25, %v8153_v4  ;;  %v7107_v4 = vld [vmem:[%s9817_s2 + $0x8] ss:$12 sps:$4 sm:$0xff]  }
 0x23e   :  { %1777 = vmatprep.subr.bf16.mxu0 %v8402_v50  ;;  %6707 = vmatprep.subr.bf16.mxu1 %v7726_v1 }
 0x23f   :  { %7425 = vtanh.f32 %v1282_v62 }
 0x241   :  { %1778 = vmatpush1.bf16.msra.mxu0 %v8408_v63  ;;  %6708 = vmatpush3.bf16.msra.mxu1 %v7094_v0 }
 0x242   :  { %1779 = vmatprep.subr.bf16.mxu0 %v8418_v5  ;;  %6709 = vmatprep.subr.bf16.mxu1 %v7726_v1 }
 0x245   :  { %1780 = vmatpush1.bf16.msra.mxu0 %v8424_v6  ;;  %6710 = vmatpush3.bf16.msra.mxu1 %v7098_v10 }
 0x246   :  { %1781 = vmatprep.subr.bf16.mxu0 %v8434_v14  ;;  %6711 = vmatprep.subr.bf16.mxu1 %v7726_v1 }
 0x247   :  { %v7424_v12 = vpop.eup %7423 }
 0x248   :  { %v1287_v42 = vmul.f32 %v7424_v12, %v1285_v37 }
 0x249   :  { %v7426_v45 = vpop.eup %7425  ;;  %1782 = vmatpush1.bf16.msra.mxu0 %v8440_v28  ;;  %6712 = vmatpush3.bf16.msra.mxu1 %v7102_v34 }
 0x24a   :  { %1783 = vmatprep.subr.bf16.mxu0 %v8450_v9  ;;  %6713 = vmatprep.subr.bf16.mxu1 %v7726_v1  ;;  %v1288_v47 = vmul.f32 %v7426_v45, %v1286_v40  ;;  %v8465_v52 = vadd.f32 %v1289_v44, %v1287_v42  ;;  %v5757_v45 = vld [vmem:[%s9818_s0 + $0x38] ss:$12 sps:$4 sm:$0xff]  }
 0x24c   :  { %v8467_v53 = vadd.f32 %v1290_v3, %v1288_v47  ;;  %v5789_v47 = vld [vmem:[%s9820_s1 + $0x90] sm:$0xff]  ;;  %v1303_v3 = vunpack.c.l.bf16 %v5757_v45 }
 0x24d   :  { %1784 = vmatpush1.bf16.msra.mxu0 %v8457_v46  ;;  %6714 = vmatpush3.bf16.msra.mxu1 %v7106_v49 }
 0x24e   :  { %v1293_v54 = vpack.c.bf16 %v8467_v53, %v8465_v52  ;;  %2071 = vmatprep.subr.bf16.mxu0 %v8170_v7  ;;  %6719 = vmatprep.subr.bf16.mxu1 %v7726_v1  ;;  %v7108_v7 = vld [vmem:[%s9817_s2 + $0x20] ss:$12 sps:$4 sm:$0xff]  }
 0x250   :  { %5755 = vst [vmem:[%s9822_s5 + $0x38] sm:$0xff] %v1293_v54  ;;  %1802 = vmatmul.mubr.bf16.vlgmr.msra.gmra.mrb[20].mxu0 %v1293_v54  ;;  %6716 = vmatmul.mubr.bf16.vlgmr.msra.gmra.mrb[20].mxu1 %v1293_v54 }
 0x251   :  { %2072 = vmatpush1.bf16.msra.mxu0 %v8175_v8  ;;  %2103 = vmatprep.mubr.bf16.mxu0 %v7727_v2  ;;  %v7109_v8 = vld [vmem:[%s9817_s2 + $0x38] ss:$12 sps:$4 sm:$0xff]  }
 0x252   :  { %2073 = vmatprep.subr.bf16.mxu0 %v8185_v11  ;;  %6735 = vmatprep.mubr.msk.bf16.mxu1 %vm7728_vm0, %v7726_v1  ;;  %v7110_v11 = vld [vmem:[%s9817_s2 + $0x50] ss:$12 sps:$4 sm:$0xff]  }
 0x253   :  { %6720 = vmatpush3.bf16.msra.mxu1 %v7107_v4 }
 0x254   :  { %6721 = vmatprep.subr.bf16.mxu1 %v7726_v1 }
 0x255   :  { %2074 = vmatpush1.bf16.msra.mxu0 %v8191_v13  ;;  %v7111_v13 = vld [vmem:[%s9817_s2 + $0x68] ss:$12 sps:$4 sm:$0xff]  }
 0x256   :  { %2075 = vmatprep.subr.bf16.mxu0 %v8201_v15  ;;  %v7112_v15 = vld [vmem:[%s9817_s2 + $0x80] ss:$12 sps:$4 sm:$0xff]  }
 0x257   :  { %6722 = vmatpush3.bf16.msra.mxu1 %v7108_v7 }
 0x258   :  { %6723 = vmatprep.subr.bf16.mxu1 %v7726_v1 }
 0x259   :  { %2076 = vmatpush1.bf16.msra.mxu0 %v8207_v16  ;;  %v7113_v16 = vld [vmem:[%s9817_s2 + $0x98] ss:$12 sps:$4 sm:$0xff]  }
 0x25a   :  { %2077 = vmatprep.subr.bf16.mxu0 %v8217_v18  ;;  %v7114_v18 = vld [vmem:[%s9817_s2 + $0xb0] ss:$12 sps:$4 sm:$0xff]  }
 0x25b   :  { %6724 = vmatpush3.bf16.msra.mxu1 %v7109_v8  ;;  %v1306_v8 = vunpack.c.h.bf16 %v5757_v45 }
 0x25c   :  { %6725 = vmatprep.subr.bf16.mxu1 %v7726_v1 }
 0x25d   :  { %2078 = vmatpush1.bf16.msra.mxu0 %v8223_v19  ;;  %v5756_v19 = vld [vmem:[%s9818_s0 + $0x30] sm:$0xff] }
 0x25e   :  { %2079 = vmatprep.subr.bf16.mxu0 %v8233_v22  ;;  %v5758_v22 = vld [vmem:[%s9818_s0 + $0x3c] sm:$0xff] }
 0x25f   :  { %6726 = vmatpush3.bf16.msra.mxu1 %v7110_v11  ;;  %v1305_v57 = vunpack.c.h.bf16 %v5758_v22  ;;  %v5791_v11 = vld [vmem:[%s9820_s1 + $0x9c] sm:$0xff] }
 0x260   :  { %6727 = vmatprep.subr.bf16.mxu1 %v7726_v1 }
 0x261   :  { %2080 = vmatpush1.bf16.msra.mxu0 %v8239_v23  ;;  %v1301_v23 = vunpack.c.l.bf16 %v5756_v19 }
 0x262   :  { %2081 = vmatprep.subr.bf16.mxu0 %v8249_v26  ;;  %v1304_v26 = vunpack.c.l.bf16 %v5758_v22 }
 0x263   :  { %6728 = vmatpush3.bf16.msra.mxu1 %v7111_v13 }
 0x264   :  { %6729 = vmatprep.subr.bf16.mxu1 %v7726_v1 }
 0x265   :  { %2082 = vmatpush1.bf16.msra.mxu0 %v8255_v27 }
 0x266   :  { %2083 = vmatprep.subr.bf16.mxu0 %v8265_v29 }
 0x267   :  { %6730 = vmatpush3.bf16.msra.mxu1 %v7112_v15 }
 0x268   :  { %6731 = vmatprep.subr.bf16.mxu1 %v7726_v1 }
 0x269   :  { %2084 = vmatpush1.bf16.msra.mxu0 %v8271_v30  ;;  %v1302_v30 = vunpack.c.h.bf16 %v5756_v19 }
 0x26a   :  { %2085 = vmatprep.subr.bf16.mxu0 %v8281_v32 }
 0x26b   :  { %6732 = vmatpush3.bf16.msra.mxu1 %v7113_v16  ;;  %v1603_v16 = vunpack.c.l.bf16 %v5789_v47 }
 0x26c   :  { %6733 = vmatprep.subr.bf16.mxu1 %v7726_v1 }
 0x26d   :  { %2086 = vmatpush1.bf16.msra.mxu0 %v8287_v33 }
 0x26e   :  { %2373 = vmatprep.subr.bf16.mxu0 %v8297_v35 }
 0x26f   :  { %6734 = vmatpush3.bf16.msra.mxu1 %v7114_v18 }
 0x270   :  { %6739 = vmatprep.subr.bf16.mxu1 %v7726_v1 }
 0x303   :  { %v1501_v27 = vpop.f32.mrb[16].mxu0  ;;  %v1544_v29 = vpop.f32.mrb[16].mxu1 }
 0x304   :  { %v1551_v32 = vadd.f32 %v1501_v27, %v1301_v23  ;;  %v1503_v33 = vpop.f32.mrb[17].mxu0  ;;  %v6697_v35 = vpop.f32.mrb[17].mxu1  ;;  %v1579_v54 = vadd.f32 %v8043_v24, %v1544_v29  ;;  %v1606_v23 = vunpack.c.l.bf16 %v5791_v11  ;;  %v1604_v29 = vunpack.c.h.bf16 %v5789_v47 }
 0x305   :  { %v1505_v55 = vpop.f32.mrb[18].mxu0  ;;  %v1547_v56 = vpop.f32.mrb[18].mxu1  ;;  %v1565_v62 = vadd.f32 %v1503_v33, %v1302_v30 }
 0x306   :  { %v5784_v43 = vmul.f32 -1.442695, %v1551_v32  ;;  %v1552_v59 = vadd.f32 %v1505_v55, %v1304_v26  ;;  %v1507_v60 = vpop.f32.mrb[19].mxu0  ;;  %v6698_v61 = vpop.f32.mrb[19].mxu1  ;;  %v1580_v15 = vadd.f32 %v8043_v24, %v1547_v56 }
 0x307   :  { %v1566_v10 = vadd.f32 %v1507_v60, %v1305_v57  ;;  %v5786_v17 = vmul.f32 -1.442695, %v1565_v62 }
 0x308   :  { %7427 = vpow2.f32 %v5784_v43  ;;  %v5785_v0 = vmul.f32 -1.442695, %v1552_v59  ;;  %v1607_v43 = vunpack.c.h.bf16 %v5791_v11  ;;  %v7115_v11 = vld [vmem:[%s9817_s2 + $0xc8] ss:$12 sps:$4 sm:$0xff]  }
 0x309   :  { %v5787_v25 = vmul.f32 -1.442695, %v1566_v10 }
 0x30a   :  { %7429 = vpow2.f32 %v5785_v0 }
 0x30b   :  { %7431 = vpow2.f32 %v5786_v17 }
 0x30c   :  { %7433 = vpow2.f32 %v5787_v25 }
 0x312   :  { %v7428_v34 = vpop.eup %7427 }
 0x313   :  { %v1559_v37 = vadd.f32 1.0, %v7428_v34 }
 0x314   :  { %v7430_v12 = vpop.eup %7429 }
 0x315   :  { %7435 = vrcp.f32 %v1559_v37  ;;  %v1560_v40 = vadd.f32 1.0, %v7430_v12  ;;  %v7432_v42 = vpop.eup %7431 }
 0x316   :  { %v7434_v44 = vpop.eup %7433  ;;  %v1573_v49 = vadd.f32 1.0, %v7432_v42 }
 0x317   :  { %7437 = vrcp.f32 %v1560_v40  ;;  %v1574_v4 = vadd.f32 1.0, %v7434_v44 }
 0x318   :  { %7439 = vrcp.f32 %v1573_v49 }
 0x319   :  { %7441 = vrcp.f32 %v1574_v4 }
 0x31f   :  { %v7436_v7 = vpop.eup %7435 }
 0x320   :  { %v1581_v13 = vmul.f32 %v7436_v7, %v1579_v54 }
 0x321   :  { %v7438_v18 = vpop.eup %7437 }
 0x322   :  { %v1583_v19 = vadd.f32 %v1581_v13, %v1303_v3  ;;  %v1582_v22 = vmul.f32 %v7438_v18, %v1580_v15  ;;  %v7440_v10 = vpop.eup %7439 }
 0x323   :  { %v1803_v26 = vpop.f32.mrb[20].mxu0  ;;  %v8545_v27 = vpop.f32.mrb[20].mxu1  ;;  %v1587_v37 = vsub.f32 1.0, %v7440_v10  ;;  %v1591_v44 = vmul.f32 %v7440_v10, %v8324_v21  ;;  %v8668_v10 = vld [vmem:[%s9817_s2 + $0x30] ss:$12 sps:$4 sm:$0xff]  }
 0x324   :  { %7443 = vtanh.f32 %v1583_v19  ;;  %v1584_v30 = vadd.f32 %v1582_v22, %v1306_v8  ;;  %v1853_v32 = vadd.f32 %v1803_v26, %v1603_v16  ;;  %v1805_v33 = vpop.f32.mrb[21].mxu0  ;;  %v6717_v35 = vpop.f32.mrb[21].mxu1  ;;  %v1881_v22 = vadd.f32 %v8077_v20, %v8545_v27 }
 0x325   :  { %v1807_v55 = vpop.f32.mrb[22].mxu0  ;;  %v1849_v57 = vpop.f32.mrb[22].mxu1  ;;  %v1867_v61 = vadd.f32 %v1805_v33, %v1604_v29 }
 0x326   :  { %7445 = vtanh.f32 %v1584_v30  ;;  %v5849_v24 = vmul.f32 -1.442695, %v1853_v32  ;;  %v1854_v56 = vadd.f32 %v1807_v55, %v1606_v23  ;;  %v1809_v59 = vpop.f32.mrb[23].mxu0  ;;  %v6718_v60 = vpop.f32.mrb[23].mxu1 }
 0x327   :  { %v1868_v0 = vadd.f32 %v1809_v59, %v1607_v43  ;;  %v5851_v17 = vmul.f32 -1.442695, %v1867_v61  ;;  %v7442_v25 = vpop.eup %7441  ;;  %v8652_v61 = vld [vmem:[%s9817_s2 + $0x18] ss:$12 sps:$4 sm:$0xff]  }
 0x328   :  { %7447 = vpow2.f32 %v5849_v24  ;;  %v5850_v62 = vmul.f32 -1.442695, %v1854_v56  ;;  %v1588_v40 = vsub.f32 1.0, %v7442_v25  ;;  %v1592_v47 = vmul.f32 %v7442_v25, %v8326_v31  ;;  %v7116_v31 = vld [vmem:[%s9817_s2 + $0xe0] ss:$12 sps:$4 sm:$0xff]  }
 0x329   :  { %v5852_v34 = vmul.f32 -1.442695, %v1868_v0  ;;  %v8662_v0 = vld [vmem:[%s9817_s2 + $0x34] ss:$12 sps:$4 sm:$0xff]   ;;  %v8678_v25 = vld [vmem:[%s9817_s2 + $0x4c] ss:$12 sps:$4 sm:$0xff]  }
 0x32a   :  { %7449 = vpow2.f32 %v5850_v62  ;;  %v7130_v62 = vld [vmem:[%s9817_s2 + $0x20] ss:$12 sps:$4 sm:$0xff]  }
 0x32b   :  { %7451 = vpow2.f32 %v5851_v17  ;;  %v7134_v17 = vld [vmem:[%s9817_s2 + $0x38] ss:$12 sps:$4 sm:$0xff]  }
 0x32c   :  { %7453 = vpow2.f32 %v5852_v34  ;;  %v8684_v34 = vld [vmem:[%s9817_s2 + $0x48] ss:$12 sps:$4 sm:$0xff]  }
 0x32e   :  { %v7444_v12 = vpop.eup %7443 }
 0x32f   :  { %v1589_v42 = vmul.f32 %v7444_v12, %v1587_v37  ;;  %v7138_v37 = vld [vmem:[%s9817_s2 + $0x50] ss:$12 sps:$4 sm:$0xff]  }
 0x330   :  { %v7446_v45 = vpop.eup %7445  ;;  %v8694_v12 = vld [vmem:[%s9817_s2 + $0x64] ss:$12 sps:$4 sm:$0xff]  }
 0x331   :  { %v1590_v49 = vmul.f32 %v7446_v45, %v1588_v40  ;;  %v8549_v3 = vadd.f32 %v1591_v44, %v1589_v42  ;;  %v8700_v40 = vld [vmem:[%s9817_s2 + $0x60] ss:$12 sps:$4 sm:$0xff]   ;;  %v7142_v42 = vld [vmem:[%s9817_s2 + $0x68] ss:$12 sps:$4 sm:$0xff]   ;;  %v8716_v45 = vld [vmem:[%s9817_s2 + $0x78] ss:$12 sps:$4 sm:$0xff]  }
 0x332   :  { %v7448_v54 = vpop.eup %7447  ;;  %v8710_v44 = vld [vmem:[%s9817_s2 + $0x7c] ss:$12 sps:$4 sm:$0xff]  }
 0x333   :  { %v1861_v4 = vadd.f32 1.0, %v7448_v54  ;;  %v8551_v7 = vadd.f32 %v1592_v47, %v1590_v49  ;;  %v7146_v49 = vld [vmem:[%s9817_s2 + $0x80] ss:$12 sps:$4 sm:$0xff]   ;;  %v8732_v54 = vld [vmem:[%s9817_s2 + $0x90] ss:$12 sps:$4 sm:$0xff]  }
 0x334   :  { %v7450_v8 = vpop.eup %7449  ;;  %v8726_v47 = vld [vmem:[%s9817_s2 + $0x94] ss:$12 sps:$4 sm:$0xff]  }
 0x335   :  { %7455 = vrcp.f32 %v1861_v4  ;;  %v1862_v13 = vadd.f32 1.0, %v7450_v8  ;;  %v1595_v21 = vpack.c.bf16 %v8551_v7, %v8549_v3  ;;  %v7452_v15 = vpop.eup %7451  ;;  %v7150_v4 = vld [vmem:[%s9817_s2 + $0x98] ss:$12 sps:$4 sm:$0xff]  }
 0x336   :  { %v7454_v16 = vpop.eup %7453  ;;  %v1875_v18 = vadd.f32 1.0, %v7452_v15  ;;  %v8742_v8 = vld [vmem:[%s9817_s2 + $0xac] ss:$12 sps:$4 sm:$0xff]  }
 0x337   :  { %7457 = vrcp.f32 %v1862_v13  ;;  %5788 = vst [vmem:[%s9821_s4 + $0x10] sm:$0xff] %v1595_v21  ;;  %2104 = vmatmul.mubr.bf16.vlgmr.msra.gmra.mrb[24].mxu0 %v1595_v21  ;;  %6736 = vmatmul.mubr.bf16.vlgmr.msra.gmra.mrb[24].mxu1 %v1595_v21  ;;  %v1876_v23 = vadd.f32 1.0, %v7454_v16  ;;  %v7154_v13 = vld [vmem:[%s9817_s2 + $0xb0] ss:$12 sps:$4 sm:$0xff]   ;;  %v5856_v15 = vld [vmem:[%s9818_s0 + $0x54] sm:$0xff] }
 0x338   :  { %2374 = vmatpush1.bf16.msra.mxu0 %v8331_v36  ;;  %6740 = vmatpush3.bf16.msra.mxu1 %v7115_v11  ;;  %v5790_v36 = vld [vmem:[%s9820_s1 + $0x98] ss:$12 sps:$4 sm:$0xff]   ;;  %7459 = vrcp.f32 %v1875_v18  ;;  %v8748_v11 = vld [vmem:[%s9817_s2 + $0xa8] ss:$12 sps:$4 sm:$0xff]  }
 0x339   :  { %2375 = vmatprep.subr.bf16.mxu0 %v8341_v38  ;;  %6741 = vmatprep.subr.bf16.mxu1 %v7726_v1  ;;  %v7117_v38 = vld [vmem:[%s9817_s2 + $0xf8] ss:$12 sps:$4 sm:$0xff]   ;;  %v1605_v19 = vunpack.c.l.bf16 %v5790_v36  ;;  %v1608_v30 = vunpack.c.h.bf16 %v5790_v36  ;;  %7461 = vrcp.f32 %v1876_v23  ;;  %v1908_v36 = vunpack.c.l.bf16 %v5856_v15 }
 0x33a   :  { %2405 = vmatprep.mubr.bf16.mxu0 %v7727_v2  ;;  %6755 = vmatprep.mubr.msk.bf16.mxu1 %vm7728_vm0, %v7726_v1  ;;  %v8758_v21 = vld [vmem:[%s9817_s2 + $0xc4] ss:$12 sps:$4 sm:$0xff]  }
 0x33c   :  { %2376 = vmatpush1.bf16.msra.mxu0 %v8350_v39  ;;  %6742 = vmatpush3.bf16.msra.mxu1 %v7116_v31  ;;  %v1882_v39 = vadd.f32 %v8077_v20, %v1849_v57  ;;  %v7119_v20 = vld [vmem:[%s9817_s2 + $0x128] ss:$12 sps:$4 sm:$0xff]  }
 0x33d   :  { %2377 = vmatprep.subr.bf16.mxu0 %v8360_v41  ;;  %6743 = vmatprep.subr.bf16.mxu1 %v7726_v1  ;;  %v7118_v41 = vld [vmem:[%s9817_s2 + $0x110] ss:$12 sps:$4 sm:$0xff]   ;;  %v5854_v31 = vld [vmem:[%s9818_s0 + $0x48] sm:$0xff] }
 0x33e   :  { %v1905_v16 = vunpack.c.l.bf16 %v5854_v31 }
 0x33f   :  { %v7456_v26 = vpop.eup %7455 }
 0x340   :  { %v1883_v29 = vmul.f32 %v7456_v26, %v1881_v22  ;;  %2378 = vmatpush1.bf16.msra.mxu0 %v8372_v48  ;;  %6744 = vmatpush3.bf16.msra.mxu1 %v7117_v38  ;;  %v7120_v48 = vld [vmem:[%s9817_s2 + $0x140] ss:$12 sps:$4 sm:$0xff]  }
 0x341   :  { %v7458_v32 = vpop.eup %7457  ;;  %2379 = vmatprep.subr.bf16.mxu0 %v8382_v51  ;;  %6745 = vmatprep.subr.bf16.mxu1 %v7726_v1 }
 0x342   :  { %v1885_v27 = vadd.f32 %v1883_v29, %v1605_v19  ;;  %v1884_v33 = vmul.f32 %v7458_v32, %v1882_v39  ;;  %v7460_v51 = vpop.eup %7459  ;;  %v1906_v19 = vunpack.c.h.bf16 %v5854_v31  ;;  %v1909_v39 = vunpack.c.h.bf16 %v5856_v15 }
 0x344   :  { %7463 = vtanh.f32 %v1885_v27  ;;  %v1886_v35 = vadd.f32 %v1884_v33, %v1608_v30  ;;  %2380 = vmatpush1.bf16.msra.mxu0 %v8392_v58  ;;  %6746 = vmatpush3.bf16.msra.mxu1 %v7118_v41  ;;  %v7462_v58 = vpop.eup %7461 }
 0x345   :  { %2381 = vmatprep.subr.bf16.mxu0 %v8402_v50  ;;  %6747 = vmatprep.subr.bf16.mxu1 %v7726_v1  ;;  %v7121_v50 = vld [vmem:[%s9817_s2 + $0x158] ss:$12 sps:$4 sm:$0xff]   ;;  %v1890_v57 = vsub.f32 1.0, %v7462_v58  ;;  %v1894_v56 = vmul.f32 %v7462_v58, %v8467_v53  ;;  %v8646_v53 = vld [vmem:[%s9817_s2 + $0x1c] ss:$12 sps:$4 sm:$0xff]  }
 0x346   :  { %7465 = vtanh.f32 %v1886_v35 }
 0x348   :  { %2382 = vmatpush1.bf16.msra.mxu0 %v8408_v63  ;;  %6748 = vmatpush3.bf16.msra.mxu1 %v7119_v20  ;;  %v1889_v63 = vsub.f32 1.0, %v7460_v51 }
 0x349   :  { %2383 = vmatprep.subr.bf16.mxu0 %v8418_v5  ;;  %6749 = vmatprep.subr.bf16.mxu1 %v7726_v1  ;;  %v1893_v5 = vmul.f32 %v7460_v51, %v8465_v52  ;;  %v7126_v52 = vld [vmem:[%s9817_s2 + $0x8] ss:$12 sps:$4 sm:$0xff]  }
 0x34c   :  { %2384 = vmatpush1.bf16.msra.mxu0 %v8424_v6  ;;  %6750 = vmatpush3.bf16.msra.mxu1 %v7120_v48  ;;  %v7122_v6 = vld [vmem:[%s9817_s2 + $0x170] ss:$12 sps:$4 sm:$0xff]  }
 0x34d   :  { %2385 = vmatprep.subr.bf16.mxu0 %v8434_v14  ;;  %6751 = vmatprep.subr.bf16.mxu1 %v7726_v1 }
 0x34e   :  { %v7464_v55 = vpop.eup %7463 }
 0x34f   :  { %v1891_v43 = vmul.f32 %v7464_v55, %v1889_v63 }
 0x350   :  { %v7466_v24 = vpop.eup %7465  ;;  %2386 = vmatpush1.bf16.msra.mxu0 %v8440_v28  ;;  %6752 = vmatpush3.bf16.msra.mxu1 %v7121_v50 }
 0x351   :  { %2387 = vmatprep.subr.bf16.mxu0 %v8450_v9  ;;  %6753 = vmatprep.subr.bf16.mxu1 %v7726_v1  ;;  %v1892_v14 = vmul.f32 %v7466_v24, %v1890_v57  ;;  %v8614_v59 = vadd.f32 %v1893_v5, %v1891_v43  ;;  %v8631_v9 = vld [vmem:[%s9817_s2 + $0x4] ss:$12 sps:$4 sm:$0xff]  }
 0x352   :  { %v5855_v24 = vld [vmem:[%s9818_s0 + $0x50] ss:$12 sps:$4 sm:$0xff]  }
 0x353   :  { %v8616_v60 = vadd.f32 %v1894_v56, %v1892_v14  ;;  %v5887_v14 = vld [vmem:[%s9820_s1 + $0x78] sm:$0xff]  ;;  %v1907_v56 = vunpack.c.l.bf16 %v5855_v24 }
 0x354   :  { %2388 = vmatpush1.bf16.msra.mxu0 %v8457_v46  ;;  %6754 = vmatpush3.bf16.msra.mxu1 %v7122_v6  ;;  %v8636_v46 = vld [vmem:[%s9817_s2] ss:$12 sps:$4 sm:$0xff]  }
 0x355   :  { %v1897_v28 = vpack.c.bf16 %v8616_v60, %v8614_v59  ;;  %6759 = vmatprep.subr.bf16.mxu1 %v7726_v1  ;;  %2675 = vmatprep.subr.bf16.mxu0 %v8631_v9 }
 0x357   :  { %5853 = vst [vmem:[%s9822_s5 + $0x30] sm:$0xff] %v1897_v28  ;;  %2406 = vmatmul.mubr.bf16.vlgmr.msra.gmra.mrb[28].mxu0 %v1897_v28  ;;  %6756 = vmatmul.mubr.bf16.vlgmr.msra.gmra.mrb[28].mxu1 %v1897_v28  ;;  %v8777_v28 = vld [vmem:[%s9819_s3] ss:$0 sm:$0xff] }
 0x358   :  { %2707 = vmatprep.mubr.bf16.mxu0 %v7727_v2  ;;  %6775 = vmatprep.mubr.msk.bf16.mxu1 %vm7728_vm0, %v7726_v1 }
 0x359   :  { %2676 = vmatpush1.bf16.msra.mxu0 %v8636_v46  ;;  %6760 = vmatpush3.bf16.msra.mxu1 %v7126_v52 }
 0x35a   :  { %6761 = vmatprep.subr.bf16.mxu1 %v7726_v1  ;;  %2677 = vmatprep.subr.bf16.mxu0 %v8646_v53 }
 0x35d   :  { %2678 = vmatpush1.bf16.msra.mxu0 %v8652_v61  ;;  %6762 = vmatpush3.bf16.msra.mxu1 %v7130_v62 }
 0x35e   :  { %6763 = vmatprep.subr.bf16.mxu1 %v7726_v1  ;;  %2679 = vmatprep.subr.bf16.mxu0 %v8662_v0 }
 0x361   :  { %2680 = vmatpush1.bf16.msra.mxu0 %v8668_v10  ;;  %6764 = vmatpush3.bf16.msra.mxu1 %v7134_v17 }
 0x362   :  { %6765 = vmatprep.subr.bf16.mxu1 %v7726_v1  ;;  %2681 = vmatprep.subr.bf16.mxu0 %v8678_v25 }
 0x365   :  { %2682 = vmatpush1.bf16.msra.mxu0 %v8684_v34  ;;  %6766 = vmatpush3.bf16.msra.mxu1 %v7138_v37  ;;  %v1910_v37 = vunpack.c.h.bf16 %v5855_v24 }
 0x366   :  { %6767 = vmatprep.subr.bf16.mxu1 %v7726_v1  ;;  %2683 = vmatprep.subr.bf16.mxu0 %v8694_v12 }
 0x369   :  { %2684 = vmatpush1.bf16.msra.mxu0 %v8700_v40  ;;  %6768 = vmatpush3.bf16.msra.mxu1 %v7142_v42  ;;  %v5889_v42 = vld [vmem:[%s9820_s1 + $0x84] sm:$0xff] }
 0x36a   :  { %6769 = vmatprep.subr.bf16.mxu1 %v7726_v1  ;;  %2685 = vmatprep.subr.bf16.mxu0 %v8710_v44 }
 0x36d   :  { %2686 = vmatpush1.bf16.msra.mxu0 %v8716_v45  ;;  %6770 = vmatpush3.bf16.msra.mxu1 %v7146_v49 }
 0x36e   :  { %6771 = vmatprep.subr.bf16.mxu1 %v7726_v1  ;;  %2687 = vmatprep.subr.bf16.mxu0 %v8726_v47 }
 0x371   :  { %2688 = vmatpush1.bf16.msra.mxu0 %v8732_v54  ;;  %6772 = vmatpush3.bf16.msra.mxu1 %v7150_v4 }
 0x372   :  { %6773 = vmatprep.subr.bf16.mxu1 %v7726_v1  ;;  %2689 = vmatprep.subr.bf16.mxu0 %v8742_v8 }
 0x375   :  { %2690 = vmatpush1.bf16.msra.mxu0 %v8748_v11  ;;  %6774 = vmatpush3.bf16.msra.mxu1 %v7154_v13  ;;  %v2207_v13 = vunpack.c.l.bf16 %v5887_v14 }
 0x376   :  { %6779 = vmatprep.subr.bf16.mxu1 %v7726_v1  ;;  %2977 = vmatprep.subr.bf16.mxu0 %v8758_v21 }
 0x40a   :  { %v2105_v18 = vpop.f32.mrb[24].mxu0  ;;  %v2148_v38 = vpop.f32.mrb[24].mxu1 }
 0x40b   :  { %v2155_v22 = vadd.f32 %v2105_v18, %v1905_v16  ;;  %v2107_v23 = vpop.f32.mrb[25].mxu0  ;;  %v6737_v26 = vpop.f32.mrb[25].mxu1  ;;  %v2183_v52 = vadd.f32 %v8777_v28, %v2148_v38  ;;  %v2208_v38 = vunpack.c.h.bf16 %v5887_v14 }
 0x40c   :  { %v2109_v29 = vpop.f32.mrb[26].mxu0  ;;  %v2151_v30 = vpop.f32.mrb[26].mxu1  ;;  %v2169_v35 = vadd.f32 %v2107_v23, %v1906_v19 }
 0x40d   :  { %v5882_v41 = vmul.f32 -1.442695, %v2155_v22  ;;  %v2156_v32 = vadd.f32 %v2109_v29, %v1908_v36  ;;  %v2111_v27 = vpop.f32.mrb[27].mxu0  ;;  %v6738_v33 = vpop.f32.mrb[27].mxu1  ;;  %v2184_v4 = vadd.f32 %v8777_v28, %v2151_v30  ;;  %v2210_v36 = vunpack.c.l.bf16 %v5889_v42 }
 0x40e   :  { %v2170_v48 = vadd.f32 %v2111_v27, %v1909_v39  ;;  %v5884_v51 = vmul.f32 -1.442695, %v2169_v35 }
 0x40f   :  { %7467 = vpow2.f32 %v5882_v41  ;;  %v5883_v20 = vmul.f32 -1.442695, %v2156_v32  ;;  %v2211_v32 = vunpack.c.h.bf16 %v5889_v42 }
 0x410   :  { %v5885_v58 = vmul.f32 -1.442695, %v2170_v48 }
 0x411   :  { %7469 = vpow2.f32 %v5883_v20 }
 0x412   :  { %7471 = vpow2.f32 %v5884_v51 }
 0x413   :  { %7473 = vpow2.f32 %v5885_v58 }
 0x419   :  { %v7468_v50 = vpop.eup %7467 }
 0x41a   :  { %v2163_v63 = vadd.f32 1.0, %v7468_v50 }
 0x41b   :  { %v7470_v55 = vpop.eup %7469 }
 0x41c   :  { %7475 = vrcp.f32 %v2163_v63  ;;  %v2164_v57 = vadd.f32 1.0, %v7470_v55  ;;  %v7472_v43 = vpop.eup %7471 }
 0x41d   :  { %v7474_v5 = vpop.eup %7473  ;;  %v2177_v6 = vadd.f32 1.0, %v7472_v43 }
 0x41e   :  { %7477 = vrcp.f32 %v2164_v57  ;;  %v2178_v62 = vadd.f32 1.0, %v7474_v5 }
 0x41f   :  { %7479 = vrcp.f32 %v2177_v6 }
 0x420   :  { %7481 = vrcp.f32 %v2178_v62 }
 0x426   :  { %v7476_v17 = vpop.eup %7475 }
 0x427   :  { %v2185_v49 = vmul.f32 %v7476_v17, %v2183_v52 }
 0x428   :  { %v7478_v31 = vpop.eup %7477 }
 0x429   :  { %v2187_v15 = vadd.f32 %v2185_v49, %v1907_v56  ;;  %v2186_v16 = vmul.f32 %v7478_v31, %v2184_v4  ;;  %v7480_v58 = vpop.eup %7479  ;;  %v8797_v4 = vld [vmem:[%s9817_s2 + $0xc0] ss:$12 sps:$4 sm:$0xff]   ;;  %v8807_v31 = vld [vmem:[%s9817_s2 + $0xdc] ss:$12 sps:$4 sm:$0xff]  }
 0x42a   :  { %v2407_v18 = vpop.f32.mrb[28].mxu0  ;;  %v8784_v19 = vpop.f32.mrb[28].mxu1  ;;  %v2191_v57 = vsub.f32 1.0, %v7480_v58  ;;  %v2195_v6 = vmul.f32 %v7480_v58, %v8549_v3  ;;  %v7158_v3 = vld [vmem:[%s9817_s2 + $0xc8] ss:$12 sps:$4 sm:$0xff]  }
 0x42b   :  { %7483 = vtanh.f32 %v2187_v15  ;;  %v2188_v22 = vadd.f32 %v2186_v16, %v1910_v37  ;;  %v2457_v23 = vadd.f32 %v2407_v18, %v2207_v13  ;;  %v2409_v26 = vpop.f32.mrb[29].mxu0  ;;  %v6757_v29 = vpop.f32.mrb[29].mxu1  ;;  %v8816_v15 = vld [vmem:[%s9817_s2 + $0xd8] ss:$12 sps:$4 sm:$0xff]   ;;  %v7162_v16 = vld [vmem:[%s9817_s2 + $0xe0] ss:$12 sps:$4 sm:$0xff]  }
 0x42c   :  { %v2411_v39 = vpop.f32.mrb[30].mxu0  ;;  %v8786_v41 = vpop.f32.mrb[30].mxu1  ;;  %v2471_v20 = vadd.f32 %v2409_v26, %v2208_v38  ;;  %v8826_v18 = vld [vmem:[%s9817_s2 + $0xf4] ss:$12 sps:$4 sm:$0xff]   ;;  %v8838_v26 = vld [vmem:[%s9817_s2 + $0xf0] ss:$12 sps:$4 sm:$0xff]  }
 0x42d   :  { %7485 = vtanh.f32 %v2188_v22  ;;  %v5947_v30 = vmul.f32 -1.442695, %v2457_v23  ;;  %v2458_v27 = vadd.f32 %v2411_v39, %v2210_v36  ;;  %v2413_v33 = vpop.f32.mrb[31].mxu0  ;;  %v6758_v35 = vpop.f32.mrb[31].mxu1  ;;  %v5888_v22 = vld [vmem:[%s9820_s1 + $0x80] ss:$12 sps:$4 sm:$0xff]  }
 0x42e   :  { %v2472_v51 = vadd.f32 %v2413_v33, %v2211_v32  ;;  %v5949_v50 = vmul.f32 -1.442695, %v2471_v20  ;;  %v7482_v63 = vpop.eup %7481  ;;  %v7166_v29 = vld [vmem:[%s9817_s2 + $0xf8] ss:$12 sps:$4 sm:$0xff]   ;;  %v2209_v32 = vunpack.c.l.bf16 %v5888_v22  ;;  %v8863_v58 = vld [vmem:[%s9817_s2 + $0x108] ss:$12 sps:$4 sm:$0xff]  }
 0x42f   :  { %7487 = vpow2.f32 %v5947_v30  ;;  %v5948_v48 = vmul.f32 -1.442695, %v2458_v27  ;;  %v2192_v5 = vsub.f32 1.0, %v7482_v63  ;;  %v2196_v52 = vmul.f32 %v7482_v63, %v8551_v7  ;;  %v8848_v39 = vld [vmem:[%s9817_s2 + $0x10c] ss:$12 sps:$4 sm:$0xff]  }
 0x430   :  { %v5950_v55 = vmul.f32 -1.442695, %v2472_v51  ;;  %v8853_v30 = vld [vmem:[%s9819_s3 + $0x1] ss:$0 sm:$0xff] }
 0x431   :  { %7489 = vpow2.f32 %v5948_v48  ;;  %v2485_v27 = vadd.f32 %v8853_v30, %v8784_v19  ;;  %v2212_v48 = vunpack.c.h.bf16 %v5888_v22  ;;  %v2486_v51 = vadd.f32 %v8853_v30, %v8786_v41  ;;  %v7170_v19 = vld [vmem:[%s9817_s2 + $0x110] ss:$12 sps:$4 sm:$0xff]  }
 0x432   :  { %7491 = vpow2.f32 %v5949_v50  ;;  %v8873_v41 = vld [vmem:[%s9817_s2 + $0x124] ss:$12 sps:$4 sm:$0xff]  }
 0x433   :  { %7493 = vpow2.f32 %v5950_v55 }
 0x435   :  { %v7484_v43 = vpop.eup %7483 }
 0x436   :  { %v2193_v24 = vmul.f32 %v7484_v43, %v2191_v57  ;;  %v8879_v43 = vld [vmem:[%s9817_s2 + $0x120] ss:$12 sps:$4 sm:$0xff]  }
 0x437   :  { %v7486_v14 = vpop.eup %7485 }
 0x438   :  { %v2194_v56 = vmul.f32 %v7486_v14, %v2192_v5  ;;  %v8790_v62 = vadd.f32 %v2195_v6, %v2193_v24  ;;  %v7174_v5 = vld [vmem:[%s9817_s2 + $0x128] ss:$12 sps:$4 sm:$0xff]   ;;  %v8895_v6 = vld [vmem:[%s9817_s2 + $0x138] ss:$12 sps:$4 sm:$0xff]   ;;  %v7178_v14 = vld [vmem:[%s9817_s2 + $0x140] ss:$12 sps:$4 sm:$0xff]  }
 0x439   :  { %v7488_v17 = vpop.eup %7487  ;;  %v8889_v24 = vld [vmem:[%s9817_s2 + $0x13c] ss:$12 sps:$4 sm:$0xff]  }
 0x43a   :  { %v2465_v37 = vadd.f32 1.0, %v7488_v17  ;;  %v8792_v42 = vadd.f32 %v2196_v52, %v2194_v56  ;;  %v8905_v56 = vld [vmem:[%s9817_s2 + $0x154] ss:$12 sps:$4 sm:$0xff]  }
 0x43b   :  { %v7490_v49 = vpop.eup %7489 }
 0x43c   :  { %7495 = vrcp.f32 %v2465_v37  ;;  %v2466_v13 = vadd.f32 1.0, %v7490_v49  ;;  %v2199_v7 = vpack.c.bf16 %v8792_v42, %v8790_v62  ;;  %v7492_v36 = vpop.eup %7491  ;;  %v8911_v37 = vld [vmem:[%s9817_s2 + $0x150] ss:$12 sps:$4 sm:$0xff]   ;;  %v7182_v49 = vld [vmem:[%s9817_s2 + $0x158] ss:$12 sps:$4 sm:$0xff]  }
 0x43d   :  { %v7494_v38 = vpop.eup %7493  ;;  %v2479_v23 = vadd.f32 1.0, %v7492_v36 }
 0x43e   :  { %7497 = vrcp.f32 %v2466_v13  ;;  %5886 = vst [vmem:[%s9821_s4 + $0x18] sm:$0xff] %v2199_v7  ;;  %2708 = vmatmul.mubr.bf16.vlgmr.msra.gmra.mrb[32].mxu0 %v2199_v7  ;;  %6776 = vmatmul.mubr.bf16.vlgmr.msra.gmra.mrb[32].mxu1 %v2199_v7  ;;  %v2480_v33 = vadd.f32 1.0, %v7494_v38 }
 0x43f   :  { %2978 = vmatpush1.bf16.msra.mxu0 %v8797_v4  ;;  %6780 = vmatpush3.bf16.msra.mxu1 %v7158_v3  ;;  %7499 = vrcp.f32 %v2479_v23  ;;  %v8921_v3 = vld [vmem:[%s9817_s2 + $0x16c] ss:$12 sps:$4 sm:$0xff]   ;;  %v8928_v23 = vld [vmem:[%s9817_s2 + $0x168] ss:$12 sps:$4 sm:$0xff]  }
 0x440   :  { %2979 = vmatprep.subr.bf16.mxu0 %v8807_v31  ;;  %6781 = vmatprep.subr.bf16.mxu1 %v7726_v1  ;;  %7501 = vrcp.f32 %v2480_v33 }
 0x441   :  { %3009 = vmatprep.mubr.bf16.mxu0 %v7727_v2  ;;  %6795 = vmatprep.mubr.msk.bf16.mxu1 %vm7728_vm0, %v7726_v1 }
 0x443   :  { %2980 = vmatpush1.bf16.msra.mxu0 %v8816_v15  ;;  %6782 = vmatpush3.bf16.msra.mxu1 %v7162_v16 }
 0x444   :  { %2981 = vmatprep.subr.bf16.mxu0 %v8826_v18  ;;  %6783 = vmatprep.subr.bf16.mxu1 %v7726_v1 }
 0x446   :  { %v7496_v35 = vpop.eup %7495 }
 0x447   :  { %v2487_v20 = vmul.f32 %v7496_v35, %v2485_v27  ;;  %2982 = vmatpush1.bf16.msra.mxu0 %v8838_v26  ;;  %6784 = vmatpush3.bf16.msra.mxu1 %v7166_v29  ;;  %v7186_v29 = vld [vmem:[%s9817_s2 + $0x170] ss:$12 sps:$4 sm:$0xff]  }
 0x448   :  { %v7498_v50 = vpop.eup %7497  ;;  %2983 = vmatprep.subr.bf16.mxu0 %v8848_v39  ;;  %6785 = vmatprep.subr.bf16.mxu1 %v7726_v1 }
 0x449   :  { %v2489_v63 = vadd.f32 %v2487_v20, %v2209_v32  ;;  %v2488_v55 = vmul.f32 %v7498_v50, %v2486_v51  ;;  %v7500_v52 = vpop.eup %7499 }
 0x44a   :  { %v7502_v17 = vpop.eup %7501  ;;  %v2493_v13 = vsub.f32 1.0, %v7500_v52  ;;  %v2497_v38 = vmul.f32 %v7500_v52, %v8614_v59 }
 0x44b   :  { %7503 = vtanh.f32 %v2489_v63  ;;  %v2490_v57 = vadd.f32 %v2488_v55, %v2212_v48  ;;  %2984 = vmatpush1.bf16.msra.mxu0 %v8863_v58  ;;  %6786 = vmatpush3.bf16.msra.mxu1 %v7170_v19  ;;  %v2494_v16 = vsub.f32 1.0, %v7502_v17  ;;  %v2498_v59 = vmul.f32 %v7502_v17, %v8616_v60  ;;  %v7187_v60 = vld [vmem:[%s9817_s2 + $0x8] ss:$12 sps:$4 sm:$0xff]  }
 0x44c   :  { %2985 = vmatprep.subr.bf16.mxu0 %v8873_v41  ;;  %6787 = vmatprep.subr.bf16.mxu1 %v7726_v1 }
 0x44d   :  { %7505 = vtanh.f32 %v2490_v57 }
 0x44f   :  { %2986 = vmatpush1.bf16.msra.mxu0 %v8879_v43  ;;  %6788 = vmatpush3.bf16.msra.mxu1 %v7174_v5 }
 0x450   :  { %2987 = vmatprep.subr.bf16.mxu0 %v8889_v24  ;;  %6789 = vmatprep.subr.bf16.mxu1 %v7726_v1 }
 0x453   :  { %2988 = vmatpush1.bf16.msra.mxu0 %v8895_v6  ;;  %6790 = vmatpush3.bf16.msra.mxu1 %v7178_v14 }
 0x454   :  { %2989 = vmatprep.subr.bf16.mxu0 %v8905_v56  ;;  %6791 = vmatprep.subr.bf16.mxu1 %v7726_v1 }
 0x455   :  { %v7504_v7 = vpop.eup %7503 }
 0x456   :  { %v2495_v36 = vmul.f32 %v7504_v7, %v2493_v13 }
 0x457   :  { %v7506_v22 = vpop.eup %7505  ;;  %2990 = vmatpush1.bf16.msra.mxu0 %v8911_v37  ;;  %6792 = vmatpush3.bf16.msra.mxu1 %v7182_v49 }
 0x458   :  { %2991 = vmatprep.subr.bf16.mxu0 %v8921_v3  ;;  %6793 = vmatprep.subr.bf16.mxu1 %v7726_v1  ;;  %v2496_v32 = vmul.f32 %v7506_v22, %v2494_v16  ;;  %v8936_v27 = vadd.f32 %v2497_v38, %v2495_v36  ;;  %v5953_v22 = vld [vmem:[%s9818_s0 + $0x68] ss:$12 sps:$4 sm:$0xff]  }
 0x45a   :  { %v8938_v33 = vadd.f32 %v2498_v59, %v2496_v32  ;;  %v5985_v32 = vld [vmem:[%s9820_s1 + $0x60] sm:$0xff]  ;;  %v2511_v59 = vunpack.c.l.bf16 %v5953_v22 }
 0x45b   :  { %2992 = vmatpush1.bf16.msra.mxu0 %v8928_v23  ;;  %6794 = vmatpush3.bf16.msra.mxu1 %v7186_v29 }
 0x45c   :  { %v2501_v35 = vpack.c.bf16 %v8938_v33, %v8936_v27  ;;  %3279 = vmatprep.subr.bf16.mxu0 %v8631_v9  ;;  %6799 = vmatprep.subr.bf16.mxu1 %v7726_v1  ;;  %v7188_v9 = vld [vmem:[%s9817_s2 + $0x20] ss:$12 sps:$4 sm:$0xff]  }
 0x45e   :  { %5951 = vst [vmem:[%s9822_s5 + $0x28] sm:$0xff] %v2501_v35  ;;  %3010 = vmatmul.mubr.bf16.vlgmr.msra.gmra.mrb[36].mxu0 %v2501_v35  ;;  %6796 = vmatmul.mubr.bf16.vlgmr.msra.gmra.mrb[36].mxu1 %v2501_v35 }
 0x45f   :  { %3280 = vmatpush1.bf16.msra.mxu0 %v8636_v46  ;;  %3311 = vmatprep.mubr.bf16.mxu0 %v7727_v2  ;;  %v7189_v46 = vld [vmem:[%s9817_s2 + $0x38] ss:$12 sps:$4 sm:$0xff]  }
 0x460   :  { %3281 = vmatprep.subr.bf16.mxu0 %v8646_v53  ;;  %6815 = vmatprep.mubr.msk.bf16.mxu1 %vm7728_vm0, %v7726_v1  ;;  %v7190_v53 = vld [vmem:[%s9817_s2 + $0x50] ss:$12 sps:$4 sm:$0xff]  }
 0x461   :  { %6800 = vmatpush3.bf16.msra.mxu1 %v7187_v60 }
 0x462   :  { %6801 = vmatprep.subr.bf16.mxu1 %v7726_v1 }
 0x463   :  { %3282 = vmatpush1.bf16.msra.mxu0 %v8652_v61  ;;  %v7191_v61 = vld [vmem:[%s9817_s2 + $0x68] ss:$12 sps:$4 sm:$0xff]  }
 0x464   :  { %3283 = vmatprep.subr.bf16.mxu0 %v8662_v0  ;;  %v7192_v0 = vld [vmem:[%s9817_s2 + $0x80] ss:$12 sps:$4 sm:$0xff]  }
 0x465   :  { %6802 = vmatpush3.bf16.msra.mxu1 %v7188_v9 }
 0x466   :  { %6803 = vmatprep.subr.bf16.mxu1 %v7726_v1 }
 0x467   :  { %3284 = vmatpush1.bf16.msra.mxu0 %v8668_v10  ;;  %v7193_v10 = vld [vmem:[%s9817_s2 + $0x98] ss:$12 sps:$4 sm:$0xff]  }
 0x468   :  { %3285 = vmatprep.subr.bf16.mxu0 %v8678_v25  ;;  %v7194_v25 = vld [vmem:[%s9817_s2 + $0xb0] ss:$12 sps:$4 sm:$0xff]  }
 0x469   :  { %6804 = vmatpush3.bf16.msra.mxu1 %v7189_v46  ;;  %v2514_v46 = vunpack.c.h.bf16 %v5953_v22 }
 0x46a   :  { %6805 = vmatprep.subr.bf16.mxu1 %v7726_v1 }
 0x46b   :  { %3286 = vmatpush1.bf16.msra.mxu0 %v8684_v34  ;;  %v5952_v34 = vld [vmem:[%s9818_s0 + $0x60] sm:$0xff] }
 0x46c   :  { %3287 = vmatprep.subr.bf16.mxu0 %v8694_v12  ;;  %v5954_v12 = vld [vmem:[%s9818_s0 + $0x6c] sm:$0xff] }
 0x46d   :  { %6806 = vmatpush3.bf16.msra.mxu1 %v7190_v53  ;;  %v2513_v51 = vunpack.c.h.bf16 %v5954_v12  ;;  %v5987_v53 = vld [vmem:[%s9820_s1 + $0x6c] sm:$0xff] }
 0x46e   :  { %6807 = vmatprep.subr.bf16.mxu1 %v7726_v1 }
 0x46f   :  { %3288 = vmatpush1.bf16.msra.mxu0 %v8700_v40  ;;  %v2509_v40 = vunpack.c.l.bf16 %v5952_v34 }
 0x470   :  { %3289 = vmatprep.subr.bf16.mxu0 %v8710_v44  ;;  %v2512_v44 = vunpack.c.l.bf16 %v5954_v12 }
 0x471   :  { %6808 = vmatpush3.bf16.msra.mxu1 %v7191_v61 }
 0x472   :  { %6809 = vmatprep.subr.bf16.mxu1 %v7726_v1 }
 0x473   :  { %3290 = vmatpush1.bf16.msra.mxu0 %v8716_v45 }
 0x474   :  { %3291 = vmatprep.subr.bf16.mxu0 %v8726_v47 }
 0x475   :  { %6810 = vmatpush3.bf16.msra.mxu1 %v7192_v0 }
 0x476   :  { %6811 = vmatprep.subr.bf16.mxu1 %v7726_v1 }
 0x477   :  { %3292 = vmatpush1.bf16.msra.mxu0 %v8732_v54  ;;  %v2510_v54 = vunpack.c.h.bf16 %v5952_v34 }
 0x478   :  { %3293 = vmatprep.subr.bf16.mxu0 %v8742_v8 }
 0x479   :  { %6812 = vmatpush3.bf16.msra.mxu1 %v7193_v10  ;;  %v2811_v10 = vunpack.c.l.bf16 %v5985_v32 }
 0x47a   :  { %6813 = vmatprep.subr.bf16.mxu1 %v7726_v1 }
 0x47b   :  { %3294 = vmatpush1.bf16.msra.mxu0 %v8748_v11 }
 0x47c   :  { %3581 = vmatprep.subr.bf16.mxu0 %v8758_v21 }
 0x47d   :  { %6814 = vmatpush3.bf16.msra.mxu1 %v7194_v25 }
 0x47e   :  { %6819 = vmatprep.subr.bf16.mxu1 %v7726_v1 }
 0x511   :  { %v2709_v45 = vpop.f32.mrb[32].mxu0  ;;  %v2752_v47 = vpop.f32.mrb[32].mxu1 }
 0x512   :  { %v2759_v8 = vadd.f32 %v2709_v45, %v2509_v40  ;;  %v2711_v11 = vpop.f32.mrb[33].mxu0  ;;  %v6777_v21 = vpop.f32.mrb[33].mxu1  ;;  %v2787_v35 = vadd.f32 %v8777_v28, %v2752_v47  ;;  %v2814_v40 = vunpack.c.l.bf16 %v5987_v53  ;;  %v2812_v47 = vunpack.c.h.bf16 %v5985_v32 }
 0x513   :  { %v2713_v20 = vpop.f32.mrb[34].mxu0  ;;  %v2755_v48 = vpop.f32.mrb[34].mxu1  ;;  %v2773_v57 = vadd.f32 %v2711_v11, %v2510_v54 }
 0x514   :  { %v5980_v19 = vmul.f32 -1.442695, %v2759_v8  ;;  %v2760_v50 = vadd.f32 %v2713_v20, %v2512_v44  ;;  %v2715_v63 = vpop.f32.mrb[35].mxu0  ;;  %v6778_v55 = vpop.f32.mrb[35].mxu1  ;;  %v2788_v0 = vadd.f32 %v8777_v28, %v2755_v48 }
 0x515   :  { %v2774_v14 = vadd.f32 %v2715_v63, %v2513_v51  ;;  %v5982_v52 = vmul.f32 -1.442695, %v2773_v57 }
 0x516   :  { %7507 = vpow2.f32 %v5980_v19  ;;  %v5981_v5 = vmul.f32 -1.442695, %v2760_v50  ;;  %v2815_v19 = vunpack.c.h.bf16 %v5987_v53 }
 0x517   :  { %v5983_v17 = vmul.f32 -1.442695, %v2774_v14 }
 0x518   :  { %7509 = vpow2.f32 %v5981_v5 }
 0x519   :  { %7511 = vpow2.f32 %v5982_v52 }
 0x51a   :  { %7513 = vpow2.f32 %v5983_v17 }
 0x520   :  { %v7508_v49 = vpop.eup %7507 }
 0x521   :  { %v2767_v13 = vadd.f32 1.0, %v7508_v49 }
 0x522   :  { %v7510_v7 = vpop.eup %7509 }
 0x523   :  { %7515 = vrcp.f32 %v2767_v13  ;;  %v2768_v16 = vadd.f32 1.0, %v7510_v7  ;;  %v7512_v36 = vpop.eup %7511 }
 0x524   :  { %v7514_v38 = vpop.eup %7513  ;;  %v2781_v29 = vadd.f32 1.0, %v7512_v36 }
 0x525   :  { %7517 = vrcp.f32 %v2768_v16  ;;  %v2782_v60 = vadd.f32 1.0, %v7514_v38 }
 0x526   :  { %7519 = vrcp.f32 %v2781_v29 }
 0x527   :  { %7521 = vrcp.f32 %v2782_v60 }
 0x52d   :  { %v7516_v9 = vpop.eup %7515 }
 0x52e   :  { %v2789_v61 = vmul.f32 %v7516_v9, %v2787_v35 }
 0x52f   :  { %v7518_v25 = vpop.eup %7517 }
 0x530   :  { %v2791_v34 = vadd.f32 %v2789_v61, %v2511_v59  ;;  %v2790_v12 = vmul.f32 %v7518_v25, %v2788_v0  ;;  %v7520_v52 = vpop.eup %7519  ;;  %v7195_v61 = vld [vmem:[%s9817_s2 + $0xc8] ss:$12 sps:$4 sm:$0xff]  }
 0x531   :  { %v3011_v44 = vpop.f32.mrb[36].mxu0  ;;  %v9016_v45 = vpop.f32.mrb[36].mxu1  ;;  %v2795_v7 = vsub.f32 1.0, %v7520_v52  ;;  %v2799_v22 = vmul.f32 %v7520_v52, %v8790_v62  ;;  %v7210_v52 = vld [vmem:[%s9817_s2 + $0x20] ss:$12 sps:$4 sm:$0xff]  }
 0x532   :  { %7523 = vtanh.f32 %v2791_v34  ;;  %v2792_v54 = vadd.f32 %v2790_v12, %v2514_v46  ;;  %v3061_v8 = vadd.f32 %v3011_v44, %v2811_v10  ;;  %v3013_v11 = vpop.f32.mrb[37].mxu0  ;;  %v6797_v21 = vpop.f32.mrb[37].mxu1 }
 0x533   :  { %v3015_v20 = vpop.f32.mrb[38].mxu0  ;;  %v3057_v51 = vpop.f32.mrb[38].mxu1  ;;  %v3075_v57 = vadd.f32 %v3013_v11, %v2812_v47 }
 0x534   :  { %7525 = vtanh.f32 %v2792_v54  ;;  %v6045_v48 = vmul.f32 -1.442695, %v3061_v8  ;;  %v3062_v50 = vadd.f32 %v3015_v20, %v2814_v40  ;;  %v3017_v63 = vpop.f32.mrb[39].mxu0  ;;  %v6798_v55 = vpop.f32.mrb[39].mxu1  ;;  %v3089_v40 = vadd.f32 %v8853_v30, %v9016_v45 }
 0x535   :  { %v3076_v14 = vadd.f32 %v3017_v63, %v2815_v19  ;;  %v6047_v17 = vmul.f32 -1.442695, %v3075_v57  ;;  %v7522_v49 = vpop.eup %7521 }
 0x536   :  { %7527 = vpow2.f32 %v6045_v48  ;;  %v6046_v5 = vmul.f32 -1.442695, %v3062_v50  ;;  %v2796_v36 = vsub.f32 1.0, %v7522_v49  ;;  %v2800_v59 = vmul.f32 %v7522_v49, %v8792_v42  ;;  %v7196_v42 = vld [vmem:[%s9817_s2 + $0xe0] ss:$12 sps:$4 sm:$0xff]  }
 0x537   :  { %v6048_v13 = vmul.f32 -1.442695, %v3076_v14  ;;  %v9123_v14 = vld [vmem:[%s9817_s2 + $0x18] ss:$12 sps:$4 sm:$0xff]   ;;  %v9139_v49 = vld [vmem:[%s9817_s2 + $0x30] ss:$12 sps:$4 sm:$0xff]  }
 0x538   :  { %7529 = vpow2.f32 %v6046_v5 }
 0x539   :  { %7531 = vpow2.f32 %v6047_v17  ;;  %v9133_v17 = vld [vmem:[%s9817_s2 + $0x34] ss:$12 sps:$4 sm:$0xff]  }
 0x53a   :  { %7533 = vpow2.f32 %v6048_v13  ;;  %v7214_v13 = vld [vmem:[%s9817_s2 + $0x38] ss:$12 sps:$4 sm:$0xff]  }
 0x53c   :  { %v7524_v16 = vpop.eup %7523 }
 0x53d   :  { %v2797_v38 = vmul.f32 %v7524_v16, %v2795_v7  ;;  %v9149_v7 = vld [vmem:[%s9817_s2 + $0x4c] ss:$12 sps:$4 sm:$0xff]   ;;  %v9155_v16 = vld [vmem:[%s9817_s2 + $0x48] ss:$12 sps:$4 sm:$0xff]  }
 0x53e   :  { %v7526_v29 = vpop.eup %7525 }
 0x53f   :  { %v2798_v32 = vmul.f32 %v7526_v29, %v2796_v36  ;;  %v9020_v35 = vadd.f32 %v2799_v22, %v2797_v38  ;;  %v7218_v36 = vld [vmem:[%s9817_s2 + $0x50] ss:$12 sps:$4 sm:$0xff]   ;;  %v9171_v22 = vld [vmem:[%s9817_s2 + $0x60] ss:$12 sps:$4 sm:$0xff]   ;;  %v7222_v29 = vld [vmem:[%s9817_s2 + $0x68] ss:$12 sps:$4 sm:$0xff]  }
 0x540   :  { %v7528_v60 = vpop.eup %7527  ;;  %v9165_v38 = vld [vmem:[%s9817_s2 + $0x64] ss:$12 sps:$4 sm:$0xff]  }
 0x541   :  { %v3069_v9 = vadd.f32 1.0, %v7528_v60  ;;  %v9022_v46 = vadd.f32 %v2800_v59, %v2798_v32  ;;  %v9181_v32 = vld [vmem:[%s9817_s2 + $0x7c] ss:$12 sps:$4 sm:$0xff]   ;;  %v9187_v59 = vld [vmem:[%s9817_s2 + $0x78] ss:$12 sps:$4 sm:$0xff]  }
 0x542   :  { %v7530_v53 = vpop.eup %7529  ;;  %v7226_v60 = vld [vmem:[%s9817_s2 + $0x80] ss:$12 sps:$4 sm:$0xff]  }
 0x543   :  { %7535 = vrcp.f32 %v3069_v9  ;;  %v3070_v0 = vadd.f32 1.0, %v7530_v53  ;;  %v2803_v62 = vpack.c.bf16 %v9022_v46, %v9020_v35  ;;  %v7532_v10 = vpop.eup %7531  ;;  %v9197_v9 = vld [vmem:[%s9817_s2 + $0x94] ss:$12 sps:$4 sm:$0xff]   ;;  %v9203_v53 = vld [vmem:[%s9817_s2 + $0x90] ss:$12 sps:$4 sm:$0xff]  }
 0x544   :  { %v7534_v25 = vpop.eup %7533  ;;  %v3083_v34 = vadd.f32 1.0, %v7532_v10  ;;  %v9229_v10 = vld [vmem:[%s9817_s2 + $0xc4] ss:$12 sps:$4 sm:$0xff]  }
 0x545   :  { %7537 = vrcp.f32 %v3070_v0  ;;  %5984 = vst [vmem:[%s9821_s4 + $0x20] sm:$0xff] %v2803_v62  ;;  %3312 = vmatmul.mubr.bf16.vlgmr.msra.gmra.mrb[40].mxu0 %v2803_v62  ;;  %6816 = vmatmul.mubr.bf16.vlgmr.msra.gmra.mrb[40].mxu1 %v2803_v62  ;;  %v3084_v44 = vadd.f32 1.0, %v7534_v25  ;;  %v9213_v0 = vld [vmem:[%s9817_s2 + $0xac] ss:$12 sps:$4 sm:$0xff]   ;;  %v9219_v62 = vld [vmem:[%s9817_s2 + $0xa8] ss:$12 sps:$4 sm:$0xff]  }
 0x546   :  { %3582 = vmatpush1.bf16.msra.mxu0 %v8797_v4  ;;  %6820 = vmatpush3.bf16.msra.mxu1 %v7195_v61  ;;  %v5986_v4 = vld [vmem:[%s9820_s1 + $0x68] ss:$12 sps:$4 sm:$0xff]   ;;  %7539 = vrcp.f32 %v3083_v34  ;;  %v7230_v61 = vld [vmem:[%s9817_s2 + $0x98] ss:$12 sps:$4 sm:$0xff]  }
 0x547   :  { %3583 = vmatprep.subr.bf16.mxu0 %v8807_v31  ;;  %6821 = vmatprep.subr.bf16.mxu1 %v7726_v1  ;;  %v7197_v31 = vld [vmem:[%s9817_s2 + $0xf8] ss:$12 sps:$4 sm:$0xff]   ;;  %v2813_v12 = vunpack.c.l.bf16 %v5986_v4  ;;  %v2816_v8 = vunpack.c.h.bf16 %v5986_v4  ;;  %7541 = vrcp.f32 %v3084_v44 }
 0x548   :  { %3613 = vmatprep.mubr.bf16.mxu0 %v7727_v2  ;;  %6835 = vmatprep.mubr.msk.bf16.mxu1 %vm7728_vm0, %v7726_v1  ;;  %v6050_v25 = vld [vmem:[%s9818_s0 + $0x78] sm:$0xff]  ;;  %v6052_v4 = vld [vmem:[%s9818_s0 + $0x84] sm:$0xff] }
 0x549   :  { %v3113_v34 = vunpack.c.l.bf16 %v6050_v25  ;;  %v3114_v44 = vunpack.c.h.bf16 %v6050_v25 }
 0x54a   :  { %3584 = vmatpush1.bf16.msra.mxu0 %v8816_v15  ;;  %6822 = vmatpush3.bf16.msra.mxu1 %v7196_v42  ;;  %v3090_v15 = vadd.f32 %v8853_v30, %v3057_v51  ;;  %v7234_v42 = vld [vmem:[%s9817_s2 + $0xb0] ss:$12 sps:$4 sm:$0xff]  }
 0x54b   :  { %3585 = vmatprep.subr.bf16.mxu0 %v8826_v18  ;;  %6823 = vmatprep.subr.bf16.mxu1 %v7726_v1  ;;  %v7198_v18 = vld [vmem:[%s9817_s2 + $0x110] ss:$12 sps:$4 sm:$0xff]  }
 0x54d   :  { %v7536_v47 = vpop.eup %7535 }
 0x54e   :  { %v3091_v54 = vmul.f32 %v7536_v47, %v3089_v40  ;;  %3586 = vmatpush1.bf16.msra.mxu0 %v8838_v26  ;;  %6824 = vmatpush3.bf16.msra.mxu1 %v7197_v31  ;;  %v7199_v26 = vld [vmem:[%s9817_s2 + $0x128] ss:$12 sps:$4 sm:$0xff]   ;;  %v3116_v31 = vunpack.c.l.bf16 %v6052_v4 }
 0x54f   :  { %v7538_v11 = vpop.eup %7537  ;;  %3587 = vmatprep.subr.bf16.mxu0 %v8848_v39  ;;  %6825 = vmatprep.subr.bf16.mxu1 %v7726_v1  ;;  %v7200_v39 = vld [vmem:[%s9817_s2 + $0x140] ss:$12 sps:$4 sm:$0xff]  }
 0x550   :  { %v3093_v45 = vadd.f32 %v3091_v54, %v2813_v12  ;;  %v3092_v21 = vmul.f32 %v7538_v11, %v3090_v15  ;;  %v3117_v11 = vunpack.c.h.bf16 %v6052_v4 }
 0x552   :  { %7543 = vtanh.f32 %v3093_v45  ;;  %v3094_v20 = vadd.f32 %v3092_v21, %v2816_v8  ;;  %3588 = vmatpush1.bf16.msra.mxu0 %v8863_v58  ;;  %6826 = vmatpush3.bf16.msra.mxu1 %v7198_v18  ;;  %v7540_v58 = vpop.eup %7539 }
 0x553   :  { %3589 = vmatprep.subr.bf16.mxu0 %v8873_v41  ;;  %6827 = vmatprep.subr.bf16.mxu1 %v7726_v1  ;;  %v7542_v51 = vpop.eup %7541  ;;  %v7201_v41 = vld [vmem:[%s9817_s2 + $0x158] ss:$12 sps:$4 sm:$0xff]  }
 0x554   :  { %7545 = vtanh.f32 %v3094_v20  ;;  %v3098_v48 = vsub.f32 1.0, %v7542_v51  ;;  %v3102_v55 = vmul.f32 %v7542_v51, %v8938_v33  ;;  %v9117_v33 = vld [vmem:[%s9817_s2 + $0x1c] ss:$12 sps:$4 sm:$0xff]  }
 0x556   :  { %3590 = vmatpush1.bf16.msra.mxu0 %v8879_v43  ;;  %6828 = vmatpush3.bf16.msra.mxu1 %v7199_v26  ;;  %v3097_v43 = vsub.f32 1.0, %v7540_v58 }
 0x557   :  { %3591 = vmatprep.subr.bf16.mxu0 %v8889_v24  ;;  %6829 = vmatprep.subr.bf16.mxu1 %v7726_v1  ;;  %v3101_v24 = vmul.f32 %v7540_v58, %v8936_v27  ;;  %v7206_v27 = vld [vmem:[%s9817_s2 + $0x8] ss:$12 sps:$4 sm:$0xff]  }
 0x55a   :  { %3592 = vmatpush1.bf16.msra.mxu0 %v8895_v6  ;;  %6830 = vmatpush3.bf16.msra.mxu1 %v7200_v39  ;;  %v7202_v6 = vld [vmem:[%s9817_s2 + $0x170] ss:$12 sps:$4 sm:$0xff]  }
 0x55b   :  { %3593 = vmatprep.subr.bf16.mxu0 %v8905_v56  ;;  %6831 = vmatprep.subr.bf16.mxu1 %v7726_v1 }
 0x55c   :  { %v7544_v19 = vpop.eup %7543 }
 0x55d   :  { %v3099_v50 = vmul.f32 %v7544_v19, %v3097_v43 }
 0x55e   :  { %v7546_v63 = vpop.eup %7545  ;;  %3594 = vmatpush1.bf16.msra.mxu0 %v8911_v37  ;;  %6832 = vmatpush3.bf16.msra.mxu1 %v7201_v41 }
 0x55f   :  { %3595 = vmatprep.subr.bf16.mxu0 %v8921_v3  ;;  %6833 = vmatprep.subr.bf16.mxu1 %v7726_v1  ;;  %v3100_v56 = vmul.f32 %v7546_v63, %v3098_v48  ;;  %v9085_v57 = vadd.f32 %v3101_v24, %v3099_v50  ;;  %v9102_v3 = vld [vmem:[%s9817_s2 + $0x4] ss:$12 sps:$4 sm:$0xff]  }
 0x561   :  { %v9087_v5 = vadd.f32 %v3102_v55, %v3100_v56  ;;  %v6051_v56 = vld [vmem:[%s9818_s0 + $0x80] ss:$12 sps:$4 sm:$0xff]  }
 0x562   :  { %3596 = vmatpush1.bf16.msra.mxu0 %v8928_v23  ;;  %6834 = vmatpush3.bf16.msra.mxu1 %v7202_v6  ;;  %v9107_v23 = vld [vmem:[%s9817_s2] ss:$12 sps:$4 sm:$0xff]  }
 0x563   :  { %v3105_v37 = vpack.c.bf16 %v9087_v5, %v9085_v57  ;;  %6839 = vmatprep.subr.bf16.mxu1 %v7726_v1  ;;  %3883 = vmatprep.subr.bf16.mxu0 %v9102_v3 }
 0x565   :  { %6049 = vst [vmem:[%s9822_s5 + $0x20] sm:$0xff] %v3105_v37  ;;  %3614 = vmatmul.mubr.bf16.vlgmr.msra.gmra.mrb[44].mxu0 %v3105_v37  ;;  %6836 = vmatmul.mubr.bf16.vlgmr.msra.gmra.mrb[44].mxu1 %v3105_v37  ;;  %v6083_v37 = vld [vmem:[%s9820_s1 + $0x48] sm:$0xff] }
 0x566   :  { %3915 = vmatprep.mubr.bf16.mxu0 %v7727_v2  ;;  %6855 = vmatprep.mubr.msk.bf16.mxu1 %vm7728_vm0, %v7726_v1  ;;  %v3415_v25 = vunpack.c.l.bf16 %v6083_v37 }
 0x567   :  { %3884 = vmatpush1.bf16.msra.mxu0 %v9107_v23  ;;  %6840 = vmatpush3.bf16.msra.mxu1 %v7206_v27  ;;  %v3115_v27 = vunpack.c.l.bf16 %v6051_v56 }
 0x568   :  { %6841 = vmatprep.subr.bf16.mxu1 %v7726_v1  ;;  %3885 = vmatprep.subr.bf16.mxu0 %v9117_v33 }
 0x56b   :  { %3886 = vmatpush1.bf16.msra.mxu0 %v9123_v14  ;;  %6842 = vmatpush3.bf16.msra.mxu1 %v7210_v52 }
 0x56c   :  { %6843 = vmatprep.subr.bf16.mxu1 %v7726_v1  ;;  %3887 = vmatprep.subr.bf16.mxu0 %v9133_v17 }
 0x56f   :  { %3888 = vmatpush1.bf16.msra.mxu0 %v9139_v49  ;;  %6844 = vmatpush3.bf16.msra.mxu1 %v7214_v13 }
 0x570   :  { %6845 = vmatprep.subr.bf16.mxu1 %v7726_v1  ;;  %3889 = vmatprep.subr.bf16.mxu0 %v9149_v7 }
 0x573   :  { %3890 = vmatpush1.bf16.msra.mxu0 %v9155_v16  ;;  %6846 = vmatpush3.bf16.msra.mxu1 %v7218_v36 }
 0x574   :  { %6847 = vmatprep.subr.bf16.mxu1 %v7726_v1  ;;  %3891 = vmatprep.subr.bf16.mxu0 %v9165_v38 }
 0x577   :  { %3892 = vmatpush1.bf16.msra.mxu0 %v9171_v22  ;;  %6848 = vmatpush3.bf16.msra.mxu1 %v7222_v29  ;;  %v3118_v29 = vunpack.c.h.bf16 %v6051_v56 }
 0x578   :  { %6849 = vmatprep.subr.bf16.mxu1 %v7726_v1  ;;  %3893 = vmatprep.subr.bf16.mxu0 %v9181_v32 }
 0x57b   :  { %3894 = vmatpush1.bf16.msra.mxu0 %v9187_v59  ;;  %6850 = vmatpush3.bf16.msra.mxu1 %v7226_v60  ;;  %v6085_v60 = vld [vmem:[%s9820_s1 + $0x54] sm:$0xff] }
 0x57c   :  { %6851 = vmatprep.subr.bf16.mxu1 %v7726_v1  ;;  %3895 = vmatprep.subr.bf16.mxu0 %v9197_v9 }
 0x57f   :  { %3896 = vmatpush1.bf16.msra.mxu0 %v9203_v53  ;;  %6852 = vmatpush3.bf16.msra.mxu1 %v7230_v61 }
 0x580   :  { %6853 = vmatprep.subr.bf16.mxu1 %v7726_v1  ;;  %3897 = vmatprep.subr.bf16.mxu0 %v9213_v0 }
 0x583   :  { %3898 = vmatpush1.bf16.msra.mxu0 %v9219_v62  ;;  %6854 = vmatpush3.bf16.msra.mxu1 %v7234_v42 }
 0x584   :  { %6859 = vmatprep.subr.bf16.mxu1 %v7726_v1  ;;  %4185 = vmatprep.subr.bf16.mxu0 %v9229_v10 }
 0x618   :  { %v3313_v12 = vpop.f32.mrb[40].mxu0  ;;  %v3356_v40 = vpop.f32.mrb[40].mxu1 }
 0x619   :  { %v3363_v47 = vadd.f32 %v3313_v12, %v3113_v34  ;;  %v3315_v54 = vpop.f32.mrb[41].mxu0  ;;  %v6817_v8 = vpop.f32.mrb[41].mxu1  ;;  %v3391_v52 = vadd.f32 %v8777_v28, %v3356_v40  ;;  %v3418_v12 = vunpack.c.l.bf16 %v6085_v60  ;;  %v3416_v40 = vunpack.c.h.bf16 %v6083_v37 }
 0x61a   :  { %v3317_v15 = vpop.f32.mrb[42].mxu0  ;;  %v3359_v18 = vpop.f32.mrb[42].mxu1  ;;  %v3377_v39 = vadd.f32 %v3315_v54, %v3114_v44 }
 0x61b   :  { %v6078_v45 = vmul.f32 -1.442695, %v3363_v47  ;;  %v3364_v21 = vadd.f32 %v3317_v15, %v3116_v31  ;;  %v3319_v20 = vpop.f32.mrb[43].mxu0  ;;  %v6818_v26 = vpop.f32.mrb[43].mxu1  ;;  %v3392_v42 = vadd.f32 %v8777_v28, %v3359_v18 }
 0x61c   :  { %v3378_v51 = vadd.f32 %v3319_v20, %v3117_v11  ;;  %v6080_v41 = vmul.f32 -1.442695, %v3377_v39  ;;  %v3419_v20 = vunpack.c.h.bf16 %v6085_v60 }
 0x61d   :  { %7547 = vpow2.f32 %v6078_v45  ;;  %v6079_v58 = vmul.f32 -1.442695, %v3364_v21 }
 0x61e   :  { %v6081_v43 = vmul.f32 -1.442695, %v3378_v51 }
 0x61f   :  { %7549 = vpow2.f32 %v6079_v58 }
 0x620   :  { %7551 = vpow2.f32 %v6080_v41 }
 0x621   :  { %7553 = vpow2.f32 %v6081_v43 }
 0x627   :  { %v7548_v19 = vpop.eup %7547 }
 0x628   :  { %v3371_v48 = vadd.f32 1.0, %v7548_v19 }
 0x629   :  { %v7550_v50 = vpop.eup %7549 }
 0x62a   :  { %7555 = vrcp.f32 %v3371_v48  ;;  %v3372_v24 = vadd.f32 1.0, %v7550_v50  ;;  %v7552_v63 = vpop.eup %7551 }
 0x62b   :  { %v7554_v6 = vpop.eup %7553  ;;  %v3385_v55 = vadd.f32 1.0, %v7552_v63 }
 0x62c   :  { %7557 = vrcp.f32 %v3372_v24  ;;  %v3386_v13 = vadd.f32 1.0, %v7554_v6 }
 0x62d   :  { %7559 = vrcp.f32 %v3385_v55 }
 0x62e   :  { %7561 = vrcp.f32 %v3386_v13 }
 0x634   :  { %v7556_v36 = vpop.eup %7555 }
 0x635   :  { %v3393_v61 = vmul.f32 %v7556_v36, %v3391_v52 }
 0x636   :  { %v7558_v4 = vpop.eup %7557 }
 0x637   :  { %v3395_v34 = vadd.f32 %v3393_v61, %v3115_v27  ;;  %v3394_v31 = vmul.f32 %v7558_v4, %v3392_v42  ;;  %v7560_v43 = vpop.eup %7559  ;;  %v9263_v42 = vld [vmem:[%s9817_s2 + $0xc0] ss:$12 sps:$4 sm:$0xff]   ;;  %v9273_v4 = vld [vmem:[%s9817_s2 + $0xdc] ss:$12 sps:$4 sm:$0xff]  }
 0x638   :  { %v3615_v44 = vpop.f32.mrb[44].mxu0  ;;  %v9250_v47 = vpop.f32.mrb[44].mxu1  ;;  %v3399_v24 = vsub.f32 1.0, %v7560_v43  ;;  %v3403_v55 = vmul.f32 %v7560_v43, %v9020_v35  ;;  %v7238_v35 = vld [vmem:[%s9817_s2 + $0xc8] ss:$12 sps:$4 sm:$0xff]  }
 0x639   :  { %7563 = vtanh.f32 %v3395_v34  ;;  %v3396_v54 = vadd.f32 %v3394_v31, %v3118_v29  ;;  %v3665_v8 = vadd.f32 %v3615_v44, %v3415_v25  ;;  %v3617_v15 = vpop.f32.mrb[45].mxu0  ;;  %v6837_v11 = vpop.f32.mrb[45].mxu1  ;;  %v9282_v34 = vld [vmem:[%s9817_s2 + $0xd8] ss:$12 sps:$4 sm:$0xff]   ;;  %v7242_v31 = vld [vmem:[%s9817_s2 + $0xe0] ss:$12 sps:$4 sm:$0xff]  }
 0x63a   :  { %v3619_v45 = vpop.f32.mrb[46].mxu0  ;;  %v9252_v21 = vpop.f32.mrb[46].mxu1  ;;  %v3679_v58 = vadd.f32 %v3617_v15, %v3416_v40  ;;  %v9292_v44 = vld [vmem:[%s9817_s2 + $0xf4] ss:$12 sps:$4 sm:$0xff]   ;;  %v9304_v15 = vld [vmem:[%s9817_s2 + $0xf0] ss:$12 sps:$4 sm:$0xff]  }
 0x63b   :  { %7565 = vtanh.f32 %v3396_v54  ;;  %v6143_v28 = vmul.f32 -1.442695, %v3665_v8  ;;  %v3666_v18 = vadd.f32 %v3619_v45, %v3418_v12  ;;  %v3621_v26 = vpop.f32.mrb[47].mxu0  ;;  %v6838_v39 = vpop.f32.mrb[47].mxu1  ;;  %v6084_v54 = vld [vmem:[%s9820_s1 + $0x50] ss:$12 sps:$4 sm:$0xff]  }
 0x63c   :  { %v3680_v41 = vadd.f32 %v3621_v26, %v3419_v20  ;;  %v6145_v19 = vmul.f32 -1.442695, %v3679_v58  ;;  %v7562_v48 = vpop.eup %7561  ;;  %v7246_v11 = vld [vmem:[%s9817_s2 + $0xf8] ss:$12 sps:$4 sm:$0xff]   ;;  %v3417_v20 = vunpack.c.l.bf16 %v6084_v54  ;;  %v3420_v58 = vunpack.c.h.bf16 %v6084_v54  ;;  %v7266_v54 = vld [vmem:[%s9817_s2 + $0x170] ss:$12 sps:$4 sm:$0xff]  }
 0x63d   :  { %7567 = vpow2.f32 %v6143_v28  ;;  %v6144_v51 = vmul.f32 -1.442695, %v3666_v18  ;;  %v3400_v6 = vsub.f32 1.0, %v7562_v48  ;;  %v3404_v52 = vmul.f32 %v7562_v48, %v9022_v46  ;;  %v9314_v45 = vld [vmem:[%s9817_s2 + $0x10c] ss:$12 sps:$4 sm:$0xff]  }
 0x63e   :  { %v6146_v50 = vmul.f32 -1.442695, %v3680_v41  ;;  %v3693_v28 = vadd.f32 %v8853_v30, %v9250_v47  ;;  %v9324_v41 = vld [vmem:[%s9817_s2 + $0x108] ss:$12 sps:$4 sm:$0xff]   ;;  %v7250_v47 = vld [vmem:[%s9817_s2 + $0x110] ss:$12 sps:$4 sm:$0xff]  }
 0x63f   :  { %7569 = vpow2.f32 %v6144_v51  ;;  %v3694_v51 = vadd.f32 %v8853_v30, %v9252_v21  ;;  %v9334_v30 = vld [vmem:[%s9817_s2 + $0x124] ss:$12 sps:$4 sm:$0xff]  }
 0x640   :  { %7571 = vpow2.f32 %v6145_v19 }
 0x641   :  { %7573 = vpow2.f32 %v6146_v50  ;;  %v9340_v50 = vld [vmem:[%s9817_s2 + $0x120] ss:$12 sps:$4 sm:$0xff]  }
 0x643   :  { %v7564_v63 = vpop.eup %7563 }
 0x644   :  { %v3401_v56 = vmul.f32 %v7564_v63, %v3399_v24  ;;  %v7254_v24 = vld [vmem:[%s9817_s2 + $0x128] ss:$12 sps:$4 sm:$0xff]  }
 0x645   :  { %v7566_v37 = vpop.eup %7565  ;;  %v9350_v63 = vld [vmem:[%s9817_s2 + $0x13c] ss:$12 sps:$4 sm:$0xff]  }
 0x646   :  { %v3402_v27 = vmul.f32 %v7566_v37, %v3400_v6  ;;  %v9256_v13 = vadd.f32 %v3403_v55, %v3401_v56  ;;  %v9356_v6 = vld [vmem:[%s9817_s2 + $0x138] ss:$12 sps:$4 sm:$0xff]   ;;  %v7258_v56 = vld [vmem:[%s9817_s2 + $0x140] ss:$12 sps:$4 sm:$0xff]  }
 0x647   :  { %v7568_v36 = vpop.eup %7567  ;;  %v9366_v55 = vld [vmem:[%s9817_s2 + $0x154] ss:$12 sps:$4 sm:$0xff]  }
 0x648   :  { %v3673_v29 = vadd.f32 1.0, %v7568_v36  ;;  %v9258_v60 = vadd.f32 %v3404_v52, %v3402_v27  ;;  %v9372_v52 = vld [vmem:[%s9817_s2 + $0x150] ss:$12 sps:$4 sm:$0xff]   ;;  %v7262_v36 = vld [vmem:[%s9817_s2 + $0x158] ss:$12 sps:$4 sm:$0xff]  }
 0x649   :  { %v7570_v61 = vpop.eup %7569 }
 0x64a   :  { %7575 = vrcp.f32 %v3673_v29  ;;  %v3674_v25 = vadd.f32 1.0, %v7570_v61  ;;  %v3407_v46 = vpack.c.bf16 %v9258_v60, %v9256_v13  ;;  %v7572_v12 = vpop.eup %7571  ;;  %v9382_v29 = vld [vmem:[%s9817_s2 + $0x16c] ss:$12 sps:$4 sm:$0xff]  }
 0x64b   :  { %v7574_v40 = vpop.eup %7573  ;;  %v3687_v8 = vadd.f32 1.0, %v7572_v12 }
 0x64c   :  { %7577 = vrcp.f32 %v3674_v25  ;;  %6082 = vst [vmem:[%s9821_s4 + $0x28] sm:$0xff] %v3407_v46  ;;  %3916 = vmatmul.mubr.bf16.vlgmr.msra.gmra.mrb[48].mxu0 %v3407_v46  ;;  %6856 = vmatmul.mubr.bf16.vlgmr.msra.gmra.mrb[48].mxu1 %v3407_v46  ;;  %v3688_v18 = vadd.f32 1.0, %v7574_v40  ;;  %v9389_v40 = vld [vmem:[%s9817_s2 + $0x168] ss:$12 sps:$4 sm:$0xff]  }
 0x64d   :  { %4186 = vmatpush1.bf16.msra.mxu0 %v9263_v42  ;;  %6860 = vmatpush3.bf16.msra.mxu1 %v7238_v35  ;;  %7579 = vrcp.f32 %v3687_v8 }
 0x64e   :  { %4187 = vmatprep.subr.bf16.mxu0 %v9273_v4  ;;  %6861 = vmatprep.subr.bf16.mxu1 %v7726_v1  ;;  %7581 = vrcp.f32 %v3688_v18 }
 0x64f   :  { %4217 = vmatprep.mubr.bf16.mxu0 %v7727_v2  ;;  %6875 = vmatprep.mubr.msk.bf16.mxu1 %vm7728_vm0, %v7726_v1 }
 0x651   :  { %4188 = vmatpush1.bf16.msra.mxu0 %v9282_v34  ;;  %6862 = vmatpush3.bf16.msra.mxu1 %v7242_v31 }
 0x652   :  { %4189 = vmatprep.subr.bf16.mxu0 %v9292_v44  ;;  %6863 = vmatprep.subr.bf16.mxu1 %v7726_v1 }
 0x654   :  { %v7576_v26 = vpop.eup %7575 }
 0x655   :  { %v3695_v39 = vmul.f32 %v7576_v26, %v3693_v28  ;;  %4190 = vmatpush1.bf16.msra.mxu0 %v9304_v15  ;;  %6864 = vmatpush3.bf16.msra.mxu1 %v7246_v11 }
 0x656   :  { %v7578_v43 = vpop.eup %7577  ;;  %4191 = vmatprep.subr.bf16.mxu0 %v9314_v45  ;;  %6865 = vmatprep.subr.bf16.mxu1 %v7726_v1 }
 0x657   :  { %v3697_v21 = vadd.f32 %v3695_v39, %v3417_v20  ;;  %v3696_v19 = vmul.f32 %v7578_v43, %v3694_v51  ;;  %v7580_v37 = vpop.eup %7579 }
 0x658   :  { %v7582_v27 = vpop.eup %7581  ;;  %v3701_v61 = vsub.f32 1.0, %v7580_v37  ;;  %v3705_v31 = vmul.f32 %v7580_v37, %v9085_v57 }
 0x659   :  { %7583 = vtanh.f32 %v3697_v21  ;;  %v3698_v48 = vadd.f32 %v3696_v19, %v3420_v58  ;;  %4192 = vmatpush1.bf16.msra.mxu0 %v9324_v41  ;;  %6866 = vmatpush3.bf16.msra.mxu1 %v7250_v47  ;;  %v3702_v25 = vsub.f32 1.0, %v7582_v27  ;;  %v3706_v57 = vmul.f32 %v7582_v27, %v9087_v5  ;;  %v7267_v5 = vld [vmem:[%s9817_s2 + $0x8] ss:$12 sps:$4 sm:$0xff]  }
 0x65a   :  { %4193 = vmatprep.subr.bf16.mxu0 %v9334_v30  ;;  %6867 = vmatprep.subr.bf16.mxu1 %v7726_v1 }
 0x65b   :  { %7585 = vtanh.f32 %v3698_v48 }
 0x65d   :  { %4194 = vmatpush1.bf16.msra.mxu0 %v9340_v50  ;;  %6868 = vmatpush3.bf16.msra.mxu1 %v7254_v24 }
 0x65e   :  { %4195 = vmatprep.subr.bf16.mxu0 %v9350_v63  ;;  %6869 = vmatprep.subr.bf16.mxu1 %v7726_v1 }
 0x661   :  { %4196 = vmatpush1.bf16.msra.mxu0 %v9356_v6  ;;  %6870 = vmatpush3.bf16.msra.mxu1 %v7258_v56 }
 0x662   :  { %4197 = vmatprep.subr.bf16.mxu0 %v9366_v55  ;;  %6871 = vmatprep.subr.bf16.mxu1 %v7726_v1 }
 0x663   :  { %v7584_v35 = vpop.eup %7583 }
 0x664   :  { %v3703_v46 = vmul.f32 %v7584_v35, %v3701_v61 }
 0x665   :  { %v7586_v12 = vpop.eup %7585  ;;  %4198 = vmatpush1.bf16.msra.mxu0 %v9372_v52  ;;  %6872 = vmatpush3.bf16.msra.mxu1 %v7262_v36 }
 0x666   :  { %4199 = vmatprep.subr.bf16.mxu0 %v9382_v29  ;;  %6873 = vmatprep.subr.bf16.mxu1 %v7726_v1  ;;  %v3704_v8 = vmul.f32 %v7586_v12, %v3702_v25  ;;  %v9397_v11 = vadd.f32 %v3705_v31, %v3703_v46  ;;  %v6149_v46 = vld [vmem:[%s9818_s0 + $0x98] ss:$12 sps:$4 sm:$0xff]   ;;  %v6181_v12 = vld [vmem:[%s9820_s1 + $0x30] sm:$0xff] }
 0x668   :  { %v9399_v20 = vadd.f32 %v3706_v57, %v3704_v8  ;;  %v9475_v8 = vld [vmem:[%s9819_s3] ss:$0 sm:$0xff] }
 0x669   :  { %4200 = vmatpush1.bf16.msra.mxu0 %v9389_v40  ;;  %6874 = vmatpush3.bf16.msra.mxu1 %v7266_v54  ;;  %v3719_v54 = vunpack.c.l.bf16 %v6149_v46 }
 0x66a   :  { %v3709_v28 = vpack.c.bf16 %v9399_v20, %v9397_v11  ;;  %4487 = vmatprep.subr.bf16.mxu0 %v9102_v3  ;;  %6879 = vmatprep.subr.bf16.mxu1 %v7726_v1  ;;  %v7268_v3 = vld [vmem:[%s9817_s2 + $0x20] ss:$12 sps:$4 sm:$0xff]  }
 0x66c   :  { %6147 = vst [vmem:[%s9822_s5 + $0x18] sm:$0xff] %v3709_v28  ;;  %4218 = vmatmul.mubr.bf16.vlgmr.msra.gmra.mrb[52].mxu0 %v3709_v28  ;;  %6876 = vmatmul.mubr.bf16.vlgmr.msra.gmra.mrb[52].mxu1 %v3709_v28 }
 0x66d   :  { %4488 = vmatpush1.bf16.msra.mxu0 %v9107_v23  ;;  %4519 = vmatprep.mubr.bf16.mxu0 %v7727_v2  ;;  %v7269_v23 = vld [vmem:[%s9817_s2 + $0x38] ss:$12 sps:$4 sm:$0xff]  }
 0x66e   :  { %4489 = vmatprep.subr.bf16.mxu0 %v9117_v33  ;;  %6895 = vmatprep.mubr.msk.bf16.mxu1 %vm7728_vm0, %v7726_v1  ;;  %v7270_v33 = vld [vmem:[%s9817_s2 + $0x50] ss:$12 sps:$4 sm:$0xff]  }
 0x66f   :  { %6880 = vmatpush3.bf16.msra.mxu1 %v7267_v5 }
 0x670   :  { %6881 = vmatprep.subr.bf16.mxu1 %v7726_v1 }
 0x671   :  { %4490 = vmatpush1.bf16.msra.mxu0 %v9123_v14  ;;  %v7271_v14 = vld [vmem:[%s9817_s2 + $0x68] ss:$12 sps:$4 sm:$0xff]  }
 0x672   :  { %4491 = vmatprep.subr.bf16.mxu0 %v9133_v17  ;;  %v7272_v17 = vld [vmem:[%s9817_s2 + $0x80] ss:$12 sps:$4 sm:$0xff]  }
 0x673   :  { %6882 = vmatpush3.bf16.msra.mxu1 %v7268_v3  ;;  %v3722_v3 = vunpack.c.h.bf16 %v6149_v46 }
 0x674   :  { %6883 = vmatprep.subr.bf16.mxu1 %v7726_v1 }
 0x675   :  { %4492 = vmatpush1.bf16.msra.mxu0 %v9139_v49  ;;  %v7273_v49 = vld [vmem:[%s9817_s2 + $0x98] ss:$12 sps:$4 sm:$0xff]  }
 0x676   :  { %4493 = vmatprep.subr.bf16.mxu0 %v9149_v7  ;;  %v7274_v7 = vld [vmem:[%s9817_s2 + $0xb0] ss:$12 sps:$4 sm:$0xff]  }
 0x677   :  { %6884 = vmatpush3.bf16.msra.mxu1 %v7269_v23  ;;  %v6183_v23 = vld [vmem:[%s9820_s1 + $0x3c] sm:$0xff] }
 0x678   :  { %6885 = vmatprep.subr.bf16.mxu1 %v7726_v1 }
 0x679   :  { %4494 = vmatpush1.bf16.msra.mxu0 %v9155_v16  ;;  %v6148_v16 = vld [vmem:[%s9818_s0 + $0x90] sm:$0xff] }
 0x67a   :  { %4495 = vmatprep.subr.bf16.mxu0 %v9165_v38  ;;  %v6150_v38 = vld [vmem:[%s9818_s0 + $0x9c] sm:$0xff] }
 0x67b   :  { %6886 = vmatpush3.bf16.msra.mxu1 %v7270_v33  ;;  %v3721_v39 = vunpack.c.h.bf16 %v6150_v38 }
 0x67c   :  { %6887 = vmatprep.subr.bf16.mxu1 %v7726_v1 }
 0x67d   :  { %4496 = vmatpush1.bf16.msra.mxu0 %v9171_v22  ;;  %v3717_v22 = vunpack.c.l.bf16 %v6148_v16 }
 0x67e   :  { %4497 = vmatprep.subr.bf16.mxu0 %v9181_v32  ;;  %v3720_v32 = vunpack.c.l.bf16 %v6150_v38  ;;  %v4022_v38 = vunpack.c.l.bf16 %v6183_v23 }
 0x67f   :  { %6888 = vmatpush3.bf16.msra.mxu1 %v7271_v14 }
 0x680   :  { %6889 = vmatprep.subr.bf16.mxu1 %v7726_v1 }
 0x681   :  { %4498 = vmatpush1.bf16.msra.mxu0 %v9187_v59 }
 0x682   :  { %4499 = vmatprep.subr.bf16.mxu0 %v9197_v9 }
 0x683   :  { %6890 = vmatpush3.bf16.msra.mxu1 %v7272_v17  ;;  %v4019_v17 = vunpack.c.l.bf16 %v6181_v12 }
 0x684   :  { %6891 = vmatprep.subr.bf16.mxu1 %v7726_v1 }
 0x685   :  { %4500 = vmatpush1.bf16.msra.mxu0 %v9203_v53  ;;  %v3718_v53 = vunpack.c.h.bf16 %v6148_v16 }
 0x686   :  { %4501 = vmatprep.subr.bf16.mxu0 %v9213_v0 }
 0x687   :  { %6892 = vmatpush3.bf16.msra.mxu1 %v7273_v49 }
 0x688   :  { %6893 = vmatprep.subr.bf16.mxu1 %v7726_v1 }
 0x689   :  { %4502 = vmatpush1.bf16.msra.mxu0 %v9219_v62 }
 0x68a   :  { %4789 = vmatprep.subr.bf16.mxu0 %v9229_v10 }
 0x68b   :  { %6894 = vmatpush3.bf16.msra.mxu1 %v7274_v7 }
 0x68c   :  { %6899 = vmatprep.subr.bf16.mxu1 %v7726_v1 }
 0x71f   :  { %v3917_v59 = vpop.f32.mrb[48].mxu0  ;;  %v3960_v9 = vpop.f32.mrb[48].mxu1 }
 0x720   :  { %v3967_v0 = vadd.f32 %v3917_v59, %v3717_v22  ;;  %v3919_v62 = vpop.f32.mrb[49].mxu0  ;;  %v6857_v10 = vpop.f32.mrb[49].mxu1  ;;  %v3995_v57 = vadd.f32 %v9475_v8, %v3960_v9  ;;  %v4020_v59 = vunpack.c.h.bf16 %v6181_v12 }
 0x721   :  { %v3921_v18 = vpop.f32.mrb[50].mxu0  ;;  %v3963_v26 = vpop.f32.mrb[50].mxu1  ;;  %v3981_v21 = vadd.f32 %v3919_v62, %v3718_v53 }
 0x722   :  { %v6176_v58 = vmul.f32 -1.442695, %v3967_v0  ;;  %v3968_v51 = vadd.f32 %v3921_v18, %v3720_v32  ;;  %v3923_v47 = vpop.f32.mrb[51].mxu0  ;;  %v6858_v43 = vpop.f32.mrb[51].mxu1  ;;  %v3996_v14 = vadd.f32 %v9475_v8, %v3963_v26 }
 0x723   :  { %v3982_v48 = vadd.f32 %v3923_v47, %v3721_v39  ;;  %v6178_v24 = vmul.f32 -1.442695, %v3981_v21  ;;  %v4023_v39 = vunpack.c.h.bf16 %v6183_v23  ;;  %v7275_v23 = vld [vmem:[%s9817_s2 + $0xc8] ss:$12 sps:$4 sm:$0xff]  }
 0x724   :  { %7587 = vpow2.f32 %v6176_v58  ;;  %v6177_v19 = vmul.f32 -1.442695, %v3968_v51 }
 0x725   :  { %v6179_v56 = vmul.f32 -1.442695, %v3982_v48 }
 0x726   :  { %7589 = vpow2.f32 %v6177_v19 }
 0x727   :  { %7591 = vpow2.f32 %v6178_v24 }
 0x728   :  { %7593 = vpow2.f32 %v6179_v56 }
 0x72e   :  { %v7588_v37 = vpop.eup %7587 }
 0x72f   :  { %v3975_v27 = vadd.f32 1.0, %v7588_v37 }
 0x730   :  { %v7590_v36 = vpop.eup %7589 }
 0x731   :  { %7595 = vrcp.f32 %v3975_v27  ;;  %v3976_v61 = vadd.f32 1.0, %v7590_v36  ;;  %v7592_v35 = vpop.eup %7591 }
 0x732   :  { %v7594_v25 = vpop.eup %7593  ;;  %v3989_v31 = vadd.f32 1.0, %v7592_v35 }
 0x733   :  { %7597 = vrcp.f32 %v3976_v61  ;;  %v3990_v28 = vadd.f32 1.0, %v7594_v25 }
 0x734   :  { %7599 = vrcp.f32 %v3989_v31 }
 0x735   :  { %7601 = vrcp.f32 %v3990_v28 }
 0x73b   :  { %v7596_v5 = vpop.eup %7595 }
 0x73c   :  { %v3997_v33 = vmul.f32 %v7596_v5, %v3995_v57 }
 0x73d   :  { %v7598_v49 = vpop.eup %7597 }
 0x73e   :  { %v3999_v7 = vadd.f32 %v3997_v33, %v3719_v54  ;;  %v3998_v16 = vmul.f32 %v7598_v49, %v3996_v14  ;;  %v7600_v48 = vpop.eup %7599 }
 0x73f   :  { %v4219_v22 = vpop.f32.mrb[52].mxu0  ;;  %v9482_v32 = vpop.f32.mrb[52].mxu1  ;;  %v4003_v27 = vsub.f32 1.0, %v7600_v48  ;;  %v4007_v25 = vmul.f32 %v7600_v48, %v9256_v13  ;;  %v7290_v48 = vld [vmem:[%s9817_s2 + $0x20] ss:$12 sps:$4 sm:$0xff]  }
 0x740   :  { %7603 = vtanh.f32 %v3999_v7  ;;  %v4000_v9 = vadd.f32 %v3998_v16, %v3722_v3  ;;  %v4269_v53 = vadd.f32 %v4219_v22, %v4019_v17  ;;  %v4221_v0 = vpop.f32.mrb[53].mxu0  ;;  %v6877_v62 = vpop.f32.mrb[53].mxu1  ;;  %v9521_v16 = vld [vmem:[%s9819_s3 + $0x1] ss:$0 sm:$0xff] }
 0x741   :  { %v4223_v10 = vpop.f32.mrb[54].mxu0  ;;  %v9484_v18 = vpop.f32.mrb[54].mxu1  ;;  %v4283_v43 = vadd.f32 %v4221_v0, %v4020_v59 }
 0x742   :  { %7605 = vtanh.f32 %v4000_v9  ;;  %v6241_v26 = vmul.f32 -1.442695, %v4269_v53  ;;  %v4270_v58 = vadd.f32 %v4223_v10, %v4022_v38  ;;  %v4225_v51 = vpop.f32.mrb[55].mxu0  ;;  %v6878_v47 = vpop.f32.mrb[55].mxu1  ;;  %v4297_v38 = vadd.f32 %v9521_v16, %v9482_v32 }
 0x743   :  { %v4284_v19 = vadd.f32 %v4225_v51, %v4023_v39  ;;  %v6243_v24 = vmul.f32 -1.442695, %v4283_v43  ;;  %v7602_v56 = vpop.eup %7601  ;;  %v4298_v53 = vadd.f32 %v9521_v16, %v9484_v18 }
 0x744   :  { %7607 = vpow2.f32 %v6241_v26  ;;  %v6242_v21 = vmul.f32 -1.442695, %v4270_v58  ;;  %v4004_v61 = vsub.f32 1.0, %v7602_v56  ;;  %v4008_v12 = vmul.f32 %v7602_v56, %v9258_v60  ;;  %v7276_v60 = vld [vmem:[%s9817_s2 + $0xe0] ss:$12 sps:$4 sm:$0xff]  }
 0x745   :  { %v6244_v37 = vmul.f32 -1.442695, %v4284_v19  ;;  %v7287_v19 = vld [vmem:[%s9817_s2 + $0x18] ss:$12 sps:$4 sm:$0xff]   ;;  %v7291_v56 = vld [vmem:[%s9817_s2 + $0x30] ss:$12 sps:$4 sm:$0xff]  }
 0x746   :  { %7609 = vpow2.f32 %v6242_v21 }
 0x747   :  { %7611 = vpow2.f32 %v6243_v24  ;;  %v7293_v24 = vld [vmem:[%s9817_s2 + $0x34] ss:$12 sps:$4 sm:$0xff]  }
 0x748   :  { %7613 = vpow2.f32 %v6244_v37  ;;  %v7294_v37 = vld [vmem:[%s9817_s2 + $0x38] ss:$12 sps:$4 sm:$0xff]  }
 0x74a   :  { %v7604_v36 = vpop.eup %7603 }
 0x74b   :  { %v4005_v35 = vmul.f32 %v7604_v36, %v4003_v27  ;;  %v7297_v27 = vld [vmem:[%s9817_s2 + $0x4c] ss:$12 sps:$4 sm:$0xff]   ;;  %v7295_v36 = vld [vmem:[%s9817_s2 + $0x48] ss:$12 sps:$4 sm:$0xff]  }
 0x74c   :  { %v7606_v46 = vpop.eup %7605 }
 0x74d   :  { %v4006_v31 = vmul.f32 %v7606_v46, %v4004_v61  ;;  %v9488_v54 = vadd.f32 %v4007_v25, %v4005_v35  ;;  %v7298_v61 = vld [vmem:[%s9817_s2 + $0x50] ss:$12 sps:$4 sm:$0xff]   ;;  %v7299_v25 = vld [vmem:[%s9817_s2 + $0x60] ss:$12 sps:$4 sm:$0xff]   ;;  %v7302_v46 = vld [vmem:[%s9817_s2 + $0x68] ss:$12 sps:$4 sm:$0xff]  }
 0x74e   :  { %v7608_v57 = vpop.eup %7607  ;;  %v7301_v35 = vld [vmem:[%s9817_s2 + $0x64] ss:$12 sps:$4 sm:$0xff]  }
 0x74f   :  { %v4277_v28 = vadd.f32 1.0, %v7608_v57  ;;  %v9490_v5 = vadd.f32 %v4008_v12, %v4006_v31  ;;  %v7305_v31 = vld [vmem:[%s9817_s2 + $0x7c] ss:$12 sps:$4 sm:$0xff]   ;;  %v7303_v12 = vld [vmem:[%s9817_s2 + $0x78] ss:$12 sps:$4 sm:$0xff]  }
 0x750   :  { %v7610_v3 = vpop.eup %7609  ;;  %v7306_v57 = vld [vmem:[%s9817_s2 + $0x80] ss:$12 sps:$4 sm:$0xff]  }
 0x751   :  { %7615 = vrcp.f32 %v4277_v28  ;;  %v4278_v33 = vadd.f32 1.0, %v7610_v3  ;;  %v4011_v13 = vpack.c.bf16 %v9490_v5, %v9488_v54  ;;  %v7612_v14 = vpop.eup %7611  ;;  %v7309_v28 = vld [vmem:[%s9817_s2 + $0x94] ss:$12 sps:$4 sm:$0xff]   ;;  %v7307_v3 = vld [vmem:[%s9817_s2 + $0x90] ss:$12 sps:$4 sm:$0xff]  }
 0x752   :  { %v7614_v17 = vpop.eup %7613  ;;  %v4291_v49 = vadd.f32 1.0, %v7612_v14  ;;  %v7317_v14 = vld [vmem:[%s9817_s2 + $0xc4] ss:$12 sps:$4 sm:$0xff]  }
 0x753   :  { %7617 = vrcp.f32 %v4278_v33  ;;  %6180 = vst [vmem:[%s9821_s4 + $0x30] sm:$0xff] %v4011_v13  ;;  %4520 = vmatmul.mubr.bf16.vlgmr.msra.gmra.mrb[56].mxu0 %v4011_v13  ;;  %6896 = vmatmul.mubr.bf16.vlgmr.msra.gmra.mrb[56].mxu1 %v4011_v13  ;;  %v4292_v22 = vadd.f32 1.0, %v7614_v17  ;;  %v7313_v33 = vld [vmem:[%s9817_s2 + $0xac] ss:$12 sps:$4 sm:$0xff]   ;;  %v7311_v13 = vld [vmem:[%s9817_s2 + $0xa8] ss:$12 sps:$4 sm:$0xff]  }
 0x754   :  { %4790 = vmatpush1.bf16.msra.mxu0 %v9263_v42  ;;  %6900 = vmatpush3.bf16.msra.mxu1 %v7275_v23  ;;  %v6182_v42 = vld [vmem:[%s9820_s1 + $0x38] ss:$12 sps:$4 sm:$0xff]   ;;  %7619 = vrcp.f32 %v4291_v49  ;;  %v6246_v17 = vld [vmem:[%s9818_s0 + $0xa8] sm:$0xff] }
 0x755   :  { %4791 = vmatprep.subr.bf16.mxu0 %v9273_v4  ;;  %6901 = vmatprep.subr.bf16.mxu1 %v7726_v1  ;;  %v7277_v4 = vld [vmem:[%s9817_s2 + $0xf8] ss:$12 sps:$4 sm:$0xff]   ;;  %v4021_v7 = vunpack.c.l.bf16 %v6182_v42  ;;  %v4024_v9 = vunpack.c.h.bf16 %v6182_v42  ;;  %7621 = vrcp.f32 %v4292_v22  ;;  %v4321_v49 = vunpack.c.l.bf16 %v6246_v17 }
 0x756   :  { %4821 = vmatprep.mubr.bf16.mxu0 %v7727_v2  ;;  %6915 = vmatprep.mubr.msk.bf16.mxu1 %vm7728_vm0, %v7726_v1  ;;  %v7310_v23 = vld [vmem:[%s9817_s2 + $0x98] ss:$12 sps:$4 sm:$0xff]   ;;  %v4322_v22 = vunpack.c.h.bf16 %v6246_v17 }
 0x757   :  { %v6248_v42 = vld [vmem:[%s9818_s0 + $0xb4] sm:$0xff] }
 0x758   :  { %4792 = vmatpush1.bf16.msra.mxu0 %v9282_v34  ;;  %6902 = vmatpush3.bf16.msra.mxu1 %v7276_v60  ;;  %v7314_v60 = vld [vmem:[%s9817_s2 + $0xb0] ss:$12 sps:$4 sm:$0xff]  }
 0x759   :  { %4793 = vmatprep.subr.bf16.mxu0 %v9292_v44  ;;  %6903 = vmatprep.subr.bf16.mxu1 %v7726_v1  ;;  %v7278_v44 = vld [vmem:[%s9817_s2 + $0x110] ss:$12 sps:$4 sm:$0xff]  }
 0x75b   :  { %v7616_v34 = vpop.eup %7615 }
 0x75c   :  { %v4299_v59 = vmul.f32 %v7616_v34, %v4297_v38  ;;  %4794 = vmatpush1.bf16.msra.mxu0 %v9304_v15  ;;  %6904 = vmatpush3.bf16.msra.mxu1 %v7277_v4  ;;  %v7279_v15 = vld [vmem:[%s9817_s2 + $0x128] ss:$12 sps:$4 sm:$0xff]   ;;  %v4324_v4 = vunpack.c.l.bf16 %v6248_v42 }
 0x75d   :  { %v7618_v0 = vpop.eup %7617  ;;  %4795 = vmatprep.subr.bf16.mxu0 %v9314_v45  ;;  %6905 = vmatprep.subr.bf16.mxu1 %v7726_v1  ;;  %v7280_v45 = vld [vmem:[%s9817_s2 + $0x140] ss:$12 sps:$4 sm:$0xff]  }
 0x75e   :  { %v4301_v32 = vadd.f32 %v4299_v59, %v4021_v7  ;;  %v4300_v62 = vmul.f32 %v7618_v0, %v4298_v53  ;;  %v4325_v0 = vunpack.c.h.bf16 %v6248_v42 }
 0x760   :  { %7623 = vtanh.f32 %v4301_v32  ;;  %v4302_v10 = vadd.f32 %v4300_v62, %v4024_v9  ;;  %4796 = vmatpush1.bf16.msra.mxu0 %v9324_v41  ;;  %6906 = vmatpush3.bf16.msra.mxu1 %v7278_v44  ;;  %v7620_v41 = vpop.eup %7619 }
 0x761   :  { %4797 = vmatprep.subr.bf16.mxu0 %v9334_v30  ;;  %6907 = vmatprep.subr.bf16.mxu1 %v7726_v1  ;;  %v7622_v18 = vpop.eup %7621  ;;  %v7281_v30 = vld [vmem:[%s9817_s2 + $0x158] ss:$12 sps:$4 sm:$0xff]  }
 0x762   :  { %7625 = vtanh.f32 %v4302_v10  ;;  %v4306_v26 = vsub.f32 1.0, %v7622_v18  ;;  %v4310_v47 = vmul.f32 %v7622_v18, %v9399_v20  ;;  %v7289_v20 = vld [vmem:[%s9817_s2 + $0x1c] ss:$12 sps:$4 sm:$0xff]  }
 0x764   :  { %4798 = vmatpush1.bf16.msra.mxu0 %v9340_v50  ;;  %6908 = vmatpush3.bf16.msra.mxu1 %v7279_v15  ;;  %v4305_v50 = vsub.f32 1.0, %v7620_v41 }
 0x765   :  { %4799 = vmatprep.subr.bf16.mxu0 %v9350_v63  ;;  %6909 = vmatprep.subr.bf16.mxu1 %v7726_v1  ;;  %v4309_v63 = vmul.f32 %v7620_v41, %v9397_v11  ;;  %v7286_v11 = vld [vmem:[%s9817_s2 + $0x8] ss:$12 sps:$4 sm:$0xff]  }
 0x768   :  { %4800 = vmatpush1.bf16.msra.mxu0 %v9356_v6  ;;  %6910 = vmatpush3.bf16.msra.mxu1 %v7280_v45  ;;  %v7282_v6 = vld [vmem:[%s9817_s2 + $0x170] ss:$12 sps:$4 sm:$0xff]  }
 0x769   :  { %4801 = vmatprep.subr.bf16.mxu0 %v9366_v55  ;;  %6911 = vmatprep.subr.bf16.mxu1 %v7726_v1 }
 0x76a   :  { %v7624_v39 = vpop.eup %7623 }
 0x76b   :  { %v4307_v58 = vmul.f32 %v7624_v39, %v4305_v50 }
 0x76c   :  { %v7626_v51 = vpop.eup %7625  ;;  %4802 = vmatpush1.bf16.msra.mxu0 %v9372_v52  ;;  %6912 = vmatpush3.bf16.msra.mxu1 %v7281_v30 }
 0x76d   :  { %4803 = vmatprep.subr.bf16.mxu0 %v9382_v29  ;;  %6913 = vmatprep.subr.bf16.mxu1 %v7726_v1  ;;  %v4308_v55 = vmul.f32 %v7626_v51, %v4306_v26  ;;  %v9559_v43 = vadd.f32 %v4309_v63, %v4307_v58  ;;  %v7285_v29 = vld [vmem:[%s9817_s2 + $0x4] ss:$12 sps:$4 sm:$0xff]  }
 0x76f   :  { %v9561_v21 = vadd.f32 %v4310_v47, %v4308_v55  ;;  %v6247_v55 = vld [vmem:[%s9818_s0 + $0xb0] ss:$12 sps:$4 sm:$0xff]  }
 0x770   :  { %4804 = vmatpush1.bf16.msra.mxu0 %v9389_v40  ;;  %6914 = vmatpush3.bf16.msra.mxu1 %v7282_v6  ;;  %v7283_v40 = vld [vmem:[%s9817_s2] ss:$12 sps:$4 sm:$0xff]  }
 0x771   :  { %v4313_v52 = vpack.c.bf16 %v9561_v21, %v9559_v43  ;;  %6919 = vmatprep.subr.bf16.mxu1 %v7726_v1  ;;  %5091 = vmatprep.subr.bf16.mxu0 %v7285_v29  ;;  %v4323_v29 = vunpack.c.l.bf16 %v6247_v55 }
 0x773   :  { %6245 = vst [vmem:[%s9822_s5 + $0x10] sm:$0xff] %v4313_v52  ;;  %4822 = vmatmul.mubr.bf16.vlgmr.msra.gmra.mrb[60].mxu0 %v4313_v52  ;;  %6916 = vmatmul.mubr.bf16.vlgmr.msra.gmra.mrb[60].mxu1 %v4313_v52  ;;  %v6279_v52 = vld [vmem:[%s9820_s1 + $0x18] sm:$0xff] }
 0x774   :  { %5123 = vmatprep.mubr.bf16.mxu0 %v7727_v2  ;;  %6935 = vmatprep.mubr.msk.bf16.mxu1 %vm7728_vm0, %v7726_v1 }
 0x775   :  { %5092 = vmatpush1.bf16.msra.mxu0 %v7283_v40  ;;  %6920 = vmatpush3.bf16.msra.mxu1 %v7286_v11 }
 0x776   :  { %6921 = vmatprep.subr.bf16.mxu1 %v7726_v1  ;;  %5093 = vmatprep.subr.bf16.mxu0 %v7289_v20 }
 0x779   :  { %5094 = vmatpush1.bf16.msra.mxu0 %v7287_v19  ;;  %6922 = vmatpush3.bf16.msra.mxu1 %v7290_v48  ;;  %v4326_v19 = vunpack.c.h.bf16 %v6247_v55  ;;  %v6281_v48 = vld [vmem:[%s9820_s1 + $0x24] sm:$0xff]  ;;  %v7325_v55 = vld [vmem:[%s9817_s2 + $0xf4] ss:$12 sps:$4 sm:$0xff]  }
 0x77a   :  { %6923 = vmatprep.subr.bf16.mxu1 %v7726_v1  ;;  %5095 = vmatprep.subr.bf16.mxu0 %v7293_v24 }
 0x77d   :  { %5096 = vmatpush1.bf16.msra.mxu0 %v7291_v56  ;;  %6924 = vmatpush3.bf16.msra.mxu1 %v7294_v37  ;;  %v4623_v37 = vunpack.c.l.bf16 %v6279_v52 }
 0x77e   :  { %6925 = vmatprep.subr.bf16.mxu1 %v7726_v1  ;;  %5097 = vmatprep.subr.bf16.mxu0 %v7297_v27 }
 0x781   :  { %5098 = vmatpush1.bf16.msra.mxu0 %v7295_v36  ;;  %6926 = vmatpush3.bf16.msra.mxu1 %v7298_v61 }
 0x782   :  { %6927 = vmatprep.subr.bf16.mxu1 %v7726_v1  ;;  %5099 = vmatprep.subr.bf16.mxu0 %v7301_v35  ;;  %v4626_v35 = vunpack.c.l.bf16 %v6281_v48 }
 0x785   :  { %5100 = vmatpush1.bf16.msra.mxu0 %v7299_v25  ;;  %6928 = vmatpush3.bf16.msra.mxu1 %v7302_v46 }
 0x786   :  { %6929 = vmatprep.subr.bf16.mxu1 %v7726_v1  ;;  %5101 = vmatprep.subr.bf16.mxu0 %v7305_v31  ;;  %v4624_v31 = vunpack.c.h.bf16 %v6279_v52  ;;  %v6280_v52 = vld [vmem:[%s9820_s1 + $0x20] ss:$12 sps:$4 sm:$0xff]  }
 0x789   :  { %5102 = vmatpush1.bf16.msra.mxu0 %v7303_v12  ;;  %6930 = vmatpush3.bf16.msra.mxu1 %v7306_v57 }
 0x78a   :  { %6931 = vmatprep.subr.bf16.mxu1 %v7726_v1  ;;  %5103 = vmatprep.subr.bf16.mxu0 %v7309_v28 }
 0x78d   :  { %5104 = vmatpush1.bf16.msra.mxu0 %v7307_v3  ;;  %6932 = vmatpush3.bf16.msra.mxu1 %v7310_v23 }
 0x78e   :  { %6933 = vmatprep.subr.bf16.mxu1 %v7726_v1  ;;  %5105 = vmatprep.subr.bf16.mxu0 %v7313_v33 }
 0x791   :  { %5106 = vmatpush1.bf16.msra.mxu0 %v7311_v13  ;;  %6934 = vmatpush3.bf16.msra.mxu1 %v7314_v60  ;;  %v4627_v13 = vunpack.c.h.bf16 %v6281_v48 }
 0x792   :  { %6939 = vmatprep.subr.bf16.mxu1 %v7726_v1  ;;  %5392 = vmatprep.subr.bf16.mxu0 %v7317_v14 }
 0x826   :  { %v4521_v7 = vpop.f32.mrb[56].mxu0  ;;  %v4564_v38 = vpop.f32.mrb[56].mxu1 }
 0x827   :  { %v4571_v34 = vadd.f32 %v4521_v7, %v4321_v49  ;;  %v4523_v59 = vpop.f32.mrb[57].mxu0  ;;  %v6897_v9 = vpop.f32.mrb[57].mxu1  ;;  %v4599_v40 = vadd.f32 %v9475_v8, %v4564_v38 }
 0x828   :  { %v4525_v53 = vpop.f32.mrb[58].mxu0  ;;  %v4567_v44 = vpop.f32.mrb[58].mxu1  ;;  %v4585_v45 = vadd.f32 %v4523_v59, %v4322_v22 }
 0x829   :  { %v6274_v32 = vmul.f32 -1.442695, %v4571_v34  ;;  %v4572_v62 = vadd.f32 %v4525_v53, %v4324_v4  ;;  %v4527_v10 = vpop.f32.mrb[59].mxu0  ;;  %v6898_v15 = vpop.f32.mrb[59].mxu1  ;;  %v4600_v56 = vadd.f32 %v9475_v8, %v4567_v44 }
 0x82a   :  { %v4586_v18 = vadd.f32 %v4527_v10, %v4325_v0  ;;  %v6276_v30 = vmul.f32 -1.442695, %v4585_v45 }
 0x82b   :  { %7627 = vpow2.f32 %v6274_v32  ;;  %v6275_v41 = vmul.f32 -1.442695, %v4572_v62 }
 0x82c   :  { %v6277_v50 = vmul.f32 -1.442695, %v4586_v18 }
 0x82d   :  { %7629 = vpow2.f32 %v6275_v41 }
 0x82e   :  { %7631 = vpow2.f32 %v6276_v30 }
 0x82f   :  { %7633 = vpow2.f32 %v6277_v50 }
 0x835   :  { %v7628_v39 = vpop.eup %7627 }
 0x836   :  { %v4579_v26 = vadd.f32 1.0, %v7628_v39  ;;  %v7315_v39 = vld [vmem:[%s9817_s2 + $0xc0] ss:$12 sps:$4 sm:$0xff]  }
 0x837   :  { %v7630_v58 = vpop.eup %7629 }
 0x838   :  { %7635 = vrcp.f32 %v4579_v26  ;;  %v4580_v63 = vadd.f32 1.0, %v7630_v58  ;;  %v7632_v51 = vpop.eup %7631  ;;  %v7321_v58 = vld [vmem:[%s9817_s2 + $0xdc] ss:$12 sps:$4 sm:$0xff]  }
 0x839   :  { %v7634_v6 = vpop.eup %7633  ;;  %v4593_v47 = vadd.f32 1.0, %v7632_v51  ;;  %v7322_v51 = vld [vmem:[%s9817_s2 + $0xe0] ss:$12 sps:$4 sm:$0xff]  }
 0x83a   :  { %7637 = vrcp.f32 %v4580_v63  ;;  %v4594_v11 = vadd.f32 1.0, %v7634_v6  ;;  %v7319_v63 = vld [vmem:[%s9817_s2 + $0xd8] ss:$12 sps:$4 sm:$0xff]  }
 0x83b   :  { %7639 = vrcp.f32 %v4593_v47 }
 0x83c   :  { %7641 = vrcp.f32 %v4594_v11  ;;  %v7326_v11 = vld [vmem:[%s9817_s2 + $0xf8] ss:$12 sps:$4 sm:$0xff]  }
 0x842   :  { %v7636_v20 = vpop.eup %7635 }
 0x843   :  { %v4601_v24 = vmul.f32 %v7636_v20, %v4599_v40  ;;  %v7323_v40 = vld [vmem:[%s9817_s2 + $0xf0] ss:$12 sps:$4 sm:$0xff]   ;;  %v4625_v20 = vunpack.c.l.bf16 %v6280_v52 }
 0x844   :  { %v7638_v27 = vpop.eup %7637 }
 0x845   :  { %v4603_v36 = vadd.f32 %v4601_v24, %v4323_v29  ;;  %v4602_v61 = vmul.f32 %v7638_v27, %v4600_v56  ;;  %v7640_v38 = vpop.eup %7639 }
 0x846   :  { %v4823_v25 = vpop.f32.mrb[60].mxu0  ;;  %v9673_v46 = vpop.f32.mrb[60].mxu1  ;;  %v4607_v9 = vsub.f32 1.0, %v7640_v38  ;;  %v4611_v32 = vmul.f32 %v7640_v38, %v9488_v54  ;;  %v7318_v54 = vld [vmem:[%s9817_s2 + $0xc8] ss:$12 sps:$4 sm:$0xff]  }
 0x847   :  { %7643 = vtanh.f32 %v4603_v36  ;;  %v4604_v12 = vadd.f32 %v4602_v61, %v4326_v19  ;;  %v4873_v57 = vadd.f32 %v4823_v25, %v4623_v37  ;;  %v4825_v28 = vpop.f32.mrb[61].mxu0  ;;  %v6917_v3 = vpop.f32.mrb[61].mxu1  ;;  %v4901_v19 = vadd.f32 %v9521_v16, %v9673_v46  ;;  %v7327_v36 = vld [vmem:[%s9817_s2 + $0x108] ss:$12 sps:$4 sm:$0xff]   ;;  %v7330_v61 = vld [vmem:[%s9817_s2 + $0x110] ss:$12 sps:$4 sm:$0xff]  }
 0x848   :  { %v4827_v23 = vpop.f32.mrb[62].mxu0  ;;  %v9675_v33 = vpop.f32.mrb[62].mxu1  ;;  %v4887_v49 = vadd.f32 %v4825_v28, %v4624_v31  ;;  %v4628_v37 = vunpack.c.h.bf16 %v6280_v52  ;;  %v7333_v25 = vld [vmem:[%s9817_s2 + $0x124] ss:$12 sps:$4 sm:$0xff]   ;;  %v7334_v28 = vld [vmem:[%s9817_s2 + $0x128] ss:$12 sps:$4 sm:$0xff]  }
 0x849   :  { %7645 = vtanh.f32 %v4604_v12  ;;  %v6339_v60 = vmul.f32 -1.442695, %v4873_v57  ;;  %v4874_v14 = vadd.f32 %v4827_v23, %v4626_v35  ;;  %v4829_v17 = vpop.f32.mrb[63].mxu0  ;;  %v6918_v42 = vpop.f32.mrb[63].mxu1  ;;  %v4902_v27 = vadd.f32 %v9521_v16, %v9675_v33  ;;  %v7331_v57 = vld [vmem:[%s9817_s2 + $0x120] ss:$12 sps:$4 sm:$0xff]  }
 0x84a   :  { %v4888_v7 = vadd.f32 %v4829_v17, %v4627_v13  ;;  %v6341_v22 = vmul.f32 -1.442695, %v4887_v49  ;;  %v7642_v34 = vpop.eup %7641  ;;  %v7337_v3 = vld [vmem:[%s9817_s2 + $0x13c] ss:$12 sps:$4 sm:$0xff]   ;;  %v7335_v23 = vld [vmem:[%s9817_s2 + $0x138] ss:$12 sps:$4 sm:$0xff]  }
 0x84b   :  { %7647 = vpow2.f32 %v6339_v60  ;;  %v6340_v4 = vmul.f32 -1.442695, %v4874_v14  ;;  %v4608_v44 = vsub.f32 1.0, %v7642_v34  ;;  %v4612_v15 = vmul.f32 %v7642_v34, %v9490_v5  ;;  %v7338_v33 = vld [vmem:[%s9817_s2 + $0x140] ss:$12 sps:$4 sm:$0xff]  }
 0x84c   :  { %v6342_v59 = vmul.f32 -1.442695, %v4888_v7  ;;  %v7341_v13 = vld [vmem:[%s9817_s2 + $0x154] ss:$12 sps:$4 sm:$0xff]   ;;  %v7339_v17 = vld [vmem:[%s9817_s2 + $0x150] ss:$12 sps:$4 sm:$0xff]  }
 0x84d   :  { %7649 = vpow2.f32 %v6340_v4  ;;  %v7342_v42 = vld [vmem:[%s9817_s2 + $0x158] ss:$12 sps:$4 sm:$0xff]  }
 0x84e   :  { %7651 = vpow2.f32 %v6341_v22  ;;  %v7345_v49 = vld [vmem:[%s9817_s2 + $0x16c] ss:$12 sps:$4 sm:$0xff]  }
 0x84f   :  { %7653 = vpow2.f32 %v6342_v59 }
 0x851   :  { %v7644_v53 = vpop.eup %7643 }
 0x852   :  { %v4609_v0 = vmul.f32 %v7644_v53, %v4607_v9  ;;  %v7343_v9 = vld [vmem:[%s9817_s2 + $0x168] ss:$12 sps:$4 sm:$0xff]   ;;  %v7346_v53 = vld [vmem:[%s9817_s2 + $0x170] ss:$12 sps:$4 sm:$0xff]  }
 0x853   :  { %v7646_v62 = vpop.eup %7645 }
 0x854   :  { %v4610_v10 = vmul.f32 %v7646_v62, %v4608_v44  ;;  %v9679_v45 = vadd.f32 %v4611_v32, %v4609_v0 }
 0x855   :  { %v7648_v41 = vpop.eup %7647 }
 0x856   :  { %v4881_v18 = vadd.f32 1.0, %v7648_v41  ;;  %v9681_v30 = vadd.f32 %v4612_v15, %v4610_v10 }
 0x857   :  { %v7650_v50 = vpop.eup %7649 }
 0x858   :  { %7655 = vrcp.f32 %v4881_v18  ;;  %v4882_v26 = vadd.f32 1.0, %v7650_v50  ;;  %v4615_v5 = vpack.c.bf16 %v9681_v30, %v9679_v45  ;;  %v7652_v6 = vpop.eup %7651 }
 0x859   :  { %v7654_v47 = vpop.eup %7653  ;;  %v4895_v29 = vadd.f32 1.0, %v7652_v6 }
 0x85a   :  { %7657 = vrcp.f32 %v4882_v26  ;;  %6278 = vst [vmem:[%s9821_s4 + $0x38] sm:$0xff] %v4615_v5  ;;  %5124 = vmatmul.mubr.bf16.vlgmr.msra.gmra.mrb[64].mxu0 %v4615_v5  ;;  %6936 = vmatmul.mubr.bf16.vlgmr.msra.gmra.mrb[64].mxu1 %v4615_v5  ;;  %v4896_v48 = vadd.f32 1.0, %v7654_v47 }
 0x85b   :  { %5393 = vmatpush1.bf16.msra.mxu0 %v7315_v39  ;;  %6940 = vmatpush3.bf16.msra.mxu1 %v7318_v54  ;;  %7659 = vrcp.f32 %v4895_v29 }
 0x85c   :  { %5394 = vmatprep.subr.bf16.mxu0 %v7321_v58  ;;  %6941 = vmatprep.subr.bf16.mxu1 %v7726_v1  ;;  %7661 = vrcp.f32 %v4896_v48 }
 0x85d   :  { %5424 = vmatprep.mubr.bf16.mxu0 %v7727_v2  ;;  %6955 = vmatprep.mubr.msk.bf16.mxu1 %vm7728_vm0, %v7726_v1  ;;  %v7329_v2 = vld [vmem:[%s9817_s2 + $0x10c] ss:$12 sps:$4 sm:$0xff]  }
 0x85f   :  { %5395 = vmatpush1.bf16.msra.mxu0 %v7319_v63  ;;  %6942 = vmatpush3.bf16.msra.mxu1 %v7322_v51 }
 0x860   :  { %5396 = vmatprep.subr.bf16.mxu0 %v7325_v55  ;;  %6943 = vmatprep.subr.bf16.mxu1 %v7726_v1 }
 0x862   :  { %v7656_v24 = vpop.eup %7655 }
 0x863   :  { %v4903_v56 = vmul.f32 %v7656_v24, %v4901_v19  ;;  %5397 = vmatpush1.bf16.msra.mxu0 %v7323_v40  ;;  %6944 = vmatpush3.bf16.msra.mxu1 %v7326_v11 }
 0x864   :  { %v7658_v35 = vpop.eup %7657  ;;  %5398 = vmatprep.subr.bf16.mxu0 %v7329_v2  ;;  %6945 = vmatprep.subr.bf16.mxu1 %v7726_v1 }
 0x865   :  { %v4905_v46 = vadd.f32 %v4903_v56, %v4625_v20  ;;  %v4904_v31 = vmul.f32 %v7658_v35, %v4902_v27  ;;  %v7660_v60 = vpop.eup %7659  ;;  %v6345_v27 = vld [vmem:[%s9818_s0 + $0xc8] ss:$12 sps:$4 sm:$0xff]  }
 0x866   :  { %v7662_v14 = vpop.eup %7661  ;;  %v4909_v4 = vsub.f32 1.0, %v7660_v60  ;;  %v4913_v34 = vmul.f32 %v7660_v60, %v9559_v43  ;;  %v4927_v35 = vunpack.c.l.bf16 %v6345_v27 }
 0x867   :  { %7663 = vtanh.f32 %v4905_v46  ;;  %v4906_v12 = vadd.f32 %v4904_v31, %v4628_v37  ;;  %5399 = vmatpush1.bf16.msra.mxu0 %v7327_v36  ;;  %6946 = vmatpush3.bf16.msra.mxu1 %v7330_v61  ;;  %v4910_v38 = vsub.f32 1.0, %v7662_v14  ;;  %v4914_v0 = vmul.f32 %v7662_v14, %v9561_v21  ;;  %v6346_v21 = vld [vmem:[%s9818_s0 + $0xcc] sm:$0xff]  ;;  %v5222_v61 = vld [vmem:[%s9820_s1] sm:$0xff] }
 0x868   :  { %5400 = vmatprep.subr.bf16.mxu0 %v7333_v25  ;;  %6947 = vmatprep.subr.bf16.mxu1 %v7726_v1  ;;  %v4928_v15 = vunpack.c.l.bf16 %v6346_v21  ;;  %v4929_v63 = vunpack.c.h.bf16 %v6346_v21 }
 0x869   :  { %7665 = vtanh.f32 %v4906_v12  ;;  %v4930_v12 = vunpack.c.h.bf16 %v6345_v27 }
 0x86b   :  { %5401 = vmatpush1.bf16.msra.mxu0 %v7331_v57  ;;  %6948 = vmatpush3.bf16.msra.mxu1 %v7334_v28  ;;  %v5224_v57 = vld [vmem:[%s9820_s1 + $0xc] sm:$0xff] }
 0x86c   :  { %5402 = vmatprep.subr.bf16.mxu0 %v7337_v3  ;;  %6949 = vmatprep.subr.bf16.mxu1 %v7726_v1  ;;  %v5229_v14 = vunpack.c.l.bf16 %v5224_v57 }
 0x86f   :  { %5403 = vmatpush1.bf16.msra.mxu0 %v7335_v23  ;;  %6950 = vmatpush3.bf16.msra.mxu1 %v7338_v33  ;;  %v5226_v23 = vunpack.c.l.bf16 %v5222_v61 }
 0x870   :  { %5404 = vmatprep.subr.bf16.mxu0 %v7341_v13  ;;  %6951 = vmatprep.subr.bf16.mxu1 %v7726_v1 }
 0x871   :  { %v7664_v7 = vpop.eup %7663 }
 0x872   :  { %v4911_v22 = vmul.f32 %v7664_v7, %v4909_v4 }
 0x873   :  { %v7666_v59 = vpop.eup %7665  ;;  %5405 = vmatpush1.bf16.msra.mxu0 %v7339_v17  ;;  %6952 = vmatpush3.bf16.msra.mxu1 %v7342_v42 }
 0x874   :  { %5406 = vmatprep.subr.bf16.mxu0 %v7345_v49  ;;  %6953 = vmatprep.subr.bf16.mxu1 %v7726_v1  ;;  %v4912_v44 = vmul.f32 %v7666_v59, %v4910_v38  ;;  %v9776_v32 = vadd.f32 %v4913_v34, %v4911_v22  ;;  %v6344_v1 = vld [vmem:[%s9818_s0 + $0xc0] sm:$0xff]  ;;  %v5227_v49 = vunpack.c.h.bf16 %v5222_v61 }
 0x875   :  { %v4925_v10 = vunpack.c.l.bf16 %v6344_v1  ;;  %v4926_v50 = vunpack.c.h.bf16 %v6344_v1 }
 0x876   :  { %v9778_v43 = vadd.f32 %v4914_v0, %v4912_v44 }
 0x877   :  { %5407 = vmatpush1.bf16.msra.mxu0 %v7343_v9  ;;  %6954 = vmatpush3.bf16.msra.mxu1 %v7346_v53  ;;  %v5230_v9 = vunpack.c.h.bf16 %v5224_v57 }
 0x878   :  { %v4917_v62 = vpack.c.bf16 %v9778_v43, %v9776_v32 }
 0x87a   :  { %6343 = vst [vmem:[%s9822_s5 + $0x8] sm:$0xff] %v4917_v62  ;;  %5425 = vmatmul.mubr.bf16.vlgmr.msra.gmra.mrb[68].mxu0 %v4917_v62  ;;  %6956 = vmatmul.mubr.bf16.vlgmr.msra.gmra.mrb[68].mxu1 %v4917_v62 }
 0x92d   :  { %v5125_v41 = vpop.f32.mrb[64].mxu0  ;;  %v5168_v18 = vpop.f32.mrb[64].mxu1 }
 0x92e   :  { %v5175_v39 = vadd.f32 %v5125_v41, %v4925_v10  ;;  %v5127_v54 = vpop.f32.mrb[65].mxu0  ;;  %v6937_v26 = vpop.f32.mrb[65].mxu1  ;;  %v5203_v25 = vadd.f32 %v9475_v8, %v5168_v18 }
 0x92f   :  { %v5129_v5 = vpop.f32.mrb[66].mxu0  ;;  %v5171_v58 = vpop.f32.mrb[66].mxu1  ;;  %v5189_v52 = vadd.f32 %v5127_v54, %v4926_v50 }
 0x930   :  { %v6372_v51 = vmul.f32 -1.442695, %v5175_v39  ;;  %v5176_v6 = vadd.f32 %v5129_v5, %v4928_v15  ;;  %v5131_v55 = vpop.f32.mrb[67].mxu0  ;;  %v6938_v47 = vpop.f32.mrb[67].mxu1  ;;  %v5204_v3 = vadd.f32 %v9475_v8, %v5171_v58 }
 0x931   :  { %v5190_v40 = vadd.f32 %v5131_v55, %v4929_v63  ;;  %v6374_v11 = vmul.f32 -1.442695, %v5189_v52 }
 0x932   :  { %7667 = vpow2.f32 %v6372_v51  ;;  %v6373_v29 = vmul.f32 -1.442695, %v5176_v6 }
 0x933   :  { %v6375_v2 = vmul.f32 -1.442695, %v5190_v40 }
 0x934   :  { %7669 = vpow2.f32 %v6373_v29 }
 0x935   :  { %7671 = vpow2.f32 %v6374_v11 }
 0x936   :  { %7673 = vpow2.f32 %v6375_v2 }
 0x93c   :  { %v7668_v20 = vpop.eup %7667 }
 0x93d   :  { %v5183_v19 = vadd.f32 1.0, %v7668_v20  ;;  %v5223_v20 = vld [vmem:[%s9820_s1 + $0x8] ss:$12 sps:$4 sm:$0xff]  }
 0x93e   :  { %v7670_v48 = vpop.eup %7669  ;;  %v5231_v27 = vunpack.c.h.bf16 %v5223_v20 }
 0x93f   :  { %7675 = vrcp.f32 %v5183_v19  ;;  %v5184_v24 = vadd.f32 1.0, %v7670_v48  ;;  %v7672_v56 = vpop.eup %7671  ;;  %v5228_v19 = vunpack.c.l.bf16 %v5223_v20 }
 0x940   :  { %v7674_v37 = vpop.eup %7673  ;;  %v5197_v36 = vadd.f32 1.0, %v7672_v56 }
 0x941   :  { %7677 = vrcp.f32 %v5184_v24  ;;  %v5198_v46 = vadd.f32 1.0, %v7674_v37 }
 0x942   :  { %7679 = vrcp.f32 %v5197_v36 }
 0x943   :  { %7681 = vrcp.f32 %v5198_v46 }
 0x949   :  { %v7676_v31 = vpop.eup %7675 }
 0x94a   :  { %v5205_v28 = vmul.f32 %v7676_v31, %v5203_v25 }
 0x94b   :  { %v7678_v33 = vpop.eup %7677 }
 0x94c   :  { %v5207_v13 = vadd.f32 %v5205_v28, %v4927_v35  ;;  %v5206_v60 = vmul.f32 %v7678_v33, %v5204_v3  ;;  %v7680_v10 = vpop.eup %7679 }
 0x94d   :  { %v5426_v17 = vpop.f32.mrb[68].mxu0  ;;  %v5469_v42 = vpop.f32.mrb[68].mxu1  ;;  %v5211_v18 = vsub.f32 1.0, %v7680_v10  ;;  %v5215_v26 = vmul.f32 %v7680_v10, %v9679_v45 }
 0x94e   :  { %7683 = vtanh.f32 %v5207_v13  ;;  %v5208_v4 = vadd.f32 %v5206_v60, %v4930_v12  ;;  %v5476_v7 = vadd.f32 %v5426_v17, %v5226_v23  ;;  %v5428_v38 = vpop.f32.mrb[69].mxu0  ;;  %v6957_v22 = vpop.f32.mrb[69].mxu1  ;;  %v5504_v48 = vadd.f32 %v9521_v16, %v5469_v42 }
 0x94f   :  { %v5430_v34 = vpop.f32.mrb[70].mxu0  ;;  %v5472_v59 = vpop.f32.mrb[70].mxu1  ;;  %v5490_v62 = vadd.f32 %v5428_v38, %v5227_v49 }
 0x950   :  { %7685 = vtanh.f32 %v5208_v4  ;;  %v6433_v53 = vmul.f32 -1.442695, %v5476_v7  ;;  %v5477_v8 = vadd.f32 %v5430_v34, %v5229_v14  ;;  %v5432_v44 = vpop.f32.mrb[71].mxu0  ;;  %v6958_v0 = vpop.f32.mrb[71].mxu1  ;;  %v5505_v36 = vadd.f32 %v9521_v16, %v5472_v59 }
 0x951   :  { %v5491_v21 = vadd.f32 %v5432_v44, %v5230_v9  ;;  %v6435_v15 = vmul.f32 -1.442695, %v5490_v62  ;;  %v7682_v41 = vpop.eup %7681 }
 0x952   :  { %7687 = vpow2.f32 %v6433_v53  ;;  %v6434_v1 = vmul.f32 -1.442695, %v5477_v8  ;;  %v5212_v5 = vsub.f32 1.0, %v7682_v41  ;;  %v5216_v6 = vmul.f32 %v7682_v41, %v9681_v30 }
 0x953   :  { %v6436_v50 = vmul.f32 -1.442695, %v5491_v21 }
 0x954   :  { %7689 = vpow2.f32 %v6434_v1 }
 0x955   :  { %7691 = vpow2.f32 %v6435_v15 }
 0x956   :  { %7693 = vpow2.f32 %v6436_v50 }
 0x958   :  { %v7684_v39 = vpop.eup %7683 }
 0x959   :  { %v5213_v54 = vmul.f32 %v7684_v39, %v5211_v18 }
 0x95a   :  { %v7686_v58 = vpop.eup %7685 }
 0x95b   :  { %v5217_v63 = vadd.f32 %v5215_v26, %v5213_v54  ;;  %v5214_v51 = vmul.f32 %v7686_v58, %v5212_v5 }
 0x95c   :  { %v7688_v55 = vpop.eup %7687 }
 0x95d   :  { %v5218_v47 = vadd.f32 %v5216_v6, %v5214_v51  ;;  %v5484_v52 = vadd.f32 1.0, %v7688_v55 }
 0x95e   :  { %v7690_v29 = vpop.eup %7689 }
 0x95f   :  { %v5219_v40 = vpack.c.bf16 %v5218_v47, %v5217_v63  ;;  %7695 = vrcp.f32 %v5484_v52  ;;  %v5485_v11 = vadd.f32 1.0, %v7690_v29  ;;  %v7692_v45 = vpop.eup %7691 }
 0x960   :  { %v7694_v2 = vpop.eup %7693  ;;  %v5498_v30 = vadd.f32 1.0, %v7692_v45 }
 0x961   :  { %6376 = vst [vmem:[%s9821_s4 + $0x40] sm:$0xff] %v5219_v40  ;;  %7697 = vrcp.f32 %v5485_v11  ;;  %v5499_v24 = vadd.f32 1.0, %v7694_v2 }
 0x962   :  { %7699 = vrcp.f32 %v5498_v30 }
 0x963   :  { %7701 = vrcp.f32 %v5499_v24 }
 0x969   :  { %v7696_v56 = vpop.eup %7695 }
 0x96a   :  { %v5506_v37 = vmul.f32 %v7696_v56, %v5504_v48 }
 0x96b   :  { %v7698_v61 = vpop.eup %7697 }
 0x96c   :  { %v5508_v35 = vadd.f32 %v5506_v37, %v5228_v19  ;;  %v5507_v25 = vmul.f32 %v7698_v61, %v5505_v36  ;;  %v7700_v31 = vpop.eup %7699 }
 0x96d   :  { %v7702_v12 = vpop.eup %7701  ;;  %v5512_v57 = vsub.f32 1.0, %v7700_v31  ;;  %v5516_v23 = vmul.f32 %v7700_v31, %v9776_v32 }
 0x96e   :  { %7703 = vtanh.f32 %v5508_v35  ;;  %v5509_v46 = vadd.f32 %v5507_v25, %v5231_v27  ;;  %v5513_v33 = vsub.f32 1.0, %v7702_v12  ;;  %v5517_v16 = vmul.f32 %v7702_v12, %v9778_v43 }
 0x970   :  { %7705 = vtanh.f32 %v5509_v46 }
 0x978   :  { %v7704_v28 = vpop.eup %7703 }
 0x979   :  { %v5514_v3 = vmul.f32 %v7704_v28, %v5512_v57 }
 0x97a   :  { %v7706_v13 = vpop.eup %7705 }
 0x97b   :  { %v5518_v60 = vadd.f32 %v5516_v23, %v5514_v3  ;;  %v5515_v14 = vmul.f32 %v7706_v13, %v5513_v33 }
 0x97d   :  { %v5519_v17 = vadd.f32 %v5517_v16, %v5515_v14 }
 0x97f   :  { %v5520_v42 = vpack.c.bf16 %v5519_v17, %v5518_v60 }
 0x981   :  { %5521 = vst [vmem:[%s9822_s5] sm:$0xff] %v5520_v42 }

// kernel: _lambda_.3
= control target key start
LH: loop header
LB: loop body
LE: loop exit
PB: predicated region body
PF: predicated region fallthrough
CT: control target
= control target key end

     0   :  { %v8068_v1 = vmov 0.0   ;;  %v8069_v2 = vmov 0   ;;  %vm8070_vm0 = vmmov 0   ;;  %v8071_v28 = vmov 0.0|0.0   ;;  %s10159_s2 = inlined_call_operand.vmem [shape: bf16[2,128,384], index: 2, kind: input, shape index: {}]   ;;  %s10160_s0 = inlined_call_operand.vmem [shape: bf16[9,16,384], index: 0, kind: input, shape index: {}]   ;;  %s10161_s3 = inlined_call_operand.vmem [shape: f32[2,1,128], index: 3, kind: input, shape index: {}]   ;;  %s10162_s1 = inlined_call_operand.vmem [shape: bf16[9,16,384], index: 1, kind: input, shape index: {}]   ;;  %s10163_s4 = inlined_call_operand.vmem [shape: bf16[9,16,128], index: 4, kind: output, shape index: {0}]   ;;  %s10164_s5 = inlined_call_operand.vmem [shape: bf16[9,16,128], index: 5, kind: output, shape index: {1}]  }
   0x1   :  { %v8105_v0 = vld [vmem:[%s10159_s2 + $0x4] ss:$12 sps:$4 sm:$0xff]   ;;  %6941 = vmatprep.subr.bf16.mxu1 %v8068_v1  ;;  %292 = vmatprep.mubr.bf16.mxu0 %v8069_v2  ;;  %v8112_v3 = vld [vmem:[%s10159_s2] ss:$12 sps:$4 sm:$0xff]   ;;  %v8120_v4 = vld [vmem:[%s10159_s2 + $0x1c] ss:$12 sps:$4 sm:$0xff]  }
   0x2   :  { %6957 = vmatprep.mubr.msk.bf16.mxu1 %vm8070_vm0, %v8068_v1  ;;  %260 = vmatprep.subr.bf16.mxu0 %v8105_v0  ;;  %v8126_v5 = vld [vmem:[%s10159_s2 + $0x18] ss:$12 sps:$4 sm:$0xff]   ;;  %v8132_v6 = vld [vmem:[%s10159_s2 + $0x34] ss:$12 sps:$4 sm:$0xff]   ;;  %v8138_v7 = vld [vmem:[%s10159_s2 + $0x30] ss:$12 sps:$4 sm:$0xff]  }
   0x3   :  { %261 = vmatpush1.bf16.msra.mxu0 %v8112_v3  ;;  %v8144_v8 = vld [vmem:[%s10159_s2 + $0x4c] ss:$12 sps:$4 sm:$0xff]   ;;  %v7325_v9 = vld [vmem:[%s10159_s2 + $0x8] ss:$12 sps:$4 sm:$0xff]   ;;  %v8159_v11 = vld [vmem:[%s10159_s2 + $0x64] ss:$12 sps:$4 sm:$0xff]  }
   0x4   :  { %262 = vmatprep.subr.bf16.mxu0 %v8120_v4  ;;  %v8153_v10 = vld [vmem:[%s10159_s2 + $0x48] ss:$12 sps:$4 sm:$0xff]   ;;  %6942 = vmatpush3.bf16.msra.mxu1 %v7325_v9  ;;  %v7329_v12 = vld [vmem:[%s10159_s2 + $0x20] ss:$12 sps:$4 sm:$0xff]   ;;  %v7331_v14 = vld [vmem:[%s10159_s2 + $0x38] ss:$12 sps:$4 sm:$0xff]  }
   0x5   :  { %6943 = vmatprep.subr.bf16.mxu1 %v8068_v1  ;;  %v8168_v13 = vld [vmem:[%s10159_s2 + $0x60] ss:$12 sps:$4 sm:$0xff]   ;;  %v8178_v15 = vld [vmem:[%s10159_s2 + $0x7c] ss:$12 sps:$4 sm:$0xff]   ;;  %v8185_v16 = vld [vmem:[%s10159_s2 + $0x78] ss:$12 sps:$4 sm:$0xff]  }
   0x6   :  { %v7335_v17 = vld [vmem:[%s10159_s2 + $0x50] ss:$12 sps:$4 sm:$0xff]   ;;  %v8194_v18 = vld [vmem:[%s10159_s2 + $0x94] ss:$12 sps:$4 sm:$0xff]   ;;  %v8210_v21 = vld [vmem:[%s10159_s2 + $0xac] ss:$12 sps:$4 sm:$0xff]  }
   0x7   :  { %263 = vmatpush1.bf16.msra.mxu0 %v8126_v5  ;;  %v8200_v19 = vld [vmem:[%s10159_s2 + $0x90] ss:$12 sps:$4 sm:$0xff]   ;;  %v7339_v20 = vld [vmem:[%s10159_s2 + $0x68] ss:$12 sps:$4 sm:$0xff]   ;;  %v7343_v23 = vld [vmem:[%s10159_s2 + $0x80] ss:$12 sps:$4 sm:$0xff]  }
   0x8   :  { %264 = vmatprep.subr.bf16.mxu0 %v8132_v6  ;;  %6944 = vmatpush3.bf16.msra.mxu1 %v7329_v12  ;;  %v8217_v22 = vld [vmem:[%s10159_s2 + $0xa8] ss:$12 sps:$4 sm:$0xff]   ;;  %v8226_v24 = vld [vmem:[%s10159_s2 + $0xc4] ss:$12 sps:$4 sm:$0xff]   ;;  %v7332_v25 = vld [vmem:[%s10159_s2 + $0xc0] ss:$12 sps:$4 sm:$0xff]  }
   0x9   :  { %6945 = vmatprep.subr.bf16.mxu1 %v8068_v1  ;;  %v7347_v26 = vld [vmem:[%s10159_s2 + $0x98] ss:$12 sps:$4 sm:$0xff]   ;;  %v7338_v27 = vld [vmem:[%s10159_s2 + $0xdc] ss:$12 sps:$4 sm:$0xff]   ;;  %v7342_v31 = vld [vmem:[%s10159_s2 + $0xf4] ss:$12 sps:$4 sm:$0xff]  }
   0xa   :  { %v7336_v29 = vld [vmem:[%s10159_s2 + $0xd8] ss:$12 sps:$4 sm:$0xff]   ;;  %v7351_v30 = vld [vmem:[%s10159_s2 + $0xb0] ss:$12 sps:$4 sm:$0xff]   ;;  %v7358_v33 = vld [vmem:[%s10159_s2 + $0xc8] ss:$12 sps:$4 sm:$0xff]  }
   0xb   :  { %265 = vmatpush1.bf16.msra.mxu0 %v8138_v7  ;;  %v7340_v32 = vld [vmem:[%s10159_s2 + $0xf0] ss:$12 sps:$4 sm:$0xff]   ;;  %v7346_v34 = vld [vmem:[%s10159_s2 + $0x10c] ss:$12 sps:$4 sm:$0xff]   ;;  %v7344_v35 = vld [vmem:[%s10159_s2 + $0x108] ss:$12 sps:$4 sm:$0xff]  }
   0xc   :  { %266 = vmatprep.subr.bf16.mxu0 %v8144_v8  ;;  %6946 = vmatpush3.bf16.msra.mxu1 %v7331_v14  ;;  %v7362_v36 = vld [vmem:[%s10159_s2 + $0xe0] ss:$12 sps:$4 sm:$0xff]   ;;  %v7350_v37 = vld [vmem:[%s10159_s2 + $0x124] ss:$12 sps:$4 sm:$0xff]   ;;  %v7354_v40 = vld [vmem:[%s10159_s2 + $0x13c] ss:$12 sps:$4 sm:$0xff]  }
   0xd   :  { %6947 = vmatprep.subr.bf16.mxu1 %v8068_v1  ;;  %v7348_v38 = vld [vmem:[%s10159_s2 + $0x120] ss:$12 sps:$4 sm:$0xff]   ;;  %v7363_v39 = vld [vmem:[%s10159_s2 + $0xf8] ss:$12 sps:$4 sm:$0xff]   ;;  %v7364_v42 = vld [vmem:[%s10159_s2 + $0x110] ss:$12 sps:$4 sm:$0xff]  }
   0xe   :  { %v7352_v41 = vld [vmem:[%s10159_s2 + $0x138] ss:$12 sps:$4 sm:$0xff]   ;;  %v7357_v43 = vld [vmem:[%s10159_s2 + $0x154] ss:$12 sps:$4 sm:$0xff]   ;;  %v7355_v44 = vld [vmem:[%s10159_s2 + $0x150] ss:$12 sps:$4 sm:$0xff]  }
   0xf   :  { %267 = vmatpush1.bf16.msra.mxu0 %v8153_v10  ;;  %v7365_v45 = vld [vmem:[%s10159_s2 + $0x128] ss:$12 sps:$4 sm:$0xff]   ;;  %v7361_v46 = vld [vmem:[%s10159_s2 + $0x16c] ss:$12 sps:$4 sm:$0xff]   ;;  %v7368_v50 = vld [vmem:[%s10159_s2 + $0x170] ss:$12 sps:$4 sm:$0xff]  }
  0x10   :  { %268 = vmatprep.subr.bf16.mxu0 %v8159_v11  ;;  %6948 = vmatpush3.bf16.msra.mxu1 %v7335_v17  ;;  %v7359_v47 = vld [vmem:[%s10159_s2 + $0x168] ss:$12 sps:$4 sm:$0xff]   ;;  %v7366_v48 = vld [vmem:[%s10159_s2 + $0x140] ss:$12 sps:$4 sm:$0xff]   ;;  %v7367_v49 = vld [vmem:[%s10159_s2 + $0x158] ss:$12 sps:$4 sm:$0xff]  }
  0x11   :  { %6949 = vmatprep.subr.bf16.mxu1 %v8068_v1  ;;  %v7369_v51 = vld [vmem:[%s10159_s2 + $0x8] ss:$12 sps:$4 sm:$0xff]   ;;  %v7370_v52 = vld [vmem:[%s10159_s2 + $0x20] ss:$12 sps:$4 sm:$0xff]   ;;  %v7371_v53 = vld [vmem:[%s10159_s2 + $0x38] ss:$12 sps:$4 sm:$0xff]  }
  0x12   :  { %v7372_v54 = vld [vmem:[%s10159_s2 + $0x50] ss:$12 sps:$4 sm:$0xff]   ;;  %v7373_v55 = vld [vmem:[%s10159_s2 + $0x68] ss:$12 sps:$4 sm:$0xff]   ;;  %v7374_v56 = vld [vmem:[%s10159_s2 + $0x80] ss:$12 sps:$4 sm:$0xff]  }
  0x13   :  { %269 = vmatpush1.bf16.msra.mxu0 %v8168_v13  ;;  %v7375_v57 = vld [vmem:[%s10159_s2 + $0x98] ss:$12 sps:$4 sm:$0xff]   ;;  %v7376_v58 = vld [vmem:[%s10159_s2 + $0xb0] ss:$12 sps:$4 sm:$0xff]  }
  0x14   :  { %270 = vmatprep.subr.bf16.mxu0 %v8178_v15  ;;  %6950 = vmatpush3.bf16.msra.mxu1 %v7339_v20  ;;  %v89_v59 = vld [vmem:[%s10160_s0] sm:$0xff]  ;;  %v91_v60 = vld [vmem:[%s10160_s0 + $0xc] sm:$0xff] }
  0x15   :  { %6951 = vmatprep.subr.bf16.mxu1 %v8068_v1  ;;  %v93_v61 = vunpack.c.l.bf16 %v89_v59  ;;  %v96_v62 = vunpack.c.l.bf16 %v91_v60 }
  0x17   :  { %271 = vmatpush1.bf16.msra.mxu0 %v8185_v16 }
  0x18   :  { %272 = vmatprep.subr.bf16.mxu0 %v8194_v18  ;;  %6952 = vmatpush3.bf16.msra.mxu1 %v7343_v23 }
  0x19   :  { %6953 = vmatprep.subr.bf16.mxu1 %v8068_v1 }
  0x1b   :  { %273 = vmatpush1.bf16.msra.mxu0 %v8200_v19 }
  0x1c   :  { %274 = vmatprep.subr.bf16.mxu0 %v8210_v21  ;;  %6954 = vmatpush3.bf16.msra.mxu1 %v7347_v26  ;;  %v90_v26 = vld [vmem:[%s10160_s0 + $0x8] ss:$12 sps:$4 sm:$0xff]  }
  0x1d   :  { %6955 = vmatprep.subr.bf16.mxu1 %v8068_v1 }
  0x1f   :  { %275 = vmatpush1.bf16.msra.mxu0 %v8217_v22 }
  0x20   :  { %571 = vmatprep.subr.bf16.mxu0 %v8226_v24  ;;  %6956 = vmatpush3.bf16.msra.mxu1 %v7351_v30 }
  0x21   :  { %6961 = vmatprep.subr.bf16.mxu1 %v8068_v1 }
  0x22   :  { %293 = vmatmul.mubr.bf16.vlgmr.msra.gmra.mrb[0].mxu0 %v8071_v28 }
  0x23   :  { %572 = vmatpush1.bf16.msra.mxu0 %v7332_v25  ;;  %603 = vmatprep.mubr.bf16.mxu0 %v8069_v2 }
  0x24   :  { %573 = vmatprep.subr.bf16.mxu0 %v7338_v27  ;;  %6958 = vmatmul.mubr.bf16.vlgmr.msra.gmra.mrb[0].mxu1 %v8071_v28 }
  0x25   :  { %6962 = vmatpush3.bf16.msra.mxu1 %v7358_v33  ;;  %6977 = vmatprep.mubr.msk.bf16.mxu1 %vm8070_vm0, %v8068_v1 }
  0x26   :  { %6963 = vmatprep.subr.bf16.mxu1 %v8068_v1 }
  0x27   :  { %574 = vmatpush1.bf16.msra.mxu0 %v7336_v29  ;;  %v5743_v29 = vld [vmem:[%s10162_s1 + $0xc0] sm:$0xff] }
  0x28   :  { %575 = vmatprep.subr.bf16.mxu0 %v7342_v31  ;;  %v95_v31 = vunpack.c.l.bf16 %v90_v26 }
  0x29   :  { %6964 = vmatpush3.bf16.msra.mxu1 %v7362_v36  ;;  %v98_v36 = vunpack.c.h.bf16 %v90_v26 }
  0x2a   :  { %6965 = vmatprep.subr.bf16.mxu1 %v8068_v1 }
  0x2b   :  { %576 = vmatpush1.bf16.msra.mxu0 %v7340_v32 }
  0x2c   :  { %577 = vmatprep.subr.bf16.mxu0 %v7346_v34  ;;  %v5745_v34 = vld [vmem:[%s10162_s1 + $0xcc] sm:$0xff] }
  0x2d   :  { %6966 = vmatpush3.bf16.msra.mxu1 %v7363_v39 }
  0x2e   :  { %6967 = vmatprep.subr.bf16.mxu1 %v8068_v1 }
  0x2f   :  { %578 = vmatpush1.bf16.msra.mxu0 %v7344_v35 }
  0x30   :  { %579 = vmatprep.subr.bf16.mxu0 %v7350_v37  ;;  %v403_v37 = vunpack.c.l.bf16 %v5743_v29 }
  0x31   :  { %6968 = vmatpush3.bf16.msra.mxu1 %v7364_v42 }
  0x32   :  { %6969 = vmatprep.subr.bf16.mxu1 %v8068_v1 }
  0x33   :  { %580 = vmatpush1.bf16.msra.mxu0 %v7348_v38 }
  0x34   :  { %581 = vmatprep.subr.bf16.mxu0 %v7354_v40 }
  0x35   :  { %6970 = vmatpush3.bf16.msra.mxu1 %v7365_v45 }
  0x36   :  { %6971 = vmatprep.subr.bf16.mxu1 %v8068_v1 }
  0x37   :  { %582 = vmatpush1.bf16.msra.mxu0 %v7352_v41  ;;  %v406_v41 = vunpack.c.l.bf16 %v5745_v34 }
  0x38   :  { %583 = vmatprep.subr.bf16.mxu0 %v7357_v43  ;;  %v404_v43 = vunpack.c.h.bf16 %v5743_v29  ;;  %v8052_v29 = vld [vmem:[%s10159_s2 + $0xf4] ss:$12 sps:$4 sm:$0xff]  }
  0x39   :  { %6972 = vmatpush3.bf16.msra.mxu1 %v7366_v48  ;;  %v407_v48 = vunpack.c.h.bf16 %v5745_v34 }
  0x3a   :  { %6973 = vmatprep.subr.bf16.mxu1 %v8068_v1 }
  0x3b   :  { %584 = vmatpush1.bf16.msra.mxu0 %v7355_v44 }
  0x3c   :  { %585 = vmatprep.subr.bf16.mxu0 %v7361_v46 }
  0x3d   :  { %6974 = vmatpush3.bf16.msra.mxu1 %v7367_v49 }
  0x3e   :  { %6975 = vmatprep.subr.bf16.mxu1 %v8068_v1 }
  0x3f   :  { %586 = vmatpush1.bf16.msra.mxu0 %v7359_v47 }
  0x40   :  { %881 = vmatprep.subr.bf16.mxu0 %v8105_v0  ;;  %v94_v0 = vunpack.c.h.bf16 %v89_v59 }
  0x41   :  { %6976 = vmatpush3.bf16.msra.mxu1 %v7368_v50 }
  0x42   :  { %604 = vmatmul.mubr.bf16.vlgmr.msra.gmra.mrb[4].mxu0 %v8071_v28  ;;  %6981 = vmatprep.subr.bf16.mxu1 %v8068_v1 }
  0x43   :  { %882 = vmatpush1.bf16.msra.mxu0 %v8112_v3  ;;  %913 = vmatprep.mubr.bf16.mxu0 %v8069_v2 }
  0x44   :  { %883 = vmatprep.subr.bf16.mxu0 %v8120_v4  ;;  %6978 = vmatmul.mubr.bf16.vlgmr.msra.gmra.mrb[4].mxu1 %v8071_v28 }
  0x45   :  { %6997 = vmatprep.mubr.msk.bf16.mxu1 %vm8070_vm0, %v8068_v1  ;;  %6982 = vmatpush3.bf16.msra.mxu1 %v7369_v51 }
  0x46   :  { %6983 = vmatprep.subr.bf16.mxu1 %v8068_v1 }
  0x47   :  { %884 = vmatpush1.bf16.msra.mxu0 %v8126_v5 }
  0x48   :  { %885 = vmatprep.subr.bf16.mxu0 %v8132_v6  ;;  %v97_v6 = vunpack.c.h.bf16 %v91_v60 }
  0x49   :  { %6984 = vmatpush3.bf16.msra.mxu1 %v7370_v52 }
  0x4a   :  { %6985 = vmatprep.subr.bf16.mxu1 %v8068_v1 }
  0x4b   :  { %886 = vmatpush1.bf16.msra.mxu0 %v8138_v7 }
  0x4c   :  { %887 = vmatprep.subr.bf16.mxu0 %v8144_v8 }
  0x4d   :  { %6986 = vmatpush3.bf16.msra.mxu1 %v7371_v53 }
  0x4e   :  { %6987 = vmatprep.subr.bf16.mxu1 %v8068_v1 }
  0x4f   :  { %888 = vmatpush1.bf16.msra.mxu0 %v8153_v10 }
  0x50   :  { %889 = vmatprep.subr.bf16.mxu0 %v8159_v11 }
  0x51   :  { %6988 = vmatpush3.bf16.msra.mxu1 %v7372_v54 }
  0x52   :  { %6989 = vmatprep.subr.bf16.mxu1 %v8068_v1 }
  0x53   :  { %890 = vmatpush1.bf16.msra.mxu0 %v8168_v13 }
  0x54   :  { %891 = vmatprep.subr.bf16.mxu0 %v8178_v15 }
  0x55   :  { %6990 = vmatpush3.bf16.msra.mxu1 %v7373_v55 }
  0x56   :  { %6991 = vmatprep.subr.bf16.mxu1 %v8068_v1 }
  0x57   :  { %892 = vmatpush1.bf16.msra.mxu0 %v8185_v16 }
  0x58   :  { %893 = vmatprep.subr.bf16.mxu0 %v8194_v18 }
  0x59   :  { %6992 = vmatpush3.bf16.msra.mxu1 %v7374_v56 }
  0x5a   :  { %6993 = vmatprep.subr.bf16.mxu1 %v8068_v1 }
  0x5b   :  { %894 = vmatpush1.bf16.msra.mxu0 %v8200_v19 }
  0x5c   :  { %895 = vmatprep.subr.bf16.mxu0 %v8210_v21 }
  0x5d   :  { %6994 = vmatpush3.bf16.msra.mxu1 %v7375_v57 }
  0x5e   :  { %6995 = vmatprep.subr.bf16.mxu1 %v8068_v1 }
  0x5f   :  { %896 = vmatpush1.bf16.msra.mxu0 %v8217_v22 }
  0x60   :  { %1191 = vmatprep.subr.bf16.mxu0 %v8226_v24  ;;  %v8385_v24 = vld [vmem:[%s10161_s3] ss:$0 sm:$0xff] }
  0x61   :  { %6996 = vmatpush3.bf16.msra.mxu1 %v7376_v58 }
  0x62   :  { %7001 = vmatprep.subr.bf16.mxu1 %v8068_v1 }
  0xf5   :  { %v294_v63 = vpop.f32.mrb[0].mxu0 }
  0xf6   :  { %v344_v3 = vadd.f32 %v294_v63, %v93_v61  ;;  %v296_v4 = vpop.f32.mrb[1].mxu0 }
  0xf7   :  { %v298_v5 = vpop.f32.mrb[2].mxu0  ;;  %v358_v10 = vadd.f32 %v296_v4, %v94_v0  ;;  %v337_v14 = vpop.f32.mrb[0].mxu1 }
  0xf8   :  { %v5737_v7 = vmul.f32 -1.442695, %v344_v3  ;;  %v345_v8 = vadd.f32 %v298_v5, %v96_v62  ;;  %v300_v9 = vpop.f32.mrb[3].mxu0  ;;  %v6959_v15 = vpop.f32.mrb[1].mxu1  ;;  %v372_v28 = vadd.f32 %v8385_v24, %v337_v14  ;;  %v7377_v14 = vld [vmem:[%s10159_s2 + $0xc8] ss:$12 sps:$4 sm:$0xff]  }
  0xf9   :  { %v359_v12 = vadd.f32 %v300_v9, %v97_v6  ;;  %v5739_v13 = vmul.f32 -1.442695, %v358_v10  ;;  %v340_v17 = vpop.f32.mrb[2].mxu1 }
  0xfa   :  { %7689 = vpow2.f32 %v5737_v7  ;;  %v5738_v11 = vmul.f32 -1.442695, %v345_v8  ;;  %v6960_v18 = vpop.f32.mrb[3].mxu1  ;;  %v373_v32 = vadd.f32 %v8385_v24, %v340_v17  ;;  %v8049_v17 = vld [vmem:[%s10159_s2 + $0xc0] ss:$12 sps:$4 sm:$0xff]  }
  0xfb   :  { %v5740_v16 = vmul.f32 -1.442695, %v359_v12  ;;  %v7378_v18 = vld [vmem:[%s10159_s2 + $0xe0] ss:$12 sps:$4 sm:$0xff]  }
  0xfc   :  { %7691 = vpow2.f32 %v5738_v11 }
  0xfd   :  { %7693 = vpow2.f32 %v5739_v13 }
  0xfe   :  { %7695 = vpow2.f32 %v5740_v16 }
 0x104   :  { %v7690_v19 = vpop.eup %7689 }
 0x105   :  { %v352_v20 = vadd.f32 1.0, %v7690_v19 }
 0x106   :  { %v7692_v21 = vpop.eup %7691 }
 0x107   :  { %7697 = vrcp.f32 %v352_v20  ;;  %v353_v22 = vadd.f32 1.0, %v7692_v21  ;;  %v7694_v23 = vpop.eup %7693  ;;  %v8419_v20 = vld [vmem:[%s10161_s3 + $0x1] ss:$0 sm:$0xff]  ;;  %v8050_v21 = vld [vmem:[%s10159_s2 + $0xdc] ss:$12 sps:$4 sm:$0xff]  }
 0x108   :  { %v7696_v25 = vpop.eup %7695  ;;  %v366_v27 = vadd.f32 1.0, %v7694_v23  ;;  %v5744_v23 = vld [vmem:[%s10162_s1 + $0xc8] ss:$12 sps:$4 sm:$0xff]  }
 0x109   :  { %7699 = vrcp.f32 %v353_v22  ;;  %v367_v30 = vadd.f32 1.0, %v7696_v25  ;;  %v408_v34 = vunpack.c.h.bf16 %v5744_v23 }
 0x10a   :  { %7701 = vrcp.f32 %v366_v27  ;;  %v8051_v27 = vld [vmem:[%s10159_s2 + $0xd8] ss:$12 sps:$4 sm:$0xff]  }
 0x10b   :  { %7703 = vrcp.f32 %v367_v30 }
 0x111   :  { %v7698_v33 = vpop.eup %7697 }
 0x112   :  { %v374_v35 = vmul.f32 %v7698_v33, %v372_v28  ;;  %v7379_v28 = vld [vmem:[%s10159_s2 + $0xf8] ss:$12 sps:$4 sm:$0xff]  }
 0x113   :  { %v7700_v38 = vpop.eup %7699 }
 0x114   :  { %v376_v39 = vadd.f32 %v374_v35, %v95_v31  ;;  %v375_v40 = vmul.f32 %v7700_v38, %v373_v32  ;;  %v7702_v55 = vpop.eup %7701  ;;  %v405_v31 = vunpack.c.l.bf16 %v5744_v23  ;;  %v8581_v23 = vld [vmem:[%s10159_s2 + $0x60] ss:$12 sps:$4 sm:$0xff]  }
 0x115   :  { %v605_v42 = vpop.f32.mrb[4].mxu0  ;;  %v7704_v58 = vpop.eup %7703  ;;  %v380_v61 = vsub.f32 1.0, %v7702_v55  ;;  %v384_v5 = vmul.f32 0.0, %v7702_v55 }
 0x116   :  { %7705 = vtanh.f32 %v376_v39  ;;  %v377_v44 = vadd.f32 %v375_v40, %v98_v36  ;;  %v655_v45 = vadd.f32 %v605_v42, %v403_v37  ;;  %v607_v46 = vpop.f32.mrb[5].mxu0  ;;  %v381_v3 = vsub.f32 1.0, %v7704_v58  ;;  %v8053_v36 = vld [vmem:[%s10159_s2 + $0xf0] ss:$12 sps:$4 sm:$0xff]   ;;  %v8054_v39 = vld [vmem:[%s10159_s2 + $0x10c] ss:$12 sps:$4 sm:$0xff]  }
 0x117   :  { %v609_v47 = vpop.f32.mrb[6].mxu0  ;;  %v669_v52 = vadd.f32 %v607_v46, %v404_v43  ;;  %v648_v57 = vpop.f32.mrb[4].mxu1  ;;  %v385_v8 = vmul.f32 0.0, %v7704_v58  ;;  %v7380_v37 = vld [vmem:[%s10159_s2 + $0x110] ss:$12 sps:$4 sm:$0xff]  }
 0x118   :  { %7707 = vtanh.f32 %v377_v44  ;;  %v5803_v49 = vmul.f32 -1.442695, %v655_v45  ;;  %v656_v50 = vadd.f32 %v609_v47, %v406_v41  ;;  %v611_v51 = vpop.f32.mrb[7].mxu0  ;;  %v6979_v59 = vpop.f32.mrb[5].mxu1  ;;  %v683_v26 = vadd.f32 %v8419_v20, %v648_v57  ;;  %v8055_v43 = vld [vmem:[%s10159_s2 + $0x108] ss:$12 sps:$4 sm:$0xff]  }
 0x119   :  { %v670_v54 = vadd.f32 %v611_v51, %v407_v48  ;;  %v5805_v56 = vmul.f32 -1.442695, %v669_v52  ;;  %v651_v62 = vpop.f32.mrb[6].mxu1  ;;  %v7381_v44 = vld [vmem:[%s10159_s2 + $0x128] ss:$12 sps:$4 sm:$0xff]  }
 0x11a   :  { %7709 = vpow2.f32 %v5803_v49  ;;  %v5804_v53 = vmul.f32 -1.442695, %v656_v50  ;;  %v6980_v0 = vpop.f32.mrb[7].mxu1  ;;  %v684_v35 = vadd.f32 %v8419_v20, %v651_v62  ;;  %v8056_v45 = vld [vmem:[%s10159_s2 + $0x124] ss:$12 sps:$4 sm:$0xff]  }
 0x11b   :  { %v5806_v60 = vmul.f32 -1.442695, %v670_v54  ;;  %v8057_v46 = vld [vmem:[%s10159_s2 + $0x120] ss:$12 sps:$4 sm:$0xff]   ;;  %v8058_v48 = vld [vmem:[%s10159_s2 + $0x13c] ss:$12 sps:$4 sm:$0xff]  }
 0x11c   :  { %7711 = vpow2.f32 %v5804_v53  ;;  %v7382_v47 = vld [vmem:[%s10159_s2 + $0x140] ss:$12 sps:$4 sm:$0xff]   ;;  %v8059_v51 = vld [vmem:[%s10159_s2 + $0x138] ss:$12 sps:$4 sm:$0xff]  }
 0x11d   :  { %7713 = vpow2.f32 %v5805_v56  ;;  %v7383_v52 = vld [vmem:[%s10159_s2 + $0x158] ss:$12 sps:$4 sm:$0xff]   ;;  %v8060_v53 = vld [vmem:[%s10159_s2 + $0x154] ss:$12 sps:$4 sm:$0xff]  }
 0x11e   :  { %7715 = vpow2.f32 %v5806_v60  ;;  %v8061_v60 = vld [vmem:[%s10159_s2 + $0x150] ss:$12 sps:$4 sm:$0xff]   ;;  %v8062_v62 = vld [vmem:[%s10159_s2 + $0x16c] ss:$12 sps:$4 sm:$0xff]  }
 0x120   :  { %v7706_v63 = vpop.eup %7705 }
 0x121   :  { %v382_v4 = vmul.f32 %v7706_v63, %v380_v61  ;;  %v7384_v61 = vld [vmem:[%s10159_s2 + $0x170] ss:$12 sps:$4 sm:$0xff]  }
 0x122   :  { %v7708_v6 = vpop.eup %7707 }
 0x123   :  { %v383_v7 = vmul.f32 %v7708_v6, %v381_v3  ;;  %v8398_v9 = vadd.f32 %v384_v5, %v382_v4  ;;  %v8063_v5 = vld [vmem:[%s10159_s2 + $0x168] ss:$12 sps:$4 sm:$0xff]  }
 0x124   :  { %v7710_v10 = vpop.eup %7709 }
 0x125   :  { %v663_v11 = vadd.f32 1.0, %v7710_v10  ;;  %v8400_v12 = vadd.f32 %v385_v8, %v383_v7  ;;  %v8512_v7 = vld [vmem:[%s10159_s2 + $0x4] ss:$12 sps:$4 sm:$0xff]   ;;  %v8517_v8 = vld [vmem:[%s10159_s2] ss:$12 sps:$4 sm:$0xff]  }
 0x126   :  { %v7712_v13 = vpop.eup %7711  ;;  %v7388_v10 = vld [vmem:[%s10159_s2 + $0x8] ss:$12 sps:$4 sm:$0xff]  }
 0x127   :  { %7717 = vrcp.f32 %v663_v11  ;;  %v664_v15 = vadd.f32 1.0, %v7712_v13  ;;  %v388_v16 = vpack.c.bf16 %v8400_v12, %v8398_v9  ;;  %v7714_v19 = vpop.eup %7713  ;;  %v8527_v11 = vld [vmem:[%s10159_s2 + $0x1c] ss:$12 sps:$4 sm:$0xff]   ;;  %v8533_v13 = vld [vmem:[%s10159_s2 + $0x18] ss:$12 sps:$4 sm:$0xff]  }
 0x128   :  { %v7716_v22 = vpop.eup %7715  ;;  %v677_v25 = vadd.f32 1.0, %v7714_v19  ;;  %v8565_v19 = vld [vmem:[%s10159_s2 + $0x48] ss:$12 sps:$4 sm:$0xff]  }
 0x129   :  { %7719 = vrcp.f32 %v664_v15  ;;  %6677 = vst [vmem:[%s10163_s4] sm:$0xff] %v388_v16   ;;  %914 = vmatmul.mubr.bf16.vlgmr.msra.gmra.mrb[8].mxu0 %v388_v16  ;;  %6998 = vmatmul.mubr.bf16.vlgmr.msra.gmra.mrb[8].mxu1 %v388_v16  ;;  %v678_v30 = vadd.f32 1.0, %v7716_v22  ;;  %v8543_v15 = vld [vmem:[%s10159_s2 + $0x34] ss:$12 sps:$4 sm:$0xff]   ;;  %v8549_v16 = vld [vmem:[%s10159_s2 + $0x30] ss:$12 sps:$4 sm:$0xff]  }
 0x12a   :  { %1192 = vmatpush1.bf16.msra.mxu0 %v8049_v17  ;;  %7002 = vmatpush3.bf16.msra.mxu1 %v7377_v14  ;;  %7721 = vrcp.f32 %v677_v25  ;;  %v7392_v14 = vld [vmem:[%s10159_s2 + $0x20] ss:$12 sps:$4 sm:$0xff]   ;;  %v7396_v17 = vld [vmem:[%s10159_s2 + $0x38] ss:$12 sps:$4 sm:$0xff]   ;;  %v7404_v25 = vld [vmem:[%s10159_s2 + $0x68] ss:$12 sps:$4 sm:$0xff]  }
 0x12b   :  { %1193 = vmatprep.subr.bf16.mxu0 %v8050_v21  ;;  %7003 = vmatprep.subr.bf16.mxu1 %v8068_v1  ;;  %7723 = vrcp.f32 %v678_v30  ;;  %v7400_v21 = vld [vmem:[%s10159_s2 + $0x50] ss:$12 sps:$4 sm:$0xff]  }
 0x12c   :  { %1223 = vmatprep.mubr.bf16.mxu0 %v8069_v2  ;;  %7017 = vmatprep.mubr.msk.bf16.mxu1 %vm8070_vm0, %v8068_v1  ;;  %v8575_v22 = vld [vmem:[%s10159_s2 + $0x64] ss:$12 sps:$4 sm:$0xff]  }
 0x12d   :  { %v8613_v30 = vld [vmem:[%s10159_s2 + $0x90] ss:$12 sps:$4 sm:$0xff]  }
 0x12e   :  { %1194 = vmatpush1.bf16.msra.mxu0 %v8051_v27  ;;  %7004 = vmatpush3.bf16.msra.mxu1 %v7378_v18  ;;  %v8559_v18 = vld [vmem:[%s10159_s2 + $0x4c] ss:$12 sps:$4 sm:$0xff]  }
 0x12f   :  { %1195 = vmatprep.subr.bf16.mxu0 %v8052_v29  ;;  %7005 = vmatprep.subr.bf16.mxu1 %v8068_v1  ;;  %v8597_v27 = vld [vmem:[%s10159_s2 + $0x78] ss:$12 sps:$4 sm:$0xff]   ;;  %v8607_v29 = vld [vmem:[%s10159_s2 + $0x94] ss:$12 sps:$4 sm:$0xff]  }
 0x131   :  { %v7718_v32 = vpop.eup %7717 }
 0x132   :  { %v685_v33 = vmul.f32 %v7718_v32, %v683_v26  ;;  %1196 = vmatpush1.bf16.msra.mxu0 %v8053_v36  ;;  %7006 = vmatpush3.bf16.msra.mxu1 %v7379_v28  ;;  %v8591_v26 = vld [vmem:[%s10159_s2 + $0x7c] ss:$12 sps:$4 sm:$0xff]   ;;  %v7408_v28 = vld [vmem:[%s10159_s2 + $0x80] ss:$12 sps:$4 sm:$0xff]  }
 0x133   :  { %v7720_v38 = vpop.eup %7719  ;;  %1197 = vmatprep.subr.bf16.mxu0 %v8054_v39  ;;  %7007 = vmatprep.subr.bf16.mxu1 %v8068_v1  ;;  %v8623_v32 = vld [vmem:[%s10159_s2 + $0xac] ss:$12 sps:$4 sm:$0xff]  }
 0x134   :  { %v687_v40 = vadd.f32 %v685_v33, %v405_v31  ;;  %v686_v41 = vmul.f32 %v7720_v38, %v684_v35  ;;  %v7722_v49 = vpop.eup %7721  ;;  %v7412_v31 = vld [vmem:[%s10159_s2 + $0x98] ss:$12 sps:$4 sm:$0xff]   ;;  %v8629_v33 = vld [vmem:[%s10159_s2 + $0xa8] ss:$12 sps:$4 sm:$0xff]  }
 0x135   :  { %v7724_v50 = vpop.eup %7723  ;;  %v691_v54 = vsub.f32 1.0, %v7722_v49  ;;  %v695_v58 = vmul.f32 0.0, %v7722_v49  ;;  %v8639_v35 = vld [vmem:[%s10159_s2 + $0xc4] ss:$12 sps:$4 sm:$0xff]   ;;  %v5811_v36 = vld [vmem:[%s10160_s0 + $0x18] sm:$0xff] }
 0x136   :  { %7725 = vtanh.f32 %v687_v40  ;;  %v688_v42 = vadd.f32 %v686_v41, %v408_v34  ;;  %1198 = vmatpush1.bf16.msra.mxu0 %v8055_v43  ;;  %7008 = vmatpush3.bf16.msra.mxu1 %v7380_v37  ;;  %v692_v56 = vsub.f32 1.0, %v7724_v50  ;;  %v696_v0 = vmul.f32 0.0, %v7724_v50  ;;  %v7416_v34 = vld [vmem:[%s10159_s2 + $0xb0] ss:$12 sps:$4 sm:$0xff]   ;;  %v5813_v37 = vld [vmem:[%s10160_s0 + $0x24] sm:$0xff] }
 0x137   :  { %1199 = vmatprep.subr.bf16.mxu0 %v8056_v45  ;;  %7009 = vmatprep.subr.bf16.mxu1 %v8068_v1  ;;  %v715_v38 = vunpack.c.l.bf16 %v5811_v36  ;;  %v718_v39 = vunpack.c.l.bf16 %v5813_v37 }
 0x138   :  { %7727 = vtanh.f32 %v688_v42  ;;  %v716_v42 = vunpack.c.h.bf16 %v5811_v36 }
 0x13a   :  { %1200 = vmatpush1.bf16.msra.mxu0 %v8057_v46  ;;  %7010 = vmatpush3.bf16.msra.mxu1 %v7381_v44 }
 0x13b   :  { %1201 = vmatprep.subr.bf16.mxu0 %v8058_v48  ;;  %7011 = vmatprep.subr.bf16.mxu1 %v8068_v1  ;;  %v719_v48 = vunpack.c.h.bf16 %v5813_v37 }
 0x13e   :  { %1202 = vmatpush1.bf16.msra.mxu0 %v8059_v51  ;;  %7012 = vmatpush3.bf16.msra.mxu1 %v7382_v47 }
 0x13f   :  { %1203 = vmatprep.subr.bf16.mxu0 %v8060_v53  ;;  %7013 = vmatprep.subr.bf16.mxu1 %v8068_v1 }
 0x140   :  { %v7726_v55 = vpop.eup %7725 }
 0x141   :  { %v693_v57 = vmul.f32 %v7726_v55, %v691_v54 }
 0x142   :  { %v7728_v59 = vpop.eup %7727  ;;  %1204 = vmatpush1.bf16.msra.mxu0 %v8061_v60  ;;  %7014 = vmatpush3.bf16.msra.mxu1 %v7383_v52 }
 0x143   :  { %1205 = vmatprep.subr.bf16.mxu0 %v8062_v62  ;;  %7015 = vmatprep.subr.bf16.mxu1 %v8068_v1  ;;  %v694_v63 = vmul.f32 %v7728_v59, %v692_v56  ;;  %v8493_v3 = vadd.f32 %v695_v58, %v693_v57 }
 0x145   :  { %v8495_v4 = vadd.f32 %v696_v0, %v694_v63  ;;  %v5812_v0 = vld [vmem:[%s10160_s0 + $0x20] ss:$12 sps:$4 sm:$0xff]  }
 0x146   :  { %1206 = vmatpush1.bf16.msra.mxu0 %v8063_v5  ;;  %7016 = vmatpush3.bf16.msra.mxu1 %v7384_v61 }
 0x147   :  { %v699_v6 = vpack.c.bf16 %v8495_v4, %v8493_v3  ;;  %7021 = vmatprep.subr.bf16.mxu1 %v8068_v1  ;;  %1501 = vmatprep.subr.bf16.mxu0 %v8512_v7 }
 0x149   :  { %6763 = vst [vmem:[%s10164_s5 + $0x40] sm:$0xff] %v699_v6   ;;  %1224 = vmatmul.mubr.bf16.vlgmr.msra.gmra.mrb[12].mxu0 %v699_v6  ;;  %7018 = vmatmul.mubr.bf16.vlgmr.msra.gmra.mrb[12].mxu1 %v699_v6  ;;  %v5847_v6 = vld [vmem:[%s10162_s1 + $0xa8] sm:$0xff] }
 0x14a   :  { %1533 = vmatprep.mubr.bf16.mxu0 %v8069_v2  ;;  %7037 = vmatprep.mubr.msk.bf16.mxu1 %vm8070_vm0, %v8068_v1  ;;  %v1025_v36 = vunpack.c.l.bf16 %v5847_v6 }
 0x14b   :  { %1502 = vmatpush1.bf16.msra.mxu0 %v8517_v8  ;;  %7022 = vmatpush3.bf16.msra.mxu1 %v7388_v10  ;;  %v717_v10 = vunpack.c.l.bf16 %v5812_v0 }
 0x14c   :  { %7023 = vmatprep.subr.bf16.mxu1 %v8068_v1  ;;  %1503 = vmatprep.subr.bf16.mxu0 %v8527_v11 }
 0x14f   :  { %1504 = vmatpush1.bf16.msra.mxu0 %v8533_v13  ;;  %7024 = vmatpush3.bf16.msra.mxu1 %v7392_v14 }
 0x150   :  { %7025 = vmatprep.subr.bf16.mxu1 %v8068_v1  ;;  %1505 = vmatprep.subr.bf16.mxu0 %v8543_v15 }
 0x153   :  { %1506 = vmatpush1.bf16.msra.mxu0 %v8549_v16  ;;  %7026 = vmatpush3.bf16.msra.mxu1 %v7396_v17 }
 0x154   :  { %7027 = vmatprep.subr.bf16.mxu1 %v8068_v1  ;;  %1507 = vmatprep.subr.bf16.mxu0 %v8559_v18 }
 0x157   :  { %1508 = vmatpush1.bf16.msra.mxu0 %v8565_v19  ;;  %7028 = vmatpush3.bf16.msra.mxu1 %v7400_v21 }
 0x158   :  { %7029 = vmatprep.subr.bf16.mxu1 %v8068_v1  ;;  %1509 = vmatprep.subr.bf16.mxu0 %v8575_v22 }
 0x15b   :  { %1510 = vmatpush1.bf16.msra.mxu0 %v8581_v23  ;;  %7030 = vmatpush3.bf16.msra.mxu1 %v7404_v25  ;;  %v720_v25 = vunpack.c.h.bf16 %v5812_v0 }
 0x15c   :  { %7031 = vmatprep.subr.bf16.mxu1 %v8068_v1  ;;  %1511 = vmatprep.subr.bf16.mxu0 %v8591_v26 }
 0x15f   :  { %1512 = vmatpush1.bf16.msra.mxu0 %v8597_v27  ;;  %7032 = vmatpush3.bf16.msra.mxu1 %v7408_v28  ;;  %v5849_v28 = vld [vmem:[%s10162_s1 + $0xb4] sm:$0xff] }
 0x160   :  { %7033 = vmatprep.subr.bf16.mxu1 %v8068_v1  ;;  %1513 = vmatprep.subr.bf16.mxu0 %v8607_v29 }
 0x163   :  { %1514 = vmatpush1.bf16.msra.mxu0 %v8613_v30  ;;  %7034 = vmatpush3.bf16.msra.mxu1 %v7412_v31 }
 0x164   :  { %7035 = vmatprep.subr.bf16.mxu1 %v8068_v1  ;;  %1515 = vmatprep.subr.bf16.mxu0 %v8623_v32 }
 0x167   :  { %1516 = vmatpush1.bf16.msra.mxu0 %v8629_v33  ;;  %7036 = vmatpush3.bf16.msra.mxu1 %v7416_v34 }
 0x168   :  { %7041 = vmatprep.subr.bf16.mxu1 %v8068_v1  ;;  %1811 = vmatprep.subr.bf16.mxu0 %v8639_v35 }
 0x1fc   :  { %v915_v40 = vpop.f32.mrb[8].mxu0  ;;  %v958_v41 = vpop.f32.mrb[8].mxu1 }
 0x1fd   :  { %v965_v43 = vadd.f32 %v915_v40, %v715_v38  ;;  %v917_v44 = vpop.f32.mrb[9].mxu0  ;;  %v6999_v45 = vpop.f32.mrb[9].mxu1  ;;  %v993_v14 = vadd.f32 %v8385_v24, %v958_v41  ;;  %v1028_v40 = vunpack.c.l.bf16 %v5849_v28  ;;  %v1026_v41 = vunpack.c.h.bf16 %v5847_v6 }
 0x1fe   :  { %v919_v46 = vpop.f32.mrb[10].mxu0  ;;  %v961_v47 = vpop.f32.mrb[10].mxu1  ;;  %v979_v53 = vadd.f32 %v917_v44, %v716_v42 }
 0x1ff   :  { %v5839_v49 = vmul.f32 -1.442695, %v965_v43  ;;  %v966_v50 = vadd.f32 %v919_v46, %v718_v39  ;;  %v921_v51 = vpop.f32.mrb[11].mxu0  ;;  %v7000_v52 = vpop.f32.mrb[11].mxu1  ;;  %v994_v34 = vadd.f32 %v8385_v24, %v961_v47 }
 0x200   :  { %v980_v55 = vadd.f32 %v921_v51, %v719_v48  ;;  %v5841_v56 = vmul.f32 -1.442695, %v979_v53  ;;  %v1029_v51 = vunpack.c.h.bf16 %v5849_v28 }
 0x201   :  { %7729 = vpow2.f32 %v5839_v49  ;;  %v5840_v54 = vmul.f32 -1.442695, %v966_v50 }
 0x202   :  { %v5842_v57 = vmul.f32 -1.442695, %v980_v55 }
 0x203   :  { %7731 = vpow2.f32 %v5840_v54 }
 0x204   :  { %7733 = vpow2.f32 %v5841_v56 }
 0x205   :  { %7735 = vpow2.f32 %v5842_v57 }
 0x20b   :  { %v7730_v58 = vpop.eup %7729 }
 0x20c   :  { %v973_v59 = vadd.f32 1.0, %v7730_v58 }
 0x20d   :  { %v7732_v60 = vpop.eup %7731 }
 0x20e   :  { %7737 = vrcp.f32 %v973_v59  ;;  %v974_v61 = vadd.f32 1.0, %v7732_v60  ;;  %v7734_v62 = vpop.eup %7733 }
 0x20f   :  { %v7736_v63 = vpop.eup %7735  ;;  %v987_v5 = vadd.f32 1.0, %v7734_v62 }
 0x210   :  { %7739 = vrcp.f32 %v974_v61  ;;  %v988_v17 = vadd.f32 1.0, %v7736_v63 }
 0x211   :  { %7741 = vrcp.f32 %v987_v5 }
 0x212   :  { %7743 = vrcp.f32 %v988_v17 }
 0x218   :  { %v7738_v21 = vpop.eup %7737 }
 0x219   :  { %v995_v31 = vmul.f32 %v7738_v21, %v993_v14 }
 0x21a   :  { %v7740_v37 = vpop.eup %7739 }
 0x21b   :  { %v997_v38 = vadd.f32 %v995_v31, %v717_v10  ;;  %v996_v39 = vmul.f32 %v7740_v37, %v994_v34  ;;  %v7742_v58 = vpop.eup %7741 }
 0x21c   :  { %v1225_v42 = vpop.f32.mrb[12].mxu0  ;;  %v8660_v43 = vpop.f32.mrb[12].mxu1  ;;  %v1001_v62 = vsub.f32 1.0, %v7742_v58  ;;  %v1005_v6 = vmul.f32 %v7742_v58, %v8398_v9  ;;  %v7420_v9 = vld [vmem:[%s10159_s2 + $0xc8] ss:$12 sps:$4 sm:$0xff]  }
 0x21d   :  { %7745 = vtanh.f32 %v997_v38  ;;  %v998_v44 = vadd.f32 %v996_v39, %v720_v25  ;;  %v1275_v45 = vadd.f32 %v1225_v42, %v1025_v36  ;;  %v1227_v46 = vpop.f32.mrb[13].mxu0  ;;  %v7019_v48 = vpop.f32.mrb[13].mxu1  ;;  %v8673_v36 = vld [vmem:[%s10159_s2 + $0xc0] ss:$12 sps:$4 sm:$0xff]   ;;  %v8683_v38 = vld [vmem:[%s10159_s2 + $0xdc] ss:$12 sps:$4 sm:$0xff]  }
 0x21e   :  { %v1229_v49 = vpop.f32.mrb[14].mxu0  ;;  %v8662_v50 = vpop.f32.mrb[14].mxu1  ;;  %v1289_v55 = vadd.f32 %v1227_v46, %v1026_v41  ;;  %v8692_v39 = vld [vmem:[%s10159_s2 + $0xd8] ss:$12 sps:$4 sm:$0xff]   ;;  %v8702_v41 = vld [vmem:[%s10159_s2 + $0xf4] ss:$12 sps:$4 sm:$0xff]  }
 0x21f   :  { %7747 = vtanh.f32 %v998_v44  ;;  %v5907_v47 = vmul.f32 -1.442695, %v1275_v45  ;;  %v1276_v52 = vadd.f32 %v1229_v49, %v1028_v40  ;;  %v1231_v53 = vpop.f32.mrb[15].mxu0  ;;  %v7020_v54 = vpop.f32.mrb[15].mxu1  ;;  %v7424_v40 = vld [vmem:[%s10159_s2 + $0xe0] ss:$12 sps:$4 sm:$0xff]  }
 0x220   :  { %v1290_v57 = vadd.f32 %v1231_v53, %v1029_v51  ;;  %v5909_v59 = vmul.f32 -1.442695, %v1289_v55  ;;  %v7744_v60 = vpop.eup %7743  ;;  %v5848_v45 = vld [vmem:[%s10162_s1 + $0xb0] ss:$12 sps:$4 sm:$0xff]   ;;  %v7428_v49 = vld [vmem:[%s10159_s2 + $0xf8] ss:$12 sps:$4 sm:$0xff]  }
 0x221   :  { %7749 = vpow2.f32 %v5907_v47  ;;  %v5908_v56 = vmul.f32 -1.442695, %v1276_v52  ;;  %v1002_v0 = vsub.f32 1.0, %v7744_v60  ;;  %v1006_v17 = vmul.f32 %v7744_v60, %v8400_v12  ;;  %v8714_v48 = vld [vmem:[%s10159_s2 + $0xf0] ss:$12 sps:$4 sm:$0xff]  }
 0x222   :  { %v5910_v61 = vmul.f32 -1.442695, %v1290_v57  ;;  %v8724_v51 = vld [vmem:[%s10159_s2 + $0x10c] ss:$12 sps:$4 sm:$0xff]   ;;  %v1027_v47 = vunpack.c.l.bf16 %v5848_v45  ;;  %v1303_v52 = vadd.f32 %v8419_v20, %v8660_v43  ;;  %v1304_v57 = vadd.f32 %v8419_v20, %v8662_v50  ;;  %v8734_v58 = vld [vmem:[%s10159_s2 + $0x108] ss:$12 sps:$4 sm:$0xff]  }
 0x223   :  { %7751 = vpow2.f32 %v5908_v56  ;;  %v1030_v56 = vunpack.c.h.bf16 %v5848_v45  ;;  %v7432_v43 = vld [vmem:[%s10159_s2 + $0x110] ss:$12 sps:$4 sm:$0xff]  }
 0x224   :  { %7753 = vpow2.f32 %v5909_v59  ;;  %v8744_v50 = vld [vmem:[%s10159_s2 + $0x124] ss:$12 sps:$4 sm:$0xff]  }
 0x225   :  { %7755 = vpow2.f32 %v5910_v61 }
 0x227   :  { %v7746_v63 = vpop.eup %7745 }
 0x228   :  { %v1003_v5 = vmul.f32 %v7746_v63, %v1001_v62  ;;  %v8750_v63 = vld [vmem:[%s10159_s2 + $0x120] ss:$12 sps:$4 sm:$0xff]  }
 0x229   :  { %v7748_v10 = vpop.eup %7747 }
 0x22a   :  { %v1004_v14 = vmul.f32 %v7748_v10, %v1002_v0  ;;  %v8666_v21 = vadd.f32 %v1005_v6, %v1003_v5  ;;  %v7436_v0 = vld [vmem:[%s10159_s2 + $0x128] ss:$12 sps:$4 sm:$0xff]   ;;  %v8766_v6 = vld [vmem:[%s10159_s2 + $0x138] ss:$12 sps:$4 sm:$0xff]   ;;  %v7440_v10 = vld [vmem:[%s10159_s2 + $0x140] ss:$12 sps:$4 sm:$0xff]  }
 0x22b   :  { %v7750_v25 = vpop.eup %7749  ;;  %v8760_v5 = vld [vmem:[%s10159_s2 + $0x13c] ss:$12 sps:$4 sm:$0xff]  }
 0x22c   :  { %v1283_v28 = vadd.f32 1.0, %v7750_v25  ;;  %v8668_v31 = vadd.f32 %v1006_v17, %v1004_v14  ;;  %v8776_v14 = vld [vmem:[%s10159_s2 + $0x154] ss:$12 sps:$4 sm:$0xff]  }
 0x22d   :  { %v7752_v34 = vpop.eup %7751 }
 0x22e   :  { %7757 = vrcp.f32 %v1283_v28  ;;  %v1284_v37 = vadd.f32 1.0, %v7752_v34  ;;  %v1009_v12 = vpack.c.bf16 %v8668_v31, %v8666_v21  ;;  %v7754_v42 = vpop.eup %7753  ;;  %v8782_v28 = vld [vmem:[%s10159_s2 + $0x150] ss:$12 sps:$4 sm:$0xff]   ;;  %v7444_v34 = vld [vmem:[%s10159_s2 + $0x158] ss:$12 sps:$4 sm:$0xff]  }
 0x22f   :  { %v7756_v44 = vpop.eup %7755  ;;  %v1297_v46 = vadd.f32 1.0, %v7754_v42 }
 0x230   :  { %7759 = vrcp.f32 %v1284_v37  ;;  %6764 = vst [vmem:[%s10163_s4 + $0x8] sm:$0xff] %v1009_v12   ;;  %1534 = vmatmul.mubr.bf16.vlgmr.msra.gmra.mrb[16].mxu0 %v1009_v12  ;;  %7038 = vmatmul.mubr.bf16.vlgmr.msra.gmra.mrb[16].mxu1 %v1009_v12  ;;  %v1298_v53 = vadd.f32 1.0, %v7756_v44 }
 0x231   :  { %1812 = vmatpush1.bf16.msra.mxu0 %v8673_v36  ;;  %7042 = vmatpush3.bf16.msra.mxu1 %v7420_v9  ;;  %7761 = vrcp.f32 %v1297_v46  ;;  %v8792_v9 = vld [vmem:[%s10159_s2 + $0x16c] ss:$12 sps:$4 sm:$0xff]   ;;  %v8799_v46 = vld [vmem:[%s10159_s2 + $0x168] ss:$12 sps:$4 sm:$0xff]  }
 0x232   :  { %1813 = vmatprep.subr.bf16.mxu0 %v8683_v38  ;;  %7043 = vmatprep.subr.bf16.mxu1 %v8068_v1  ;;  %7763 = vrcp.f32 %v1298_v53 }
 0x233   :  { %1843 = vmatprep.mubr.bf16.mxu0 %v8069_v2  ;;  %7057 = vmatprep.mubr.msk.bf16.mxu1 %vm8070_vm0, %v8068_v1 }
 0x235   :  { %1814 = vmatpush1.bf16.msra.mxu0 %v8692_v39  ;;  %7044 = vmatpush3.bf16.msra.mxu1 %v7424_v40 }
 0x236   :  { %1815 = vmatprep.subr.bf16.mxu0 %v8702_v41  ;;  %7045 = vmatprep.subr.bf16.mxu1 %v8068_v1 }
 0x238   :  { %v7758_v54 = vpop.eup %7757 }
 0x239   :  { %v1305_v55 = vmul.f32 %v7758_v54, %v1303_v52  ;;  %1816 = vmatpush1.bf16.msra.mxu0 %v8714_v48  ;;  %7046 = vmatpush3.bf16.msra.mxu1 %v7428_v49  ;;  %v7448_v49 = vld [vmem:[%s10159_s2 + $0x170] ss:$12 sps:$4 sm:$0xff]  }
 0x23a   :  { %v7760_v59 = vpop.eup %7759  ;;  %1817 = vmatprep.subr.bf16.mxu0 %v8724_v51  ;;  %7047 = vmatprep.subr.bf16.mxu1 %v8068_v1 }
 0x23b   :  { %v1307_v60 = vadd.f32 %v1305_v55, %v1027_v47  ;;  %v1306_v61 = vmul.f32 %v7760_v59, %v1304_v57  ;;  %v7762_v17 = vpop.eup %7761 }
 0x23c   :  { %v7764_v25 = vpop.eup %7763  ;;  %v1311_v37 = vsub.f32 1.0, %v7762_v17  ;;  %v1315_v44 = vmul.f32 %v7762_v17, %v8493_v3 }
 0x23d   :  { %7765 = vtanh.f32 %v1307_v60  ;;  %v1308_v62 = vadd.f32 %v1306_v61, %v1030_v56  ;;  %1818 = vmatpush1.bf16.msra.mxu0 %v8734_v58  ;;  %7048 = vmatpush3.bf16.msra.mxu1 %v7432_v43  ;;  %v1312_v40 = vsub.f32 1.0, %v7764_v25  ;;  %v1316_v3 = vmul.f32 %v7764_v25, %v8495_v4  ;;  %v7449_v4 = vld [vmem:[%s10159_s2 + $0x8] ss:$12 sps:$4 sm:$0xff]  }
 0x23e   :  { %1819 = vmatprep.subr.bf16.mxu0 %v8744_v50  ;;  %7049 = vmatprep.subr.bf16.mxu1 %v8068_v1 }
 0x23f   :  { %7767 = vtanh.f32 %v1308_v62 }
 0x241   :  { %1820 = vmatpush1.bf16.msra.mxu0 %v8750_v63  ;;  %7050 = vmatpush3.bf16.msra.mxu1 %v7436_v0 }
 0x242   :  { %1821 = vmatprep.subr.bf16.mxu0 %v8760_v5  ;;  %7051 = vmatprep.subr.bf16.mxu1 %v8068_v1 }
 0x245   :  { %1822 = vmatpush1.bf16.msra.mxu0 %v8766_v6  ;;  %7052 = vmatpush3.bf16.msra.mxu1 %v7440_v10 }
 0x246   :  { %1823 = vmatprep.subr.bf16.mxu0 %v8776_v14  ;;  %7053 = vmatprep.subr.bf16.mxu1 %v8068_v1 }
 0x247   :  { %v7766_v12 = vpop.eup %7765 }
 0x248   :  { %v1313_v42 = vmul.f32 %v7766_v12, %v1311_v37 }
 0x249   :  { %v7768_v45 = vpop.eup %7767  ;;  %1824 = vmatpush1.bf16.msra.mxu0 %v8782_v28  ;;  %7054 = vmatpush3.bf16.msra.mxu1 %v7444_v34 }
 0x24a   :  { %1825 = vmatprep.subr.bf16.mxu0 %v8792_v9  ;;  %7055 = vmatprep.subr.bf16.mxu1 %v8068_v1  ;;  %v1314_v47 = vmul.f32 %v7768_v45, %v1312_v40  ;;  %v8807_v52 = vadd.f32 %v1315_v44, %v1313_v42  ;;  %v5916_v45 = vld [vmem:[%s10160_s0 + $0x38] ss:$12 sps:$4 sm:$0xff]  }
 0x24c   :  { %v8809_v53 = vadd.f32 %v1316_v3, %v1314_v47  ;;  %v5951_v47 = vld [vmem:[%s10162_s1 + $0x90] sm:$0xff]  ;;  %v1337_v3 = vunpack.c.l.bf16 %v5916_v45 }
 0x24d   :  { %1826 = vmatpush1.bf16.msra.mxu0 %v8799_v46  ;;  %7056 = vmatpush3.bf16.msra.mxu1 %v7448_v49 }
 0x24e   :  { %v1319_v54 = vpack.c.bf16 %v8809_v53, %v8807_v52  ;;  %2121 = vmatprep.subr.bf16.mxu0 %v8512_v7  ;;  %7061 = vmatprep.subr.bf16.mxu1 %v8068_v1  ;;  %v7450_v7 = vld [vmem:[%s10159_s2 + $0x20] ss:$12 sps:$4 sm:$0xff]  }
 0x250   :  { %6765 = vst [vmem:[%s10164_s5 + $0x38] sm:$0xff] %v1319_v54   ;;  %1844 = vmatmul.mubr.bf16.vlgmr.msra.gmra.mrb[20].mxu0 %v1319_v54  ;;  %7058 = vmatmul.mubr.bf16.vlgmr.msra.gmra.mrb[20].mxu1 %v1319_v54 }
 0x251   :  { %2122 = vmatpush1.bf16.msra.mxu0 %v8517_v8  ;;  %2153 = vmatprep.mubr.bf16.mxu0 %v8069_v2  ;;  %v7451_v8 = vld [vmem:[%s10159_s2 + $0x38] ss:$12 sps:$4 sm:$0xff]  }
 0x252   :  { %2123 = vmatprep.subr.bf16.mxu0 %v8527_v11  ;;  %7077 = vmatprep.mubr.msk.bf16.mxu1 %vm8070_vm0, %v8068_v1  ;;  %v7452_v11 = vld [vmem:[%s10159_s2 + $0x50] ss:$12 sps:$4 sm:$0xff]  }
 0x253   :  { %7062 = vmatpush3.bf16.msra.mxu1 %v7449_v4 }
 0x254   :  { %7063 = vmatprep.subr.bf16.mxu1 %v8068_v1 }
 0x255   :  { %2124 = vmatpush1.bf16.msra.mxu0 %v8533_v13  ;;  %v7453_v13 = vld [vmem:[%s10159_s2 + $0x68] ss:$12 sps:$4 sm:$0xff]  }
 0x256   :  { %2125 = vmatprep.subr.bf16.mxu0 %v8543_v15  ;;  %v7454_v15 = vld [vmem:[%s10159_s2 + $0x80] ss:$12 sps:$4 sm:$0xff]  }
 0x257   :  { %7064 = vmatpush3.bf16.msra.mxu1 %v7450_v7 }
 0x258   :  { %7065 = vmatprep.subr.bf16.mxu1 %v8068_v1 }
 0x259   :  { %2126 = vmatpush1.bf16.msra.mxu0 %v8549_v16  ;;  %v7455_v16 = vld [vmem:[%s10159_s2 + $0x98] ss:$12 sps:$4 sm:$0xff]  }
 0x25a   :  { %2127 = vmatprep.subr.bf16.mxu0 %v8559_v18  ;;  %v7456_v18 = vld [vmem:[%s10159_s2 + $0xb0] ss:$12 sps:$4 sm:$0xff]  }
 0x25b   :  { %7066 = vmatpush3.bf16.msra.mxu1 %v7451_v8  ;;  %v1340_v8 = vunpack.c.h.bf16 %v5916_v45 }
 0x25c   :  { %7067 = vmatprep.subr.bf16.mxu1 %v8068_v1 }
 0x25d   :  { %2128 = vmatpush1.bf16.msra.mxu0 %v8565_v19  ;;  %v5915_v19 = vld [vmem:[%s10160_s0 + $0x30] sm:$0xff] }
 0x25e   :  { %2129 = vmatprep.subr.bf16.mxu0 %v8575_v22  ;;  %v5917_v22 = vld [vmem:[%s10160_s0 + $0x3c] sm:$0xff] }
 0x25f   :  { %7068 = vmatpush3.bf16.msra.mxu1 %v7452_v11  ;;  %v1339_v57 = vunpack.c.h.bf16 %v5917_v22  ;;  %v5953_v11 = vld [vmem:[%s10162_s1 + $0x9c] sm:$0xff] }
 0x260   :  { %7069 = vmatprep.subr.bf16.mxu1 %v8068_v1 }
 0x261   :  { %2130 = vmatpush1.bf16.msra.mxu0 %v8581_v23  ;;  %v1335_v23 = vunpack.c.l.bf16 %v5915_v19 }
 0x262   :  { %2131 = vmatprep.subr.bf16.mxu0 %v8591_v26  ;;  %v1338_v26 = vunpack.c.l.bf16 %v5917_v22 }
 0x263   :  { %7070 = vmatpush3.bf16.msra.mxu1 %v7453_v13 }
 0x264   :  { %7071 = vmatprep.subr.bf16.mxu1 %v8068_v1 }
 0x265   :  { %2132 = vmatpush1.bf16.msra.mxu0 %v8597_v27 }
 0x266   :  { %2133 = vmatprep.subr.bf16.mxu0 %v8607_v29 }
 0x267   :  { %7072 = vmatpush3.bf16.msra.mxu1 %v7454_v15 }
 0x268   :  { %7073 = vmatprep.subr.bf16.mxu1 %v8068_v1 }
 0x269   :  { %2134 = vmatpush1.bf16.msra.mxu0 %v8613_v30  ;;  %v1336_v30 = vunpack.c.h.bf16 %v5915_v19 }
 0x26a   :  { %2135 = vmatprep.subr.bf16.mxu0 %v8623_v32 }
 0x26b   :  { %7074 = vmatpush3.bf16.msra.mxu1 %v7455_v16  ;;  %v1645_v16 = vunpack.c.l.bf16 %v5951_v47 }
 0x26c   :  { %7075 = vmatprep.subr.bf16.mxu1 %v8068_v1 }
 0x26d   :  { %2136 = vmatpush1.bf16.msra.mxu0 %v8629_v33 }
 0x26e   :  { %2431 = vmatprep.subr.bf16.mxu0 %v8639_v35 }
 0x26f   :  { %7076 = vmatpush3.bf16.msra.mxu1 %v7456_v18 }
 0x270   :  { %7081 = vmatprep.subr.bf16.mxu1 %v8068_v1 }
 0x303   :  { %v1535_v27 = vpop.f32.mrb[16].mxu0  ;;  %v1578_v29 = vpop.f32.mrb[16].mxu1 }
 0x304   :  { %v1585_v32 = vadd.f32 %v1535_v27, %v1335_v23  ;;  %v1537_v33 = vpop.f32.mrb[17].mxu0  ;;  %v7039_v35 = vpop.f32.mrb[17].mxu1  ;;  %v1613_v54 = vadd.f32 %v8385_v24, %v1578_v29  ;;  %v1648_v23 = vunpack.c.l.bf16 %v5953_v11  ;;  %v1646_v29 = vunpack.c.h.bf16 %v5951_v47 }
 0x305   :  { %v1539_v55 = vpop.f32.mrb[18].mxu0  ;;  %v1581_v56 = vpop.f32.mrb[18].mxu1  ;;  %v1599_v62 = vadd.f32 %v1537_v33, %v1336_v30 }
 0x306   :  { %v5943_v43 = vmul.f32 -1.442695, %v1585_v32  ;;  %v1586_v59 = vadd.f32 %v1539_v55, %v1338_v26  ;;  %v1541_v60 = vpop.f32.mrb[19].mxu0  ;;  %v7040_v61 = vpop.f32.mrb[19].mxu1  ;;  %v1614_v15 = vadd.f32 %v8385_v24, %v1581_v56 }
 0x307   :  { %v1600_v10 = vadd.f32 %v1541_v60, %v1339_v57  ;;  %v5945_v17 = vmul.f32 -1.442695, %v1599_v62 }
 0x308   :  { %7769 = vpow2.f32 %v5943_v43  ;;  %v5944_v0 = vmul.f32 -1.442695, %v1586_v59  ;;  %v1649_v43 = vunpack.c.h.bf16 %v5953_v11  ;;  %v7457_v11 = vld [vmem:[%s10159_s2 + $0xc8] ss:$12 sps:$4 sm:$0xff]  }
 0x309   :  { %v5946_v25 = vmul.f32 -1.442695, %v1600_v10 }
 0x30a   :  { %7771 = vpow2.f32 %v5944_v0 }
 0x30b   :  { %7773 = vpow2.f32 %v5945_v17 }
 0x30c   :  { %7775 = vpow2.f32 %v5946_v25 }
 0x312   :  { %v7770_v34 = vpop.eup %7769 }
 0x313   :  { %v1593_v37 = vadd.f32 1.0, %v7770_v34 }
 0x314   :  { %v7772_v12 = vpop.eup %7771 }
 0x315   :  { %7777 = vrcp.f32 %v1593_v37  ;;  %v1594_v40 = vadd.f32 1.0, %v7772_v12  ;;  %v7774_v42 = vpop.eup %7773 }
 0x316   :  { %v7776_v44 = vpop.eup %7775  ;;  %v1607_v49 = vadd.f32 1.0, %v7774_v42 }
 0x317   :  { %7779 = vrcp.f32 %v1594_v40  ;;  %v1608_v4 = vadd.f32 1.0, %v7776_v44 }
 0x318   :  { %7781 = vrcp.f32 %v1607_v49 }
 0x319   :  { %7783 = vrcp.f32 %v1608_v4 }
 0x31f   :  { %v7778_v7 = vpop.eup %7777 }
 0x320   :  { %v1615_v13 = vmul.f32 %v7778_v7, %v1613_v54 }
 0x321   :  { %v7780_v18 = vpop.eup %7779 }
 0x322   :  { %v1617_v19 = vadd.f32 %v1615_v13, %v1337_v3  ;;  %v1616_v22 = vmul.f32 %v7780_v18, %v1614_v15  ;;  %v7782_v10 = vpop.eup %7781 }
 0x323   :  { %v1845_v26 = vpop.f32.mrb[20].mxu0  ;;  %v8887_v27 = vpop.f32.mrb[20].mxu1  ;;  %v1621_v37 = vsub.f32 1.0, %v7782_v10  ;;  %v1625_v44 = vmul.f32 %v7782_v10, %v8666_v21  ;;  %v9010_v10 = vld [vmem:[%s10159_s2 + $0x30] ss:$12 sps:$4 sm:$0xff]  }
 0x324   :  { %7785 = vtanh.f32 %v1617_v19  ;;  %v1618_v30 = vadd.f32 %v1616_v22, %v1340_v8  ;;  %v1895_v32 = vadd.f32 %v1845_v26, %v1645_v16  ;;  %v1847_v33 = vpop.f32.mrb[21].mxu0  ;;  %v7059_v35 = vpop.f32.mrb[21].mxu1  ;;  %v1923_v22 = vadd.f32 %v8419_v20, %v8887_v27 }
 0x325   :  { %v1849_v55 = vpop.f32.mrb[22].mxu0  ;;  %v1891_v57 = vpop.f32.mrb[22].mxu1  ;;  %v1909_v61 = vadd.f32 %v1847_v33, %v1646_v29 }
 0x326   :  { %7787 = vtanh.f32 %v1618_v30  ;;  %v6011_v24 = vmul.f32 -1.442695, %v1895_v32  ;;  %v1896_v56 = vadd.f32 %v1849_v55, %v1648_v23  ;;  %v1851_v59 = vpop.f32.mrb[23].mxu0  ;;  %v7060_v60 = vpop.f32.mrb[23].mxu1 }
 0x327   :  { %v1910_v0 = vadd.f32 %v1851_v59, %v1649_v43  ;;  %v6013_v17 = vmul.f32 -1.442695, %v1909_v61  ;;  %v7784_v25 = vpop.eup %7783  ;;  %v8994_v61 = vld [vmem:[%s10159_s2 + $0x18] ss:$12 sps:$4 sm:$0xff]  }
 0x328   :  { %7789 = vpow2.f32 %v6011_v24  ;;  %v6012_v62 = vmul.f32 -1.442695, %v1896_v56  ;;  %v1622_v40 = vsub.f32 1.0, %v7784_v25  ;;  %v1626_v47 = vmul.f32 %v7784_v25, %v8668_v31  ;;  %v7458_v31 = vld [vmem:[%s10159_s2 + $0xe0] ss:$12 sps:$4 sm:$0xff]  }
 0x329   :  { %v6014_v34 = vmul.f32 -1.442695, %v1910_v0  ;;  %v9004_v0 = vld [vmem:[%s10159_s2 + $0x34] ss:$12 sps:$4 sm:$0xff]   ;;  %v9020_v25 = vld [vmem:[%s10159_s2 + $0x4c] ss:$12 sps:$4 sm:$0xff]  }
 0x32a   :  { %7791 = vpow2.f32 %v6012_v62  ;;  %v7472_v62 = vld [vmem:[%s10159_s2 + $0x20] ss:$12 sps:$4 sm:$0xff]  }
 0x32b   :  { %7793 = vpow2.f32 %v6013_v17  ;;  %v7476_v17 = vld [vmem:[%s10159_s2 + $0x38] ss:$12 sps:$4 sm:$0xff]  }
 0x32c   :  { %7795 = vpow2.f32 %v6014_v34  ;;  %v9026_v34 = vld [vmem:[%s10159_s2 + $0x48] ss:$12 sps:$4 sm:$0xff]  }
 0x32e   :  { %v7786_v12 = vpop.eup %7785 }
 0x32f   :  { %v1623_v42 = vmul.f32 %v7786_v12, %v1621_v37  ;;  %v7480_v37 = vld [vmem:[%s10159_s2 + $0x50] ss:$12 sps:$4 sm:$0xff]  }
 0x330   :  { %v7788_v45 = vpop.eup %7787  ;;  %v9036_v12 = vld [vmem:[%s10159_s2 + $0x64] ss:$12 sps:$4 sm:$0xff]  }
 0x331   :  { %v1624_v49 = vmul.f32 %v7788_v45, %v1622_v40  ;;  %v8891_v3 = vadd.f32 %v1625_v44, %v1623_v42  ;;  %v9042_v40 = vld [vmem:[%s10159_s2 + $0x60] ss:$12 sps:$4 sm:$0xff]   ;;  %v7484_v42 = vld [vmem:[%s10159_s2 + $0x68] ss:$12 sps:$4 sm:$0xff]   ;;  %v9058_v45 = vld [vmem:[%s10159_s2 + $0x78] ss:$12 sps:$4 sm:$0xff]  }
 0x332   :  { %v7790_v54 = vpop.eup %7789  ;;  %v9052_v44 = vld [vmem:[%s10159_s2 + $0x7c] ss:$12 sps:$4 sm:$0xff]  }
 0x333   :  { %v1903_v4 = vadd.f32 1.0, %v7790_v54  ;;  %v8893_v7 = vadd.f32 %v1626_v47, %v1624_v49  ;;  %v7488_v49 = vld [vmem:[%s10159_s2 + $0x80] ss:$12 sps:$4 sm:$0xff]   ;;  %v9074_v54 = vld [vmem:[%s10159_s2 + $0x90] ss:$12 sps:$4 sm:$0xff]  }
 0x334   :  { %v7792_v8 = vpop.eup %7791  ;;  %v9068_v47 = vld [vmem:[%s10159_s2 + $0x94] ss:$12 sps:$4 sm:$0xff]  }
 0x335   :  { %7797 = vrcp.f32 %v1903_v4  ;;  %v1904_v13 = vadd.f32 1.0, %v7792_v8  ;;  %v1629_v21 = vpack.c.bf16 %v8893_v7, %v8891_v3  ;;  %v7794_v15 = vpop.eup %7793  ;;  %v7492_v4 = vld [vmem:[%s10159_s2 + $0x98] ss:$12 sps:$4 sm:$0xff]  }
 0x336   :  { %v7796_v16 = vpop.eup %7795  ;;  %v1917_v18 = vadd.f32 1.0, %v7794_v15  ;;  %v9084_v8 = vld [vmem:[%s10159_s2 + $0xac] ss:$12 sps:$4 sm:$0xff]  }
 0x337   :  { %7799 = vrcp.f32 %v1904_v13  ;;  %6766 = vst [vmem:[%s10163_s4 + $0x10] sm:$0xff] %v1629_v21   ;;  %2154 = vmatmul.mubr.bf16.vlgmr.msra.gmra.mrb[24].mxu0 %v1629_v21  ;;  %7078 = vmatmul.mubr.bf16.vlgmr.msra.gmra.mrb[24].mxu1 %v1629_v21  ;;  %v1918_v23 = vadd.f32 1.0, %v7796_v16  ;;  %v7496_v13 = vld [vmem:[%s10159_s2 + $0xb0] ss:$12 sps:$4 sm:$0xff]   ;;  %v6021_v15 = vld [vmem:[%s10160_s0 + $0x54] sm:$0xff] }
 0x338   :  { %2432 = vmatpush1.bf16.msra.mxu0 %v8673_v36  ;;  %7082 = vmatpush3.bf16.msra.mxu1 %v7457_v11  ;;  %v5952_v36 = vld [vmem:[%s10162_s1 + $0x98] ss:$12 sps:$4 sm:$0xff]   ;;  %7801 = vrcp.f32 %v1917_v18  ;;  %v9090_v11 = vld [vmem:[%s10159_s2 + $0xa8] ss:$12 sps:$4 sm:$0xff]  }
 0x339   :  { %2433 = vmatprep.subr.bf16.mxu0 %v8683_v38  ;;  %7083 = vmatprep.subr.bf16.mxu1 %v8068_v1  ;;  %v7459_v38 = vld [vmem:[%s10159_s2 + $0xf8] ss:$12 sps:$4 sm:$0xff]   ;;  %v1647_v19 = vunpack.c.l.bf16 %v5952_v36  ;;  %v1650_v30 = vunpack.c.h.bf16 %v5952_v36  ;;  %7803 = vrcp.f32 %v1918_v23  ;;  %v1958_v36 = vunpack.c.l.bf16 %v6021_v15 }
 0x33a   :  { %2463 = vmatprep.mubr.bf16.mxu0 %v8069_v2  ;;  %7097 = vmatprep.mubr.msk.bf16.mxu1 %vm8070_vm0, %v8068_v1  ;;  %v9100_v21 = vld [vmem:[%s10159_s2 + $0xc4] ss:$12 sps:$4 sm:$0xff]  }
 0x33c   :  { %2434 = vmatpush1.bf16.msra.mxu0 %v8692_v39  ;;  %7084 = vmatpush3.bf16.msra.mxu1 %v7458_v31  ;;  %v1924_v39 = vadd.f32 %v8419_v20, %v1891_v57  ;;  %v7461_v20 = vld [vmem:[%s10159_s2 + $0x128] ss:$12 sps:$4 sm:$0xff]  }
 0x33d   :  { %2435 = vmatprep.subr.bf16.mxu0 %v8702_v41  ;;  %7085 = vmatprep.subr.bf16.mxu1 %v8068_v1  ;;  %v7460_v41 = vld [vmem:[%s10159_s2 + $0x110] ss:$12 sps:$4 sm:$0xff]   ;;  %v6019_v31 = vld [vmem:[%s10160_s0 + $0x48] sm:$0xff] }
 0x33e   :  { %v1955_v16 = vunpack.c.l.bf16 %v6019_v31 }
 0x33f   :  { %v7798_v26 = vpop.eup %7797 }
 0x340   :  { %v1925_v29 = vmul.f32 %v7798_v26, %v1923_v22  ;;  %2436 = vmatpush1.bf16.msra.mxu0 %v8714_v48  ;;  %7086 = vmatpush3.bf16.msra.mxu1 %v7459_v38  ;;  %v7462_v48 = vld [vmem:[%s10159_s2 + $0x140] ss:$12 sps:$4 sm:$0xff]  }
 0x341   :  { %v7800_v32 = vpop.eup %7799  ;;  %2437 = vmatprep.subr.bf16.mxu0 %v8724_v51  ;;  %7087 = vmatprep.subr.bf16.mxu1 %v8068_v1 }
 0x342   :  { %v1927_v27 = vadd.f32 %v1925_v29, %v1647_v19  ;;  %v1926_v33 = vmul.f32 %v7800_v32, %v1924_v39  ;;  %v7802_v51 = vpop.eup %7801  ;;  %v1956_v19 = vunpack.c.h.bf16 %v6019_v31  ;;  %v1959_v39 = vunpack.c.h.bf16 %v6021_v15 }
 0x344   :  { %7805 = vtanh.f32 %v1927_v27  ;;  %v1928_v35 = vadd.f32 %v1926_v33, %v1650_v30  ;;  %2438 = vmatpush1.bf16.msra.mxu0 %v8734_v58  ;;  %7088 = vmatpush3.bf16.msra.mxu1 %v7460_v41  ;;  %v7804_v58 = vpop.eup %7803 }
 0x345   :  { %2439 = vmatprep.subr.bf16.mxu0 %v8744_v50  ;;  %7089 = vmatprep.subr.bf16.mxu1 %v8068_v1  ;;  %v7463_v50 = vld [vmem:[%s10159_s2 + $0x158] ss:$12 sps:$4 sm:$0xff]   ;;  %v1932_v57 = vsub.f32 1.0, %v7804_v58  ;;  %v1936_v56 = vmul.f32 %v7804_v58, %v8809_v53  ;;  %v8988_v53 = vld [vmem:[%s10159_s2 + $0x1c] ss:$12 sps:$4 sm:$0xff]  }
 0x346   :  { %7807 = vtanh.f32 %v1928_v35 }
 0x348   :  { %2440 = vmatpush1.bf16.msra.mxu0 %v8750_v63  ;;  %7090 = vmatpush3.bf16.msra.mxu1 %v7461_v20  ;;  %v1931_v63 = vsub.f32 1.0, %v7802_v51 }
 0x349   :  { %2441 = vmatprep.subr.bf16.mxu0 %v8760_v5  ;;  %7091 = vmatprep.subr.bf16.mxu1 %v8068_v1  ;;  %v1935_v5 = vmul.f32 %v7802_v51, %v8807_v52  ;;  %v7468_v52 = vld [vmem:[%s10159_s2 + $0x8] ss:$12 sps:$4 sm:$0xff]  }
 0x34c   :  { %2442 = vmatpush1.bf16.msra.mxu0 %v8766_v6  ;;  %7092 = vmatpush3.bf16.msra.mxu1 %v7462_v48  ;;  %v7464_v6 = vld [vmem:[%s10159_s2 + $0x170] ss:$12 sps:$4 sm:$0xff]  }
 0x34d   :  { %2443 = vmatprep.subr.bf16.mxu0 %v8776_v14  ;;  %7093 = vmatprep.subr.bf16.mxu1 %v8068_v1 }
 0x34e   :  { %v7806_v55 = vpop.eup %7805 }
 0x34f   :  { %v1933_v43 = vmul.f32 %v7806_v55, %v1931_v63 }
 0x350   :  { %v7808_v24 = vpop.eup %7807  ;;  %2444 = vmatpush1.bf16.msra.mxu0 %v8782_v28  ;;  %7094 = vmatpush3.bf16.msra.mxu1 %v7463_v50 }
 0x351   :  { %2445 = vmatprep.subr.bf16.mxu0 %v8792_v9  ;;  %7095 = vmatprep.subr.bf16.mxu1 %v8068_v1  ;;  %v1934_v14 = vmul.f32 %v7808_v24, %v1932_v57  ;;  %v8956_v59 = vadd.f32 %v1935_v5, %v1933_v43  ;;  %v8973_v9 = vld [vmem:[%s10159_s2 + $0x4] ss:$12 sps:$4 sm:$0xff]  }
 0x352   :  { %v6020_v24 = vld [vmem:[%s10160_s0 + $0x50] ss:$12 sps:$4 sm:$0xff]  }
 0x353   :  { %v8958_v60 = vadd.f32 %v1936_v56, %v1934_v14  ;;  %v6055_v14 = vld [vmem:[%s10162_s1 + $0x78] sm:$0xff]  ;;  %v1957_v56 = vunpack.c.l.bf16 %v6020_v24 }
 0x354   :  { %2446 = vmatpush1.bf16.msra.mxu0 %v8799_v46  ;;  %7096 = vmatpush3.bf16.msra.mxu1 %v7464_v6  ;;  %v8978_v46 = vld [vmem:[%s10159_s2] ss:$12 sps:$4 sm:$0xff]  }
 0x355   :  { %v1939_v28 = vpack.c.bf16 %v8958_v60, %v8956_v59  ;;  %7101 = vmatprep.subr.bf16.mxu1 %v8068_v1  ;;  %2741 = vmatprep.subr.bf16.mxu0 %v8973_v9 }
 0x357   :  { %6767 = vst [vmem:[%s10164_s5 + $0x30] sm:$0xff] %v1939_v28   ;;  %2464 = vmatmul.mubr.bf16.vlgmr.msra.gmra.mrb[28].mxu0 %v1939_v28  ;;  %7098 = vmatmul.mubr.bf16.vlgmr.msra.gmra.mrb[28].mxu1 %v1939_v28  ;;  %v9119_v28 = vld [vmem:[%s10161_s3] ss:$0 sm:$0xff] }
 0x358   :  { %2773 = vmatprep.mubr.bf16.mxu0 %v8069_v2  ;;  %7117 = vmatprep.mubr.msk.bf16.mxu1 %vm8070_vm0, %v8068_v1 }
 0x359   :  { %2742 = vmatpush1.bf16.msra.mxu0 %v8978_v46  ;;  %7102 = vmatpush3.bf16.msra.mxu1 %v7468_v52 }
 0x35a   :  { %7103 = vmatprep.subr.bf16.mxu1 %v8068_v1  ;;  %2743 = vmatprep.subr.bf16.mxu0 %v8988_v53 }
 0x35d   :  { %2744 = vmatpush1.bf16.msra.mxu0 %v8994_v61  ;;  %7104 = vmatpush3.bf16.msra.mxu1 %v7472_v62 }
 0x35e   :  { %7105 = vmatprep.subr.bf16.mxu1 %v8068_v1  ;;  %2745 = vmatprep.subr.bf16.mxu0 %v9004_v0 }
 0x361   :  { %2746 = vmatpush1.bf16.msra.mxu0 %v9010_v10  ;;  %7106 = vmatpush3.bf16.msra.mxu1 %v7476_v17 }
 0x362   :  { %7107 = vmatprep.subr.bf16.mxu1 %v8068_v1  ;;  %2747 = vmatprep.subr.bf16.mxu0 %v9020_v25 }
 0x365   :  { %2748 = vmatpush1.bf16.msra.mxu0 %v9026_v34  ;;  %7108 = vmatpush3.bf16.msra.mxu1 %v7480_v37  ;;  %v1960_v37 = vunpack.c.h.bf16 %v6020_v24 }
 0x366   :  { %7109 = vmatprep.subr.bf16.mxu1 %v8068_v1  ;;  %2749 = vmatprep.subr.bf16.mxu0 %v9036_v12 }
 0x369   :  { %2750 = vmatpush1.bf16.msra.mxu0 %v9042_v40  ;;  %7110 = vmatpush3.bf16.msra.mxu1 %v7484_v42  ;;  %v6057_v42 = vld [vmem:[%s10162_s1 + $0x84] sm:$0xff] }
 0x36a   :  { %7111 = vmatprep.subr.bf16.mxu1 %v8068_v1  ;;  %2751 = vmatprep.subr.bf16.mxu0 %v9052_v44 }
 0x36d   :  { %2752 = vmatpush1.bf16.msra.mxu0 %v9058_v45  ;;  %7112 = vmatpush3.bf16.msra.mxu1 %v7488_v49 }
 0x36e   :  { %7113 = vmatprep.subr.bf16.mxu1 %v8068_v1  ;;  %2753 = vmatprep.subr.bf16.mxu0 %v9068_v47 }
 0x371   :  { %2754 = vmatpush1.bf16.msra.mxu0 %v9074_v54  ;;  %7114 = vmatpush3.bf16.msra.mxu1 %v7492_v4 }
 0x372   :  { %7115 = vmatprep.subr.bf16.mxu1 %v8068_v1  ;;  %2755 = vmatprep.subr.bf16.mxu0 %v9084_v8 }
 0x375   :  { %2756 = vmatpush1.bf16.msra.mxu0 %v9090_v11  ;;  %7116 = vmatpush3.bf16.msra.mxu1 %v7496_v13  ;;  %v2265_v13 = vunpack.c.l.bf16 %v6055_v14 }
 0x376   :  { %7121 = vmatprep.subr.bf16.mxu1 %v8068_v1  ;;  %3051 = vmatprep.subr.bf16.mxu0 %v9100_v21 }
 0x40a   :  { %v2155_v18 = vpop.f32.mrb[24].mxu0  ;;  %v2198_v38 = vpop.f32.mrb[24].mxu1 }
 0x40b   :  { %v2205_v22 = vadd.f32 %v2155_v18, %v1955_v16  ;;  %v2157_v23 = vpop.f32.mrb[25].mxu0  ;;  %v7079_v26 = vpop.f32.mrb[25].mxu1  ;;  %v2233_v52 = vadd.f32 %v9119_v28, %v2198_v38  ;;  %v2266_v38 = vunpack.c.h.bf16 %v6055_v14 }
 0x40c   :  { %v2159_v29 = vpop.f32.mrb[26].mxu0  ;;  %v2201_v30 = vpop.f32.mrb[26].mxu1  ;;  %v2219_v35 = vadd.f32 %v2157_v23, %v1956_v19 }
 0x40d   :  { %v6047_v41 = vmul.f32 -1.442695, %v2205_v22  ;;  %v2206_v32 = vadd.f32 %v2159_v29, %v1958_v36  ;;  %v2161_v27 = vpop.f32.mrb[27].mxu0  ;;  %v7080_v33 = vpop.f32.mrb[27].mxu1  ;;  %v2234_v4 = vadd.f32 %v9119_v28, %v2201_v30  ;;  %v2268_v36 = vunpack.c.l.bf16 %v6057_v42 }
 0x40e   :  { %v2220_v48 = vadd.f32 %v2161_v27, %v1959_v39  ;;  %v6049_v51 = vmul.f32 -1.442695, %v2219_v35 }
 0x40f   :  { %7809 = vpow2.f32 %v6047_v41  ;;  %v6048_v20 = vmul.f32 -1.442695, %v2206_v32  ;;  %v2269_v32 = vunpack.c.h.bf16 %v6057_v42 }
 0x410   :  { %v6050_v58 = vmul.f32 -1.442695, %v2220_v48 }
 0x411   :  { %7811 = vpow2.f32 %v6048_v20 }
 0x412   :  { %7813 = vpow2.f32 %v6049_v51 }
 0x413   :  { %7815 = vpow2.f32 %v6050_v58 }
 0x419   :  { %v7810_v50 = vpop.eup %7809 }
 0x41a   :  { %v2213_v63 = vadd.f32 1.0, %v7810_v50 }
 0x41b   :  { %v7812_v55 = vpop.eup %7811 }
 0x41c   :  { %7817 = vrcp.f32 %v2213_v63  ;;  %v2214_v57 = vadd.f32 1.0, %v7812_v55  ;;  %v7814_v43 = vpop.eup %7813 }
 0x41d   :  { %v7816_v5 = vpop.eup %7815  ;;  %v2227_v6 = vadd.f32 1.0, %v7814_v43 }
 0x41e   :  { %7819 = vrcp.f32 %v2214_v57  ;;  %v2228_v62 = vadd.f32 1.0, %v7816_v5 }
 0x41f   :  { %7821 = vrcp.f32 %v2227_v6 }
 0x420   :  { %7823 = vrcp.f32 %v2228_v62 }
 0x426   :  { %v7818_v17 = vpop.eup %7817 }
 0x427   :  { %v2235_v49 = vmul.f32 %v7818_v17, %v2233_v52 }
 0x428   :  { %v7820_v31 = vpop.eup %7819 }
 0x429   :  { %v2237_v15 = vadd.f32 %v2235_v49, %v1957_v56  ;;  %v2236_v16 = vmul.f32 %v7820_v31, %v2234_v4  ;;  %v7822_v58 = vpop.eup %7821  ;;  %v9139_v4 = vld [vmem:[%s10159_s2 + $0xc0] ss:$12 sps:$4 sm:$0xff]   ;;  %v9149_v31 = vld [vmem:[%s10159_s2 + $0xdc] ss:$12 sps:$4 sm:$0xff]  }
 0x42a   :  { %v2465_v18 = vpop.f32.mrb[28].mxu0  ;;  %v9126_v19 = vpop.f32.mrb[28].mxu1  ;;  %v2241_v57 = vsub.f32 1.0, %v7822_v58  ;;  %v2245_v6 = vmul.f32 %v7822_v58, %v8891_v3  ;;  %v7500_v3 = vld [vmem:[%s10159_s2 + $0xc8] ss:$12 sps:$4 sm:$0xff]  }
 0x42b   :  { %7825 = vtanh.f32 %v2237_v15  ;;  %v2238_v22 = vadd.f32 %v2236_v16, %v1960_v37  ;;  %v2515_v23 = vadd.f32 %v2465_v18, %v2265_v13  ;;  %v2467_v26 = vpop.f32.mrb[29].mxu0  ;;  %v7099_v29 = vpop.f32.mrb[29].mxu1  ;;  %v9158_v15 = vld [vmem:[%s10159_s2 + $0xd8] ss:$12 sps:$4 sm:$0xff]   ;;  %v7504_v16 = vld [vmem:[%s10159_s2 + $0xe0] ss:$12 sps:$4 sm:$0xff]  }
 0x42c   :  { %v2469_v39 = vpop.f32.mrb[30].mxu0  ;;  %v9128_v41 = vpop.f32.mrb[30].mxu1  ;;  %v2529_v20 = vadd.f32 %v2467_v26, %v2266_v38  ;;  %v9168_v18 = vld [vmem:[%s10159_s2 + $0xf4] ss:$12 sps:$4 sm:$0xff]   ;;  %v9180_v26 = vld [vmem:[%s10159_s2 + $0xf0] ss:$12 sps:$4 sm:$0xff]  }
 0x42d   :  { %7827 = vtanh.f32 %v2238_v22  ;;  %v6115_v30 = vmul.f32 -1.442695, %v2515_v23  ;;  %v2516_v27 = vadd.f32 %v2469_v39, %v2268_v36  ;;  %v2471_v33 = vpop.f32.mrb[31].mxu0  ;;  %v7100_v35 = vpop.f32.mrb[31].mxu1  ;;  %v6056_v22 = vld [vmem:[%s10162_s1 + $0x80] ss:$12 sps:$4 sm:$0xff]  }
 0x42e   :  { %v2530_v51 = vadd.f32 %v2471_v33, %v2269_v32  ;;  %v6117_v50 = vmul.f32 -1.442695, %v2529_v20  ;;  %v7824_v63 = vpop.eup %7823  ;;  %v7508_v29 = vld [vmem:[%s10159_s2 + $0xf8] ss:$12 sps:$4 sm:$0xff]   ;;  %v2267_v32 = vunpack.c.l.bf16 %v6056_v22  ;;  %v9205_v58 = vld [vmem:[%s10159_s2 + $0x108] ss:$12 sps:$4 sm:$0xff]  }
 0x42f   :  { %7829 = vpow2.f32 %v6115_v30  ;;  %v6116_v48 = vmul.f32 -1.442695, %v2516_v27  ;;  %v2242_v5 = vsub.f32 1.0, %v7824_v63  ;;  %v2246_v52 = vmul.f32 %v7824_v63, %v8893_v7  ;;  %v9190_v39 = vld [vmem:[%s10159_s2 + $0x10c] ss:$12 sps:$4 sm:$0xff]  }
 0x430   :  { %v6118_v55 = vmul.f32 -1.442695, %v2530_v51  ;;  %v9195_v30 = vld [vmem:[%s10161_s3 + $0x1] ss:$0 sm:$0xff] }
 0x431   :  { %7831 = vpow2.f32 %v6116_v48  ;;  %v2543_v27 = vadd.f32 %v9195_v30, %v9126_v19  ;;  %v2270_v48 = vunpack.c.h.bf16 %v6056_v22  ;;  %v2544_v51 = vadd.f32 %v9195_v30, %v9128_v41  ;;  %v7512_v19 = vld [vmem:[%s10159_s2 + $0x110] ss:$12 sps:$4 sm:$0xff]  }
 0x432   :  { %7833 = vpow2.f32 %v6117_v50  ;;  %v9215_v41 = vld [vmem:[%s10159_s2 + $0x124] ss:$12 sps:$4 sm:$0xff]  }
 0x433   :  { %7835 = vpow2.f32 %v6118_v55 }
 0x435   :  { %v7826_v43 = vpop.eup %7825 }
 0x436   :  { %v2243_v24 = vmul.f32 %v7826_v43, %v2241_v57  ;;  %v9221_v43 = vld [vmem:[%s10159_s2 + $0x120] ss:$12 sps:$4 sm:$0xff]  }
 0x437   :  { %v7828_v14 = vpop.eup %7827 }
 0x438   :  { %v2244_v56 = vmul.f32 %v7828_v14, %v2242_v5  ;;  %v9132_v62 = vadd.f32 %v2245_v6, %v2243_v24  ;;  %v7516_v5 = vld [vmem:[%s10159_s2 + $0x128] ss:$12 sps:$4 sm:$0xff]   ;;  %v9237_v6 = vld [vmem:[%s10159_s2 + $0x138] ss:$12 sps:$4 sm:$0xff]   ;;  %v7520_v14 = vld [vmem:[%s10159_s2 + $0x140] ss:$12 sps:$4 sm:$0xff]  }
 0x439   :  { %v7830_v17 = vpop.eup %7829  ;;  %v9231_v24 = vld [vmem:[%s10159_s2 + $0x13c] ss:$12 sps:$4 sm:$0xff]  }
 0x43a   :  { %v2523_v37 = vadd.f32 1.0, %v7830_v17  ;;  %v9134_v42 = vadd.f32 %v2246_v52, %v2244_v56  ;;  %v9247_v56 = vld [vmem:[%s10159_s2 + $0x154] ss:$12 sps:$4 sm:$0xff]  }
 0x43b   :  { %v7832_v49 = vpop.eup %7831 }
 0x43c   :  { %7837 = vrcp.f32 %v2523_v37  ;;  %v2524_v13 = vadd.f32 1.0, %v7832_v49  ;;  %v2249_v7 = vpack.c.bf16 %v9134_v42, %v9132_v62  ;;  %v7834_v36 = vpop.eup %7833  ;;  %v9253_v37 = vld [vmem:[%s10159_s2 + $0x150] ss:$12 sps:$4 sm:$0xff]   ;;  %v7524_v49 = vld [vmem:[%s10159_s2 + $0x158] ss:$12 sps:$4 sm:$0xff]  }
 0x43d   :  { %v7836_v38 = vpop.eup %7835  ;;  %v2537_v23 = vadd.f32 1.0, %v7834_v36 }
 0x43e   :  { %7839 = vrcp.f32 %v2524_v13  ;;  %6768 = vst [vmem:[%s10163_s4 + $0x18] sm:$0xff] %v2249_v7   ;;  %2774 = vmatmul.mubr.bf16.vlgmr.msra.gmra.mrb[32].mxu0 %v2249_v7  ;;  %7118 = vmatmul.mubr.bf16.vlgmr.msra.gmra.mrb[32].mxu1 %v2249_v7  ;;  %v2538_v33 = vadd.f32 1.0, %v7836_v38 }
 0x43f   :  { %3052 = vmatpush1.bf16.msra.mxu0 %v9139_v4  ;;  %7122 = vmatpush3.bf16.msra.mxu1 %v7500_v3  ;;  %7841 = vrcp.f32 %v2537_v23  ;;  %v9263_v3 = vld [vmem:[%s10159_s2 + $0x16c] ss:$12 sps:$4 sm:$0xff]   ;;  %v9270_v23 = vld [vmem:[%s10159_s2 + $0x168] ss:$12 sps:$4 sm:$0xff]  }
 0x440   :  { %3053 = vmatprep.subr.bf16.mxu0 %v9149_v31  ;;  %7123 = vmatprep.subr.bf16.mxu1 %v8068_v1  ;;  %7843 = vrcp.f32 %v2538_v33 }
 0x441   :  { %3083 = vmatprep.mubr.bf16.mxu0 %v8069_v2  ;;  %7137 = vmatprep.mubr.msk.bf16.mxu1 %vm8070_vm0, %v8068_v1 }
 0x443   :  { %3054 = vmatpush1.bf16.msra.mxu0 %v9158_v15  ;;  %7124 = vmatpush3.bf16.msra.mxu1 %v7504_v16 }
 0x444   :  { %3055 = vmatprep.subr.bf16.mxu0 %v9168_v18  ;;  %7125 = vmatprep.subr.bf16.mxu1 %v8068_v1 }
 0x446   :  { %v7838_v35 = vpop.eup %7837 }
 0x447   :  { %v2545_v20 = vmul.f32 %v7838_v35, %v2543_v27  ;;  %3056 = vmatpush1.bf16.msra.mxu0 %v9180_v26  ;;  %7126 = vmatpush3.bf16.msra.mxu1 %v7508_v29  ;;  %v7528_v29 = vld [vmem:[%s10159_s2 + $0x170] ss:$12 sps:$4 sm:$0xff]  }
 0x448   :  { %v7840_v50 = vpop.eup %7839  ;;  %3057 = vmatprep.subr.bf16.mxu0 %v9190_v39  ;;  %7127 = vmatprep.subr.bf16.mxu1 %v8068_v1 }
 0x449   :  { %v2547_v63 = vadd.f32 %v2545_v20, %v2267_v32  ;;  %v2546_v55 = vmul.f32 %v7840_v50, %v2544_v51  ;;  %v7842_v52 = vpop.eup %7841 }
 0x44a   :  { %v7844_v17 = vpop.eup %7843  ;;  %v2551_v13 = vsub.f32 1.0, %v7842_v52  ;;  %v2555_v38 = vmul.f32 %v7842_v52, %v8956_v59 }
 0x44b   :  { %7845 = vtanh.f32 %v2547_v63  ;;  %v2548_v57 = vadd.f32 %v2546_v55, %v2270_v48  ;;  %3058 = vmatpush1.bf16.msra.mxu0 %v9205_v58  ;;  %7128 = vmatpush3.bf16.msra.mxu1 %v7512_v19  ;;  %v2552_v16 = vsub.f32 1.0, %v7844_v17  ;;  %v2556_v59 = vmul.f32 %v7844_v17, %v8958_v60  ;;  %v7529_v60 = vld [vmem:[%s10159_s2 + $0x8] ss:$12 sps:$4 sm:$0xff]  }
 0x44c   :  { %3059 = vmatprep.subr.bf16.mxu0 %v9215_v41  ;;  %7129 = vmatprep.subr.bf16.mxu1 %v8068_v1 }
 0x44d   :  { %7847 = vtanh.f32 %v2548_v57 }
 0x44f   :  { %3060 = vmatpush1.bf16.msra.mxu0 %v9221_v43  ;;  %7130 = vmatpush3.bf16.msra.mxu1 %v7516_v5 }
 0x450   :  { %3061 = vmatprep.subr.bf16.mxu0 %v9231_v24  ;;  %7131 = vmatprep.subr.bf16.mxu1 %v8068_v1 }
 0x453   :  { %3062 = vmatpush1.bf16.msra.mxu0 %v9237_v6  ;;  %7132 = vmatpush3.bf16.msra.mxu1 %v7520_v14 }
 0x454   :  { %3063 = vmatprep.subr.bf16.mxu0 %v9247_v56  ;;  %7133 = vmatprep.subr.bf16.mxu1 %v8068_v1 }
 0x455   :  { %v7846_v7 = vpop.eup %7845 }
 0x456   :  { %v2553_v36 = vmul.f32 %v7846_v7, %v2551_v13 }
 0x457   :  { %v7848_v22 = vpop.eup %7847  ;;  %3064 = vmatpush1.bf16.msra.mxu0 %v9253_v37  ;;  %7134 = vmatpush3.bf16.msra.mxu1 %v7524_v49 }
 0x458   :  { %3065 = vmatprep.subr.bf16.mxu0 %v9263_v3  ;;  %7135 = vmatprep.subr.bf16.mxu1 %v8068_v1  ;;  %v2554_v32 = vmul.f32 %v7848_v22, %v2552_v16  ;;  %v9278_v27 = vadd.f32 %v2555_v38, %v2553_v36  ;;  %v6124_v22 = vld [vmem:[%s10160_s0 + $0x68] ss:$12 sps:$4 sm:$0xff]  }
 0x45a   :  { %v9280_v33 = vadd.f32 %v2556_v59, %v2554_v32  ;;  %v6159_v32 = vld [vmem:[%s10162_s1 + $0x60] sm:$0xff]  ;;  %v2577_v59 = vunpack.c.l.bf16 %v6124_v22 }
 0x45b   :  { %3066 = vmatpush1.bf16.msra.mxu0 %v9270_v23  ;;  %7136 = vmatpush3.bf16.msra.mxu1 %v7528_v29 }
 0x45c   :  { %v2559_v35 = vpack.c.bf16 %v9280_v33, %v9278_v27  ;;  %3361 = vmatprep.subr.bf16.mxu0 %v8973_v9  ;;  %7141 = vmatprep.subr.bf16.mxu1 %v8068_v1  ;;  %v7530_v9 = vld [vmem:[%s10159_s2 + $0x20] ss:$12 sps:$4 sm:$0xff]  }
 0x45e   :  { %6769 = vst [vmem:[%s10164_s5 + $0x28] sm:$0xff] %v2559_v35   ;;  %3084 = vmatmul.mubr.bf16.vlgmr.msra.gmra.mrb[36].mxu0 %v2559_v35  ;;  %7138 = vmatmul.mubr.bf16.vlgmr.msra.gmra.mrb[36].mxu1 %v2559_v35 }
 0x45f   :  { %3362 = vmatpush1.bf16.msra.mxu0 %v8978_v46  ;;  %3393 = vmatprep.mubr.bf16.mxu0 %v8069_v2  ;;  %v7531_v46 = vld [vmem:[%s10159_s2 + $0x38] ss:$12 sps:$4 sm:$0xff]  }
 0x460   :  { %3363 = vmatprep.subr.bf16.mxu0 %v8988_v53  ;;  %7157 = vmatprep.mubr.msk.bf16.mxu1 %vm8070_vm0, %v8068_v1  ;;  %v7532_v53 = vld [vmem:[%s10159_s2 + $0x50] ss:$12 sps:$4 sm:$0xff]  }
 0x461   :  { %7142 = vmatpush3.bf16.msra.mxu1 %v7529_v60 }
 0x462   :  { %7143 = vmatprep.subr.bf16.mxu1 %v8068_v1 }
 0x463   :  { %3364 = vmatpush1.bf16.msra.mxu0 %v8994_v61  ;;  %v7533_v61 = vld [vmem:[%s10159_s2 + $0x68] ss:$12 sps:$4 sm:$0xff]  }
 0x464   :  { %3365 = vmatprep.subr.bf16.mxu0 %v9004_v0  ;;  %v7534_v0 = vld [vmem:[%s10159_s2 + $0x80] ss:$12 sps:$4 sm:$0xff]  }
 0x465   :  { %7144 = vmatpush3.bf16.msra.mxu1 %v7530_v9 }
 0x466   :  { %7145 = vmatprep.subr.bf16.mxu1 %v8068_v1 }
 0x467   :  { %3366 = vmatpush1.bf16.msra.mxu0 %v9010_v10  ;;  %v7535_v10 = vld [vmem:[%s10159_s2 + $0x98] ss:$12 sps:$4 sm:$0xff]  }
 0x468   :  { %3367 = vmatprep.subr.bf16.mxu0 %v9020_v25  ;;  %v7536_v25 = vld [vmem:[%s10159_s2 + $0xb0] ss:$12 sps:$4 sm:$0xff]  }
 0x469   :  { %7146 = vmatpush3.bf16.msra.mxu1 %v7531_v46  ;;  %v2580_v46 = vunpack.c.h.bf16 %v6124_v22 }
 0x46a   :  { %7147 = vmatprep.subr.bf16.mxu1 %v8068_v1 }
 0x46b   :  { %3368 = vmatpush1.bf16.msra.mxu0 %v9026_v34  ;;  %v6123_v34 = vld [vmem:[%s10160_s0 + $0x60] sm:$0xff] }
 0x46c   :  { %3369 = vmatprep.subr.bf16.mxu0 %v9036_v12  ;;  %v6125_v12 = vld [vmem:[%s10160_s0 + $0x6c] sm:$0xff] }
 0x46d   :  { %7148 = vmatpush3.bf16.msra.mxu1 %v7532_v53  ;;  %v2579_v51 = vunpack.c.h.bf16 %v6125_v12  ;;  %v6161_v53 = vld [vmem:[%s10162_s1 + $0x6c] sm:$0xff] }
 0x46e   :  { %7149 = vmatprep.subr.bf16.mxu1 %v8068_v1 }
 0x46f   :  { %3370 = vmatpush1.bf16.msra.mxu0 %v9042_v40  ;;  %v2575_v40 = vunpack.c.l.bf16 %v6123_v34 }
 0x470   :  { %3371 = vmatprep.subr.bf16.mxu0 %v9052_v44  ;;  %v2578_v44 = vunpack.c.l.bf16 %v6125_v12 }
 0x471   :  { %7150 = vmatpush3.bf16.msra.mxu1 %v7533_v61 }
 0x472   :  { %7151 = vmatprep.subr.bf16.mxu1 %v8068_v1 }
 0x473   :  { %3372 = vmatpush1.bf16.msra.mxu0 %v9058_v45 }
 0x474   :  { %3373 = vmatprep.subr.bf16.mxu0 %v9068_v47 }
 0x475   :  { %7152 = vmatpush3.bf16.msra.mxu1 %v7534_v0 }
 0x476   :  { %7153 = vmatprep.subr.bf16.mxu1 %v8068_v1 }
 0x477   :  { %3374 = vmatpush1.bf16.msra.mxu0 %v9074_v54  ;;  %v2576_v54 = vunpack.c.h.bf16 %v6123_v34 }
 0x478   :  { %3375 = vmatprep.subr.bf16.mxu0 %v9084_v8 }
 0x479   :  { %7154 = vmatpush3.bf16.msra.mxu1 %v7535_v10  ;;  %v2885_v10 = vunpack.c.l.bf16 %v6159_v32 }
 0x47a   :  { %7155 = vmatprep.subr.bf16.mxu1 %v8068_v1 }
 0x47b   :  { %3376 = vmatpush1.bf16.msra.mxu0 %v9090_v11 }
 0x47c   :  { %3671 = vmatprep.subr.bf16.mxu0 %v9100_v21 }
 0x47d   :  { %7156 = vmatpush3.bf16.msra.mxu1 %v7536_v25 }
 0x47e   :  { %7161 = vmatprep.subr.bf16.mxu1 %v8068_v1 }
 0x511   :  { %v2775_v45 = vpop.f32.mrb[32].mxu0  ;;  %v2818_v47 = vpop.f32.mrb[32].mxu1 }
 0x512   :  { %v2825_v8 = vadd.f32 %v2775_v45, %v2575_v40  ;;  %v2777_v11 = vpop.f32.mrb[33].mxu0  ;;  %v7119_v21 = vpop.f32.mrb[33].mxu1  ;;  %v2853_v35 = vadd.f32 %v9119_v28, %v2818_v47  ;;  %v2888_v40 = vunpack.c.l.bf16 %v6161_v53  ;;  %v2886_v47 = vunpack.c.h.bf16 %v6159_v32 }
 0x513   :  { %v2779_v20 = vpop.f32.mrb[34].mxu0  ;;  %v2821_v48 = vpop.f32.mrb[34].mxu1  ;;  %v2839_v57 = vadd.f32 %v2777_v11, %v2576_v54 }
 0x514   :  { %v6151_v19 = vmul.f32 -1.442695, %v2825_v8  ;;  %v2826_v50 = vadd.f32 %v2779_v20, %v2578_v44  ;;  %v2781_v63 = vpop.f32.mrb[35].mxu0  ;;  %v7120_v55 = vpop.f32.mrb[35].mxu1  ;;  %v2854_v0 = vadd.f32 %v9119_v28, %v2821_v48 }
 0x515   :  { %v2840_v14 = vadd.f32 %v2781_v63, %v2579_v51  ;;  %v6153_v52 = vmul.f32 -1.442695, %v2839_v57 }
 0x516   :  { %7849 = vpow2.f32 %v6151_v19  ;;  %v6152_v5 = vmul.f32 -1.442695, %v2826_v50  ;;  %v2889_v19 = vunpack.c.h.bf16 %v6161_v53 }
 0x517   :  { %v6154_v17 = vmul.f32 -1.442695, %v2840_v14 }
 0x518   :  { %7851 = vpow2.f32 %v6152_v5 }
 0x519   :  { %7853 = vpow2.f32 %v6153_v52 }
 0x51a   :  { %7855 = vpow2.f32 %v6154_v17 }
 0x520   :  { %v7850_v49 = vpop.eup %7849 }
 0x521   :  { %v2833_v13 = vadd.f32 1.0, %v7850_v49 }
 0x522   :  { %v7852_v7 = vpop.eup %7851 }
 0x523   :  { %7857 = vrcp.f32 %v2833_v13  ;;  %v2834_v16 = vadd.f32 1.0, %v7852_v7  ;;  %v7854_v36 = vpop.eup %7853 }
 0x524   :  { %v7856_v38 = vpop.eup %7855  ;;  %v2847_v29 = vadd.f32 1.0, %v7854_v36 }
 0x525   :  { %7859 = vrcp.f32 %v2834_v16  ;;  %v2848_v60 = vadd.f32 1.0, %v7856_v38 }
 0x526   :  { %7861 = vrcp.f32 %v2847_v29 }
 0x527   :  { %7863 = vrcp.f32 %v2848_v60 }
 0x52d   :  { %v7858_v9 = vpop.eup %7857 }
 0x52e   :  { %v2855_v61 = vmul.f32 %v7858_v9, %v2853_v35 }
 0x52f   :  { %v7860_v25 = vpop.eup %7859 }
 0x530   :  { %v2857_v34 = vadd.f32 %v2855_v61, %v2577_v59  ;;  %v2856_v12 = vmul.f32 %v7860_v25, %v2854_v0  ;;  %v7862_v52 = vpop.eup %7861  ;;  %v7537_v61 = vld [vmem:[%s10159_s2 + $0xc8] ss:$12 sps:$4 sm:$0xff]  }
 0x531   :  { %v3085_v44 = vpop.f32.mrb[36].mxu0  ;;  %v9358_v45 = vpop.f32.mrb[36].mxu1  ;;  %v2861_v7 = vsub.f32 1.0, %v7862_v52  ;;  %v2865_v22 = vmul.f32 %v7862_v52, %v9132_v62  ;;  %v7552_v52 = vld [vmem:[%s10159_s2 + $0x20] ss:$12 sps:$4 sm:$0xff]  }
 0x532   :  { %7865 = vtanh.f32 %v2857_v34  ;;  %v2858_v54 = vadd.f32 %v2856_v12, %v2580_v46  ;;  %v3135_v8 = vadd.f32 %v3085_v44, %v2885_v10  ;;  %v3087_v11 = vpop.f32.mrb[37].mxu0  ;;  %v7139_v21 = vpop.f32.mrb[37].mxu1 }
 0x533   :  { %v3089_v20 = vpop.f32.mrb[38].mxu0  ;;  %v3131_v51 = vpop.f32.mrb[38].mxu1  ;;  %v3149_v57 = vadd.f32 %v3087_v11, %v2886_v47 }
 0x534   :  { %7867 = vtanh.f32 %v2858_v54  ;;  %v6219_v48 = vmul.f32 -1.442695, %v3135_v8  ;;  %v3136_v50 = vadd.f32 %v3089_v20, %v2888_v40  ;;  %v3091_v63 = vpop.f32.mrb[39].mxu0  ;;  %v7140_v55 = vpop.f32.mrb[39].mxu1  ;;  %v3163_v40 = vadd.f32 %v9195_v30, %v9358_v45 }
 0x535   :  { %v3150_v14 = vadd.f32 %v3091_v63, %v2889_v19  ;;  %v6221_v17 = vmul.f32 -1.442695, %v3149_v57  ;;  %v7864_v49 = vpop.eup %7863 }
 0x536   :  { %7869 = vpow2.f32 %v6219_v48  ;;  %v6220_v5 = vmul.f32 -1.442695, %v3136_v50  ;;  %v2862_v36 = vsub.f32 1.0, %v7864_v49  ;;  %v2866_v59 = vmul.f32 %v7864_v49, %v9134_v42  ;;  %v7538_v42 = vld [vmem:[%s10159_s2 + $0xe0] ss:$12 sps:$4 sm:$0xff]  }
 0x537   :  { %v6222_v13 = vmul.f32 -1.442695, %v3150_v14  ;;  %v9465_v14 = vld [vmem:[%s10159_s2 + $0x18] ss:$12 sps:$4 sm:$0xff]   ;;  %v9481_v49 = vld [vmem:[%s10159_s2 + $0x30] ss:$12 sps:$4 sm:$0xff]  }
 0x538   :  { %7871 = vpow2.f32 %v6220_v5 }
 0x539   :  { %7873 = vpow2.f32 %v6221_v17  ;;  %v9475_v17 = vld [vmem:[%s10159_s2 + $0x34] ss:$12 sps:$4 sm:$0xff]  }
 0x53a   :  { %7875 = vpow2.f32 %v6222_v13  ;;  %v7556_v13 = vld [vmem:[%s10159_s2 + $0x38] ss:$12 sps:$4 sm:$0xff]  }
 0x53c   :  { %v7866_v16 = vpop.eup %7865 }
 0x53d   :  { %v2863_v38 = vmul.f32 %v7866_v16, %v2861_v7  ;;  %v9491_v7 = vld [vmem:[%s10159_s2 + $0x4c] ss:$12 sps:$4 sm:$0xff]   ;;  %v9497_v16 = vld [vmem:[%s10159_s2 + $0x48] ss:$12 sps:$4 sm:$0xff]  }
 0x53e   :  { %v7868_v29 = vpop.eup %7867 }
 0x53f   :  { %v2864_v32 = vmul.f32 %v7868_v29, %v2862_v36  ;;  %v9362_v35 = vadd.f32 %v2865_v22, %v2863_v38  ;;  %v7560_v36 = vld [vmem:[%s10159_s2 + $0x50] ss:$12 sps:$4 sm:$0xff]   ;;  %v9513_v22 = vld [vmem:[%s10159_s2 + $0x60] ss:$12 sps:$4 sm:$0xff]   ;;  %v7564_v29 = vld [vmem:[%s10159_s2 + $0x68] ss:$12 sps:$4 sm:$0xff]  }
 0x540   :  { %v7870_v60 = vpop.eup %7869  ;;  %v9507_v38 = vld [vmem:[%s10159_s2 + $0x64] ss:$12 sps:$4 sm:$0xff]  }
 0x541   :  { %v3143_v9 = vadd.f32 1.0, %v7870_v60  ;;  %v9364_v46 = vadd.f32 %v2866_v59, %v2864_v32  ;;  %v9523_v32 = vld [vmem:[%s10159_s2 + $0x7c] ss:$12 sps:$4 sm:$0xff]   ;;  %v9529_v59 = vld [vmem:[%s10159_s2 + $0x78] ss:$12 sps:$4 sm:$0xff]  }
 0x542   :  { %v7872_v53 = vpop.eup %7871  ;;  %v7568_v60 = vld [vmem:[%s10159_s2 + $0x80] ss:$12 sps:$4 sm:$0xff]  }
 0x543   :  { %7877 = vrcp.f32 %v3143_v9  ;;  %v3144_v0 = vadd.f32 1.0, %v7872_v53  ;;  %v2869_v62 = vpack.c.bf16 %v9364_v46, %v9362_v35  ;;  %v7874_v10 = vpop.eup %7873  ;;  %v9539_v9 = vld [vmem:[%s10159_s2 + $0x94] ss:$12 sps:$4 sm:$0xff]   ;;  %v9545_v53 = vld [vmem:[%s10159_s2 + $0x90] ss:$12 sps:$4 sm:$0xff]  }
 0x544   :  { %v7876_v25 = vpop.eup %7875  ;;  %v3157_v34 = vadd.f32 1.0, %v7874_v10  ;;  %v9571_v10 = vld [vmem:[%s10159_s2 + $0xc4] ss:$12 sps:$4 sm:$0xff]  }
 0x545   :  { %7879 = vrcp.f32 %v3144_v0  ;;  %6770 = vst [vmem:[%s10163_s4 + $0x20] sm:$0xff] %v2869_v62   ;;  %3394 = vmatmul.mubr.bf16.vlgmr.msra.gmra.mrb[40].mxu0 %v2869_v62  ;;  %7158 = vmatmul.mubr.bf16.vlgmr.msra.gmra.mrb[40].mxu1 %v2869_v62  ;;  %v3158_v44 = vadd.f32 1.0, %v7876_v25  ;;  %v9555_v0 = vld [vmem:[%s10159_s2 + $0xac] ss:$12 sps:$4 sm:$0xff]   ;;  %v9561_v62 = vld [vmem:[%s10159_s2 + $0xa8] ss:$12 sps:$4 sm:$0xff]  }
 0x546   :  { %3672 = vmatpush1.bf16.msra.mxu0 %v9139_v4  ;;  %7162 = vmatpush3.bf16.msra.mxu1 %v7537_v61  ;;  %v6160_v4 = vld [vmem:[%s10162_s1 + $0x68] ss:$12 sps:$4 sm:$0xff]   ;;  %7881 = vrcp.f32 %v3157_v34  ;;  %v7572_v61 = vld [vmem:[%s10159_s2 + $0x98] ss:$12 sps:$4 sm:$0xff]  }
 0x547   :  { %3673 = vmatprep.subr.bf16.mxu0 %v9149_v31  ;;  %7163 = vmatprep.subr.bf16.mxu1 %v8068_v1  ;;  %v7539_v31 = vld [vmem:[%s10159_s2 + $0xf8] ss:$12 sps:$4 sm:$0xff]   ;;  %v2887_v12 = vunpack.c.l.bf16 %v6160_v4  ;;  %v2890_v8 = vunpack.c.h.bf16 %v6160_v4  ;;  %7883 = vrcp.f32 %v3158_v44 }
 0x548   :  { %3703 = vmatprep.mubr.bf16.mxu0 %v8069_v2  ;;  %7177 = vmatprep.mubr.msk.bf16.mxu1 %vm8070_vm0, %v8068_v1  ;;  %v6227_v25 = vld [vmem:[%s10160_s0 + $0x78] sm:$0xff]  ;;  %v6229_v4 = vld [vmem:[%s10160_s0 + $0x84] sm:$0xff] }
 0x549   :  { %v3195_v34 = vunpack.c.l.bf16 %v6227_v25  ;;  %v3196_v44 = vunpack.c.h.bf16 %v6227_v25 }
 0x54a   :  { %3674 = vmatpush1.bf16.msra.mxu0 %v9158_v15  ;;  %7164 = vmatpush3.bf16.msra.mxu1 %v7538_v42  ;;  %v3164_v15 = vadd.f32 %v9195_v30, %v3131_v51  ;;  %v7576_v42 = vld [vmem:[%s10159_s2 + $0xb0] ss:$12 sps:$4 sm:$0xff]  }
 0x54b   :  { %3675 = vmatprep.subr.bf16.mxu0 %v9168_v18  ;;  %7165 = vmatprep.subr.bf16.mxu1 %v8068_v1  ;;  %v7540_v18 = vld [vmem:[%s10159_s2 + $0x110] ss:$12 sps:$4 sm:$0xff]  }
 0x54d   :  { %v7878_v47 = vpop.eup %7877 }
 0x54e   :  { %v3165_v54 = vmul.f32 %v7878_v47, %v3163_v40  ;;  %3676 = vmatpush1.bf16.msra.mxu0 %v9180_v26  ;;  %7166 = vmatpush3.bf16.msra.mxu1 %v7539_v31  ;;  %v7541_v26 = vld [vmem:[%s10159_s2 + $0x128] ss:$12 sps:$4 sm:$0xff]   ;;  %v3198_v31 = vunpack.c.l.bf16 %v6229_v4 }
 0x54f   :  { %v7880_v11 = vpop.eup %7879  ;;  %3677 = vmatprep.subr.bf16.mxu0 %v9190_v39  ;;  %7167 = vmatprep.subr.bf16.mxu1 %v8068_v1  ;;  %v7542_v39 = vld [vmem:[%s10159_s2 + $0x140] ss:$12 sps:$4 sm:$0xff]  }
 0x550   :  { %v3167_v45 = vadd.f32 %v3165_v54, %v2887_v12  ;;  %v3166_v21 = vmul.f32 %v7880_v11, %v3164_v15  ;;  %v3199_v11 = vunpack.c.h.bf16 %v6229_v4 }
 0x552   :  { %7885 = vtanh.f32 %v3167_v45  ;;  %v3168_v20 = vadd.f32 %v3166_v21, %v2890_v8  ;;  %3678 = vmatpush1.bf16.msra.mxu0 %v9205_v58  ;;  %7168 = vmatpush3.bf16.msra.mxu1 %v7540_v18  ;;  %v7882_v58 = vpop.eup %7881 }
 0x553   :  { %3679 = vmatprep.subr.bf16.mxu0 %v9215_v41  ;;  %7169 = vmatprep.subr.bf16.mxu1 %v8068_v1  ;;  %v7884_v51 = vpop.eup %7883  ;;  %v7543_v41 = vld [vmem:[%s10159_s2 + $0x158] ss:$12 sps:$4 sm:$0xff]  }
 0x554   :  { %7887 = vtanh.f32 %v3168_v20  ;;  %v3172_v48 = vsub.f32 1.0, %v7884_v51  ;;  %v3176_v55 = vmul.f32 %v7884_v51, %v9280_v33  ;;  %v9459_v33 = vld [vmem:[%s10159_s2 + $0x1c] ss:$12 sps:$4 sm:$0xff]  }
 0x556   :  { %3680 = vmatpush1.bf16.msra.mxu0 %v9221_v43  ;;  %7170 = vmatpush3.bf16.msra.mxu1 %v7541_v26  ;;  %v3171_v43 = vsub.f32 1.0, %v7882_v58 }
 0x557   :  { %3681 = vmatprep.subr.bf16.mxu0 %v9231_v24  ;;  %7171 = vmatprep.subr.bf16.mxu1 %v8068_v1  ;;  %v3175_v24 = vmul.f32 %v7882_v58, %v9278_v27  ;;  %v7548_v27 = vld [vmem:[%s10159_s2 + $0x8] ss:$12 sps:$4 sm:$0xff]  }
 0x55a   :  { %3682 = vmatpush1.bf16.msra.mxu0 %v9237_v6  ;;  %7172 = vmatpush3.bf16.msra.mxu1 %v7542_v39  ;;  %v7544_v6 = vld [vmem:[%s10159_s2 + $0x170] ss:$12 sps:$4 sm:$0xff]  }
 0x55b   :  { %3683 = vmatprep.subr.bf16.mxu0 %v9247_v56  ;;  %7173 = vmatprep.subr.bf16.mxu1 %v8068_v1 }
 0x55c   :  { %v7886_v19 = vpop.eup %7885 }
 0x55d   :  { %v3173_v50 = vmul.f32 %v7886_v19, %v3171_v43 }
 0x55e   :  { %v7888_v63 = vpop.eup %7887  ;;  %3684 = vmatpush1.bf16.msra.mxu0 %v9253_v37  ;;  %7174 = vmatpush3.bf16.msra.mxu1 %v7543_v41 }
 0x55f   :  { %3685 = vmatprep.subr.bf16.mxu0 %v9263_v3  ;;  %7175 = vmatprep.subr.bf16.mxu1 %v8068_v1  ;;  %v3174_v56 = vmul.f32 %v7888_v63, %v3172_v48  ;;  %v9427_v57 = vadd.f32 %v3175_v24, %v3173_v50  ;;  %v9444_v3 = vld [vmem:[%s10159_s2 + $0x4] ss:$12 sps:$4 sm:$0xff]  }
 0x561   :  { %v9429_v5 = vadd.f32 %v3176_v55, %v3174_v56  ;;  %v6228_v56 = vld [vmem:[%s10160_s0 + $0x80] ss:$12 sps:$4 sm:$0xff]  }
 0x562   :  { %3686 = vmatpush1.bf16.msra.mxu0 %v9270_v23  ;;  %7176 = vmatpush3.bf16.msra.mxu1 %v7544_v6  ;;  %v9449_v23 = vld [vmem:[%s10159_s2] ss:$12 sps:$4 sm:$0xff]  }
 0x563   :  { %v3179_v37 = vpack.c.bf16 %v9429_v5, %v9427_v57  ;;  %7181 = vmatprep.subr.bf16.mxu1 %v8068_v1  ;;  %3981 = vmatprep.subr.bf16.mxu0 %v9444_v3 }
 0x565   :  { %6771 = vst [vmem:[%s10164_s5 + $0x20] sm:$0xff] %v3179_v37   ;;  %3704 = vmatmul.mubr.bf16.vlgmr.msra.gmra.mrb[44].mxu0 %v3179_v37  ;;  %7178 = vmatmul.mubr.bf16.vlgmr.msra.gmra.mrb[44].mxu1 %v3179_v37  ;;  %v6263_v37 = vld [vmem:[%s10162_s1 + $0x48] sm:$0xff] }
 0x566   :  { %4013 = vmatprep.mubr.bf16.mxu0 %v8069_v2  ;;  %7197 = vmatprep.mubr.msk.bf16.mxu1 %vm8070_vm0, %v8068_v1  ;;  %v3505_v25 = vunpack.c.l.bf16 %v6263_v37 }
 0x567   :  { %3982 = vmatpush1.bf16.msra.mxu0 %v9449_v23  ;;  %7182 = vmatpush3.bf16.msra.mxu1 %v7548_v27  ;;  %v3197_v27 = vunpack.c.l.bf16 %v6228_v56 }
 0x568   :  { %7183 = vmatprep.subr.bf16.mxu1 %v8068_v1  ;;  %3983 = vmatprep.subr.bf16.mxu0 %v9459_v33 }
 0x56b   :  { %3984 = vmatpush1.bf16.msra.mxu0 %v9465_v14  ;;  %7184 = vmatpush3.bf16.msra.mxu1 %v7552_v52 }
 0x56c   :  { %7185 = vmatprep.subr.bf16.mxu1 %v8068_v1  ;;  %3985 = vmatprep.subr.bf16.mxu0 %v9475_v17 }
 0x56f   :  { %3986 = vmatpush1.bf16.msra.mxu0 %v9481_v49  ;;  %7186 = vmatpush3.bf16.msra.mxu1 %v7556_v13 }
 0x570   :  { %7187 = vmatprep.subr.bf16.mxu1 %v8068_v1  ;;  %3987 = vmatprep.subr.bf16.mxu0 %v9491_v7 }
 0x573   :  { %3988 = vmatpush1.bf16.msra.mxu0 %v9497_v16  ;;  %7188 = vmatpush3.bf16.msra.mxu1 %v7560_v36 }
 0x574   :  { %7189 = vmatprep.subr.bf16.mxu1 %v8068_v1  ;;  %3989 = vmatprep.subr.bf16.mxu0 %v9507_v38 }
 0x577   :  { %3990 = vmatpush1.bf16.msra.mxu0 %v9513_v22  ;;  %7190 = vmatpush3.bf16.msra.mxu1 %v7564_v29  ;;  %v3200_v29 = vunpack.c.h.bf16 %v6228_v56 }
 0x578   :  { %7191 = vmatprep.subr.bf16.mxu1 %v8068_v1  ;;  %3991 = vmatprep.subr.bf16.mxu0 %v9523_v32 }
 0x57b   :  { %3992 = vmatpush1.bf16.msra.mxu0 %v9529_v59  ;;  %7192 = vmatpush3.bf16.msra.mxu1 %v7568_v60  ;;  %v6265_v60 = vld [vmem:[%s10162_s1 + $0x54] sm:$0xff] }
 0x57c   :  { %7193 = vmatprep.subr.bf16.mxu1 %v8068_v1  ;;  %3993 = vmatprep.subr.bf16.mxu0 %v9539_v9 }
 0x57f   :  { %3994 = vmatpush1.bf16.msra.mxu0 %v9545_v53  ;;  %7194 = vmatpush3.bf16.msra.mxu1 %v7572_v61 }
 0x580   :  { %7195 = vmatprep.subr.bf16.mxu1 %v8068_v1  ;;  %3995 = vmatprep.subr.bf16.mxu0 %v9555_v0 }
 0x583   :  { %3996 = vmatpush1.bf16.msra.mxu0 %v9561_v62  ;;  %7196 = vmatpush3.bf16.msra.mxu1 %v7576_v42 }
 0x584   :  { %7201 = vmatprep.subr.bf16.mxu1 %v8068_v1  ;;  %4291 = vmatprep.subr.bf16.mxu0 %v9571_v10 }
 0x618   :  { %v3395_v12 = vpop.f32.mrb[40].mxu0  ;;  %v3438_v40 = vpop.f32.mrb[40].mxu1 }
 0x619   :  { %v3445_v47 = vadd.f32 %v3395_v12, %v3195_v34  ;;  %v3397_v54 = vpop.f32.mrb[41].mxu0  ;;  %v7159_v8 = vpop.f32.mrb[41].mxu1  ;;  %v3473_v52 = vadd.f32 %v9119_v28, %v3438_v40  ;;  %v3508_v12 = vunpack.c.l.bf16 %v6265_v60  ;;  %v3506_v40 = vunpack.c.h.bf16 %v6263_v37 }
 0x61a   :  { %v3399_v15 = vpop.f32.mrb[42].mxu0  ;;  %v3441_v18 = vpop.f32.mrb[42].mxu1  ;;  %v3459_v39 = vadd.f32 %v3397_v54, %v3196_v44 }
 0x61b   :  { %v6255_v45 = vmul.f32 -1.442695, %v3445_v47  ;;  %v3446_v21 = vadd.f32 %v3399_v15, %v3198_v31  ;;  %v3401_v20 = vpop.f32.mrb[43].mxu0  ;;  %v7160_v26 = vpop.f32.mrb[43].mxu1  ;;  %v3474_v42 = vadd.f32 %v9119_v28, %v3441_v18 }
 0x61c   :  { %v3460_v51 = vadd.f32 %v3401_v20, %v3199_v11  ;;  %v6257_v41 = vmul.f32 -1.442695, %v3459_v39  ;;  %v3509_v20 = vunpack.c.h.bf16 %v6265_v60 }
 0x61d   :  { %7889 = vpow2.f32 %v6255_v45  ;;  %v6256_v58 = vmul.f32 -1.442695, %v3446_v21 }
 0x61e   :  { %v6258_v43 = vmul.f32 -1.442695, %v3460_v51 }
 0x61f   :  { %7891 = vpow2.f32 %v6256_v58 }
 0x620   :  { %7893 = vpow2.f32 %v6257_v41 }
 0x621   :  { %7895 = vpow2.f32 %v6258_v43 }
 0x627   :  { %v7890_v19 = vpop.eup %7889 }
 0x628   :  { %v3453_v48 = vadd.f32 1.0, %v7890_v19 }
 0x629   :  { %v7892_v50 = vpop.eup %7891 }
 0x62a   :  { %7897 = vrcp.f32 %v3453_v48  ;;  %v3454_v24 = vadd.f32 1.0, %v7892_v50  ;;  %v7894_v63 = vpop.eup %7893 }
 0x62b   :  { %v7896_v6 = vpop.eup %7895  ;;  %v3467_v55 = vadd.f32 1.0, %v7894_v63 }
 0x62c   :  { %7899 = vrcp.f32 %v3454_v24  ;;  %v3468_v13 = vadd.f32 1.0, %v7896_v6 }
 0x62d   :  { %7901 = vrcp.f32 %v3467_v55 }
 0x62e   :  { %7903 = vrcp.f32 %v3468_v13 }
 0x634   :  { %v7898_v36 = vpop.eup %7897 }
 0x635   :  { %v3475_v61 = vmul.f32 %v7898_v36, %v3473_v52 }
 0x636   :  { %v7900_v4 = vpop.eup %7899 }
 0x637   :  { %v3477_v34 = vadd.f32 %v3475_v61, %v3197_v27  ;;  %v3476_v31 = vmul.f32 %v7900_v4, %v3474_v42  ;;  %v7902_v43 = vpop.eup %7901  ;;  %v9605_v42 = vld [vmem:[%s10159_s2 + $0xc0] ss:$12 sps:$4 sm:$0xff]   ;;  %v9615_v4 = vld [vmem:[%s10159_s2 + $0xdc] ss:$12 sps:$4 sm:$0xff]  }
 0x638   :  { %v3705_v44 = vpop.f32.mrb[44].mxu0  ;;  %v9592_v47 = vpop.f32.mrb[44].mxu1  ;;  %v3481_v24 = vsub.f32 1.0, %v7902_v43  ;;  %v3485_v55 = vmul.f32 %v7902_v43, %v9362_v35  ;;  %v7580_v35 = vld [vmem:[%s10159_s2 + $0xc8] ss:$12 sps:$4 sm:$0xff]  }
 0x639   :  { %7905 = vtanh.f32 %v3477_v34  ;;  %v3478_v54 = vadd.f32 %v3476_v31, %v3200_v29  ;;  %v3755_v8 = vadd.f32 %v3705_v44, %v3505_v25  ;;  %v3707_v15 = vpop.f32.mrb[45].mxu0  ;;  %v7179_v11 = vpop.f32.mrb[45].mxu1  ;;  %v9624_v34 = vld [vmem:[%s10159_s2 + $0xd8] ss:$12 sps:$4 sm:$0xff]   ;;  %v7584_v31 = vld [vmem:[%s10159_s2 + $0xe0] ss:$12 sps:$4 sm:$0xff]  }
 0x63a   :  { %v3709_v45 = vpop.f32.mrb[46].mxu0  ;;  %v9594_v21 = vpop.f32.mrb[46].mxu1  ;;  %v3769_v58 = vadd.f32 %v3707_v15, %v3506_v40  ;;  %v9634_v44 = vld [vmem:[%s10159_s2 + $0xf4] ss:$12 sps:$4 sm:$0xff]   ;;  %v9646_v15 = vld [vmem:[%s10159_s2 + $0xf0] ss:$12 sps:$4 sm:$0xff]  }
 0x63b   :  { %7907 = vtanh.f32 %v3478_v54  ;;  %v6323_v28 = vmul.f32 -1.442695, %v3755_v8  ;;  %v3756_v18 = vadd.f32 %v3709_v45, %v3508_v12  ;;  %v3711_v26 = vpop.f32.mrb[47].mxu0  ;;  %v7180_v39 = vpop.f32.mrb[47].mxu1  ;;  %v6264_v54 = vld [vmem:[%s10162_s1 + $0x50] ss:$12 sps:$4 sm:$0xff]  }
 0x63c   :  { %v3770_v41 = vadd.f32 %v3711_v26, %v3509_v20  ;;  %v6325_v19 = vmul.f32 -1.442695, %v3769_v58  ;;  %v7904_v48 = vpop.eup %7903  ;;  %v7588_v11 = vld [vmem:[%s10159_s2 + $0xf8] ss:$12 sps:$4 sm:$0xff]   ;;  %v3507_v20 = vunpack.c.l.bf16 %v6264_v54  ;;  %v3510_v58 = vunpack.c.h.bf16 %v6264_v54  ;;  %v7608_v54 = vld [vmem:[%s10159_s2 + $0x170] ss:$12 sps:$4 sm:$0xff]  }
 0x63d   :  { %7909 = vpow2.f32 %v6323_v28  ;;  %v6324_v51 = vmul.f32 -1.442695, %v3756_v18  ;;  %v3482_v6 = vsub.f32 1.0, %v7904_v48  ;;  %v3486_v52 = vmul.f32 %v7904_v48, %v9364_v46  ;;  %v9656_v45 = vld [vmem:[%s10159_s2 + $0x10c] ss:$12 sps:$4 sm:$0xff]  }
 0x63e   :  { %v6326_v50 = vmul.f32 -1.442695, %v3770_v41  ;;  %v3783_v28 = vadd.f32 %v9195_v30, %v9592_v47  ;;  %v9666_v41 = vld [vmem:[%s10159_s2 + $0x108] ss:$12 sps:$4 sm:$0xff]   ;;  %v7592_v47 = vld [vmem:[%s10159_s2 + $0x110] ss:$12 sps:$4 sm:$0xff]  }
 0x63f   :  { %7911 = vpow2.f32 %v6324_v51  ;;  %v3784_v51 = vadd.f32 %v9195_v30, %v9594_v21  ;;  %v9676_v30 = vld [vmem:[%s10159_s2 + $0x124] ss:$12 sps:$4 sm:$0xff]  }
 0x640   :  { %7913 = vpow2.f32 %v6325_v19 }
 0x641   :  { %7915 = vpow2.f32 %v6326_v50  ;;  %v9682_v50 = vld [vmem:[%s10159_s2 + $0x120] ss:$12 sps:$4 sm:$0xff]  }
 0x643   :  { %v7906_v63 = vpop.eup %7905 }
 0x644   :  { %v3483_v56 = vmul.f32 %v7906_v63, %v3481_v24  ;;  %v7596_v24 = vld [vmem:[%s10159_s2 + $0x128] ss:$12 sps:$4 sm:$0xff]  }
 0x645   :  { %v7908_v37 = vpop.eup %7907  ;;  %v9692_v63 = vld [vmem:[%s10159_s2 + $0x13c] ss:$12 sps:$4 sm:$0xff]  }
 0x646   :  { %v3484_v27 = vmul.f32 %v7908_v37, %v3482_v6  ;;  %v9598_v13 = vadd.f32 %v3485_v55, %v3483_v56  ;;  %v9698_v6 = vld [vmem:[%s10159_s2 + $0x138] ss:$12 sps:$4 sm:$0xff]   ;;  %v7600_v56 = vld [vmem:[%s10159_s2 + $0x140] ss:$12 sps:$4 sm:$0xff]  }
 0x647   :  { %v7910_v36 = vpop.eup %7909  ;;  %v9708_v55 = vld [vmem:[%s10159_s2 + $0x154] ss:$12 sps:$4 sm:$0xff]  }
 0x648   :  { %v3763_v29 = vadd.f32 1.0, %v7910_v36  ;;  %v9600_v60 = vadd.f32 %v3486_v52, %v3484_v27  ;;  %v9714_v52 = vld [vmem:[%s10159_s2 + $0x150] ss:$12 sps:$4 sm:$0xff]   ;;  %v7604_v36 = vld [vmem:[%s10159_s2 + $0x158] ss:$12 sps:$4 sm:$0xff]  }
 0x649   :  { %v7912_v61 = vpop.eup %7911 }
 0x64a   :  { %7917 = vrcp.f32 %v3763_v29  ;;  %v3764_v25 = vadd.f32 1.0, %v7912_v61  ;;  %v3489_v46 = vpack.c.bf16 %v9600_v60, %v9598_v13  ;;  %v7914_v12 = vpop.eup %7913  ;;  %v9724_v29 = vld [vmem:[%s10159_s2 + $0x16c] ss:$12 sps:$4 sm:$0xff]  }
 0x64b   :  { %v7916_v40 = vpop.eup %7915  ;;  %v3777_v8 = vadd.f32 1.0, %v7914_v12 }
 0x64c   :  { %7919 = vrcp.f32 %v3764_v25  ;;  %6772 = vst [vmem:[%s10163_s4 + $0x28] sm:$0xff] %v3489_v46   ;;  %4014 = vmatmul.mubr.bf16.vlgmr.msra.gmra.mrb[48].mxu0 %v3489_v46  ;;  %7198 = vmatmul.mubr.bf16.vlgmr.msra.gmra.mrb[48].mxu1 %v3489_v46  ;;  %v3778_v18 = vadd.f32 1.0, %v7916_v40  ;;  %v9731_v40 = vld [vmem:[%s10159_s2 + $0x168] ss:$12 sps:$4 sm:$0xff]  }
 0x64d   :  { %4292 = vmatpush1.bf16.msra.mxu0 %v9605_v42  ;;  %7202 = vmatpush3.bf16.msra.mxu1 %v7580_v35  ;;  %7921 = vrcp.f32 %v3777_v8 }
 0x64e   :  { %4293 = vmatprep.subr.bf16.mxu0 %v9615_v4  ;;  %7203 = vmatprep.subr.bf16.mxu1 %v8068_v1  ;;  %7923 = vrcp.f32 %v3778_v18 }
 0x64f   :  { %4323 = vmatprep.mubr.bf16.mxu0 %v8069_v2  ;;  %7217 = vmatprep.mubr.msk.bf16.mxu1 %vm8070_vm0, %v8068_v1 }
 0x651   :  { %4294 = vmatpush1.bf16.msra.mxu0 %v9624_v34  ;;  %7204 = vmatpush3.bf16.msra.mxu1 %v7584_v31 }
 0x652   :  { %4295 = vmatprep.subr.bf16.mxu0 %v9634_v44  ;;  %7205 = vmatprep.subr.bf16.mxu1 %v8068_v1 }
 0x654   :  { %v7918_v26 = vpop.eup %7917 }
 0x655   :  { %v3785_v39 = vmul.f32 %v7918_v26, %v3783_v28  ;;  %4296 = vmatpush1.bf16.msra.mxu0 %v9646_v15  ;;  %7206 = vmatpush3.bf16.msra.mxu1 %v7588_v11 }
 0x656   :  { %v7920_v43 = vpop.eup %7919  ;;  %4297 = vmatprep.subr.bf16.mxu0 %v9656_v45  ;;  %7207 = vmatprep.subr.bf16.mxu1 %v8068_v1 }
 0x657   :  { %v3787_v21 = vadd.f32 %v3785_v39, %v3507_v20  ;;  %v3786_v19 = vmul.f32 %v7920_v43, %v3784_v51  ;;  %v7922_v37 = vpop.eup %7921 }
 0x658   :  { %v7924_v27 = vpop.eup %7923  ;;  %v3791_v61 = vsub.f32 1.0, %v7922_v37  ;;  %v3795_v31 = vmul.f32 %v7922_v37, %v9427_v57 }
 0x659   :  { %7925 = vtanh.f32 %v3787_v21  ;;  %v3788_v48 = vadd.f32 %v3786_v19, %v3510_v58  ;;  %4298 = vmatpush1.bf16.msra.mxu0 %v9666_v41  ;;  %7208 = vmatpush3.bf16.msra.mxu1 %v7592_v47  ;;  %v3792_v25 = vsub.f32 1.0, %v7924_v27  ;;  %v3796_v57 = vmul.f32 %v7924_v27, %v9429_v5  ;;  %v7609_v5 = vld [vmem:[%s10159_s2 + $0x8] ss:$12 sps:$4 sm:$0xff]  }
 0x65a   :  { %4299 = vmatprep.subr.bf16.mxu0 %v9676_v30  ;;  %7209 = vmatprep.subr.bf16.mxu1 %v8068_v1 }
 0x65b   :  { %7927 = vtanh.f32 %v3788_v48 }
 0x65d   :  { %4300 = vmatpush1.bf16.msra.mxu0 %v9682_v50  ;;  %7210 = vmatpush3.bf16.msra.mxu1 %v7596_v24 }
 0x65e   :  { %4301 = vmatprep.subr.bf16.mxu0 %v9692_v63  ;;  %7211 = vmatprep.subr.bf16.mxu1 %v8068_v1 }
 0x661   :  { %4302 = vmatpush1.bf16.msra.mxu0 %v9698_v6  ;;  %7212 = vmatpush3.bf16.msra.mxu1 %v7600_v56 }
 0x662   :  { %4303 = vmatprep.subr.bf16.mxu0 %v9708_v55  ;;  %7213 = vmatprep.subr.bf16.mxu1 %v8068_v1 }
 0x663   :  { %v7926_v35 = vpop.eup %7925 }
 0x664   :  { %v3793_v46 = vmul.f32 %v7926_v35, %v3791_v61 }
 0x665   :  { %v7928_v12 = vpop.eup %7927  ;;  %4304 = vmatpush1.bf16.msra.mxu0 %v9714_v52  ;;  %7214 = vmatpush3.bf16.msra.mxu1 %v7604_v36 }
 0x666   :  { %4305 = vmatprep.subr.bf16.mxu0 %v9724_v29  ;;  %7215 = vmatprep.subr.bf16.mxu1 %v8068_v1  ;;  %v3794_v8 = vmul.f32 %v7928_v12, %v3792_v25  ;;  %v9739_v11 = vadd.f32 %v3795_v31, %v3793_v46  ;;  %v6332_v46 = vld [vmem:[%s10160_s0 + $0x98] ss:$12 sps:$4 sm:$0xff]   ;;  %v6367_v12 = vld [vmem:[%s10162_s1 + $0x30] sm:$0xff] }
 0x668   :  { %v9741_v20 = vadd.f32 %v3796_v57, %v3794_v8  ;;  %v9817_v8 = vld [vmem:[%s10161_s3] ss:$0 sm:$0xff] }
 0x669   :  { %4306 = vmatpush1.bf16.msra.mxu0 %v9731_v40  ;;  %7216 = vmatpush3.bf16.msra.mxu1 %v7608_v54  ;;  %v3817_v54 = vunpack.c.l.bf16 %v6332_v46 }
 0x66a   :  { %v3799_v28 = vpack.c.bf16 %v9741_v20, %v9739_v11  ;;  %4601 = vmatprep.subr.bf16.mxu0 %v9444_v3  ;;  %7221 = vmatprep.subr.bf16.mxu1 %v8068_v1  ;;  %v7610_v3 = vld [vmem:[%s10159_s2 + $0x20] ss:$12 sps:$4 sm:$0xff]  }
 0x66c   :  { %6773 = vst [vmem:[%s10164_s5 + $0x18] sm:$0xff] %v3799_v28   ;;  %4324 = vmatmul.mubr.bf16.vlgmr.msra.gmra.mrb[52].mxu0 %v3799_v28  ;;  %7218 = vmatmul.mubr.bf16.vlgmr.msra.gmra.mrb[52].mxu1 %v3799_v28 }
 0x66d   :  { %4602 = vmatpush1.bf16.msra.mxu0 %v9449_v23  ;;  %4633 = vmatprep.mubr.bf16.mxu0 %v8069_v2  ;;  %v7611_v23 = vld [vmem:[%s10159_s2 + $0x38] ss:$12 sps:$4 sm:$0xff]  }
 0x66e   :  { %4603 = vmatprep.subr.bf16.mxu0 %v9459_v33  ;;  %7237 = vmatprep.mubr.msk.bf16.mxu1 %vm8070_vm0, %v8068_v1  ;;  %v7612_v33 = vld [vmem:[%s10159_s2 + $0x50] ss:$12 sps:$4 sm:$0xff]  }
 0x66f   :  { %7222 = vmatpush3.bf16.msra.mxu1 %v7609_v5 }
 0x670   :  { %7223 = vmatprep.subr.bf16.mxu1 %v8068_v1 }
 0x671   :  { %4604 = vmatpush1.bf16.msra.mxu0 %v9465_v14  ;;  %v7613_v14 = vld [vmem:[%s10159_s2 + $0x68] ss:$12 sps:$4 sm:$0xff]  }
 0x672   :  { %4605 = vmatprep.subr.bf16.mxu0 %v9475_v17  ;;  %v7614_v17 = vld [vmem:[%s10159_s2 + $0x80] ss:$12 sps:$4 sm:$0xff]  }
 0x673   :  { %7224 = vmatpush3.bf16.msra.mxu1 %v7610_v3  ;;  %v3820_v3 = vunpack.c.h.bf16 %v6332_v46 }
 0x674   :  { %7225 = vmatprep.subr.bf16.mxu1 %v8068_v1 }
 0x675   :  { %4606 = vmatpush1.bf16.msra.mxu0 %v9481_v49  ;;  %v7615_v49 = vld [vmem:[%s10159_s2 + $0x98] ss:$12 sps:$4 sm:$0xff]  }
 0x676   :  { %4607 = vmatprep.subr.bf16.mxu0 %v9491_v7  ;;  %v7616_v7 = vld [vmem:[%s10159_s2 + $0xb0] ss:$12 sps:$4 sm:$0xff]  }
 0x677   :  { %7226 = vmatpush3.bf16.msra.mxu1 %v7611_v23  ;;  %v6369_v23 = vld [vmem:[%s10162_s1 + $0x3c] sm:$0xff] }
 0x678   :  { %7227 = vmatprep.subr.bf16.mxu1 %v8068_v1 }
 0x679   :  { %4608 = vmatpush1.bf16.msra.mxu0 %v9497_v16  ;;  %v6331_v16 = vld [vmem:[%s10160_s0 + $0x90] sm:$0xff] }
 0x67a   :  { %4609 = vmatprep.subr.bf16.mxu0 %v9507_v38  ;;  %v6333_v38 = vld [vmem:[%s10160_s0 + $0x9c] sm:$0xff] }
 0x67b   :  { %7228 = vmatpush3.bf16.msra.mxu1 %v7612_v33  ;;  %v3819_v39 = vunpack.c.h.bf16 %v6333_v38 }
 0x67c   :  { %7229 = vmatprep.subr.bf16.mxu1 %v8068_v1 }
 0x67d   :  { %4610 = vmatpush1.bf16.msra.mxu0 %v9513_v22  ;;  %v3815_v22 = vunpack.c.l.bf16 %v6331_v16 }
 0x67e   :  { %4611 = vmatprep.subr.bf16.mxu0 %v9523_v32  ;;  %v3818_v32 = vunpack.c.l.bf16 %v6333_v38  ;;  %v4128_v38 = vunpack.c.l.bf16 %v6369_v23 }
 0x67f   :  { %7230 = vmatpush3.bf16.msra.mxu1 %v7613_v14 }
 0x680   :  { %7231 = vmatprep.subr.bf16.mxu1 %v8068_v1 }
 0x681   :  { %4612 = vmatpush1.bf16.msra.mxu0 %v9529_v59 }
 0x682   :  { %4613 = vmatprep.subr.bf16.mxu0 %v9539_v9 }
 0x683   :  { %7232 = vmatpush3.bf16.msra.mxu1 %v7614_v17  ;;  %v4125_v17 = vunpack.c.l.bf16 %v6367_v12 }
 0x684   :  { %7233 = vmatprep.subr.bf16.mxu1 %v8068_v1 }
 0x685   :  { %4614 = vmatpush1.bf16.msra.mxu0 %v9545_v53  ;;  %v3816_v53 = vunpack.c.h.bf16 %v6331_v16 }
 0x686   :  { %4615 = vmatprep.subr.bf16.mxu0 %v9555_v0 }
 0x687   :  { %7234 = vmatpush3.bf16.msra.mxu1 %v7615_v49 }
 0x688   :  { %7235 = vmatprep.subr.bf16.mxu1 %v8068_v1 }
 0x689   :  { %4616 = vmatpush1.bf16.msra.mxu0 %v9561_v62 }
 0x68a   :  { %4911 = vmatprep.subr.bf16.mxu0 %v9571_v10 }
 0x68b   :  { %7236 = vmatpush3.bf16.msra.mxu1 %v7616_v7 }
 0x68c   :  { %7241 = vmatprep.subr.bf16.mxu1 %v8068_v1 }
 0x71f   :  { %v4015_v59 = vpop.f32.mrb[48].mxu0  ;;  %v4058_v9 = vpop.f32.mrb[48].mxu1 }
 0x720   :  { %v4065_v0 = vadd.f32 %v4015_v59, %v3815_v22  ;;  %v4017_v62 = vpop.f32.mrb[49].mxu0  ;;  %v7199_v10 = vpop.f32.mrb[49].mxu1  ;;  %v4093_v57 = vadd.f32 %v9817_v8, %v4058_v9  ;;  %v4126_v59 = vunpack.c.h.bf16 %v6367_v12 }
 0x721   :  { %v4019_v18 = vpop.f32.mrb[50].mxu0  ;;  %v4061_v26 = vpop.f32.mrb[50].mxu1  ;;  %v4079_v21 = vadd.f32 %v4017_v62, %v3816_v53 }
 0x722   :  { %v6359_v58 = vmul.f32 -1.442695, %v4065_v0  ;;  %v4066_v51 = vadd.f32 %v4019_v18, %v3818_v32  ;;  %v4021_v47 = vpop.f32.mrb[51].mxu0  ;;  %v7200_v43 = vpop.f32.mrb[51].mxu1  ;;  %v4094_v14 = vadd.f32 %v9817_v8, %v4061_v26 }
 0x723   :  { %v4080_v48 = vadd.f32 %v4021_v47, %v3819_v39  ;;  %v6361_v24 = vmul.f32 -1.442695, %v4079_v21  ;;  %v4129_v39 = vunpack.c.h.bf16 %v6369_v23  ;;  %v7617_v23 = vld [vmem:[%s10159_s2 + $0xc8] ss:$12 sps:$4 sm:$0xff]  }
 0x724   :  { %7929 = vpow2.f32 %v6359_v58  ;;  %v6360_v19 = vmul.f32 -1.442695, %v4066_v51 }
 0x725   :  { %v6362_v56 = vmul.f32 -1.442695, %v4080_v48 }
 0x726   :  { %7931 = vpow2.f32 %v6360_v19 }
 0x727   :  { %7933 = vpow2.f32 %v6361_v24 }
 0x728   :  { %7935 = vpow2.f32 %v6362_v56 }
 0x72e   :  { %v7930_v37 = vpop.eup %7929 }
 0x72f   :  { %v4073_v27 = vadd.f32 1.0, %v7930_v37 }
 0x730   :  { %v7932_v36 = vpop.eup %7931 }
 0x731   :  { %7937 = vrcp.f32 %v4073_v27  ;;  %v4074_v61 = vadd.f32 1.0, %v7932_v36  ;;  %v7934_v35 = vpop.eup %7933 }
 0x732   :  { %v7936_v25 = vpop.eup %7935  ;;  %v4087_v31 = vadd.f32 1.0, %v7934_v35 }
 0x733   :  { %7939 = vrcp.f32 %v4074_v61  ;;  %v4088_v28 = vadd.f32 1.0, %v7936_v25 }
 0x734   :  { %7941 = vrcp.f32 %v4087_v31 }
 0x735   :  { %7943 = vrcp.f32 %v4088_v28 }
 0x73b   :  { %v7938_v5 = vpop.eup %7937 }
 0x73c   :  { %v4095_v33 = vmul.f32 %v7938_v5, %v4093_v57 }
 0x73d   :  { %v7940_v49 = vpop.eup %7939 }
 0x73e   :  { %v4097_v7 = vadd.f32 %v4095_v33, %v3817_v54  ;;  %v4096_v16 = vmul.f32 %v7940_v49, %v4094_v14  ;;  %v7942_v48 = vpop.eup %7941 }
 0x73f   :  { %v4325_v22 = vpop.f32.mrb[52].mxu0  ;;  %v9824_v32 = vpop.f32.mrb[52].mxu1  ;;  %v4101_v27 = vsub.f32 1.0, %v7942_v48  ;;  %v4105_v25 = vmul.f32 %v7942_v48, %v9598_v13  ;;  %v7632_v48 = vld [vmem:[%s10159_s2 + $0x20] ss:$12 sps:$4 sm:$0xff]  }
 0x740   :  { %7945 = vtanh.f32 %v4097_v7  ;;  %v4098_v9 = vadd.f32 %v4096_v16, %v3820_v3  ;;  %v4375_v53 = vadd.f32 %v4325_v22, %v4125_v17  ;;  %v4327_v0 = vpop.f32.mrb[53].mxu0  ;;  %v7219_v62 = vpop.f32.mrb[53].mxu1  ;;  %v9863_v16 = vld [vmem:[%s10161_s3 + $0x1] ss:$0 sm:$0xff] }
 0x741   :  { %v4329_v10 = vpop.f32.mrb[54].mxu0  ;;  %v9826_v18 = vpop.f32.mrb[54].mxu1  ;;  %v4389_v43 = vadd.f32 %v4327_v0, %v4126_v59 }
 0x742   :  { %7947 = vtanh.f32 %v4098_v9  ;;  %v6427_v26 = vmul.f32 -1.442695, %v4375_v53  ;;  %v4376_v58 = vadd.f32 %v4329_v10, %v4128_v38  ;;  %v4331_v51 = vpop.f32.mrb[55].mxu0  ;;  %v7220_v47 = vpop.f32.mrb[55].mxu1  ;;  %v4403_v38 = vadd.f32 %v9863_v16, %v9824_v32 }
 0x743   :  { %v4390_v19 = vadd.f32 %v4331_v51, %v4129_v39  ;;  %v6429_v24 = vmul.f32 -1.442695, %v4389_v43  ;;  %v7944_v56 = vpop.eup %7943  ;;  %v4404_v53 = vadd.f32 %v9863_v16, %v9826_v18 }
 0x744   :  { %7949 = vpow2.f32 %v6427_v26  ;;  %v6428_v21 = vmul.f32 -1.442695, %v4376_v58  ;;  %v4102_v61 = vsub.f32 1.0, %v7944_v56  ;;  %v4106_v12 = vmul.f32 %v7944_v56, %v9600_v60  ;;  %v7618_v60 = vld [vmem:[%s10159_s2 + $0xe0] ss:$12 sps:$4 sm:$0xff]  }
 0x745   :  { %v6430_v37 = vmul.f32 -1.442695, %v4390_v19  ;;  %v7629_v19 = vld [vmem:[%s10159_s2 + $0x18] ss:$12 sps:$4 sm:$0xff]   ;;  %v7633_v56 = vld [vmem:[%s10159_s2 + $0x30] ss:$12 sps:$4 sm:$0xff]  }
 0x746   :  { %7951 = vpow2.f32 %v6428_v21 }
 0x747   :  { %7953 = vpow2.f32 %v6429_v24  ;;  %v7635_v24 = vld [vmem:[%s10159_s2 + $0x34] ss:$12 sps:$4 sm:$0xff]  }
 0x748   :  { %7955 = vpow2.f32 %v6430_v37  ;;  %v7636_v37 = vld [vmem:[%s10159_s2 + $0x38] ss:$12 sps:$4 sm:$0xff]  }
 0x74a   :  { %v7946_v36 = vpop.eup %7945 }
 0x74b   :  { %v4103_v35 = vmul.f32 %v7946_v36, %v4101_v27  ;;  %v7639_v27 = vld [vmem:[%s10159_s2 + $0x4c] ss:$12 sps:$4 sm:$0xff]   ;;  %v7637_v36 = vld [vmem:[%s10159_s2 + $0x48] ss:$12 sps:$4 sm:$0xff]  }
 0x74c   :  { %v7948_v46 = vpop.eup %7947 }
 0x74d   :  { %v4104_v31 = vmul.f32 %v7948_v46, %v4102_v61  ;;  %v9830_v54 = vadd.f32 %v4105_v25, %v4103_v35  ;;  %v7640_v61 = vld [vmem:[%s10159_s2 + $0x50] ss:$12 sps:$4 sm:$0xff]   ;;  %v7641_v25 = vld [vmem:[%s10159_s2 + $0x60] ss:$12 sps:$4 sm:$0xff]   ;;  %v7644_v46 = vld [vmem:[%s10159_s2 + $0x68] ss:$12 sps:$4 sm:$0xff]  }
 0x74e   :  { %v7950_v57 = vpop.eup %7949  ;;  %v7643_v35 = vld [vmem:[%s10159_s2 + $0x64] ss:$12 sps:$4 sm:$0xff]  }
 0x74f   :  { %v4383_v28 = vadd.f32 1.0, %v7950_v57  ;;  %v9832_v5 = vadd.f32 %v4106_v12, %v4104_v31  ;;  %v7647_v31 = vld [vmem:[%s10159_s2 + $0x7c] ss:$12 sps:$4 sm:$0xff]   ;;  %v7645_v12 = vld [vmem:[%s10159_s2 + $0x78] ss:$12 sps:$4 sm:$0xff]  }
 0x750   :  { %v7952_v3 = vpop.eup %7951  ;;  %v7648_v57 = vld [vmem:[%s10159_s2 + $0x80] ss:$12 sps:$4 sm:$0xff]  }
 0x751   :  { %7957 = vrcp.f32 %v4383_v28  ;;  %v4384_v33 = vadd.f32 1.0, %v7952_v3  ;;  %v4109_v13 = vpack.c.bf16 %v9832_v5, %v9830_v54  ;;  %v7954_v14 = vpop.eup %7953  ;;  %v7651_v28 = vld [vmem:[%s10159_s2 + $0x94] ss:$12 sps:$4 sm:$0xff]   ;;  %v7649_v3 = vld [vmem:[%s10159_s2 + $0x90] ss:$12 sps:$4 sm:$0xff]  }
 0x752   :  { %v7956_v17 = vpop.eup %7955  ;;  %v4397_v49 = vadd.f32 1.0, %v7954_v14  ;;  %v7659_v14 = vld [vmem:[%s10159_s2 + $0xc4] ss:$12 sps:$4 sm:$0xff]  }
 0x753   :  { %7959 = vrcp.f32 %v4384_v33  ;;  %6774 = vst [vmem:[%s10163_s4 + $0x30] sm:$0xff] %v4109_v13   ;;  %4634 = vmatmul.mubr.bf16.vlgmr.msra.gmra.mrb[56].mxu0 %v4109_v13  ;;  %7238 = vmatmul.mubr.bf16.vlgmr.msra.gmra.mrb[56].mxu1 %v4109_v13  ;;  %v4398_v22 = vadd.f32 1.0, %v7956_v17  ;;  %v7655_v33 = vld [vmem:[%s10159_s2 + $0xac] ss:$12 sps:$4 sm:$0xff]   ;;  %v7653_v13 = vld [vmem:[%s10159_s2 + $0xa8] ss:$12 sps:$4 sm:$0xff]  }
 0x754   :  { %4912 = vmatpush1.bf16.msra.mxu0 %v9605_v42  ;;  %7242 = vmatpush3.bf16.msra.mxu1 %v7617_v23  ;;  %v6368_v42 = vld [vmem:[%s10162_s1 + $0x38] ss:$12 sps:$4 sm:$0xff]   ;;  %7961 = vrcp.f32 %v4397_v49  ;;  %v6435_v17 = vld [vmem:[%s10160_s0 + $0xa8] sm:$0xff] }
 0x755   :  { %4913 = vmatprep.subr.bf16.mxu0 %v9615_v4  ;;  %7243 = vmatprep.subr.bf16.mxu1 %v8068_v1  ;;  %v7619_v4 = vld [vmem:[%s10159_s2 + $0xf8] ss:$12 sps:$4 sm:$0xff]   ;;  %v4127_v7 = vunpack.c.l.bf16 %v6368_v42  ;;  %v4130_v9 = vunpack.c.h.bf16 %v6368_v42  ;;  %7963 = vrcp.f32 %v4398_v22  ;;  %v4435_v49 = vunpack.c.l.bf16 %v6435_v17 }
 0x756   :  { %4943 = vmatprep.mubr.bf16.mxu0 %v8069_v2  ;;  %7257 = vmatprep.mubr.msk.bf16.mxu1 %vm8070_vm0, %v8068_v1  ;;  %v7652_v23 = vld [vmem:[%s10159_s2 + $0x98] ss:$12 sps:$4 sm:$0xff]   ;;  %v4436_v22 = vunpack.c.h.bf16 %v6435_v17 }
 0x757   :  { %v6437_v42 = vld [vmem:[%s10160_s0 + $0xb4] sm:$0xff] }
 0x758   :  { %4914 = vmatpush1.bf16.msra.mxu0 %v9624_v34  ;;  %7244 = vmatpush3.bf16.msra.mxu1 %v7618_v60  ;;  %v7656_v60 = vld [vmem:[%s10159_s2 + $0xb0] ss:$12 sps:$4 sm:$0xff]  }
 0x759   :  { %4915 = vmatprep.subr.bf16.mxu0 %v9634_v44  ;;  %7245 = vmatprep.subr.bf16.mxu1 %v8068_v1  ;;  %v7620_v44 = vld [vmem:[%s10159_s2 + $0x110] ss:$12 sps:$4 sm:$0xff]  }
 0x75b   :  { %v7958_v34 = vpop.eup %7957 }
 0x75c   :  { %v4405_v59 = vmul.f32 %v7958_v34, %v4403_v38  ;;  %4916 = vmatpush1.bf16.msra.mxu0 %v9646_v15  ;;  %7246 = vmatpush3.bf16.msra.mxu1 %v7619_v4  ;;  %v7621_v15 = vld [vmem:[%s10159_s2 + $0x128] ss:$12 sps:$4 sm:$0xff]   ;;  %v4438_v4 = vunpack.c.l.bf16 %v6437_v42 }
 0x75d   :  { %v7960_v0 = vpop.eup %7959  ;;  %4917 = vmatprep.subr.bf16.mxu0 %v9656_v45  ;;  %7247 = vmatprep.subr.bf16.mxu1 %v8068_v1  ;;  %v7622_v45 = vld [vmem:[%s10159_s2 + $0x140] ss:$12 sps:$4 sm:$0xff]  }
 0x75e   :  { %v4407_v32 = vadd.f32 %v4405_v59, %v4127_v7  ;;  %v4406_v62 = vmul.f32 %v7960_v0, %v4404_v53  ;;  %v4439_v0 = vunpack.c.h.bf16 %v6437_v42 }
 0x760   :  { %7965 = vtanh.f32 %v4407_v32  ;;  %v4408_v10 = vadd.f32 %v4406_v62, %v4130_v9  ;;  %4918 = vmatpush1.bf16.msra.mxu0 %v9666_v41  ;;  %7248 = vmatpush3.bf16.msra.mxu1 %v7620_v44  ;;  %v7962_v41 = vpop.eup %7961 }
 0x761   :  { %4919 = vmatprep.subr.bf16.mxu0 %v9676_v30  ;;  %7249 = vmatprep.subr.bf16.mxu1 %v8068_v1  ;;  %v7964_v18 = vpop.eup %7963  ;;  %v7623_v30 = vld [vmem:[%s10159_s2 + $0x158] ss:$12 sps:$4 sm:$0xff]  }
 0x762   :  { %7967 = vtanh.f32 %v4408_v10  ;;  %v4412_v26 = vsub.f32 1.0, %v7964_v18  ;;  %v4416_v47 = vmul.f32 %v7964_v18, %v9741_v20  ;;  %v7631_v20 = vld [vmem:[%s10159_s2 + $0x1c] ss:$12 sps:$4 sm:$0xff]  }
 0x764   :  { %4920 = vmatpush1.bf16.msra.mxu0 %v9682_v50  ;;  %7250 = vmatpush3.bf16.msra.mxu1 %v7621_v15  ;;  %v4411_v50 = vsub.f32 1.0, %v7962_v41 }
 0x765   :  { %4921 = vmatprep.subr.bf16.mxu0 %v9692_v63  ;;  %7251 = vmatprep.subr.bf16.mxu1 %v8068_v1  ;;  %v4415_v63 = vmul.f32 %v7962_v41, %v9739_v11  ;;  %v7628_v11 = vld [vmem:[%s10159_s2 + $0x8] ss:$12 sps:$4 sm:$0xff]  }
 0x768   :  { %4922 = vmatpush1.bf16.msra.mxu0 %v9698_v6  ;;  %7252 = vmatpush3.bf16.msra.mxu1 %v7622_v45  ;;  %v7624_v6 = vld [vmem:[%s10159_s2 + $0x170] ss:$12 sps:$4 sm:$0xff]  }
 0x769   :  { %4923 = vmatprep.subr.bf16.mxu0 %v9708_v55  ;;  %7253 = vmatprep.subr.bf16.mxu1 %v8068_v1 }
 0x76a   :  { %v7966_v39 = vpop.eup %7965 }
 0x76b   :  { %v4413_v58 = vmul.f32 %v7966_v39, %v4411_v50 }
 0x76c   :  { %v7968_v51 = vpop.eup %7967  ;;  %4924 = vmatpush1.bf16.msra.mxu0 %v9714_v52  ;;  %7254 = vmatpush3.bf16.msra.mxu1 %v7623_v30 }
 0x76d   :  { %4925 = vmatprep.subr.bf16.mxu0 %v9724_v29  ;;  %7255 = vmatprep.subr.bf16.mxu1 %v8068_v1  ;;  %v4414_v55 = vmul.f32 %v7968_v51, %v4412_v26  ;;  %v9901_v43 = vadd.f32 %v4415_v63, %v4413_v58  ;;  %v7627_v29 = vld [vmem:[%s10159_s2 + $0x4] ss:$12 sps:$4 sm:$0xff]  }
 0x76f   :  { %v9903_v21 = vadd.f32 %v4416_v47, %v4414_v55  ;;  %v6436_v55 = vld [vmem:[%s10160_s0 + $0xb0] ss:$12 sps:$4 sm:$0xff]  }
 0x770   :  { %4926 = vmatpush1.bf16.msra.mxu0 %v9731_v40  ;;  %7256 = vmatpush3.bf16.msra.mxu1 %v7624_v6  ;;  %v7625_v40 = vld [vmem:[%s10159_s2] ss:$12 sps:$4 sm:$0xff]  }
 0x771   :  { %v4419_v52 = vpack.c.bf16 %v9903_v21, %v9901_v43  ;;  %7261 = vmatprep.subr.bf16.mxu1 %v8068_v1  ;;  %5221 = vmatprep.subr.bf16.mxu0 %v7627_v29  ;;  %v4437_v29 = vunpack.c.l.bf16 %v6436_v55 }
 0x773   :  { %6775 = vst [vmem:[%s10164_s5 + $0x10] sm:$0xff] %v4419_v52   ;;  %4944 = vmatmul.mubr.bf16.vlgmr.msra.gmra.mrb[60].mxu0 %v4419_v52  ;;  %7258 = vmatmul.mubr.bf16.vlgmr.msra.gmra.mrb[60].mxu1 %v4419_v52  ;;  %v6471_v52 = vld [vmem:[%s10162_s1 + $0x18] sm:$0xff] }
 0x774   :  { %5253 = vmatprep.mubr.bf16.mxu0 %v8069_v2  ;;  %7277 = vmatprep.mubr.msk.bf16.mxu1 %vm8070_vm0, %v8068_v1 }
 0x775   :  { %5222 = vmatpush1.bf16.msra.mxu0 %v7625_v40  ;;  %7262 = vmatpush3.bf16.msra.mxu1 %v7628_v11 }
 0x776   :  { %7263 = vmatprep.subr.bf16.mxu1 %v8068_v1  ;;  %5223 = vmatprep.subr.bf16.mxu0 %v7631_v20 }
 0x779   :  { %5224 = vmatpush1.bf16.msra.mxu0 %v7629_v19  ;;  %7264 = vmatpush3.bf16.msra.mxu1 %v7632_v48  ;;  %v4440_v19 = vunpack.c.h.bf16 %v6436_v55  ;;  %v6473_v48 = vld [vmem:[%s10162_s1 + $0x24] sm:$0xff]  ;;  %v7667_v55 = vld [vmem:[%s10159_s2 + $0xf4] ss:$12 sps:$4 sm:$0xff]  }
 0x77a   :  { %7265 = vmatprep.subr.bf16.mxu1 %v8068_v1  ;;  %5225 = vmatprep.subr.bf16.mxu0 %v7635_v24 }
 0x77d   :  { %5226 = vmatpush1.bf16.msra.mxu0 %v7633_v56  ;;  %7266 = vmatpush3.bf16.msra.mxu1 %v7636_v37  ;;  %v4745_v37 = vunpack.c.l.bf16 %v6471_v52 }
 0x77e   :  { %7267 = vmatprep.subr.bf16.mxu1 %v8068_v1  ;;  %5227 = vmatprep.subr.bf16.mxu0 %v7639_v27 }
 0x781   :  { %5228 = vmatpush1.bf16.msra.mxu0 %v7637_v36  ;;  %7268 = vmatpush3.bf16.msra.mxu1 %v7640_v61 }
 0x782   :  { %7269 = vmatprep.subr.bf16.mxu1 %v8068_v1  ;;  %5229 = vmatprep.subr.bf16.mxu0 %v7643_v35  ;;  %v4748_v35 = vunpack.c.l.bf16 %v6473_v48 }
 0x785   :  { %5230 = vmatpush1.bf16.msra.mxu0 %v7641_v25  ;;  %7270 = vmatpush3.bf16.msra.mxu1 %v7644_v46 }
 0x786   :  { %7271 = vmatprep.subr.bf16.mxu1 %v8068_v1  ;;  %5231 = vmatprep.subr.bf16.mxu0 %v7647_v31  ;;  %v4746_v31 = vunpack.c.h.bf16 %v6471_v52  ;;  %v6472_v52 = vld [vmem:[%s10162_s1 + $0x20] ss:$12 sps:$4 sm:$0xff]  }
 0x789   :  { %5232 = vmatpush1.bf16.msra.mxu0 %v7645_v12  ;;  %7272 = vmatpush3.bf16.msra.mxu1 %v7648_v57 }
 0x78a   :  { %7273 = vmatprep.subr.bf16.mxu1 %v8068_v1  ;;  %5233 = vmatprep.subr.bf16.mxu0 %v7651_v28 }
 0x78d   :  { %5234 = vmatpush1.bf16.msra.mxu0 %v7649_v3  ;;  %7274 = vmatpush3.bf16.msra.mxu1 %v7652_v23 }
 0x78e   :  { %7275 = vmatprep.subr.bf16.mxu1 %v8068_v1  ;;  %5235 = vmatprep.subr.bf16.mxu0 %v7655_v33 }
 0x791   :  { %5236 = vmatpush1.bf16.msra.mxu0 %v7653_v13  ;;  %7276 = vmatpush3.bf16.msra.mxu1 %v7656_v60  ;;  %v4749_v13 = vunpack.c.h.bf16 %v6473_v48 }
 0x792   :  { %7281 = vmatprep.subr.bf16.mxu1 %v8068_v1  ;;  %5530 = vmatprep.subr.bf16.mxu0 %v7659_v14 }
 0x826   :  { %v4635_v7 = vpop.f32.mrb[56].mxu0  ;;  %v4678_v38 = vpop.f32.mrb[56].mxu1 }
 0x827   :  { %v4685_v34 = vadd.f32 %v4635_v7, %v4435_v49  ;;  %v4637_v59 = vpop.f32.mrb[57].mxu0  ;;  %v7239_v9 = vpop.f32.mrb[57].mxu1  ;;  %v4713_v40 = vadd.f32 %v9817_v8, %v4678_v38 }
 0x828   :  { %v4639_v53 = vpop.f32.mrb[58].mxu0  ;;  %v4681_v44 = vpop.f32.mrb[58].mxu1  ;;  %v4699_v45 = vadd.f32 %v4637_v59, %v4436_v22 }
 0x829   :  { %v6463_v32 = vmul.f32 -1.442695, %v4685_v34  ;;  %v4686_v62 = vadd.f32 %v4639_v53, %v4438_v4  ;;  %v4641_v10 = vpop.f32.mrb[59].mxu0  ;;  %v7240_v15 = vpop.f32.mrb[59].mxu1  ;;  %v4714_v56 = vadd.f32 %v9817_v8, %v4681_v44 }
 0x82a   :  { %v4700_v18 = vadd.f32 %v4641_v10, %v4439_v0  ;;  %v6465_v30 = vmul.f32 -1.442695, %v4699_v45 }
 0x82b   :  { %7969 = vpow2.f32 %v6463_v32  ;;  %v6464_v41 = vmul.f32 -1.442695, %v4686_v62 }
 0x82c   :  { %v6466_v50 = vmul.f32 -1.442695, %v4700_v18 }
 0x82d   :  { %7971 = vpow2.f32 %v6464_v41 }
 0x82e   :  { %7973 = vpow2.f32 %v6465_v30 }
 0x82f   :  { %7975 = vpow2.f32 %v6466_v50 }
 0x835   :  { %v7970_v39 = vpop.eup %7969 }
 0x836   :  { %v4693_v26 = vadd.f32 1.0, %v7970_v39  ;;  %v7657_v39 = vld [vmem:[%s10159_s2 + $0xc0] ss:$12 sps:$4 sm:$0xff]  }
 0x837   :  { %v7972_v58 = vpop.eup %7971 }
 0x838   :  { %7977 = vrcp.f32 %v4693_v26  ;;  %v4694_v63 = vadd.f32 1.0, %v7972_v58  ;;  %v7974_v51 = vpop.eup %7973  ;;  %v7663_v58 = vld [vmem:[%s10159_s2 + $0xdc] ss:$12 sps:$4 sm:$0xff]  }
 0x839   :  { %v7976_v6 = vpop.eup %7975  ;;  %v4707_v47 = vadd.f32 1.0, %v7974_v51  ;;  %v7664_v51 = vld [vmem:[%s10159_s2 + $0xe0] ss:$12 sps:$4 sm:$0xff]  }
 0x83a   :  { %7979 = vrcp.f32 %v4694_v63  ;;  %v4708_v11 = vadd.f32 1.0, %v7976_v6  ;;  %v7661_v63 = vld [vmem:[%s10159_s2 + $0xd8] ss:$12 sps:$4 sm:$0xff]  }
 0x83b   :  { %7981 = vrcp.f32 %v4707_v47 }
 0x83c   :  { %7983 = vrcp.f32 %v4708_v11  ;;  %v7668_v11 = vld [vmem:[%s10159_s2 + $0xf8] ss:$12 sps:$4 sm:$0xff]  }
 0x842   :  { %v7978_v20 = vpop.eup %7977 }
 0x843   :  { %v4715_v24 = vmul.f32 %v7978_v20, %v4713_v40  ;;  %v7665_v40 = vld [vmem:[%s10159_s2 + $0xf0] ss:$12 sps:$4 sm:$0xff]   ;;  %v4747_v20 = vunpack.c.l.bf16 %v6472_v52 }
 0x844   :  { %v7980_v27 = vpop.eup %7979 }
 0x845   :  { %v4717_v36 = vadd.f32 %v4715_v24, %v4437_v29  ;;  %v4716_v61 = vmul.f32 %v7980_v27, %v4714_v56  ;;  %v7982_v38 = vpop.eup %7981 }
 0x846   :  { %v4945_v25 = vpop.f32.mrb[60].mxu0  ;;  %v10015_v46 = vpop.f32.mrb[60].mxu1  ;;  %v4721_v9 = vsub.f32 1.0, %v7982_v38  ;;  %v4725_v32 = vmul.f32 %v7982_v38, %v9830_v54  ;;  %v7660_v54 = vld [vmem:[%s10159_s2 + $0xc8] ss:$12 sps:$4 sm:$0xff]  }
 0x847   :  { %7985 = vtanh.f32 %v4717_v36  ;;  %v4718_v12 = vadd.f32 %v4716_v61, %v4440_v19  ;;  %v4995_v57 = vadd.f32 %v4945_v25, %v4745_v37  ;;  %v4947_v28 = vpop.f32.mrb[61].mxu0  ;;  %v7259_v3 = vpop.f32.mrb[61].mxu1  ;;  %v5023_v19 = vadd.f32 %v9863_v16, %v10015_v46  ;;  %v7669_v36 = vld [vmem:[%s10159_s2 + $0x108] ss:$12 sps:$4 sm:$0xff]   ;;  %v7672_v61 = vld [vmem:[%s10159_s2 + $0x110] ss:$12 sps:$4 sm:$0xff]  }
 0x848   :  { %v4949_v23 = vpop.f32.mrb[62].mxu0  ;;  %v10017_v33 = vpop.f32.mrb[62].mxu1  ;;  %v5009_v49 = vadd.f32 %v4947_v28, %v4746_v31  ;;  %v4750_v37 = vunpack.c.h.bf16 %v6472_v52  ;;  %v7675_v25 = vld [vmem:[%s10159_s2 + $0x124] ss:$12 sps:$4 sm:$0xff]   ;;  %v7676_v28 = vld [vmem:[%s10159_s2 + $0x128] ss:$12 sps:$4 sm:$0xff]  }
 0x849   :  { %7987 = vtanh.f32 %v4718_v12  ;;  %v6531_v60 = vmul.f32 -1.442695, %v4995_v57  ;;  %v4996_v14 = vadd.f32 %v4949_v23, %v4748_v35  ;;  %v4951_v17 = vpop.f32.mrb[63].mxu0  ;;  %v7260_v42 = vpop.f32.mrb[63].mxu1  ;;  %v5024_v27 = vadd.f32 %v9863_v16, %v10017_v33  ;;  %v7673_v57 = vld [vmem:[%s10159_s2 + $0x120] ss:$12 sps:$4 sm:$0xff]  }
 0x84a   :  { %v5010_v7 = vadd.f32 %v4951_v17, %v4749_v13  ;;  %v6533_v22 = vmul.f32 -1.442695, %v5009_v49  ;;  %v7984_v34 = vpop.eup %7983  ;;  %v7679_v3 = vld [vmem:[%s10159_s2 + $0x13c] ss:$12 sps:$4 sm:$0xff]   ;;  %v7677_v23 = vld [vmem:[%s10159_s2 + $0x138] ss:$12 sps:$4 sm:$0xff]  }
 0x84b   :  { %7989 = vpow2.f32 %v6531_v60  ;;  %v6532_v4 = vmul.f32 -1.442695, %v4996_v14  ;;  %v4722_v44 = vsub.f32 1.0, %v7984_v34  ;;  %v4726_v15 = vmul.f32 %v7984_v34, %v9832_v5  ;;  %v7680_v33 = vld [vmem:[%s10159_s2 + $0x140] ss:$12 sps:$4 sm:$0xff]  }
 0x84c   :  { %v6534_v59 = vmul.f32 -1.442695, %v5010_v7  ;;  %v7683_v13 = vld [vmem:[%s10159_s2 + $0x154] ss:$12 sps:$4 sm:$0xff]   ;;  %v7681_v17 = vld [vmem:[%s10159_s2 + $0x150] ss:$12 sps:$4 sm:$0xff]  }
 0x84d   :  { %7991 = vpow2.f32 %v6532_v4  ;;  %v7684_v42 = vld [vmem:[%s10159_s2 + $0x158] ss:$12 sps:$4 sm:$0xff]  }
 0x84e   :  { %7993 = vpow2.f32 %v6533_v22  ;;  %v7687_v49 = vld [vmem:[%s10159_s2 + $0x16c] ss:$12 sps:$4 sm:$0xff]  }
 0x84f   :  { %7995 = vpow2.f32 %v6534_v59 }
 0x851   :  { %v7986_v53 = vpop.eup %7985 }
 0x852   :  { %v4723_v0 = vmul.f32 %v7986_v53, %v4721_v9  ;;  %v7685_v9 = vld [vmem:[%s10159_s2 + $0x168] ss:$12 sps:$4 sm:$0xff]   ;;  %v7688_v53 = vld [vmem:[%s10159_s2 + $0x170] ss:$12 sps:$4 sm:$0xff]  }
 0x853   :  { %v7988_v62 = vpop.eup %7987 }
 0x854   :  { %v4724_v10 = vmul.f32 %v7988_v62, %v4722_v44  ;;  %v10021_v45 = vadd.f32 %v4725_v32, %v4723_v0 }
 0x855   :  { %v7990_v41 = vpop.eup %7989 }
 0x856   :  { %v5003_v18 = vadd.f32 1.0, %v7990_v41  ;;  %v10023_v30 = vadd.f32 %v4726_v15, %v4724_v10 }
 0x857   :  { %v7992_v50 = vpop.eup %7991 }
 0x858   :  { %7997 = vrcp.f32 %v5003_v18  ;;  %v5004_v26 = vadd.f32 1.0, %v7992_v50  ;;  %v4729_v5 = vpack.c.bf16 %v10023_v30, %v10021_v45  ;;  %v7994_v6 = vpop.eup %7993 }
 0x859   :  { %v7996_v47 = vpop.eup %7995  ;;  %v5017_v29 = vadd.f32 1.0, %v7994_v6 }
 0x85a   :  { %7999 = vrcp.f32 %v5004_v26  ;;  %6776 = vst [vmem:[%s10163_s4 + $0x38] sm:$0xff] %v4729_v5   ;;  %5254 = vmatmul.mubr.bf16.vlgmr.msra.gmra.mrb[64].mxu0 %v4729_v5  ;;  %7278 = vmatmul.mubr.bf16.vlgmr.msra.gmra.mrb[64].mxu1 %v4729_v5  ;;  %v5018_v48 = vadd.f32 1.0, %v7996_v47 }
 0x85b   :  { %5531 = vmatpush1.bf16.msra.mxu0 %v7657_v39  ;;  %7282 = vmatpush3.bf16.msra.mxu1 %v7660_v54  ;;  %8001 = vrcp.f32 %v5017_v29 }
 0x85c   :  { %5532 = vmatprep.subr.bf16.mxu0 %v7663_v58  ;;  %7283 = vmatprep.subr.bf16.mxu1 %v8068_v1  ;;  %8003 = vrcp.f32 %v5018_v48 }
 0x85d   :  { %5562 = vmatprep.mubr.bf16.mxu0 %v8069_v2  ;;  %7297 = vmatprep.mubr.msk.bf16.mxu1 %vm8070_vm0, %v8068_v1  ;;  %v7671_v2 = vld [vmem:[%s10159_s2 + $0x10c] ss:$12 sps:$4 sm:$0xff]  }
 0x85f   :  { %5533 = vmatpush1.bf16.msra.mxu0 %v7661_v63  ;;  %7284 = vmatpush3.bf16.msra.mxu1 %v7664_v51 }
 0x860   :  { %5534 = vmatprep.subr.bf16.mxu0 %v7667_v55  ;;  %7285 = vmatprep.subr.bf16.mxu1 %v8068_v1 }
 0x862   :  { %v7998_v24 = vpop.eup %7997 }
 0x863   :  { %v5025_v56 = vmul.f32 %v7998_v24, %v5023_v19  ;;  %5535 = vmatpush1.bf16.msra.mxu0 %v7665_v40  ;;  %7286 = vmatpush3.bf16.msra.mxu1 %v7668_v11 }
 0x864   :  { %v8000_v35 = vpop.eup %7999  ;;  %5536 = vmatprep.subr.bf16.mxu0 %v7671_v2  ;;  %7287 = vmatprep.subr.bf16.mxu1 %v8068_v1 }
 0x865   :  { %v5027_v46 = vadd.f32 %v5025_v56, %v4747_v20  ;;  %v5026_v31 = vmul.f32 %v8000_v35, %v5024_v27  ;;  %v8002_v60 = vpop.eup %8001  ;;  %v6540_v27 = vld [vmem:[%s10160_s0 + $0xc8] ss:$12 sps:$4 sm:$0xff]  }
 0x866   :  { %v8004_v14 = vpop.eup %8003  ;;  %v5031_v4 = vsub.f32 1.0, %v8002_v60  ;;  %v5035_v34 = vmul.f32 %v8002_v60, %v9901_v43  ;;  %v5057_v35 = vunpack.c.l.bf16 %v6540_v27 }
 0x867   :  { %8005 = vtanh.f32 %v5027_v46  ;;  %v5028_v12 = vadd.f32 %v5026_v31, %v4750_v37  ;;  %5537 = vmatpush1.bf16.msra.mxu0 %v7669_v36  ;;  %7288 = vmatpush3.bf16.msra.mxu1 %v7672_v61  ;;  %v5032_v38 = vsub.f32 1.0, %v8004_v14  ;;  %v5036_v0 = vmul.f32 %v8004_v14, %v9903_v21  ;;  %v6541_v21 = vld [vmem:[%s10160_s0 + $0xcc] sm:$0xff]  ;;  %v5360_v61 = vld [vmem:[%s10162_s1] sm:$0xff] }
 0x868   :  { %5538 = vmatprep.subr.bf16.mxu0 %v7675_v25  ;;  %7289 = vmatprep.subr.bf16.mxu1 %v8068_v1  ;;  %v5058_v15 = vunpack.c.l.bf16 %v6541_v21  ;;  %v5059_v63 = vunpack.c.h.bf16 %v6541_v21 }
 0x869   :  { %8007 = vtanh.f32 %v5028_v12  ;;  %v5060_v12 = vunpack.c.h.bf16 %v6540_v27 }
 0x86b   :  { %5539 = vmatpush1.bf16.msra.mxu0 %v7673_v57  ;;  %7290 = vmatpush3.bf16.msra.mxu1 %v7676_v28  ;;  %v5362_v57 = vld [vmem:[%s10162_s1 + $0xc] sm:$0xff] }
 0x86c   :  { %5540 = vmatprep.subr.bf16.mxu0 %v7679_v3  ;;  %7291 = vmatprep.subr.bf16.mxu1 %v8068_v1  ;;  %v5367_v14 = vunpack.c.l.bf16 %v5362_v57 }
 0x86f   :  { %5541 = vmatpush1.bf16.msra.mxu0 %v7677_v23  ;;  %7292 = vmatpush3.bf16.msra.mxu1 %v7680_v33  ;;  %v5364_v23 = vunpack.c.l.bf16 %v5360_v61 }
 0x870   :  { %5542 = vmatprep.subr.bf16.mxu0 %v7683_v13  ;;  %7293 = vmatprep.subr.bf16.mxu1 %v8068_v1 }
 0x871   :  { %v8006_v7 = vpop.eup %8005 }
 0x872   :  { %v5033_v22 = vmul.f32 %v8006_v7, %v5031_v4 }
 0x873   :  { %v8008_v59 = vpop.eup %8007  ;;  %5543 = vmatpush1.bf16.msra.mxu0 %v7681_v17  ;;  %7294 = vmatpush3.bf16.msra.mxu1 %v7684_v42 }
 0x874   :  { %5544 = vmatprep.subr.bf16.mxu0 %v7687_v49  ;;  %7295 = vmatprep.subr.bf16.mxu1 %v8068_v1  ;;  %v5034_v44 = vmul.f32 %v8008_v59, %v5032_v38  ;;  %v10118_v32 = vadd.f32 %v5035_v34, %v5033_v22  ;;  %v6539_v1 = vld [vmem:[%s10160_s0 + $0xc0] sm:$0xff]  ;;  %v5365_v49 = vunpack.c.h.bf16 %v5360_v61 }
 0x875   :  { %v5055_v10 = vunpack.c.l.bf16 %v6539_v1  ;;  %v5056_v50 = vunpack.c.h.bf16 %v6539_v1 }
 0x876   :  { %v10120_v43 = vadd.f32 %v5036_v0, %v5034_v44 }
 0x877   :  { %5545 = vmatpush1.bf16.msra.mxu0 %v7685_v9  ;;  %7296 = vmatpush3.bf16.msra.mxu1 %v7688_v53  ;;  %v5368_v9 = vunpack.c.h.bf16 %v5362_v57 }
 0x878   :  { %v5039_v62 = vpack.c.bf16 %v10120_v43, %v10118_v32 }
 0x87a   :  { %6777 = vst [vmem:[%s10164_s5 + $0x8] sm:$0xff] %v5039_v62   ;;  %5563 = vmatmul.mubr.bf16.vlgmr.msra.gmra.mrb[68].mxu0 %v5039_v62  ;;  %7298 = vmatmul.mubr.bf16.vlgmr.msra.gmra.mrb[68].mxu1 %v5039_v62 }
 0x92d   :  { %v5255_v41 = vpop.f32.mrb[64].mxu0  ;;  %v5298_v18 = vpop.f32.mrb[64].mxu1 }
 0x92e   :  { %v5305_v39 = vadd.f32 %v5255_v41, %v5055_v10  ;;  %v5257_v54 = vpop.f32.mrb[65].mxu0  ;;  %v7279_v26 = vpop.f32.mrb[65].mxu1  ;;  %v5333_v25 = vadd.f32 %v9817_v8, %v5298_v18 }
 0x92f   :  { %v5259_v5 = vpop.f32.mrb[66].mxu0  ;;  %v5301_v58 = vpop.f32.mrb[66].mxu1  ;;  %v5319_v52 = vadd.f32 %v5257_v54, %v5056_v50 }
 0x930   :  { %v6567_v51 = vmul.f32 -1.442695, %v5305_v39  ;;  %v5306_v6 = vadd.f32 %v5259_v5, %v5058_v15  ;;  %v5261_v55 = vpop.f32.mrb[67].mxu0  ;;  %v7280_v47 = vpop.f32.mrb[67].mxu1  ;;  %v5334_v3 = vadd.f32 %v9817_v8, %v5301_v58 }
 0x931   :  { %v5320_v40 = vadd.f32 %v5261_v55, %v5059_v63  ;;  %v6569_v11 = vmul.f32 -1.442695, %v5319_v52 }
 0x932   :  { %8009 = vpow2.f32 %v6567_v51  ;;  %v6568_v29 = vmul.f32 -1.442695, %v5306_v6 }
 0x933   :  { %v6570_v2 = vmul.f32 -1.442695, %v5320_v40 }
 0x934   :  { %8011 = vpow2.f32 %v6568_v29 }
 0x935   :  { %8013 = vpow2.f32 %v6569_v11 }
 0x936   :  { %8015 = vpow2.f32 %v6570_v2 }
 0x93c   :  { %v8010_v20 = vpop.eup %8009 }
 0x93d   :  { %v5313_v19 = vadd.f32 1.0, %v8010_v20  ;;  %v5361_v20 = vld [vmem:[%s10162_s1 + $0x8] ss:$12 sps:$4 sm:$0xff]  }
 0x93e   :  { %v8012_v48 = vpop.eup %8011  ;;  %v5369_v27 = vunpack.c.h.bf16 %v5361_v20 }
 0x93f   :  { %8017 = vrcp.f32 %v5313_v19  ;;  %v5314_v24 = vadd.f32 1.0, %v8012_v48  ;;  %v8014_v56 = vpop.eup %8013  ;;  %v5366_v19 = vunpack.c.l.bf16 %v5361_v20 }
 0x940   :  { %v8016_v37 = vpop.eup %8015  ;;  %v5327_v36 = vadd.f32 1.0, %v8014_v56 }
 0x941   :  { %8019 = vrcp.f32 %v5314_v24  ;;  %v5328_v46 = vadd.f32 1.0, %v8016_v37 }
 0x942   :  { %8021 = vrcp.f32 %v5327_v36 }
 0x943   :  { %8023 = vrcp.f32 %v5328_v46 }
 0x949   :  { %v8018_v31 = vpop.eup %8017 }
 0x94a   :  { %v5335_v28 = vmul.f32 %v8018_v31, %v5333_v25 }
 0x94b   :  { %v8020_v33 = vpop.eup %8019 }
 0x94c   :  { %v5337_v13 = vadd.f32 %v5335_v28, %v5057_v35  ;;  %v5336_v60 = vmul.f32 %v8020_v33, %v5334_v3  ;;  %v8022_v10 = vpop.eup %8021 }
 0x94d   :  { %v5564_v17 = vpop.f32.mrb[68].mxu0  ;;  %v5607_v42 = vpop.f32.mrb[68].mxu1  ;;  %v5341_v18 = vsub.f32 1.0, %v8022_v10  ;;  %v5345_v26 = vmul.f32 %v8022_v10, %v10021_v45 }
 0x94e   :  { %8025 = vtanh.f32 %v5337_v13  ;;  %v5338_v4 = vadd.f32 %v5336_v60, %v5060_v12  ;;  %v5614_v7 = vadd.f32 %v5564_v17, %v5364_v23  ;;  %v5566_v38 = vpop.f32.mrb[69].mxu0  ;;  %v7299_v22 = vpop.f32.mrb[69].mxu1  ;;  %v5642_v48 = vadd.f32 %v9863_v16, %v5607_v42 }
 0x94f   :  { %v5568_v34 = vpop.f32.mrb[70].mxu0  ;;  %v5610_v59 = vpop.f32.mrb[70].mxu1  ;;  %v5628_v62 = vadd.f32 %v5566_v38, %v5365_v49 }
 0x950   :  { %8027 = vtanh.f32 %v5338_v4  ;;  %v6631_v53 = vmul.f32 -1.442695, %v5614_v7  ;;  %v5615_v8 = vadd.f32 %v5568_v34, %v5367_v14  ;;  %v5570_v44 = vpop.f32.mrb[71].mxu0  ;;  %v7300_v0 = vpop.f32.mrb[71].mxu1  ;;  %v5643_v36 = vadd.f32 %v9863_v16, %v5610_v59 }
 0x951   :  { %v5629_v21 = vadd.f32 %v5570_v44, %v5368_v9  ;;  %v6633_v15 = vmul.f32 -1.442695, %v5628_v62  ;;  %v8024_v41 = vpop.eup %8023 }
 0x952   :  { %8029 = vpow2.f32 %v6631_v53  ;;  %v6632_v1 = vmul.f32 -1.442695, %v5615_v8  ;;  %v5342_v5 = vsub.f32 1.0, %v8024_v41  ;;  %v5346_v6 = vmul.f32 %v8024_v41, %v10023_v30 }
 0x953   :  { %v6634_v50 = vmul.f32 -1.442695, %v5629_v21 }
 0x954   :  { %8031 = vpow2.f32 %v6632_v1 }
 0x955   :  { %8033 = vpow2.f32 %v6633_v15 }
 0x956   :  { %8035 = vpow2.f32 %v6634_v50 }
 0x958   :  { %v8026_v39 = vpop.eup %8025 }
 0x959   :  { %v5343_v54 = vmul.f32 %v8026_v39, %v5341_v18 }
 0x95a   :  { %v8028_v58 = vpop.eup %8027 }
 0x95b   :  { %v5347_v63 = vadd.f32 %v5345_v26, %v5343_v54  ;;  %v5344_v51 = vmul.f32 %v8028_v58, %v5342_v5 }
 0x95c   :  { %v8030_v55 = vpop.eup %8029 }
 0x95d   :  { %v5348_v47 = vadd.f32 %v5346_v6, %v5344_v51  ;;  %v5622_v52 = vadd.f32 1.0, %v8030_v55 }
 0x95e   :  { %v8032_v29 = vpop.eup %8031 }
 0x95f   :  { %v6756_v40 = vpack.c.bf16 %v5348_v47, %v5347_v63  ;;  %8037 = vrcp.f32 %v5622_v52  ;;  %v5623_v11 = vadd.f32 1.0, %v8032_v29  ;;  %v8034_v45 = vpop.eup %8033 }
 0x960   :  { %v8036_v2 = vpop.eup %8035  ;;  %v5636_v30 = vadd.f32 1.0, %v8034_v45 }
 0x961   :  { %6778 = vst [vmem:[%s10163_s4 + $0x40] sm:$0xff] %v6756_v40   ;;  %8039 = vrcp.f32 %v5623_v11  ;;  %v5637_v24 = vadd.f32 1.0, %v8036_v2 }
 0x962   :  { %8041 = vrcp.f32 %v5636_v30 }
 0x963   :  { %8043 = vrcp.f32 %v5637_v24 }
 0x969   :  { %v8038_v56 = vpop.eup %8037 }
 0x96a   :  { %v5644_v37 = vmul.f32 %v8038_v56, %v5642_v48 }
 0x96b   :  { %v8040_v61 = vpop.eup %8039 }
 0x96c   :  { %v5646_v35 = vadd.f32 %v5644_v37, %v5366_v19  ;;  %v5645_v25 = vmul.f32 %v8040_v61, %v5643_v36  ;;  %v8042_v31 = vpop.eup %8041 }
 0x96d   :  { %v8044_v12 = vpop.eup %8043  ;;  %v5650_v57 = vsub.f32 1.0, %v8042_v31  ;;  %v5654_v23 = vmul.f32 %v8042_v31, %v10118_v32 }
 0x96e   :  { %8045 = vtanh.f32 %v5646_v35  ;;  %v5647_v46 = vadd.f32 %v5645_v25, %v5369_v27  ;;  %v5651_v33 = vsub.f32 1.0, %v8044_v12  ;;  %v5655_v16 = vmul.f32 %v8044_v12, %v10120_v43 }
 0x970   :  { %8047 = vtanh.f32 %v5647_v46 }
 0x978   :  { %v8046_v28 = vpop.eup %8045 }
 0x979   :  { %v5652_v3 = vmul.f32 %v8046_v28, %v5650_v57 }
 0x97a   :  { %v8048_v13 = vpop.eup %8047 }
 0x97b   :  { %v5656_v60 = vadd.f32 %v5654_v23, %v5652_v3  ;;  %v5653_v14 = vmul.f32 %v8048_v13, %v5651_v33 }
 0x97d   :  { %v5657_v17 = vadd.f32 %v5655_v16, %v5653_v14 }
 0x97f   :  { %v6761_v42 = vpack.c.bf16 %v5657_v17, %v5656_v60 }
 0x981   :  { %6762 = vst [vmem:[%s10164_s5] sm:$0xff] %v6761_v42  }

</bundles_post_ra>
